<compile_context>
chip_gen: v6e
topology: v6e:2x2x1
jax: 0.10.0
libtpu: 0.0.40
codegen_flags: <defaults>
</compile_context>

<pallas_src>
import jax
import jax.numpy as jnp
from jax import lax
from jax.experimental import pallas as pl
from jax.experimental.pallas import tpu as pltpu

# ----------------------------- problem sizes -------------------------------
B = 8            # batch (T = B*S >= 128 per perf review)
S = 16           # sequence length (tokens / merged words)
E = 32           # encoder_output_dim (hidden size)
H = 4            # self_attention_heads
DH = E // H      # head dim
F = 64           # BERT FFN intermediate size
T = B * S        # flattened token axis (128)
VOCAB = 50
LN_EPS = 1e-12
SCALE = 1.0 / (DH ** 0.5)
NEG = -1e9
SEG = 128        # lane-aligned segment stride inside the packed weight slab


# ----------------------------- in-kernel helpers ---------------------------
def _layernorm(x, g, b, eps=LN_EPS):
    mu = jnp.mean(x, axis=-1, keepdims=True)
    xc = x - mu
    var = jnp.mean(xc * xc, axis=-1, keepdims=True)
    return xc * lax.rsqrt(var + eps) * g + b


def _attention(x, add_neg, wqkv, bqkv, wo, bo):
    """Multi-head self-attention on the flattened (T, E) token matrix.

      x: (T, E)          add_neg: (T, T) additive mask (block-diag batch +
                                  key padding, -1e9 where masked)
      wqkv: (E, 3E)      bqkv: (1, 3E)
      wo: (E, E)         bo: (1, E)
    """
    qkv = jnp.dot(x, wqkv, preferred_element_type=jnp.float32) + bqkv   # (T, 3E)
    ctx_heads = []
    for h in range(H):                                                  # H=4, static
        qh = qkv[:, h * DH:(h + 1) * DH]                                # (T, DH)
        kh = qkv[:, E + h * DH:E + (h + 1) * DH]
        vh = qkv[:, 2 * E + h * DH:2 * E + (h + 1) * DH]
        # s = qh @ kh^T  (NT contraction, no explicit transpose op)
        s = lax.dot_general(qh, kh, (((1,), (1,)), ((), ())),
                            preferred_element_type=jnp.float32) * SCALE
        s = s + add_neg
        s = s - jnp.max(s, axis=-1, keepdims=True)
        p = jnp.exp(s)
        p = p / jnp.sum(p, axis=-1, keepdims=True)                      # exact softmax
        ctx_heads.append(jnp.dot(p, vh, preferred_element_type=jnp.float32))
    ctx = jnp.concatenate(ctx_heads, axis=1)                            # (T, E)
    # fused head reduction inside the single out-projection matmul
    return jnp.dot(ctx, wo, preferred_element_type=jnp.float32) + bo


# ----------------------------- fused Pallas kernel --------------------------
def encoder_fused_kernel(x_ref,      # (T, E)     f32  word+pos embeddings (flattened)
                         masks_ref,  # (3, T, T)  f32  [bert attn mask, mha key-pad mask,
                                     #                  exact subword-mean merge matrix]
                         wmat_ref,   # (E, 6*SEG) f32  packed matrices, 128-lane-aligned segs
                         vec_ref,    # (12, 128)  f32  packed LN params / biases
                         o_ref):     # (T, E)     f32
    x = x_ref[...]
    attn_neg = masks_ref[0]          # BERT self-attention additive mask
    words_neg = masks_ref[1]         # final MHA key_padding additive mask
    merge_mat = masks_ref[2]         # exact per-word-mean merge matrix

    wmat = wmat_ref[...]
    wqkv_b = wmat[:, 0:3 * E]                      # (E, 96)
    wo_b = wmat[:, SEG:SEG + E]                    # (E, 32)
    w1 = wmat[:, 2 * SEG:2 * SEG + F]              # (E, 64)
    w2t = wmat[:, 3 * SEG:3 * SEG + F]             # (E, 64)  == w2.T
    wqkv_m = wmat[:, 4 * SEG:4 * SEG + 3 * E]      # (E, 96)
    wo_m = wmat[:, 5 * SEG:5 * SEG + E]            # (E, 32)

    vecs = vec_ref[...]
    lne_g, lne_b = vecs[0:1, 0:E], vecs[1:2, 0:E]
    ln1_g, ln1_b = vecs[2:3, 0:E], vecs[3:4, 0:E]
    ln2_g, ln2_b = vecs[4:5, 0:E], vecs[5:6, 0:E]
    bo_b = vecs[6:7, 0:E]
    b2 = vecs[7:8, 0:E]
    bo_m = vecs[8:9, 0:E]
    bqkv_b = vecs[9:10, 0:3 * E]
    bqkv_m = vecs[10:11, 0:3 * E]
    b1 = vecs[11:12, 0:F]

    # ---- BERT embedding LayerNorm -------------------------------------------
    h0 = _layernorm(x, lne_g, lne_b)

    # ---- BERT self-attention + Add & Norm -----------------------------------
    attn = _attention(h0, attn_neg, wqkv_b, bqkv_b, wo_b, bo_b)
    h1 = _layernorm(h0 + attn, ln1_g, ln1_b)

    # ---- BERT FFN + Add & Norm ----------------------------------------------
    hid = jnp.dot(h1, w1, preferred_element_type=jnp.float32) + b1
    # TODO(synk): HF BertModel uses exact (erf) GELU; tanh approximation used here.
    hid = jax.nn.gelu(hid)
    ff = lax.dot_general(hid, w2t, (((1,), (1,)), ((), ())),
                         preferred_element_type=jnp.float32) + b2
    h2 = _layernorm(h1 + ff, ln2_g, ln2_b)          # last_hidden_state

    # ---- merge_subword_representation (rep_mode == 'words') -----------------
    # merge_mat rows: normalized subword selector for word positions, identity
    # rows for positions >= tot_words  -> exact per-word means in one matmul.
    merged = jnp.dot(merge_mat, h2, preferred_element_type=jnp.float32)

    # ---- final nn.MultiheadAttention (key_padding_mask = words_mask < 0.5) --
    # dropout(0.2) inside MHA is inactive in eval mode -> identity.
    out = _attention(merged, words_neg, wqkv_m, bqkv_m, wo_m, bo_m)
    o_ref[...] = out


# ----------------------------- pallas_call wrapper ---------------------------
def _spec(shape):
    nd = len(shape)
    return pl.BlockSpec(shape, lambda i, nd=nd: (0,) * nd)


@jax.jit
def encoder_forward(packed, input_ids, attention_mask, word_ids, words_mask):
    # embedding lookup + learned positions (glue, outside the kernel)
    emb = jnp.take(packed["word_emb"], input_ids, axis=0) + packed["pos_emb"][None, :, :]
    x = emb.astype(jnp.float32).reshape(T, E)                        # flatten tokens

    am = attention_mask.astype(jnp.float32).reshape(T)
    wm = words_mask.astype(jnp.float32).reshape(T)
    wid = word_ids.reshape(T)

    # --- all mask / merge-matrix construction hoisted out of the kernel ------
    batch_of = jnp.arange(T, dtype=jnp.int32) // S
    pos_of = jnp.arange(T, dtype=jnp.int32) % S
    same_batch = batch_of[:, None] == batch_of[None, :]
    cross_neg = jnp.where(same_batch, 0.0, NEG).astype(jnp.float32)  # block-diag batch mask

    attn_neg = cross_neg + (1.0 - am)[None, :] * NEG                 # BERT key mask
    words_neg = cross_neg + (1.0 - wm)[None, :] * NEG                # MHA key_padding_mask

    sel = (same_batch & (wid[None, :] == pos_of[:, None])).astype(jnp.float32)
    counts = jnp.sum(sel, axis=1, keepdims=True)
    mean_rows = sel / jnp.maximum(counts, 1.0)                       # exact means
    tot_words = (jnp.max(word_ids, axis=-1) + 1).astype(jnp.int32)   # (B,)
    thresh = jnp.repeat(tot_words, S)                                # (T,)
    use_mean = (pos_of < thresh).astype(jnp.float32)[:, None]
    merge_mat = use_mean * mean_rows + (1.0 - use_mean) * jnp.eye(T, dtype=jnp.float32)

    masks = jnp.stack([attn_neg, words_neg, merge_mat], axis=0)      # (3, T, T)

    ins = (x, masks, packed["wmat"], packed["vecs"])

    out = pl.pallas_call(
        encoder_fused_kernel,
        out_shape=jax.ShapeDtypeStruct((T, E), jnp.float32),
        grid_spec=pl.GridSpec(
            grid=(1,),
            in_specs=[_spec(a.shape) for a in ins],
            out_specs=_spec((T, E)),
        ),
        compiler_params=pltpu.CompilerParams(
            dimension_semantics=("arbitrary",)),
    )(*ins)
    return out.reshape(B, S, E)


# ----------------------------- parameters -----------------------------------
def init_params(key):
    ks = jax.random.split(key, 12)
    w = lambda k, shape: (0.02 * jax.random.normal(k, shape)).astype(jnp.float32)
    zeros = lambda shape: jnp.zeros(shape, jnp.float32)
    ones = lambda shape: jnp.ones(shape, jnp.float32)
    return {
        "word_emb": w(ks[0], (VOCAB, E)),
        "pos_emb": w(ks[1], (S, E)),
        "lne_g": ones((E,)), "lne_b": zeros((E,)),
        # BERT layer self-attention
        "wq": w(ks[2], (E, E)), "bq": zeros((E,)),
        "wk": w(ks[3], (E, E)), "bk": zeros((E,)),
        "wv": w(ks[4], (E, E)), "bv": zeros((E,)),
        "wo": w(ks[5], (E, E)), "bo": zeros((E,)),
        "ln1_g": ones((E,)), "ln1_b": zeros((E,)),
        # BERT layer FFN
        "w1": w(ks[6], (E, F)), "b1": zeros((F,)),
        "w2": w(ks[7], (F, E)), "b2": zeros((E,)),
        "ln2_g": ones((E,)), "ln2_b": zeros((E,)),
        # post-encoder nn.MultiheadAttention
        # TODO(synk): a real checkpoint's packed in_proj_weight must be split /
        # transposed into this Q|K|V column layout when loaded here.
        "mwq": w(ks[8], (E, E)), "mbq": zeros((E,)),
        "mwk": w(ks[9], (E, E)), "mbk": zeros((E,)),
        "mwv": w(ks[10], (E, E)), "mbv": zeros((E,)),
        "mwo": w(ks[11], (E, E)), "mbo": zeros((E,)),
    }


def pack_params(p):
    """Pack weights into 2 slabs (matrices + vectors); done once, outside jit."""
    def padcols(m, width=SEG):           # pad to a 128-lane-aligned segment
        return jnp.pad(m, ((0, 0), (0, width - m.shape[1])))

    wqkv_b = jnp.concatenate([p["wq"], p["wk"], p["wv"]], axis=1)      # (E, 3E)
    wqkv_m = jnp.concatenate([p["mwq"], p["mwk"], p["mwv"]], axis=1)   # (E, 3E)
    wmat = jnp.concatenate(
        [padcols(wqkv_b), padcols(p["wo"]), padcols(p["w1"]),
         padcols(p["w2"].T), padcols(wqkv_m), padcols(p["mwo"])],
        axis=1).astype(jnp.float32)                                    # (E, 6*128)

    VW = 128
    def padrow(v):
        return jnp.pad(v, (0, VW - v.shape[0]))
    vecs = jnp.stack(
        [padrow(p["lne_g"]), padrow(p["lne_b"]),
         padrow(p["ln1_g"]), padrow(p["ln1_b"]),
         padrow(p["ln2_g"]), padrow(p["ln2_b"]),
         padrow(p["bo"]), padrow(p["b2"]), padrow(p["mbo"]),
         padrow(jnp.concatenate([p["bq"], p["bk"], p["bv"]])),
         padrow(jnp.concatenate([p["mbq"], p["mbk"], p["mbv"]])),
         padrow(p["b1"])],
        axis=0).astype(jnp.float32)                                    # (12, 128)

    return {
        "word_emb": p["word_emb"], "pos_emb": p["pos_emb"],
        "wmat": wmat, "vecs": vecs,
    }


# ----------------------------- main ------------------------------------------
if __name__ == "__main__":
    key = jax.random.PRNGKey(0)
    pkey, ikey = jax.random.split(key)
    params = init_params(pkey)
    packed = pack_params(params)

    # deterministic synthetic batch (tokenizer output stand-in)
    lengths = jnp.array([12, 8, 16, 10, 14, 6, 9, 16], dtype=jnp.int32)   # (B,)
    pos = jnp.arange(S, dtype=jnp.int32)[None, :]
    attention_mask = (pos < lengths[:, None]).astype(jnp.int32)           # (B, S)
    input_ids = jax.random.randint(ikey, (B, S), 1, VOCAB, dtype=jnp.int32)
    input_ids = input_ids * attention_mask                                # zero pad ids

    # word_ids_custom: two subwords per word over real tokens, -1 elsewhere
    word_ids = jnp.where(attention_mask == 1, pos // 2, -1).astype(jnp.int32)
    tot_words = jnp.max(word_ids, axis=-1) + 1
    words_mask = (pos < tot_words[:, None]).astype(jnp.int32)             # (B, S)

    out = encoder_forward(packed, input_ids, attention_mask, word_ids, words_mask)
    out = jax.block_until_ready(out)

    assert out.shape == (B, S, E), out.shape
    assert bool(jnp.all(jnp.isfinite(out)))
    print("KERNEL_OK")
</pallas_src>

<mosaic_0001>
module attributes {stable_mosaic.version = 11 : i64} {
  func.func @encoder_fused_kernel(%arg0: i32, %arg1: memref<128x32xf32, #tpu.memory_space<vmem>>, %arg2: memref<3x128x128xf32, #tpu.memory_space<vmem>>, %arg3: memref<32x768xf32, #tpu.memory_space<vmem>>, %arg4: memref<12x128xf32, #tpu.memory_space<vmem>>, %arg5: memref<128x32xf32, #tpu.memory_space<vmem>>) attributes {dimension_semantics = [#tpu.dimension_semantics<arbitrary>], iteration_bounds = array<i64: 1>, scalar_prefetch = 0 : i64, scratch_operands = 0 : i64, tpu.core_type = #tpu.core_type<tc>, window_params = [{pipeline_mode = #tpu.pipeline_mode<synchronous>, transform_indices = @transform_0, window_bounds = array<i64: 128, 32>}, {pipeline_mode = #tpu.pipeline_mode<synchronous>, transform_indices = @transform_1, window_bounds = array<i64: 3, 128, 128>}, {pipeline_mode = #tpu.pipeline_mode<synchronous>, transform_indices = @transform_2, window_bounds = array<i64: 32, 768>}, {pipeline_mode = #tpu.pipeline_mode<synchronous>, transform_indices = @transform_3, window_bounds = array<i64: 12, 128>}, {pipeline_mode = #tpu.pipeline_mode<synchronous>, transform_indices = @transform_4, window_bounds = array<i64: 128, 32>}]} {
    %c0 = arith.constant 0 : index
    %c0_0 = arith.constant 0 : index
    %0 = vector.load %arg1[%c0, %c0_0] : memref<128x32xf32, #tpu.memory_space<vmem>>, vector<128x32xf32>
    %c0_1 = arith.constant 0 : index
    %c0_2 = arith.constant 0 : index
    %c0_3 = arith.constant 0 : index
    %1 = vector.load %arg2[%c0_1, %c0_2, %c0_3] : memref<3x128x128xf32, #tpu.memory_space<vmem>>, vector<1x128x128xf32>
    %2 = vector.shape_cast %1 : vector<1x128x128xf32> to vector<128x128xf32>
    %c1 = arith.constant 1 : index
    %c0_4 = arith.constant 0 : index
    %c0_5 = arith.constant 0 : index
    %3 = vector.load %arg2[%c1, %c0_4, %c0_5] : memref<3x128x128xf32, #tpu.memory_space<vmem>>, vector<1x128x128xf32>
    %4 = vector.shape_cast %3 : vector<1x128x128xf32> to vector<128x128xf32>
    %c2 = arith.constant 2 : index
    %c0_6 = arith.constant 0 : index
    %c0_7 = arith.constant 0 : index
    %5 = vector.load %arg2[%c2, %c0_6, %c0_7] : memref<3x128x128xf32, #tpu.memory_space<vmem>>, vector<1x128x128xf32>
    %6 = vector.shape_cast %5 : vector<1x128x128xf32> to vector<128x128xf32>
    %c0_8 = arith.constant 0 : index
    %c0_9 = arith.constant 0 : index
    %7 = vector.load %arg3[%c0_8, %c0_9] : memref<32x768xf32, #tpu.memory_space<vmem>>, vector<32x768xf32>
    %8 = vector.extract_strided_slice %7 {offsets = [0, 0], sizes = [32, 96], strides = [1, 1]} : vector<32x768xf32> to vector<32x96xf32>
    %9 = vector.extract_strided_slice %7 {offsets = [0, 128], sizes = [32, 32], strides = [1, 1]} : vector<32x768xf32> to vector<32x32xf32>
    %10 = vector.extract_strided_slice %7 {offsets = [0, 256], sizes = [32, 64], strides = [1, 1]} : vector<32x768xf32> to vector<32x64xf32>
    %11 = vector.extract_strided_slice %7 {offsets = [0, 384], sizes = [32, 64], strides = [1, 1]} : vector<32x768xf32> to vector<32x64xf32>
    %12 = vector.extract_strided_slice %7 {offsets = [0, 512], sizes = [32, 96], strides = [1, 1]} : vector<32x768xf32> to vector<32x96xf32>
    %13 = vector.extract_strided_slice %7 {offsets = [0, 640], sizes = [32, 32], strides = [1, 1]} : vector<32x768xf32> to vector<32x32xf32>
    %c0_10 = arith.constant 0 : index
    %c0_11 = arith.constant 0 : index
    %14 = vector.load %arg4[%c0_10, %c0_11] : memref<12x128xf32, #tpu.memory_space<vmem>>, vector<12x128xf32>
    %15 = vector.extract_strided_slice %14 {offsets = [0, 0], sizes = [1, 32], strides = [1, 1]} : vector<12x128xf32> to vector<1x32xf32>
    %16 = vector.extract_strided_slice %14 {offsets = [1, 0], sizes = [1, 32], strides = [1, 1]} : vector<12x128xf32> to vector<1x32xf32>
    %17 = vector.extract_strided_slice %14 {offsets = [2, 0], sizes = [1, 32], strides = [1, 1]} : vector<12x128xf32> to vector<1x32xf32>
    %18 = vector.extract_strided_slice %14 {offsets = [3, 0], sizes = [1, 32], strides = [1, 1]} : vector<12x128xf32> to vector<1x32xf32>
    %19 = vector.extract_strided_slice %14 {offsets = [4, 0], sizes = [1, 32], strides = [1, 1]} : vector<12x128xf32> to vector<1x32xf32>
    %20 = vector.extract_strided_slice %14 {offsets = [5, 0], sizes = [1, 32], strides = [1, 1]} : vector<12x128xf32> to vector<1x32xf32>
    %21 = vector.extract_strided_slice %14 {offsets = [6, 0], sizes = [1, 32], strides = [1, 1]} : vector<12x128xf32> to vector<1x32xf32>
    %22 = vector.extract_strided_slice %14 {offsets = [7, 0], sizes = [1, 32], strides = [1, 1]} : vector<12x128xf32> to vector<1x32xf32>
    %23 = vector.extract_strided_slice %14 {offsets = [8, 0], sizes = [1, 32], strides = [1, 1]} : vector<12x128xf32> to vector<1x32xf32>
    %24 = vector.extract_strided_slice %14 {offsets = [9, 0], sizes = [1, 96], strides = [1, 1]} : vector<12x128xf32> to vector<1x96xf32>
    %25 = vector.extract_strided_slice %14 {offsets = [10, 0], sizes = [1, 96], strides = [1, 1]} : vector<12x128xf32> to vector<1x96xf32>
    %26 = vector.extract_strided_slice %14 {offsets = [11, 0], sizes = [1, 64], strides = [1, 1]} : vector<12x128xf32> to vector<1x64xf32>
    %cst = arith.constant dense<0.000000e+00> : vector<128xf32>
    %27 = vector.multi_reduction <add>, %0, %cst [1] : vector<128x32xf32> to vector<128xf32>
    %28 = vector.shape_cast %27 : vector<128xf32> to vector<128x1xf32>
    %cst_12 = arith.constant 3.200000e+01 : f32
    %29 = vector.broadcast %cst_12 : f32 to vector<128x1xf32>
    %30 = arith.divf %28, %29 : vector<128x1xf32>
    %31 = vector.broadcast %30 : vector<128x1xf32> to vector<128x32xf32>
    %32 = arith.subf %0, %31 : vector<128x32xf32>
    %33 = arith.mulf %32, %32 : vector<128x32xf32>
    %cst_13 = arith.constant dense<0.000000e+00> : vector<128xf32>
    %34 = vector.multi_reduction <add>, %33, %cst_13 [1] : vector<128x32xf32> to vector<128xf32>
    %35 = vector.shape_cast %34 : vector<128xf32> to vector<128x1xf32>
    %cst_14 = arith.constant 3.200000e+01 : f32
    %36 = vector.broadcast %cst_14 : f32 to vector<128x1xf32>
    %37 = arith.divf %35, %36 : vector<128x1xf32>
    %cst_15 = arith.constant 9.99999996E-13 : f32
    %38 = vector.broadcast %cst_15 : f32 to vector<128x1xf32>
    %39 = arith.addf %37, %38 : vector<128x1xf32>
    %40 = math.rsqrt %39 : vector<128x1xf32>
    %41 = vector.broadcast %40 : vector<128x1xf32> to vector<128x32xf32>
    %42 = arith.mulf %32, %41 : vector<128x32xf32>
    %43 = vector.broadcast %15 : vector<1x32xf32> to vector<128x32xf32>
    %44 = arith.mulf %42, %43 : vector<128x32xf32>
    %45 = vector.broadcast %16 : vector<1x32xf32> to vector<128x32xf32>
    %46 = arith.addf %44, %45 : vector<128x32xf32>
    %cst_16 = arith.constant dense<0.000000e+00> : vector<128x96xf32>
    %47 = tpu.matmul %46, %8, %cst_16 {dimension_numbers = #tpu.dot_dimension_numbers<[1], [0], [0], [1], [0, 0, 1, 1], [], []>} : vector<128x32xf32>, vector<32x96xf32>, vector<128x96xf32> -> vector<128x96xf32>
    %48 = vector.broadcast %24 : vector<1x96xf32> to vector<128x96xf32>
    %49 = arith.addf %47, %48 : vector<128x96xf32>
    %50 = vector.extract_strided_slice %49 {offsets = [0, 0], sizes = [128, 8], strides = [1, 1]} : vector<128x96xf32> to vector<128x8xf32>
    %51 = vector.extract_strided_slice %49 {offsets = [0, 32], sizes = [128, 8], strides = [1, 1]} : vector<128x96xf32> to vector<128x8xf32>
    %52 = vector.extract_strided_slice %49 {offsets = [0, 64], sizes = [128, 8], strides = [1, 1]} : vector<128x96xf32> to vector<128x8xf32>
    %cst_17 = arith.constant dense<0.000000e+00> : vector<128x128xf32>
    %53 = tpu.matmul %50, %51, %cst_17 {dimension_numbers = #tpu.dot_dimension_numbers<[1], [1], [0], [0], [0, 0, 1, 0], [], []>} : vector<128x8xf32>, vector<128x8xf32>, vector<128x128xf32> -> vector<128x128xf32>
    %cst_18 = arith.constant 0.353553385 : f32
    %54 = vector.broadcast %cst_18 : f32 to vector<128x128xf32>
    %55 = arith.mulf %53, %54 : vector<128x128xf32>
    %56 = arith.addf %55, %2 : vector<128x128xf32>
    %cst_19 = arith.constant dense<0xFF800000> : vector<128xf32>
    %57 = vector.multi_reduction <maximumf>, %56, %cst_19 [1] : vector<128x128xf32> to vector<128xf32>
    %58 = vector.shape_cast %57 : vector<128xf32> to vector<128x1xf32>
    %59 = vector.broadcast %58 : vector<128x1xf32> to vector<128x128xf32>
    %60 = arith.subf %56, %59 : vector<128x128xf32>
    %61 = math.exp %60 : vector<128x128xf32>
    %cst_20 = arith.constant dense<0.000000e+00> : vector<128xf32>
    %62 = vector.multi_reduction <add>, %61, %cst_20 [1] : vector<128x128xf32> to vector<128xf32>
    %63 = vector.shape_cast %62 : vector<128xf32> to vector<128x1xf32>
    %64 = vector.broadcast %63 : vector<128x1xf32> to vector<128x128xf32>
    %65 = arith.divf %61, %64 : vector<128x128xf32>
    %cst_21 = arith.constant dense<0.000000e+00> : vector<128x8xf32>
    %66 = tpu.matmul %65, %52, %cst_21 {dimension_numbers = #tpu.dot_dimension_numbers<[1], [0], [0], [1], [0, 0, 1, 1], [], []>} : vector<128x128xf32>, vector<128x8xf32>, vector<128x8xf32> -> vector<128x8xf32>
    %67 = vector.extract_strided_slice %49 {offsets = [0, 8], sizes = [128, 8], strides = [1, 1]} : vector<128x96xf32> to vector<128x8xf32>
    %68 = vector.extract_strided_slice %49 {offsets = [0, 40], sizes = [128, 8], strides = [1, 1]} : vector<128x96xf32> to vector<128x8xf32>
    %69 = vector.extract_strided_slice %49 {offsets = [0, 72], sizes = [128, 8], strides = [1, 1]} : vector<128x96xf32> to vector<128x8xf32>
    %cst_22 = arith.constant dense<0.000000e+00> : vector<128x128xf32>
    %70 = tpu.matmul %67, %68, %cst_22 {dimension_numbers = #tpu.dot_dimension_numbers<[1], [1], [0], [0], [0, 0, 1, 0], [], []>} : vector<128x8xf32>, vector<128x8xf32>, vector<128x128xf32> -> vector<128x128xf32>
    %cst_23 = arith.constant 0.353553385 : f32
    %71 = vector.broadcast %cst_23 : f32 to vector<128x128xf32>
    %72 = arith.mulf %70, %71 : vector<128x128xf32>
    %73 = arith.addf %72, %2 : vector<128x128xf32>
    %cst_24 = arith.constant dense<0xFF800000> : vector<128xf32>
    %74 = vector.multi_reduction <maximumf>, %73, %cst_24 [1] : vector<128x128xf32> to vector<128xf32>
    %75 = vector.shape_cast %74 : vector<128xf32> to vector<128x1xf32>
    %76 = vector.broadcast %75 : vector<128x1xf32> to vector<128x128xf32>
    %77 = arith.subf %73, %76 : vector<128x128xf32>
    %78 = math.exp %77 : vector<128x128xf32>
    %cst_25 = arith.constant dense<0.000000e+00> : vector<128xf32>
    %79 = vector.multi_reduction <add>, %78, %cst_25 [1] : vector<128x128xf32> to vector<128xf32>
    %80 = vector.shape_cast %79 : vector<128xf32> to vector<128x1xf32>
    %81 = vector.broadcast %80 : vector<128x1xf32> to vector<128x128xf32>
    %82 = arith.divf %78, %81 : vector<128x128xf32>
    %cst_26 = arith.constant dense<0.000000e+00> : vector<128x8xf32>
    %83 = tpu.matmul %82, %69, %cst_26 {dimension_numbers = #tpu.dot_dimension_numbers<[1], [0], [0], [1], [0, 0, 1, 1], [], []>} : vector<128x128xf32>, vector<128x8xf32>, vector<128x8xf32> -> vector<128x8xf32>
    %84 = vector.extract_strided_slice %49 {offsets = [0, 16], sizes = [128, 8], strides = [1, 1]} : vector<128x96xf32> to vector<128x8xf32>
    %85 = vector.extract_strided_slice %49 {offsets = [0, 48], sizes = [128, 8], strides = [1, 1]} : vector<128x96xf32> to vector<128x8xf32>
    %86 = vector.extract_strided_slice %49 {offsets = [0, 80], sizes = [128, 8], strides = [1, 1]} : vector<128x96xf32> to vector<128x8xf32>
    %cst_27 = arith.constant dense<0.000000e+00> : vector<128x128xf32>
    %87 = tpu.matmul %84, %85, %cst_27 {dimension_numbers = #tpu.dot_dimension_numbers<[1], [1], [0], [0], [0, 0, 1, 0], [], []>} : vector<128x8xf32>, vector<128x8xf32>, vector<128x128xf32> -> vector<128x128xf32>
    %cst_28 = arith.constant 0.353553385 : f32
    %88 = vector.broadcast %cst_28 : f32 to vector<128x128xf32>
    %89 = arith.mulf %87, %88 : vector<128x128xf32>
    %90 = arith.addf %89, %2 : vector<128x128xf32>
    %cst_29 = arith.constant dense<0xFF800000> : vector<128xf32>
    %91 = vector.multi_reduction <maximumf>, %90, %cst_29 [1] : vector<128x128xf32> to vector<128xf32>
    %92 = vector.shape_cast %91 : vector<128xf32> to vector<128x1xf32>
    %93 = vector.broadcast %92 : vector<128x1xf32> to vector<128x128xf32>
    %94 = arith.subf %90, %93 : vector<128x128xf32>
    %95 = math.exp %94 : vector<128x128xf32>
    %cst_30 = arith.constant dense<0.000000e+00> : vector<128xf32>
    %96 = vector.multi_reduction <add>, %95, %cst_30 [1] : vector<128x128xf32> to vector<128xf32>
    %97 = vector.shape_cast %96 : vector<128xf32> to vector<128x1xf32>
    %98 = vector.broadcast %97 : vector<128x1xf32> to vector<128x128xf32>
    %99 = arith.divf %95, %98 : vector<128x128xf32>
    %cst_31 = arith.constant dense<0.000000e+00> : vector<128x8xf32>
    %100 = tpu.matmul %99, %86, %cst_31 {dimension_numbers = #tpu.dot_dimension_numbers<[1], [0], [0], [1], [0, 0, 1, 1], [], []>} : vector<128x128xf32>, vector<128x8xf32>, vector<128x8xf32> -> vector<128x8xf32>
    %101 = vector.extract_strided_slice %49 {offsets = [0, 24], sizes = [128, 8], strides = [1, 1]} : vector<128x96xf32> to vector<128x8xf32>
    %102 = vector.extract_strided_slice %49 {offsets = [0, 56], sizes = [128, 8], strides = [1, 1]} : vector<128x96xf32> to vector<128x8xf32>
    %103 = vector.extract_strided_slice %49 {offsets = [0, 88], sizes = [128, 8], strides = [1, 1]} : vector<128x96xf32> to vector<128x8xf32>
    %cst_32 = arith.constant dense<0.000000e+00> : vector<128x128xf32>
    %104 = tpu.matmul %101, %102, %cst_32 {dimension_numbers = #tpu.dot_dimension_numbers<[1], [1], [0], [0], [0, 0, 1, 0], [], []>} : vector<128x8xf32>, vector<128x8xf32>, vector<128x128xf32> -> vector<128x128xf32>
    %cst_33 = arith.constant 0.353553385 : f32
    %105 = vector.broadcast %cst_33 : f32 to vector<128x128xf32>
    %106 = arith.mulf %104, %105 : vector<128x128xf32>
    %107 = arith.addf %106, %2 : vector<128x128xf32>
    %cst_34 = arith.constant dense<0xFF800000> : vector<128xf32>
    %108 = vector.multi_reduction <maximumf>, %107, %cst_34 [1] : vector<128x128xf32> to vector<128xf32>
    %109 = vector.shape_cast %108 : vector<128xf32> to vector<128x1xf32>
    %110 = vector.broadcast %109 : vector<128x1xf32> to vector<128x128xf32>
    %111 = arith.subf %107, %110 : vector<128x128xf32>
    %112 = math.exp %111 : vector<128x128xf32>
    %cst_35 = arith.constant dense<0.000000e+00> : vector<128xf32>
    %113 = vector.multi_reduction <add>, %112, %cst_35 [1] : vector<128x128xf32> to vector<128xf32>
    %114 = vector.shape_cast %113 : vector<128xf32> to vector<128x1xf32>
    %115 = vector.broadcast %114 : vector<128x1xf32> to vector<128x128xf32>
    %116 = arith.divf %112, %115 : vector<128x128xf32>
    %cst_36 = arith.constant dense<0.000000e+00> : vector<128x8xf32>
    %117 = tpu.matmul %116, %103, %cst_36 {dimension_numbers = #tpu.dot_dimension_numbers<[1], [0], [0], [1], [0, 0, 1, 1], [], []>} : vector<128x128xf32>, vector<128x8xf32>, vector<128x8xf32> -> vector<128x8xf32>
    %118 = tpu.concatenate %66, %83, %100, %117 in 1 : vector<128x8xf32>, vector<128x8xf32>, vector<128x8xf32>, vector<128x8xf32> -> vector<128x32xf32>
    %cst_37 = arith.constant dense<0.000000e+00> : vector<128x32xf32>
    %119 = tpu.matmul %118, %9, %cst_37 {dimension_numbers = #tpu.dot_dimension_numbers<[1], [0], [0], [1], [0, 0, 1, 1], [], []>} : vector<128x32xf32>, vector<32x32xf32>, vector<128x32xf32> -> vector<128x32xf32>
    %120 = vector.broadcast %21 : vector<1x32xf32> to vector<128x32xf32>
    %121 = arith.addf %119, %120 : vector<128x32xf32>
    %122 = arith.addf %46, %121 : vector<128x32xf32>
    %cst_38 = arith.constant dense<0.000000e+00> : vector<128xf32>
    %123 = vector.multi_reduction <add>, %122, %cst_38 [1] : vector<128x32xf32> to vector<128xf32>
    %124 = vector.shape_cast %123 : vector<128xf32> to vector<128x1xf32>
    %cst_39 = arith.constant 3.200000e+01 : f32
    %125 = vector.broadcast %cst_39 : f32 to vector<128x1xf32>
    %126 = arith.divf %124, %125 : vector<128x1xf32>
    %127 = vector.broadcast %126 : vector<128x1xf32> to vector<128x32xf32>
    %128 = arith.subf %122, %127 : vector<128x32xf32>
    %129 = arith.mulf %128, %128 : vector<128x32xf32>
    %cst_40 = arith.constant dense<0.000000e+00> : vector<128xf32>
    %130 = vector.multi_reduction <add>, %129, %cst_40 [1] : vector<128x32xf32> to vector<128xf32>
    %131 = vector.shape_cast %130 : vector<128xf32> to vector<128x1xf32>
    %cst_41 = arith.constant 3.200000e+01 : f32
    %132 = vector.broadcast %cst_41 : f32 to vector<128x1xf32>
    %133 = arith.divf %131, %132 : vector<128x1xf32>
    %cst_42 = arith.constant 9.99999996E-13 : f32
    %134 = vector.broadcast %cst_42 : f32 to vector<128x1xf32>
    %135 = arith.addf %133, %134 : vector<128x1xf32>
    %136 = math.rsqrt %135 : vector<128x1xf32>
    %137 = vector.broadcast %136 : vector<128x1xf32> to vector<128x32xf32>
    %138 = arith.mulf %128, %137 : vector<128x32xf32>
    %139 = vector.broadcast %17 : vector<1x32xf32> to vector<128x32xf32>
    %140 = arith.mulf %138, %139 : vector<128x32xf32>
    %141 = vector.broadcast %18 : vector<1x32xf32> to vector<128x32xf32>
    %142 = arith.addf %140, %141 : vector<128x32xf32>
    %cst_43 = arith.constant dense<0.000000e+00> : vector<128x64xf32>
    %143 = tpu.matmul %142, %10, %cst_43 {dimension_numbers = #tpu.dot_dimension_numbers<[1], [0], [0], [1], [0, 0, 1, 1], [], []>} : vector<128x32xf32>, vector<32x64xf32>, vector<128x64xf32> -> vector<128x64xf32>
    %144 = vector.broadcast %26 : vector<1x64xf32> to vector<128x64xf32>
    %145 = arith.addf %143, %144 : vector<128x64xf32>
    %146 = arith.mulf %145, %145 : vector<128x64xf32>
    %147 = arith.mulf %145, %146 : vector<128x64xf32>
    %cst_44 = arith.constant 4.471500e-02 : f32
    %148 = vector.broadcast %cst_44 : f32 to vector<128x64xf32>
    %149 = arith.mulf %148, %147 : vector<128x64xf32>
    %150 = arith.addf %145, %149 : vector<128x64xf32>
    %cst_45 = arith.constant 0.797884583 : f32
    %151 = vector.broadcast %cst_45 : f32 to vector<128x64xf32>
    %152 = arith.mulf %151, %150 : vector<128x64xf32>
    %153 = math.tanh %152 : vector<128x64xf32>
    %cst_46 = arith.constant 1.000000e+00 : f32
    %154 = vector.broadcast %cst_46 : f32 to vector<128x64xf32>
    %155 = arith.addf %154, %153 : vector<128x64xf32>
    %cst_47 = arith.constant 5.000000e-01 : f32
    %156 = vector.broadcast %cst_47 : f32 to vector<128x64xf32>
    %157 = arith.mulf %156, %155 : vector<128x64xf32>
    %158 = arith.mulf %145, %157 : vector<128x64xf32>
    %cst_48 = arith.constant dense<0.000000e+00> : vector<128x32xf32>
    %159 = tpu.matmul %158, %11, %cst_48 {dimension_numbers = #tpu.dot_dimension_numbers<[1], [1], [0], [0], [0, 0, 1, 0], [], []>} : vector<128x64xf32>, vector<32x64xf32>, vector<128x32xf32> -> vector<128x32xf32>
    %160 = vector.broadcast %22 : vector<1x32xf32> to vector<128x32xf32>
    %161 = arith.addf %159, %160 : vector<128x32xf32>
    %162 = arith.addf %142, %161 : vector<128x32xf32>
    %cst_49 = arith.constant dense<0.000000e+00> : vector<128xf32>
    %163 = vector.multi_reduction <add>, %162, %cst_49 [1] : vector<128x32xf32> to vector<128xf32>
    %164 = vector.shape_cast %163 : vector<128xf32> to vector<128x1xf32>
    %cst_50 = arith.constant 3.200000e+01 : f32
    %165 = vector.broadcast %cst_50 : f32 to vector<128x1xf32>
    %166 = arith.divf %164, %165 : vector<128x1xf32>
    %167 = vector.broadcast %166 : vector<128x1xf32> to vector<128x32xf32>
    %168 = arith.subf %162, %167 : vector<128x32xf32>
    %169 = arith.mulf %168, %168 : vector<128x32xf32>
    %cst_51 = arith.constant dense<0.000000e+00> : vector<128xf32>
    %170 = vector.multi_reduction <add>, %169, %cst_51 [1] : vector<128x32xf32> to vector<128xf32>
    %171 = vector.shape_cast %170 : vector<128xf32> to vector<128x1xf32>
    %cst_52 = arith.constant 3.200000e+01 : f32
    %172 = vector.broadcast %cst_52 : f32 to vector<128x1xf32>
    %173 = arith.divf %171, %172 : vector<128x1xf32>
    %cst_53 = arith.constant 9.99999996E-13 : f32
    %174 = vector.broadcast %cst_53 : f32 to vector<128x1xf32>
    %175 = arith.addf %173, %174 : vector<128x1xf32>
    %176 = math.rsqrt %175 : vector<128x1xf32>
    %177 = vector.broadcast %176 : vector<128x1xf32> to vector<128x32xf32>
    %178 = arith.mulf %168, %177 : vector<128x32xf32>
    %179 = vector.broadcast %19 : vector<1x32xf32> to vector<128x32xf32>
    %180 = arith.mulf %178, %179 : vector<128x32xf32>
    %181 = vector.broadcast %20 : vector<1x32xf32> to vector<128x32xf32>
    %182 = arith.addf %180, %181 : vector<128x32xf32>
    %cst_54 = arith.constant dense<0.000000e+00> : vector<128x32xf32>
    %183 = tpu.matmul %6, %182, %cst_54 {dimension_numbers = #tpu.dot_dimension_numbers<[1], [0], [0], [1], [0, 0, 1, 1], [], []>} : vector<128x128xf32>, vector<128x32xf32>, vector<128x32xf32> -> vector<128x32xf32>
    %cst_55 = arith.constant dense<0.000000e+00> : vector<128x96xf32>
    %184 = tpu.matmul %183, %12, %cst_55 {dimension_numbers = #tpu.dot_dimension_numbers<[1], [0], [0], [1], [0, 0, 1, 1], [], []>} : vector<128x32xf32>, vector<32x96xf32>, vector<128x96xf32> -> vector<128x96xf32>
    %185 = vector.broadcast %25 : vector<1x96xf32> to vector<128x96xf32>
    %186 = arith.addf %184, %185 : vector<128x96xf32>
    %187 = vector.extract_strided_slice %186 {offsets = [0, 0], sizes = [128, 8], strides = [1, 1]} : vector<128x96xf32> to vector<128x8xf32>
    %188 = vector.extract_strided_slice %186 {offsets = [0, 32], sizes = [128, 8], strides = [1, 1]} : vector<128x96xf32> to vector<128x8xf32>
    %189 = vector.extract_strided_slice %186 {offsets = [0, 64], sizes = [128, 8], strides = [1, 1]} : vector<128x96xf32> to vector<128x8xf32>
    %cst_56 = arith.constant dense<0.000000e+00> : vector<128x128xf32>
    %190 = tpu.matmul %187, %188, %cst_56 {dimension_numbers = #tpu.dot_dimension_numbers<[1], [1], [0], [0], [0, 0, 1, 0], [], []>} : vector<128x8xf32>, vector<128x8xf32>, vector<128x128xf32> -> vector<128x128xf32>
    %cst_57 = arith.constant 0.353553385 : f32
    %191 = vector.broadcast %cst_57 : f32 to vector<128x128xf32>
    %192 = arith.mulf %190, %191 : vector<128x128xf32>
    %193 = arith.addf %192, %4 : vector<128x128xf32>
    %cst_58 = arith.constant dense<0xFF800000> : vector<128xf32>
    %194 = vector.multi_reduction <maximumf>, %193, %cst_58 [1] : vector<128x128xf32> to vector<128xf32>
    %195 = vector.shape_cast %194 : vector<128xf32> to vector<128x1xf32>
    %196 = vector.broadcast %195 : vector<128x1xf32> to vector<128x128xf32>
    %197 = arith.subf %193, %196 : vector<128x128xf32>
    %198 = math.exp %197 : vector<128x128xf32>
    %cst_59 = arith.constant dense<0.000000e+00> : vector<128xf32>
    %199 = vector.multi_reduction <add>, %198, %cst_59 [1] : vector<128x128xf32> to vector<128xf32>
    %200 = vector.shape_cast %199 : vector<128xf32> to vector<128x1xf32>
    %201 = vector.broadcast %200 : vector<128x1xf32> to vector<128x128xf32>
    %202 = arith.divf %198, %201 : vector<128x128xf32>
    %cst_60 = arith.constant dense<0.000000e+00> : vector<128x8xf32>
    %203 = tpu.matmul %202, %189, %cst_60 {dimension_numbers = #tpu.dot_dimension_numbers<[1], [0], [0], [1], [0, 0, 1, 1], [], []>} : vector<128x128xf32>, vector<128x8xf32>, vector<128x8xf32> -> vector<128x8xf32>
    %204 = vector.extract_strided_slice %186 {offsets = [0, 8], sizes = [128, 8], strides = [1, 1]} : vector<128x96xf32> to vector<128x8xf32>
    %205 = vector.extract_strided_slice %186 {offsets = [0, 40], sizes = [128, 8], strides = [1, 1]} : vector<128x96xf32> to vector<128x8xf32>
    %206 = vector.extract_strided_slice %186 {offsets = [0, 72], sizes = [128, 8], strides = [1, 1]} : vector<128x96xf32> to vector<128x8xf32>
    %cst_61 = arith.constant dense<0.000000e+00> : vector<128x128xf32>
    %207 = tpu.matmul %204, %205, %cst_61 {dimension_numbers = #tpu.dot_dimension_numbers<[1], [1], [0], [0], [0, 0, 1, 0], [], []>} : vector<128x8xf32>, vector<128x8xf32>, vector<128x128xf32> -> vector<128x128xf32>
    %cst_62 = arith.constant 0.353553385 : f32
    %208 = vector.broadcast %cst_62 : f32 to vector<128x128xf32>
    %209 = arith.mulf %207, %208 : vector<128x128xf32>
    %210 = arith.addf %209, %4 : vector<128x128xf32>
    %cst_63 = arith.constant dense<0xFF800000> : vector<128xf32>
    %211 = vector.multi_reduction <maximumf>, %210, %cst_63 [1] : vector<128x128xf32> to vector<128xf32>
    %212 = vector.shape_cast %211 : vector<128xf32> to vector<128x1xf32>
    %213 = vector.broadcast %212 : vector<128x1xf32> to vector<128x128xf32>
    %214 = arith.subf %210, %213 : vector<128x128xf32>
    %215 = math.exp %214 : vector<128x128xf32>
    %cst_64 = arith.constant dense<0.000000e+00> : vector<128xf32>
    %216 = vector.multi_reduction <add>, %215, %cst_64 [1] : vector<128x128xf32> to vector<128xf32>
    %217 = vector.shape_cast %216 : vector<128xf32> to vector<128x1xf32>
    %218 = vector.broadcast %217 : vector<128x1xf32> to vector<128x128xf32>
    %219 = arith.divf %215, %218 : vector<128x128xf32>
    %cst_65 = arith.constant dense<0.000000e+00> : vector<128x8xf32>
    %220 = tpu.matmul %219, %206, %cst_65 {dimension_numbers = #tpu.dot_dimension_numbers<[1], [0], [0], [1], [0, 0, 1, 1], [], []>} : vector<128x128xf32>, vector<128x8xf32>, vector<128x8xf32> -> vector<128x8xf32>
    %221 = vector.extract_strided_slice %186 {offsets = [0, 16], sizes = [128, 8], strides = [1, 1]} : vector<128x96xf32> to vector<128x8xf32>
    %222 = vector.extract_strided_slice %186 {offsets = [0, 48], sizes = [128, 8], strides = [1, 1]} : vector<128x96xf32> to vector<128x8xf32>
    %223 = vector.extract_strided_slice %186 {offsets = [0, 80], sizes = [128, 8], strides = [1, 1]} : vector<128x96xf32> to vector<128x8xf32>
    %cst_66 = arith.constant dense<0.000000e+00> : vector<128x128xf32>
    %224 = tpu.matmul %221, %222, %cst_66 {dimension_numbers = #tpu.dot_dimension_numbers<[1], [1], [0], [0], [0, 0, 1, 0], [], []>} : vector<128x8xf32>, vector<128x8xf32>, vector<128x128xf32> -> vector<128x128xf32>
    %cst_67 = arith.constant 0.353553385 : f32
    %225 = vector.broadcast %cst_67 : f32 to vector<128x128xf32>
    %226 = arith.mulf %224, %225 : vector<128x128xf32>
    %227 = arith.addf %226, %4 : vector<128x128xf32>
    %cst_68 = arith.constant dense<0xFF800000> : vector<128xf32>
    %228 = vector.multi_reduction <maximumf>, %227, %cst_68 [1] : vector<128x128xf32> to vector<128xf32>
    %229 = vector.shape_cast %228 : vector<128xf32> to vector<128x1xf32>
    %230 = vector.broadcast %229 : vector<128x1xf32> to vector<128x128xf32>
    %231 = arith.subf %227, %230 : vector<128x128xf32>
    %232 = math.exp %231 : vector<128x128xf32>
    %cst_69 = arith.constant dense<0.000000e+00> : vector<128xf32>
    %233 = vector.multi_reduction <add>, %232, %cst_69 [1] : vector<128x128xf32> to vector<128xf32>
    %234 = vector.shape_cast %233 : vector<128xf32> to vector<128x1xf32>
    %235 = vector.broadcast %234 : vector<128x1xf32> to vector<128x128xf32>
    %236 = arith.divf %232, %235 : vector<128x128xf32>
    %cst_70 = arith.constant dense<0.000000e+00> : vector<128x8xf32>
    %237 = tpu.matmul %236, %223, %cst_70 {dimension_numbers = #tpu.dot_dimension_numbers<[1], [0], [0], [1], [0, 0, 1, 1], [], []>} : vector<128x128xf32>, vector<128x8xf32>, vector<128x8xf32> -> vector<128x8xf32>
    %238 = vector.extract_strided_slice %186 {offsets = [0, 24], sizes = [128, 8], strides = [1, 1]} : vector<128x96xf32> to vector<128x8xf32>
    %239 = vector.extract_strided_slice %186 {offsets = [0, 56], sizes = [128, 8], strides = [1, 1]} : vector<128x96xf32> to vector<128x8xf32>
    %240 = vector.extract_strided_slice %186 {offsets = [0, 88], sizes = [128, 8], strides = [1, 1]} : vector<128x96xf32> to vector<128x8xf32>
    %cst_71 = arith.constant dense<0.000000e+00> : vector<128x128xf32>
    %241 = tpu.matmul %238, %239, %cst_71 {dimension_numbers = #tpu.dot_dimension_numbers<[1], [1], [0], [0], [0, 0, 1, 0], [], []>} : vector<128x8xf32>, vector<128x8xf32>, vector<128x128xf32> -> vector<128x128xf32>
    %cst_72 = arith.constant 0.353553385 : f32
    %242 = vector.broadcast %cst_72 : f32 to vector<128x128xf32>
    %243 = arith.mulf %241, %242 : vector<128x128xf32>
    %244 = arith.addf %243, %4 : vector<128x128xf32>
    %cst_73 = arith.constant dense<0xFF800000> : vector<128xf32>
    %245 = vector.multi_reduction <maximumf>, %244, %cst_73 [1] : vector<128x128xf32> to vector<128xf32>
    %246 = vector.shape_cast %245 : vector<128xf32> to vector<128x1xf32>
    %247 = vector.broadcast %246 : vector<128x1xf32> to vector<128x128xf32>
    %248 = arith.subf %244, %247 : vector<128x128xf32>
    %249 = math.exp %248 : vector<128x128xf32>
    %cst_74 = arith.constant dense<0.000000e+00> : vector<128xf32>
    %250 = vector.multi_reduction <add>, %249, %cst_74 [1] : vector<128x128xf32> to vector<128xf32>
    %251 = vector.shape_cast %250 : vector<128xf32> to vector<128x1xf32>
    %252 = vector.broadcast %251 : vector<128x1xf32> to vector<128x128xf32>
    %253 = arith.divf %249, %252 : vector<128x128xf32>
    %cst_75 = arith.constant dense<0.000000e+00> : vector<128x8xf32>
    %254 = tpu.matmul %253, %240, %cst_75 {dimension_numbers = #tpu.dot_dimension_numbers<[1], [0], [0], [1], [0, 0, 1, 1], [], []>} : vector<128x128xf32>, vector<128x8xf32>, vector<128x8xf32> -> vector<128x8xf32>
    %255 = tpu.concatenate %203, %220, %237, %254 in 1 : vector<128x8xf32>, vector<128x8xf32>, vector<128x8xf32>, vector<128x8xf32> -> vector<128x32xf32>
    %cst_76 = arith.constant dense<0.000000e+00> : vector<128x32xf32>
    %256 = tpu.matmul %255, %13, %cst_76 {dimension_numbers = #tpu.dot_dimension_numbers<[1], [0], [0], [1], [0, 0, 1, 1], [], []>} : vector<128x32xf32>, vector<32x32xf32>, vector<128x32xf32> -> vector<128x32xf32>
    %257 = vector.broadcast %23 : vector<1x32xf32> to vector<128x32xf32>
    %258 = arith.addf %256, %257 : vector<128x32xf32>
    %c0_77 = arith.constant 0 : index
    %c0_78 = arith.constant 0 : index
    %259 = vector.load %arg5[%c0_77, %c0_78] : memref<128x32xf32, #tpu.memory_space<vmem>>, vector<128x32xf32>
    tpu.vector_store %arg5[%c0_77, %c0_78], %258 {strides = array<i32>} : memref<128x32xf32, #tpu.memory_space<vmem>>, vector<128x32xf32>,
    return
  }
  func.func @transform_0(%arg0: i32) -> (i32, i32) {
    %c0_i32 = arith.constant 0 : i32
    %c0_i32_0 = arith.constant 0 : i32
    %c0_i32_1 = arith.constant 0 : i32
    return %c0_i32, %c0_i32_0 : i32, i32
  }
  func.func @transform_1(%arg0: i32) -> (i32, i32, i32) {
    %c0_i32 = arith.constant 0 : i32
    %c0_i32_0 = arith.constant 0 : i32
    %c0_i32_1 = arith.constant 0 : i32
    %c0_i32_2 = arith.constant 0 : i32
    return %c0_i32, %c0_i32_0, %c0_i32_1 : i32, i32, i32
  }
  func.func @transform_2(%arg0: i32) -> (i32, i32) {
    %c0_i32 = arith.constant 0 : i32
    %c0_i32_0 = arith.constant 0 : i32
    %c0_i32_1 = arith.constant 0 : i32
    return %c0_i32, %c0_i32_0 : i32, i32
  }
  func.func @transform_3(%arg0: i32) -> (i32, i32) {
    %c0_i32 = arith.constant 0 : i32
    %c0_i32_0 = arith.constant 0 : i32
    %c0_i32_1 = arith.constant 0 : i32
    return %c0_i32, %c0_i32_0 : i32, i32
  }
  func.func @transform_4(%arg0: i32) -> (i32, i32) {
    %c0_i32 = arith.constant 0 : i32
    %c0_i32_0 = arith.constant 0 : i32
    %c0_i32_1 = arith.constant 0 : i32
    return %c0_i32, %c0_i32_0 : i32, i32
  }
}

</mosaic_0001>

<bundles_post_ra>
// kernel: encoder_forward.1
= control target key start
LH: loop header
LB: loop body
LE: loop exit
PB: predicated region body
PF: predicated region fallthrough
CT: control target
= control target key end

     0   :  { %vm110_vm0 = vcmask 261120   ;;  %s15732_s0 = inlined_call_operand.vmem [shape: f32[128,32], index: 0, kind: input, shape index: {}]   ;;  %s15733_s1 = inlined_call_operand.vmem [shape: f32[3,128,128], index: 1, kind: input, shape index: {}]   ;;  %s15734_s2 = inlined_call_operand.vmem [shape: f32[32,768], index: 2, kind: input, shape index: {}]   ;;  %s15735_s3 = inlined_call_operand.vmem [shape: f32[12,128], index: 3, kind: input, shape index: {}]   ;;  %s15736_s4 = inlined_call_operand.hbm [shape: f32[128,32], index: 4, kind: output, shape index: {}]  }
   0x1   :  { %v18_v0 = vld [vmem:[%s15732_s0] sm:$0xff]  ;;  %v20_v1 = vld [vmem:[%s15732_s0 + $0x10] sm:$0xff]  ;;  %v19_v2 = vld [vmem:[%s15732_s0 + $0x8] sm:$0xff] }
   0x2   :  { %v111_v3 = vsel %vm110_vm0, %v18_v0, 0.0  ;;  %v117_v4 = vsel %vm110_vm0, %v20_v1, 0.0  ;;  %v21_v5 = vld [vmem:[%s15732_s0 + $0x18] sm:$0xff]  ;;  %v114_v6 = vsel %vm110_vm0, %v19_v2, 0.0  ;;  %v22_v8 = vld [vmem:[%s15732_s0 + $0x20] sm:$0xff]  ;;  %v23_v9 = vld [vmem:[%s15732_s0 + $0x28] sm:$0xff] }
   0x3   :  { %112 = vadd.xlane.f32.xlu0 %v111_v3  ;;  %118 = vadd.xlane.f32.xlu1 %v117_v4  ;;  %v120_v7 = vsel %vm110_vm0, %v21_v5, 0.0 }
   0x4   :  { %9 = vsyncpa [#allocation3], 0  ;;  %v123_v10 = vsel %vm110_vm0, %v22_v8, 0.0  ;;  %v126_v11 = vsel %vm110_vm0, %v23_v9, 0.0  ;;  %v11002_v12 = vld [vmem:[%s15732_s0 + $0x30] sm:$0xff]  ;;  %v11007_v13 = vld [vmem:[%s15732_s0 + $0x38] sm:$0xff] }
   0x5   :  { %v129_v14 = vsel %vm110_vm0, %v11002_v12, 0.0  ;;  %v132_v15 = vsel %vm110_vm0, %v11007_v13, 0.0  ;;  %v11016_v16 = vld [vmem:[%s15732_s0 + $0x40] sm:$0xff]  ;;  %v11021_v17 = vld [vmem:[%s15732_s0 + $0x48] sm:$0xff]  ;;  %v11030_v20 = vld [vmem:[%s15732_s0 + $0x50] sm:$0xff]  ;;  %vm605_vm1 = vcmask 64512  }
   0x6   :  { %v135_v18 = vsel %vm110_vm0, %v11016_v16, 0.0  ;;  %v138_v19 = vsel %vm110_vm0, %v11021_v17, 0.0  ;;  %v11035_v21 = vld [vmem:[%s15732_s0 + $0x58] sm:$0xff]  ;;  %v141_v22 = vsel %vm110_vm0, %v11030_v20, 0.0  ;;  %v11044_v24 = vld [vmem:[%s15732_s0 + $0x60] sm:$0xff]  ;;  %v11049_v25 = vld [vmem:[%s15732_s0 + $0x68] sm:$0xff] }
   0x7   :  { %115 = vadd.xlane.f32.xlu0 %v114_v6  ;;  %121 = vadd.xlane.f32.xlu1 %v120_v7  ;;  %v144_v23 = vsel %vm110_vm0, %v11035_v21, 0.0  ;;  %v147_v26 = vsel %vm110_vm0, %v11044_v24, 0.0  ;;  %v150_v27 = vsel %vm110_vm0, %v11049_v25, 0.0  ;;  %v11058_v28 = vld [vmem:[%s15732_s0 + $0x70] sm:$0xff]  ;;  %v11063_v29 = vld [vmem:[%s15732_s0 + $0x78] sm:$0xff]  ;;  %s10934_s6 = smov 96  }
   0x8   :  { %v153_v30 = vsel %vm110_vm0, %v11058_v28, 0.0  ;;  %v156_v31 = vsel %vm110_vm0, %v11063_v29, 0.0  ;;  %s10935_s7 = smov 64   ;;  %s10936_s8 = smov 88   ;;  %vm3318_vm2 = vcmask 130048   ;;  %vm3335_vm3 = vcmask 195584  }
   0x9   :  { %s10937_s17 = smov 120   ;;  %s10938_s18 = smov 56   ;;  %vm4158_vm4 = vcmask 523264  }
   0xa   :  { %s10939_s19 = smov 80   ;;  %s10940_s20 = smov 112  }
   0xb   :  { %124 = vadd.xlane.f32.xlu0 %v123_v10  ;;  %127 = vadd.xlane.f32.xlu1 %v126_v11  ;;  %s10941_s0 = smov 48   ;;  %s10942_s21 = smov 72  }
   0xc   :  { %s10943_s13 = smov 104   ;;  %s10944_s14 = smov 40  }
   0xd   :  { %s10945_s15 = smov 8   ;;  %s10946_s16 = smov 16  }
   0xe   :  { %s10947_s30 = smov 24  }
   0xf   :  { %130 = vadd.xlane.f32.xlu0 %v129_v14  ;;  %133 = vadd.xlane.f32.xlu1 %v132_v15 }
  0x13   :  { %136 = vadd.xlane.f32.xlu0 %v135_v18  ;;  %139 = vadd.xlane.f32.xlu1 %v138_v19 }
  0x17   :  { %142 = vadd.xlane.f32.xlu0 %v141_v22  ;;  %145 = vadd.xlane.f32.xlu1 %v144_v23 }
  0x1b   :  { %148 = vadd.xlane.f32.xlu0 %v147_v26  ;;  %151 = vadd.xlane.f32.xlu1 %v150_v27 }
  0x1f   :  { %154 = vadd.xlane.f32.xlu0 %v153_v30  ;;  %157 = vadd.xlane.f32.xlu1 %v156_v31 }
  0x8c   :  { %v113_v32 = vpop.xlane.xlu0 %112  ;;  %v119_v33 = vpop.xlane.xlu1 %118 }
  0x8d   :  { %v160_v34 = vmul.f32 0.03125, %v113_v32  ;;  %v162_v35 = vmul.f32 0.03125, %v119_v33 }
  0x8f   :  { %v11069_v36 = vsub.f32 %v18_v0, %v160_v34  ;;  %v11071_v37 = vsub.f32 %v20_v1, %v162_v35 }
  0x90   :  { %v116_v38 = vpop.xlane.xlu0 %115  ;;  %v122_v39 = vpop.xlane.xlu1 %121 }
  0x91   :  { %v161_v40 = vmul.f32 0.03125, %v116_v38  ;;  %v163_v41 = vmul.f32 0.03125, %v122_v39  ;;  %v192_v42 = vmul.f32 %v11069_v36, %v11069_v36  ;;  %v194_v43 = vmul.f32 %v11071_v37, %v11071_v37 }
  0x93   :  { %v11077_v44 = vsub.f32 %v19_v2, %v161_v40  ;;  %v11079_v45 = vsub.f32 %v21_v5, %v163_v41  ;;  %v208_v46 = vsel %vm110_vm0, %v192_v42, 0.0  ;;  %v214_v49 = vsel %vm110_vm0, %v194_v43, 0.0 }
  0x94   :  { %209 = vadd.xlane.f32.xlu0 %v208_v46  ;;  %v125_v47 = vpop.xlane.xlu0 %124  ;;  %v128_v48 = vpop.xlane.xlu1 %127 }
  0x95   :  { %v164_v50 = vmul.f32 0.03125, %v125_v47  ;;  %v165_v51 = vmul.f32 0.03125, %v128_v48  ;;  %v193_v52 = vmul.f32 %v11077_v44, %v11077_v44  ;;  %v195_v53 = vmul.f32 %v11079_v45, %v11079_v45 }
  0x97   :  { %v11087_v54 = vsub.f32 %v22_v8, %v164_v50  ;;  %v11089_v55 = vsub.f32 %v23_v9, %v165_v51  ;;  %v211_v56 = vsel %vm110_vm0, %v193_v52, 0.0  ;;  %v217_v59 = vsel %vm110_vm0, %v195_v53, 0.0  ;;  %v96_v53 = vld [vmem:[%s15734_s2 + $0x60] sm:$0xff] }
  0x98   :  { %215 = vadd.xlane.f32.xlu0 %v214_v49  ;;  %212 = vadd.xlane.f32.xlu1 %v211_v56  ;;  %v131_v57 = vpop.xlane.xlu0 %130  ;;  %v134_v58 = vpop.xlane.xlu1 %133  ;;  %v90_v56 = vld [vmem:[%s15734_s2 + $0x30] sm:$0xff] }
  0x99   :  { %v166_v60 = vmul.f32 0.03125, %v131_v57  ;;  %v167_v61 = vmul.f32 0.03125, %v134_v58  ;;  %v196_v62 = vmul.f32 %v11087_v54, %v11087_v54  ;;  %v197_v63 = vmul.f32 %v11089_v55, %v11089_v55  ;;  %v84_v57 = vld [vmem:[%s15734_s2] sm:$0xff] }
  0x9b   :  { %v11098_v0 = vsub.f32 %v11002_v12, %v166_v60  ;;  %v11101_v1 = vsub.f32 %v11007_v13, %v167_v61  ;;  %v220_v2 = vsel %vm110_vm0, %v196_v62, 0.0  ;;  %v223_v5 = vsel %vm110_vm0, %v197_v63, 0.0 }
  0x9c   :  { %218 = vadd.xlane.f32.xlu1 %v217_v59  ;;  %221 = vadd.xlane.f32.xlu0 %v220_v2  ;;  %v137_v3 = vpop.xlane.xlu0 %136  ;;  %v140_v4 = vpop.xlane.xlu1 %139 }
  0x9d   :  { %v168_v6 = vmul.f32 0.03125, %v137_v3  ;;  %v169_v7 = vmul.f32 0.03125, %v140_v4  ;;  %v198_v8 = vmul.f32 %v11098_v0, %v11098_v0  ;;  %v199_v9 = vmul.f32 %v11101_v1, %v11101_v1 }
  0x9e   :  { %v320_v3 = vlaneseq }
  0x9f   :  { %v11110_v10 = vsub.f32 %v11016_v16, %v168_v6  ;;  %v11113_v11 = vsub.f32 %v11021_v17, %v169_v7  ;;  %v226_v12 = vsel %vm110_vm0, %v198_v8, 0.0  ;;  %v229_v15 = vsel %vm110_vm0, %v199_v9, 0.0 }
  0xa0   :  { %224 = vadd.xlane.f32.xlu1 %v223_v5  ;;  %227 = vadd.xlane.f32.xlu0 %v226_v12  ;;  %v143_v13 = vpop.xlane.xlu0 %142  ;;  %v146_v14 = vpop.xlane.xlu1 %145  ;;  %v11171_v12 = vshrl.u32 %v320_v3, 7 }
  0xa1   :  { %v170_v18 = vmul.f32 0.03125, %v143_v13  ;;  %v171_v19 = vmul.f32 0.03125, %v146_v14  ;;  %v200_v22 = vmul.f32 %v11110_v10, %v11110_v10  ;;  %v201_v16 = vmul.f32 %v11113_v11, %v11113_v11 }
  0xa2   :  { %15800 = vst [vmem:[#allocation5_spill] sm:$0xff] %v11171_v12 }
  0xa3   :  { %v11122_v23 = vsub.f32 %v11030_v20, %v170_v18  ;;  %v11125_v17 = vsub.f32 %v11035_v21, %v171_v19  ;;  %v232_v26 = vsel %vm110_vm0, %v200_v22, 0.0  ;;  %v235_v31 = vsel %vm110_vm0, %v201_v16, 0.0 }
  0xa4   :  { %230 = vadd.xlane.f32.xlu1 %v229_v15  ;;  %233 = vadd.xlane.f32.xlu0 %v232_v26  ;;  %v149_v27 = vpop.xlane.xlu0 %148  ;;  %v152_v30 = vpop.xlane.xlu1 %151  ;;  %v15737_v16 = vsub.s32 0, %v11171_v12  ;;  %v108_v26 = vld [vmem:[%s15735_s3] sm:$0xff] }
  0xa5   :  { %v172_v32 = vmul.f32 0.03125, %v149_v27  ;;  %v173_v33 = vmul.f32 0.03125, %v152_v30  ;;  %v202_v34 = vmul.f32 %v11122_v23, %v11122_v23  ;;  %v203_v20 = vmul.f32 %v11125_v17, %v11125_v17 }
  0xa7   :  { %v11134_v35 = vsub.f32 %v11044_v24, %v172_v32  ;;  %v11137_v21 = vsub.f32 %v11049_v25, %v173_v33  ;;  %v238_v38 = vsel %vm110_vm0, %v202_v34, 0.0  ;;  %v241_v41 = vsel %vm110_vm0, %v203_v20, 0.0 }
  0xa8   :  { %236 = vadd.xlane.f32.xlu1 %v235_v31  ;;  %239 = vadd.xlane.f32.xlu0 %v238_v38  ;;  %v155_v39 = vpop.xlane.xlu0 %154  ;;  %v158_v40 = vpop.xlane.xlu1 %157  ;;  %v342_v31 = vsub.s32 1, %v11171_v12  ;;  %v11180_v38 = vrot.slane %v108_v26, %v15737_v16 }
  0xa9   :  { %v174_v42 = vmul.f32 0.03125, %v155_v39  ;;  %v175_v43 = vmul.f32 0.03125, %v158_v40  ;;  %v204_v46 = vmul.f32 %v11134_v35, %v11134_v35  ;;  %v205_v24 = vmul.f32 %v11137_v21, %v11137_v21 }
  0xab   :  { %v11146_v47 = vsub.f32 %v11058_v28, %v174_v42  ;;  %v11149_v25 = vsub.f32 %v11063_v29, %v175_v43  ;;  %v244_v48 = vsel %vm110_vm0, %v204_v46, 0.0  ;;  %v247_v49 = vsel %vm110_vm0, %v205_v24, 0.0  ;;  %v102_v29 = vld [vmem:[%s15734_s2 + $0x90] sm:$0xff] }
  0xac   :  { %242 = vadd.xlane.f32.xlu1 %v241_v41  ;;  %245 = vadd.xlane.f32.xlu0 %v244_v48  ;;  %v11185_v43 = vrot.slane %v108_v26, %v342_v31 }
  0xad   :  { %v206_v50 = vmul.f32 %v11146_v47, %v11146_v47  ;;  %v207_v51 = vmul.f32 %v11149_v25, %v11149_v25  ;;  %9043 = vmatprep.subr.mxu0 %v102_v29 }
  0xae   :  { %9044 = vmatpush3.msra.mxu0 %v102_v29 }
  0xaf   :  { %v250_v52 = vsel %vm110_vm0, %v206_v50, 0.0  ;;  %v253_v28 = vsel %vm110_vm0, %v207_v51, 0.0  ;;  %9045 = vmatprep.subr.mxu0 %v96_v53 }
  0xb0   :  { %248 = vadd.xlane.f32.xlu1 %v247_v49  ;;  %251 = vadd.xlane.f32.xlu0 %v250_v52 }
  0xb1   :  { %9046 = vmatpush3.msra.mxu0 %v96_v53 }
  0xb2   :  { %9047 = vmatprep.subr.mxu0 %v90_v56 }
  0xb3   :  { %9048 = vmatpush3.msra.mxu0 %v90_v56 }
  0xb4   :  { %254 = vadd.xlane.f32.xlu1 %v253_v28  ;;  %9049 = vmatprep.subr.mxu0 %v84_v57 }
  0xb5   :  { %9050 = vmatpush3.msra.mxu0 %v84_v57 }
 0x11d   :  { %v210_v58 = vpop.xlane.xlu0 %209 }
 0x11e   :  { %v256_v59 = vmul.f32 0.03125, %v210_v58 }
 0x120   :  { %v272_v60 = vadd.f32 1e-12, %v256_v59 }
 0x121   :  { %v213_v61 = vpop.xlane.xlu1 %212  ;;  %v216_v62 = vpop.xlane.xlu0 %215 }
 0x122   :  { %10235 = vrsqrt.f32 %v272_v60  ;;  %v257_v63 = vmul.f32 0.03125, %v213_v61  ;;  %v258_v2 = vmul.f32 0.03125, %v216_v62 }
 0x124   :  { %v273_v4 = vadd.f32 1e-12, %v257_v63  ;;  %v274_v5 = vadd.f32 1e-12, %v258_v2 }
 0x125   :  { %v219_v6 = vpop.xlane.xlu1 %218  ;;  %v222_v7 = vpop.xlane.xlu0 %221 }
 0x126   :  { %10237 = vrsqrt.f32 %v273_v4  ;;  %v259_v8 = vmul.f32 0.03125, %v219_v6  ;;  %v260_v9 = vmul.f32 0.03125, %v222_v7 }
 0x127   :  { %10239 = vrsqrt.f32 %v274_v5 }
 0x128   :  { %v275_v13 = vadd.f32 1e-12, %v259_v8  ;;  %v276_v14 = vadd.f32 1e-12, %v260_v9 }
 0x129   :  { %v225_v15 = vpop.xlane.xlu1 %224  ;;  %v228_v18 = vpop.xlane.xlu0 %227 }
 0x12a   :  { %10241 = vrsqrt.f32 %v275_v13  ;;  %v261_v19 = vmul.f32 0.03125, %v225_v15  ;;  %v262_v22 = vmul.f32 0.03125, %v228_v18 }
 0x12b   :  { %10243 = vrsqrt.f32 %v276_v14 }
 0x12c   :  { %v277_v27 = vadd.f32 1e-12, %v261_v19  ;;  %v278_v30 = vadd.f32 1e-12, %v262_v22 }
 0x12d   :  { %v231_v32 = vpop.xlane.xlu1 %230  ;;  %v234_v33 = vpop.xlane.xlu0 %233 }
 0x12e   :  { %10245 = vrsqrt.f32 %v277_v27  ;;  %v263_v34 = vmul.f32 0.03125, %v231_v32  ;;  %v264_v20 = vmul.f32 0.03125, %v234_v33 }
 0x12f   :  { %v10236_v39 = vpop.eup %10235  ;;  %10247 = vrsqrt.f32 %v278_v30 }
 0x130   :  { %v279_v40 = vadd.f32 1e-12, %v263_v34  ;;  %v280_v41 = vadd.f32 1e-12, %v264_v20  ;;  %v304_v42 = vmul.f32 %v10236_v39, %v11069_v36 }
 0x131   :  { %v237_v46 = vpop.xlane.xlu1 %236  ;;  %v240_v24 = vpop.xlane.xlu0 %239 }
 0x132   :  { %10249 = vrsqrt.f32 %v279_v40  ;;  %v265_v48 = vmul.f32 0.03125, %v237_v46  ;;  %v266_v49 = vmul.f32 0.03125, %v240_v24  ;;  %v324_v50 = vmul.f32 %v11180_v38, %v304_v42 }
 0x133   :  { %v10238_v51 = vpop.eup %10237  ;;  %10251 = vrsqrt.f32 %v280_v41 }
 0x134   :  { %v10240_v52 = vpop.eup %10239  ;;  %v281_v28 = vadd.f32 1e-12, %v265_v48  ;;  %v282_v29 = vadd.f32 1e-12, %v266_v49  ;;  %v11189_v53 = vadd.f32 %v11185_v43, %v324_v50  ;;  %v305_v36 = vmul.f32 %v10238_v51, %v11077_v44 }
 0x135   :  { %v243_v56 = vpop.xlane.xlu1 %242  ;;  %v246_v57 = vpop.xlane.xlu0 %245  ;;  %v306_v58 = vmul.f32 %v10240_v52, %v11071_v37 }
 0x136   :  { %15801 = vst [vmem:[#allocation6_spill] sm:$0xff] %v11189_v53  ;;  %10253 = vrsqrt.f32 %v281_v28  ;;  %v267_v59 = vmul.f32 0.03125, %v243_v56  ;;  %v268_v60 = vmul.f32 0.03125, %v246_v57  ;;  %9051 = vmatprep.mubr.msk.f32.mxu0 %vm110_vm0, %v11189_v53  ;;  %v325_v61 = vmul.f32 %v11180_v38, %v305_v36 }
 0x137   :  { %v10242_v62 = vpop.eup %10241  ;;  %10255 = vrsqrt.f32 %v282_v29  ;;  %v326_v63 = vmul.f32 %v11180_v38, %v306_v58 }
 0x138   :  { %v10244_v2 = vpop.eup %10243  ;;  %v283_v3 = vadd.f32 1e-12, %v267_v59  ;;  %v284_v4 = vadd.f32 1e-12, %v268_v60  ;;  %v11198_v44 = vadd.f32 %v11185_v43, %v325_v61  ;;  %v307_v37 = vmul.f32 %v10242_v62, %v11079_v45 }
 0x139   :  { %v249_v5 = vpop.xlane.xlu1 %248  ;;  %v252_v6 = vpop.xlane.xlu0 %251  ;;  %v11202_v7 = vadd.f32 %v11185_v43, %v326_v63  ;;  %v308_v8 = vmul.f32 %v10244_v2, %v11087_v54 }
 0x13a   :  { %15802 = vst [vmem:[#allocation7_spill] sm:$0xff] %v11198_v44  ;;  %10257 = vrsqrt.f32 %v283_v3  ;;  %v269_v9 = vmul.f32 0.03125, %v249_v5  ;;  %v270_v13 = vmul.f32 0.03125, %v252_v6  ;;  %9052 = vmatmul.mubr.msk.f32.vlgmr.msra.gmra.mxu0 %vm110_vm0, %v11198_v44  ;;  %v327_v14 = vmul.f32 %v11180_v38, %v307_v37 }
 0x13b   :  { %15803 = vst [vmem:[#allocation8_spill] sm:$0xff] %v11202_v7  ;;  %v10246_v15 = vpop.eup %10245  ;;  %10259 = vrsqrt.f32 %v284_v4  ;;  %9054 = vmatprep.mubr.msk.f32.mxu0 %vm110_vm0, %v11202_v7  ;;  %v328_v45 = vmul.f32 %v11180_v38, %v308_v8 }
 0x13c   :  { %v10248_v18 = vpop.eup %10247  ;;  %v285_v19 = vadd.f32 1e-12, %v269_v9  ;;  %v286_v22 = vadd.f32 1e-12, %v270_v13  ;;  %v11212_v54 = vadd.f32 %v11185_v43, %v327_v14  ;;  %v309_v26 = vmul.f32 %v10246_v15, %v11089_v55 }
 0x13d   :  { %v255_v27 = vpop.xlane.xlu1 %254  ;;  %v11216_v30 = vadd.f32 %v11185_v43, %v328_v45  ;;  %v310_v32 = vmul.f32 %v10248_v18, %v11098_v0 }
 0x13e   :  { %15804 = vst [vmem:[#allocation9_spill] sm:$0xff] %v11212_v54  ;;  %10261 = vrsqrt.f32 %v285_v19  ;;  %v271_v33 = vmul.f32 0.03125, %v255_v27  ;;  %9055 = vmatmul.mubr.msk.f32.gmra.mxu0 %vm110_vm0, %v11212_v54  ;;  %v329_v34 = vmul.f32 %v11180_v38, %v309_v26 }
 0x13f   :  { %15805 = vst [vmem:[#allocation10_spill] sm:$0xff] %v11216_v30  ;;  %v10250_v20 = vpop.eup %10249  ;;  %10263 = vrsqrt.f32 %v286_v22  ;;  %9057 = vmatprep.mubr.msk.f32.mxu0 %vm110_vm0, %v11216_v30  ;;  %v330_v55 = vmul.f32 %v11180_v38, %v310_v32 }
 0x140   :  { %v10252_v39 = vpop.eup %10251  ;;  %v287_v40 = vadd.f32 1e-12, %v271_v33  ;;  %v11226_v41 = vadd.f32 %v11185_v43, %v329_v34  ;;  %v311_v0 = vmul.f32 %v10250_v20, %v11101_v1 }
 0x141   :  { %v11230_v42 = vadd.f32 %v11185_v43, %v330_v55  ;;  %v312_v46 = vmul.f32 %v10252_v39, %v11110_v10 }
 0x142   :  { %15806 = vst [vmem:[#allocation11_spill] sm:$0xff] %v11226_v41  ;;  %10265 = vrsqrt.f32 %v287_v40  ;;  %9058 = vmatmul.mubr.msk.f32.gmra.mxu0 %vm110_vm0, %v11226_v41  ;;  %v331_v24 = vmul.f32 %v11180_v38, %v311_v0 }
 0x143   :  { %15807 = vst [vmem:[#allocation12_spill] sm:$0xff] %v11230_v42  ;;  %v10254_v48 = vpop.eup %10253  ;;  %9060 = vmatprep.mubr.msk.f32.mxu0 %vm110_vm0, %v11230_v42  ;;  %v332_v49 = vmul.f32 %v11180_v38, %v312_v46 }
 0x144   :  { %v10256_v50 = vpop.eup %10255  ;;  %v11240_v1 = vadd.f32 %v11185_v43, %v331_v24  ;;  %v313_v51 = vmul.f32 %v10254_v48, %v11113_v11 }
 0x145   :  { %v11244_v10 = vadd.f32 %v11185_v43, %v332_v49  ;;  %v314_v52 = vmul.f32 %v10256_v50, %v11122_v23 }
 0x146   :  { %15808 = vst [vmem:[#allocation13_spill] sm:$0xff] %v11240_v1  ;;  %9061 = vmatmul.mubr.msk.f32.gmra.mxu0 %vm110_vm0, %v11240_v1  ;;  %v333_v28 = vmul.f32 %v11180_v38, %v313_v51 }
 0x147   :  { %15809 = vst [vmem:[#allocation14_spill] sm:$0xff] %v11244_v10  ;;  %v10258_v29 = vpop.eup %10257  ;;  %9063 = vmatprep.mubr.msk.f32.mxu0 %vm110_vm0, %v11244_v10  ;;  %v334_v36 = vmul.f32 %v11180_v38, %v314_v52 }
 0x148   :  { %v10260_v56 = vpop.eup %10259  ;;  %v11254_v57 = vadd.f32 %v11185_v43, %v333_v28  ;;  %v315_v11 = vmul.f32 %v10258_v29, %v11125_v17 }
 0x149   :  { %v11258_v58 = vadd.f32 %v11185_v43, %v334_v36  ;;  %v316_v23 = vmul.f32 %v10260_v56, %v11134_v35 }
 0x14a   :  { %15810 = vst [vmem:[#allocation15_spill] sm:$0xff] %v11254_v57  ;;  %9064 = vmatmul.mubr.msk.f32.gmra.mxu0 %vm110_vm0, %v11254_v57  ;;  %v335_v59 = vmul.f32 %v11180_v38, %v315_v11 }
 0x14b   :  { %15811 = vst [vmem:[#allocation16_spill] sm:$0xff] %v11258_v58  ;;  %v10262_v60 = vpop.eup %10261  ;;  %9066 = vmatprep.mubr.msk.f32.mxu0 %vm110_vm0, %v11258_v58  ;;  %v336_v61 = vmul.f32 %v11180_v38, %v316_v23 }
 0x14c   :  { %v10264_v62 = vpop.eup %10263  ;;  %v11268_v63 = vadd.f32 %v11185_v43, %v335_v59  ;;  %v317_v17 = vmul.f32 %v10262_v60, %v11137_v21 }
 0x14d   :  { %v11272_v2 = vadd.f32 %v11185_v43, %v336_v61  ;;  %v318_v35 = vmul.f32 %v10264_v62, %v11146_v47 }
 0x14e   :  { %15812 = vst [vmem:[#allocation17_spill] sm:$0xff] %v11268_v63  ;;  %9067 = vmatmul.mubr.msk.f32.gmra.mxu0 %vm110_vm0, %v11268_v63  ;;  %v337_v3 = vmul.f32 %v11180_v38, %v317_v17  ;;  %v11603_v63 = vld [vmem:[%s15733_s1 + $0x60] sm:$0xff] }
 0x14f   :  { %15813 = vst [vmem:[#allocation18_spill] sm:$0xff] %v11272_v2  ;;  %v10266_v4 = vpop.eup %10265  ;;  %9069 = vmatprep.mubr.msk.f32.mxu0 %vm110_vm0, %v11272_v2  ;;  %v338_v37 = vmul.f32 %v11180_v38, %v318_v35  ;;  %15819 = vst [vmem:[#allocation24_spill] sm:$0xff] %v11603_v63 }
 0x150   :  { %v11282_v5 = vadd.f32 %v11185_v43, %v337_v3  ;;  %v319_v21 = vmul.f32 %v10266_v4, %v11149_v25  ;;  %v109_v25 = vld [vmem:[%s15735_s3 + $0x8] sm:$0xf] }
 0x151   :  { %v11286_v6 = vadd.f32 %v11185_v43, %v338_v37  ;;  %v363_v13 = vrot.slane %v109_v25, %v342_v31 }
 0x152   :  { %15814 = vst [vmem:[#allocation19_spill] sm:$0xff] %v11282_v5  ;;  %9070 = vmatmul.mubr.msk.f32.gmra.mxu0 %vm110_vm0, %v11282_v5  ;;  %v339_v47 = vmul.f32 %v11180_v38, %v319_v21 }
 0x153   :  { %15815 = vst [vmem:[#allocation20_spill] sm:$0xff] %v11286_v6  ;;  %9072 = vmatprep.mubr.msk.f32.mxu0 %vm110_vm0, %v11286_v6 }
 0x154   :  { %v11294_v8 = vadd.f32 %v11185_v43, %v339_v47 }
 0x156   :  { %15816 = vst [vmem:[#allocation21_spill] sm:$0xff] %v11294_v8  ;;  %9073 = vmatmul.mubr.msk.f32.gmra.mxu0 %vm110_vm0, %v11294_v8  ;;  %v11585_v8 = vld [vmem:[%s15733_s1 + $0x50] sm:$0xff] }
 0x1fa   :  { %v9053_v9 = vpop.f32.mrf.mxu0 }
 0x1fb   :  { %v11353_v36 = vadd.f32 %v9053_v9, %v363_v13 }
 0x1fc   :  { %v478_v14 = vpop.f32.mrf.mxu0 }
 0x1fd   :  { %v11303_v38 = vadd.f32 %v478_v14, %v363_v13 }
 0x1fe   :  { %v9056_v15 = vpop.f32.mrf.mxu0 }
 0x1ff   :  { %9107 = vmatprep.mubr.msk.f32.mxu1 %vm605_vm1, %v11303_v38  ;;  %v11345_v28 = vadd.f32 %v9056_v15, %v363_v13 }
 0x200   :  { %v488_v43 = vpop.f32.mrf.mxu0 }
 0x201   :  { %v11363_v11 = vadd.f32 %v488_v43, %v363_v13 }
 0x202   :  { %v9059_v45 = vpop.f32.mrf.mxu0 }
 0x203   :  { %v11337_v51 = vadd.f32 %v9059_v45, %v363_v13 }
 0x204   :  { %v498_v18 = vpop.f32.mrf.mxu0 }
 0x205   :  { %v11357_v56 = vadd.f32 %v498_v18, %v363_v13 }
 0x206   :  { %v9062_v19 = vpop.f32.mrf.mxu0 }
 0x207   :  { %v11329_v49 = vadd.f32 %v9062_v19, %v363_v13 }
 0x208   :  { %v508_v22 = vpop.f32.mrf.mxu0 }
 0x209   :  { %v11349_v29 = vadd.f32 %v508_v22, %v363_v13 }
 0x20a   :  { %v9065_v26 = vpop.f32.mrf.mxu0 }
 0x20b   :  { %v11321_v24 = vadd.f32 %v9065_v26, %v363_v13 }
 0x20c   :  { %v518_v27 = vpop.f32.mrf.mxu0 }
 0x20d   :  { %v11341_v52 = vadd.f32 %v518_v27, %v363_v13 }
 0x20e   :  { %v9068_v32 = vpop.f32.mrf.mxu0 }
 0x20f   :  { %v11313_v0 = vadd.f32 %v9068_v32, %v363_v13 }
 0x210   :  { %v528_v33 = vpop.f32.mrf.mxu0 }
 0x211   :  { %v11333_v50 = vadd.f32 %v528_v33, %v363_v13 }
 0x212   :  { %v9071_v34 = vpop.f32.mrf.mxu0 }
 0x213   :  { %v11317_v46 = vadd.f32 %v9071_v34, %v363_v13 }
 0x214   :  { %v538_v20 = vpop.f32.mrf.mxu0 }
 0x215   :  { %v11325_v48 = vadd.f32 %v538_v20, %v363_v13 }
 0x216   :  { %v9074_v31 = vpop.f32.mrf.mxu0 }
 0x217   :  { %v11307_v55 = vadd.f32 %v9074_v31, %v363_v13 }
 0x218   :  { %v548_v39 = vpop.f32.mrf.mxu0 }
 0x219   :  { %v11309_v40 = vadd.f32 %v548_v39, %v363_v13  ;;  %603 = vrot.lane.b32.xlu0 %v11307_v55, %s10934_s6 }
 0x21b   :  { %601 = vrot.lane.b32.xlu1 %v11309_v40, %s10934_s6 }
 0x21d   :  { %595 = vrot.lane.b32.xlu0 %v11313_v0, %s10934_s6 }
 0x21f   :  { %599 = vrot.lane.b32.xlu1 %v11317_v46, %s10934_s6 }
 0x221   :  { %591 = vrot.lane.b32.xlu0 %v11321_v24, %s10934_s6 }
 0x223   :  { %597 = vrot.lane.b32.xlu1 %v11325_v48, %s10934_s6 }
 0x225   :  { %587 = vrot.lane.b32.xlu0 %v11329_v49, %s10934_s6 }
 0x227   :  { %593 = vrot.lane.b32.xlu1 %v11333_v50, %s10934_s6 }
 0x229   :  { %583 = vrot.lane.b32.xlu0 %v11337_v51, %s10934_s6 }
 0x22b   :  { %589 = vrot.lane.b32.xlu1 %v11341_v52, %s10934_s6 }
 0x22d   :  { %579 = vrot.lane.b32.xlu0 %v11345_v28, %s10934_s6 }
 0x22f   :  { %585 = vrot.lane.b32.xlu1 %v11349_v29, %s10934_s6 }
 0x231   :  { %575 = vrot.lane.b32.xlu0 %v11353_v36, %s10934_s6 }
 0x233   :  { %581 = vrot.lane.b32.xlu1 %v11357_v56, %s10934_s6 }
 0x235   :  { %1021 = vrot.lane.b32.xlu0 %v11307_v55, %s10935_s7 }
 0x237   :  { %577 = vrot.lane.b32.xlu1 %v11363_v11, %s10934_s6 }
 0x239   :  { %1017 = vrot.lane.b32.xlu0 %v11317_v46, %s10935_s7 }
 0x23b   :  { %573 = vrot.lane.b32.xlu1 %v11303_v38, %s10934_s6 }
 0x23d   :  { %1013 = vrot.lane.b32.xlu0 %v11313_v0, %s10935_s7 }
 0x23f   :  { %1015 = vrot.lane.b32.xlu1 %v11325_v48, %s10935_s7 }
 0x241   :  { %1005 = vrot.lane.b32.xlu0 %v11329_v49, %s10935_s7 }
 0x243   :  { %1011 = vrot.lane.b32.xlu1 %v11333_v50, %s10935_s7 }
 0x245   :  { %1001 = vrot.lane.b32.xlu0 %v11337_v51, %s10935_s7 }
 0x247   :  { %1009 = vrot.lane.b32.xlu1 %v11321_v24, %s10935_s7 }
 0x249   :  { %997 = vrot.lane.b32.xlu0 %v11345_v28, %s10935_s7 }
 0x24b   :  { %1007 = vrot.lane.b32.xlu1 %v11341_v52, %s10935_s7 }
 0x24d   :  { %993 = vrot.lane.b32.xlu0 %v11353_v36, %s10935_s7 }
 0x24f   :  { %1003 = vrot.lane.b32.xlu1 %v11349_v29, %s10935_s7 }
 0x251   :  { %1246 = vrot.lane.b32.xlu0 %v11307_v55, %s10936_s8 }
 0x253   :  { %999 = vrot.lane.b32.xlu1 %v11357_v56, %s10935_s7 }
 0x255   :  { %1242 = vrot.lane.b32.xlu0 %v11317_v46, %s10936_s8 }
 0x257   :  { %995 = vrot.lane.b32.xlu1 %v11363_v11, %s10935_s7 }
 0x259   :  { %1238 = vrot.lane.b32.xlu0 %v11313_v0, %s10936_s8 }
 0x25b   :  { %991 = vrot.lane.b32.xlu1 %v11303_v38, %s10935_s7 }
 0x25f   :  { %1240 = vrot.lane.b32.xlu1 %v11325_v48, %s10936_s8 }
 0x263   :  { %1019 = vrot.lane.b32.xlu1 %v11309_v40, %s10935_s7 }
 0x267   :  { %1244 = vrot.lane.b32.xlu1 %v11309_v40, %s10936_s8 }
 0x28b   :  { %v604_v23 = vpop.permute.xlu0 %603 }
 0x28c   :  { %9075 = vmatprep.subr.msk.mxu1 %vm605_vm1, %v604_v23 }
 0x28d   :  { %9076 = vmatpush3.xpose.msk.msra.mxu1 %vm605_vm1, %v604_v23  ;;  %v602_v59 = vpop.permute.xlu1 %601 }
 0x28e   :  { %9077 = vmatprep.subr.msk.mxu1 %vm605_vm1, %v602_v59 }
 0x28f   :  { %v596_v60 = vpop.permute.xlu0 %595 }
 0x291   :  { %9078 = vmatpush3.xpose.msk.msra.mxu1 %vm605_vm1, %v602_v59  ;;  %v600_v61 = vpop.permute.xlu1 %599 }
 0x292   :  { %9079 = vmatprep.subr.msk.mxu1 %vm605_vm1, %v600_v61 }
 0x293   :  { %v592_v62 = vpop.permute.xlu0 %591 }
 0x295   :  { %9080 = vmatpush3.xpose.msk.msra.mxu1 %vm605_vm1, %v600_v61  ;;  %v598_v17 = vpop.permute.xlu1 %597 }
 0x296   :  { %9081 = vmatprep.subr.msk.mxu1 %vm605_vm1, %v598_v17 }
 0x297   :  { %v588_v35 = vpop.permute.xlu0 %587 }
 0x299   :  { %9082 = vmatpush3.xpose.msk.msra.mxu1 %vm605_vm1, %v598_v17  ;;  %v594_v3 = vpop.permute.xlu1 %593  ;;  %v11482_v17 = vld [vmem:[%s15733_s1 + $0x8] sm:$0xff] }
 0x29a   :  { %9083 = vmatprep.subr.msk.mxu1 %vm605_vm1, %v596_v60 }
 0x29b   :  { %v584_v4 = vpop.permute.xlu0 %583 }
 0x29d   :  { %9084 = vmatpush3.xpose.msk.msra.mxu1 %vm605_vm1, %v596_v60  ;;  %v590_v37 = vpop.permute.xlu1 %589 }
 0x29e   :  { %9085 = vmatprep.subr.msk.mxu1 %vm605_vm1, %v594_v3 }
 0x29f   :  { %v580_v21 = vpop.permute.xlu0 %579 }
 0x2a1   :  { %9086 = vmatpush3.xpose.msk.msra.mxu1 %vm605_vm1, %v594_v3  ;;  %v586_v47 = vpop.permute.xlu1 %585 }
 0x2a2   :  { %9087 = vmatprep.subr.msk.mxu1 %vm605_vm1, %v592_v62 }
 0x2a3   :  { %v576_v25 = vpop.permute.xlu0 %575 }
 0x2a5   :  { %9088 = vmatpush3.xpose.msk.msra.mxu1 %vm605_vm1, %v592_v62  ;;  %v582_v9 = vpop.permute.xlu1 %581 }
 0x2a6   :  { %9089 = vmatprep.subr.msk.mxu1 %vm605_vm1, %v590_v37 }
 0x2a7   :  { %v1022_v13 = vpop.permute.xlu0 %1021 }
 0x2a8   :  { %9131 = vmatprep.subr.mxu0 %v1022_v13 }
 0x2a9   :  { %9090 = vmatpush3.xpose.msk.msra.mxu1 %vm605_vm1, %v590_v37  ;;  %9132 = vmatpush3.msra.mxu0 %v1022_v13  ;;  %v578_v14 = vpop.permute.xlu1 %577 }
 0x2aa   :  { %9091 = vmatprep.subr.msk.mxu1 %vm605_vm1, %v588_v35 }
 0x2ab   :  { %v1018_v33 = vpop.permute.xlu0 %1017 }
 0x2ad   :  { %9092 = vmatpush3.xpose.msk.msra.mxu1 %vm605_vm1, %v588_v35  ;;  %v574_v15 = vpop.permute.xlu1 %573 }
 0x2ae   :  { %9093 = vmatprep.subr.msk.mxu1 %vm605_vm1, %v586_v47 }
 0x2af   :  { %v1014_v20 = vpop.permute.xlu0 %1013 }
 0x2b1   :  { %9094 = vmatpush3.xpose.msk.msra.mxu1 %vm605_vm1, %v586_v47  ;;  %v1016_v43 = vpop.permute.xlu1 %1015 }
 0x2b2   :  { %9095 = vmatprep.subr.msk.mxu1 %vm605_vm1, %v584_v4 }
 0x2b3   :  { %v1006_v39 = vpop.permute.xlu0 %1005 }
 0x2b5   :  { %9096 = vmatpush3.xpose.msk.msra.mxu1 %vm605_vm1, %v584_v4  ;;  %v1012_v45 = vpop.permute.xlu1 %1011  ;;  %v11487_v4 = vld [vmem:[%s15733_s1] sm:$0xff] }
 0x2b6   :  { %9097 = vmatprep.subr.msk.mxu1 %vm605_vm1, %v582_v9 }
 0x2b7   :  { %v1002_v23 = vpop.permute.xlu0 %1001 }
 0x2b9   :  { %9098 = vmatpush3.xpose.msk.msra.mxu1 %vm605_vm1, %v582_v9  ;;  %v1010_v18 = vpop.permute.xlu1 %1009 }
 0x2ba   :  { %9099 = vmatprep.subr.msk.mxu1 %vm605_vm1, %v580_v21 }
 0x2bb   :  { %v998_v59 = vpop.permute.xlu0 %997 }
 0x2bd   :  { %9100 = vmatpush3.xpose.msk.msra.mxu1 %vm605_vm1, %v580_v21  ;;  %v1008_v19 = vpop.permute.xlu1 %1007 }
 0x2be   :  { %9101 = vmatprep.subr.msk.mxu1 %vm605_vm1, %v578_v14 }
 0x2bf   :  { %v994_v60 = vpop.permute.xlu0 %993 }
 0x2c1   :  { %9102 = vmatpush3.xpose.msk.msra.mxu1 %vm605_vm1, %v578_v14  ;;  %v1004_v22 = vpop.permute.xlu1 %1003  ;;  %v11499_v14 = vld [vmem:[%s15733_s1 + $0x18] sm:$0xff] }
 0x2c2   :  { %9103 = vmatprep.subr.msk.mxu1 %vm605_vm1, %v576_v25 }
 0x2c3   :  { %v11475_v61 = vpop.permute.xlu0 %1246 }
 0x2c5   :  { %9104 = vmatpush3.xpose.msk.msra.mxu1 %vm605_vm1, %v576_v25  ;;  %v1000_v26 = vpop.permute.xlu1 %999 }
 0x2c6   :  { %9105 = vmatprep.subr.msk.mxu1 %vm605_vm1, %v574_v15 }
 0x2c9   :  { %9106 = vmatpush3.xpose.msk.msra.mxu1 %vm605_vm1, %v574_v15  ;;  %v996_v27 = vpop.permute.xlu1 %995 }
 0x2cc   :  { %9108 = vmatmul.mubr.msk.f32.vlgmr.msra.gmra.mxu1 %vm605_vm1, %v11353_v36 }
 0x2cd   :  { %9110 = vmatprep.mubr.msk.f32.mxu1 %vm605_vm1, %v11363_v11  ;;  %v992_v32 = vpop.permute.xlu1 %991 }
 0x2d0   :  { %9111 = vmatmul.mubr.msk.f32.gmra.mxu1 %vm605_vm1, %v11345_v28 }
 0x2d1   :  { %9113 = vmatprep.mubr.msk.f32.mxu1 %vm605_vm1, %v11357_v56  ;;  %v11451_v34 = vpop.permute.xlu1 %1240 }
 0x2d4   :  { %9114 = vmatmul.mubr.msk.f32.gmra.mxu1 %vm605_vm1, %v11337_v51 }
 0x2d5   :  { %9116 = vmatprep.mubr.msk.f32.mxu1 %vm605_vm1, %v11349_v29  ;;  %v1020_v31 = vpop.permute.xlu1 %1019 }
 0x2d6   :  { %9133 = vmatprep.subr.mxu0 %v1020_v31 }
 0x2d7   :  { %9134 = vmatpush3.msra.mxu0 %v1020_v31 }
 0x2d8   :  { %9117 = vmatmul.mubr.msk.f32.gmra.mxu1 %vm605_vm1, %v11329_v49  ;;  %9135 = vmatprep.subr.mxu0 %v1018_v33 }
 0x2d9   :  { %9119 = vmatprep.mubr.msk.f32.mxu1 %vm605_vm1, %v11341_v52  ;;  %9136 = vmatpush3.msra.mxu0 %v1018_v33  ;;  %v11522_v33 = vld [vmem:[%s15733_s1 + $0x38] sm:$0xff] }
 0x2da   :  { %9137 = vmatprep.subr.mxu0 %v1016_v43 }
 0x2db   :  { %9138 = vmatpush3.msra.mxu0 %v1016_v43  ;;  %v11505_v43 = vld [vmem:[%s15733_s1 + $0x28] sm:$0xff] }
 0x2dc   :  { %9120 = vmatmul.mubr.msk.f32.gmra.mxu1 %vm605_vm1, %v11321_v24  ;;  %9139 = vmatprep.subr.mxu0 %v1014_v20 }
 0x2dd   :  { %9122 = vmatprep.mubr.msk.f32.mxu1 %vm605_vm1, %v11333_v50  ;;  %9140 = vmatpush3.msra.mxu0 %v1014_v20 }
 0x2de   :  { %9141 = vmatprep.subr.mxu0 %v1012_v45 }
 0x2df   :  { %9142 = vmatpush3.msra.mxu0 %v1012_v45 }
 0x2e0   :  { %9123 = vmatmul.mubr.msk.f32.gmra.mxu1 %vm605_vm1, %v11313_v0  ;;  %9143 = vmatprep.subr.mxu0 %v1010_v18 }
 0x2e1   :  { %9125 = vmatprep.mubr.msk.f32.mxu1 %vm605_vm1, %v11325_v48  ;;  %9144 = vmatpush3.msra.mxu0 %v1010_v18 }
 0x2e2   :  { %9145 = vmatprep.subr.mxu0 %v1008_v19 }
 0x2e3   :  { %9146 = vmatpush3.msra.mxu0 %v1008_v19 }
 0x2e4   :  { %9126 = vmatmul.mubr.msk.f32.gmra.mxu1 %vm605_vm1, %v11317_v46  ;;  %9147 = vmatprep.subr.mxu0 %v1006_v39 }
 0x2e5   :  { %9128 = vmatprep.mubr.msk.f32.mxu1 %vm605_vm1, %v11309_v40  ;;  %9148 = vmatpush3.msra.mxu0 %v1006_v39 }
 0x2e6   :  { %9149 = vmatprep.subr.mxu0 %v1004_v22 }
 0x2e7   :  { %9150 = vmatpush3.msra.mxu0 %v1004_v22 }
 0x2e8   :  { %9129 = vmatmul.mubr.msk.f32.gmra.mxu1 %vm605_vm1, %v11307_v55  ;;  %9151 = vmatprep.subr.mxu0 %v1002_v23 }
 0x2e9   :  { %9152 = vmatpush3.msra.mxu0 %v1002_v23 }
 0x2ea   :  { %9153 = vmatprep.subr.mxu0 %v1000_v26 }
 0x2eb   :  { %9154 = vmatpush3.msra.mxu0 %v1000_v26  ;;  %v11513_v26 = vld [vmem:[%s15733_s1 + $0x10] sm:$0xff] }
 0x2ec   :  { %9155 = vmatprep.subr.mxu0 %v998_v59 }
 0x2ed   :  { %9156 = vmatpush3.msra.mxu0 %v998_v59  ;;  %v11531_v59 = vld [vmem:[%s15733_s1 + $0x20] sm:$0xff] }
 0x2ee   :  { %9157 = vmatprep.subr.mxu0 %v996_v27 }
 0x2ef   :  { %9158 = vmatpush3.msra.mxu0 %v996_v27 }
 0x2f0   :  { %9159 = vmatprep.subr.mxu0 %v994_v60 }
 0x2f1   :  { %9160 = vmatpush3.msra.mxu0 %v994_v60 }
 0x2f2   :  { %9161 = vmatprep.subr.mxu0 %v992_v32 }
 0x2f3   :  { %9162 = vmatpush3.msra.mxu0 %v992_v32 }
 0x2f4   :  { %9187 = vmatprep.subr.msk.mxu0 %vm605_vm1, %v11475_v61 }
 0x38c   :  { %v9109_v62 = vpop.f32.mrf.mxu1 }
 0x38d   :  { %v816_v35 = vmul.f32 0.35355338, %v9109_v62 }
 0x38e   :  { %v736_v3 = vpop.f32.mrf.mxu1 }
 0x38f   :  { %v815_v37 = vmul.f32 0.35355338, %v736_v3  ;;  %v11490_v21 = vadd.f32 %v816_v35, %v11482_v17  ;;  %v11540_v35 = vld [vmem:[%s15733_s1 + $0x48] sm:$0xff] }
 0x390   :  { %v9112_v47 = vpop.f32.mrf.mxu1 }
 0x391   :  { %v818_v25 = vmul.f32 0.35355338, %v9112_v47  ;;  %849 = vmax.xlane.f32.xlu1 %v11490_v21  ;;  %v11494_v9 = vadd.f32 %v815_v37, %v11487_v4 }
 0x392   :  { %v746_v13 = vpop.f32.mrf.mxu1 }
 0x393   :  { %847 = vmax.xlane.f32.xlu0 %v11494_v9  ;;  %v817_v45 = vmul.f32 0.35355338, %v746_v13  ;;  %v11508_v19 = vadd.f32 %v818_v25, %v11499_v14  ;;  %v11549_v13 = vld [vmem:[%s15733_s1 + $0x30] sm:$0xff] }
 0x394   :  { %v9115_v15 = vpop.f32.mrf.mxu1 }
 0x395   :  { %v820_v18 = vmul.f32 0.35355338, %v9115_v15  ;;  %v11526_v39 = vadd.f32 %v817_v45, %v11513_v26 }
 0x396   :  { %v756_v22 = vpop.f32.mrf.mxu1 }
 0x397   :  { %853 = vmax.xlane.f32.xlu0 %v11508_v19  ;;  %v11517_v27 = vadd.f32 %v820_v18, %v11505_v43  ;;  %v819_v20 = vmul.f32 0.35355338, %v756_v22  ;;  %v11558_v18 = vld [vmem:[%s15733_s1 + $0x58] sm:$0xff] }
 0x398   :  { %v9118_v32 = vpop.f32.mrf.mxu1 }
 0x399   :  { %v822_v31 = vmul.f32 0.35355338, %v9118_v32  ;;  %857 = vmax.xlane.f32.xlu1 %v11517_v27  ;;  %v11544_v47 = vadd.f32 %v819_v20, %v11531_v59 }
 0x39a   :  { %v766_v23 = vpop.f32.mrf.mxu1 }
 0x39b   :  { %851 = vmax.xlane.f32.xlu0 %v11526_v39  ;;  %v11535_v60 = vadd.f32 %v822_v31, %v11522_v33  ;;  %v821_v3 = vmul.f32 0.35355338, %v766_v23  ;;  %v11567_v23 = vld [vmem:[%s15733_s1 + $0x40] sm:$0xff] }
 0x39c   :  { %v9121_v62 = vpop.f32.mrf.mxu1 }
 0x39d   :  { %v824_v37 = vmul.f32 0.35355338, %v9121_v62  ;;  %861 = vmax.xlane.f32.xlu1 %v11535_v60  ;;  %v11562_v20 = vadd.f32 %v821_v3, %v11549_v13 }
 0x39e   :  { %v776_v25 = vpop.f32.mrf.mxu1 }
 0x39f   :  { %855 = vmax.xlane.f32.xlu0 %v11544_v47  ;;  %v11553_v15 = vadd.f32 %v824_v37, %v11540_v35  ;;  %v823_v22 = vmul.f32 0.35355338, %v776_v25  ;;  %v11576_v25 = vld [vmem:[%s15733_s1 + $0x68] sm:$0xff] }
 0x3a0   :  { %v9124_v45 = vpop.f32.mrf.mxu1  ;;  %15817 = vst [vmem:[#allocation22_spill] sm:$0xff] %v11576_v25 }
 0x3a1   :  { %v826_v32 = vmul.f32 0.35355338, %v9124_v45  ;;  %865 = vmax.xlane.f32.xlu1 %v11553_v15  ;;  %v11580_v16 = vadd.f32 %v823_v22, %v11567_v23 }
 0x3a2   :  { %v786_v31 = vpop.f32.mrf.mxu1 }
 0x3a3   :  { %859 = vmax.xlane.f32.xlu0 %v11562_v20  ;;  %v11571_v62 = vadd.f32 %v826_v32, %v11558_v18  ;;  %v825_v45 = vmul.f32 0.35355338, %v786_v31  ;;  %v11594_v31 = vld [vmem:[%s15733_s1 + $0x78] sm:$0xff] }
 0x3a4   :  { %v9127_v37 = vpop.f32.mrf.mxu1  ;;  %15818 = vst [vmem:[#allocation23_spill] sm:$0xff] %v11594_v31 }
 0x3a5   :  { %v828_v3 = vmul.f32 0.35355338, %v9127_v37  ;;  %869 = vmax.xlane.f32.xlu1 %v11571_v62  ;;  %v11598_v5 = vadd.f32 %v825_v45, %v11585_v8 }
 0x3a6   :  { %v796_v6 = vpop.f32.mrf.mxu1 }
 0x3a7   :  { %863 = vmax.xlane.f32.xlu0 %v11580_v16  ;;  %v11589_v32 = vadd.f32 %v828_v3, %v11576_v25  ;;  %v827_v37 = vmul.f32 0.35355338, %v796_v6  ;;  %v11616_v6 = vld [vmem:[%s15733_s1 + $0x70] sm:$0xff] }
 0x3a8   :  { %v9130_v2 = vpop.f32.mrf.mxu1  ;;  %15820 = vst [vmem:[#allocation25_spill] sm:$0xff] %v11616_v6 }
 0x3a9   :  { %v830_v22 = vmul.f32 0.35355338, %v9130_v2  ;;  %873 = vmax.xlane.f32.xlu1 %v11589_v32  ;;  %v11611_v2 = vadd.f32 %v827_v37, %v11603_v63 }
 0x3aa   :  { %v806_v58 = vpop.f32.mrf.mxu1 }
 0x3ab   :  { %867 = vmax.xlane.f32.xlu0 %v11598_v5  ;;  %v11607_v3 = vadd.f32 %v830_v22, %v11594_v31  ;;  %v829_v10 = vmul.f32 0.35355338, %v806_v58  ;;  %v11637_v58 = vpop.permute.xlu1 %1244 }
 0x3ad   :  { %877 = vmax.xlane.f32.xlu1 %v11607_v3  ;;  %v11620_v45 = vadd.f32 %v829_v10, %v11616_v6  ;;  %v11635_v10 = vpop.permute.xlu0 %1242 }
 0x3af   :  { %871 = vmax.xlane.f32.xlu0 %v11611_v2 }
 0x3b1   :  { %v11639_v37 = vpop.permute.xlu0 %1238 }
 0x3b3   :  { %875 = vmax.xlane.f32.xlu0 %v11620_v45 }
 0x3be   :  { %1234 = vrot.lane.b32.xlu1 %v11321_v24, %s10936_s8 }
 0x3c2   :  { %1230 = vrot.lane.b32.xlu1 %v11329_v49, %s10936_s8 }
 0x3c6   :  { %1228 = vrot.lane.b32.xlu1 %v11349_v29, %s10936_s8 }
 0x3c9   :  { %1236 = vrot.lane.b32.xlu0 %v11333_v50, %s10936_s8 }
 0x3ca   :  { %1226 = vrot.lane.b32.xlu1 %v11337_v51, %s10936_s8 }
 0x3ce   :  { %1224 = vrot.lane.b32.xlu1 %v11357_v56, %s10936_s8 }
 0x41a   :  { %v850_v22 = vpop.xlane.xlu1 %849 }
 0x41b   :  { %v880_v57 = vsub.f32 %v11490_v21, %v850_v22 }
 0x41c   :  { %v848_v42 = vpop.xlane.xlu0 %847 }
 0x41d   :  { %v897_v1 = vmul.f32 1.442695, %v880_v57  ;;  %v879_v30 = vsub.f32 %v11494_v9, %v848_v42 }
 0x41f   :  { %10267 = vpow2.f32 %v897_v1  ;;  %v895_v41 = vmul.f32 1.442695, %v879_v30 }
 0x420   :  { %v854_v7 = vpop.xlane.xlu0 %853 }
 0x421   :  { %10269 = vpow2.f32 %v895_v41  ;;  %v882_v54 = vsub.f32 %v11508_v19, %v854_v7 }
 0x422   :  { %v858_v53 = vpop.xlane.xlu1 %857 }
 0x423   :  { %v901_v44 = vmul.f32 1.442695, %v882_v54  ;;  %v884_v12 = vsub.f32 %v11517_v27, %v858_v53 }
 0x424   :  { %v852_v6 = vpop.xlane.xlu0 %851 }
 0x425   :  { %10271 = vpow2.f32 %v901_v44  ;;  %v905_v31 = vmul.f32 1.442695, %v884_v12 }
 0x426   :  { %v862_v63 = vpop.xlane.xlu1 %861 }
 0x427   :  { %10273 = vpow2.f32 %v905_v31  ;;  %v886_v57 = vsub.f32 %v11535_v60, %v862_v63 }
 0x428   :  { %v856_v25 = vpop.xlane.xlu0 %855 }
 0x429   :  { %v883_v42 = vsub.f32 %v11544_v47, %v856_v25  ;;  %v909_v7 = vmul.f32 1.442695, %v886_v57 }
 0x42a   :  { %v866_v1 = vpop.xlane.xlu1 %865 }
 0x42b   :  { %v903_v30 = vmul.f32 1.442695, %v883_v42  ;;  %v888_v54 = vsub.f32 %v11553_v15, %v866_v1  ;;  %v881_v1 = vsub.f32 %v11526_v39, %v852_v6 }
 0x42c   :  { %v11647_v21 = vpop.eup %10267  ;;  %v860_v41 = vpop.xlane.xlu0 %859 }
 0x42d   :  { %10275 = vpow2.f32 %v903_v30  ;;  %929 = vadd.xlane.f32.xlu0 %v11647_v21  ;;  %v913_v44 = vmul.f32 1.442695, %v888_v54  ;;  %v899_v54 = vmul.f32 1.442695, %v881_v1 }
 0x42e   :  { %v11651_v53 = vpop.eup %10269  ;;  %10277 = vpow2.f32 %v909_v7  ;;  %v870_v30 = vpop.xlane.xlu1 %869 }
 0x42f   :  { %927 = vadd.xlane.f32.xlu1 %v11651_v53  ;;  %10279 = vpow2.f32 %v913_v44 }
 0x430   :  { %v864_v12 = vpop.xlane.xlu0 %863 }
 0x431   :  { %v887_v63 = vsub.f32 %v11580_v16, %v864_v12  ;;  %v885_v12 = vsub.f32 %v11562_v20, %v860_v41 }
 0x432   :  { %v11655_v9 = vpop.eup %10271  ;;  %v874_v44 = vpop.xlane.xlu1 %873 }
 0x433   :  { %933 = vadd.xlane.f32.xlu1 %v11655_v9  ;;  %v911_v27 = vmul.f32 1.442695, %v887_v63  ;;  %v907_v63 = vmul.f32 1.442695, %v885_v12 }
 0x434   :  { %v868_v19 = vpop.xlane.xlu0 %867  ;;  %v11659_v47 = vpop.eup %10273 }
 0x435   :  { %v889_v60 = vsub.f32 %v11598_v5, %v868_v19  ;;  %10281 = vpow2.f32 %v911_v27  ;;  %v890_v19 = vsub.f32 %v11571_v62, %v870_v30 }
 0x437   :  { %937 = vadd.xlane.f32.xlu1 %v11659_v47  ;;  %v915_v25 = vmul.f32 1.442695, %v889_v60  ;;  %v917_v27 = vmul.f32 1.442695, %v890_v19  ;;  %v892_v60 = vsub.f32 %v11589_v32, %v874_v44 }
 0x438   :  { %v872_v15 = vpop.xlane.xlu0 %871 }
 0x439   :  { %v891_v31 = vsub.f32 %v11611_v2, %v872_v15  ;;  %10283 = vpow2.f32 %v915_v25  ;;  %v878_v15 = vpop.xlane.xlu1 %877  ;;  %v921_v39 = vmul.f32 1.442695, %v892_v60 }
 0x43a   :  { %v11663_v22 = vpop.eup %10275  ;;  %v894_v6 = vsub.f32 %v11607_v3, %v878_v15 }
 0x43b   :  { %935 = vadd.xlane.f32.xlu1 %v11663_v22  ;;  %v919_v16 = vmul.f32 1.442695, %v891_v31  ;;  %v11666_v57 = vpop.eup %10277 }
 0x43c   :  { %v11669_v5 = vpop.eup %10279  ;;  %v925_v25 = vmul.f32 1.442695, %v894_v6  ;;  %v876_v31 = vpop.xlane.xlu0 %875 }
 0x43d   :  { %10285 = vpow2.f32 %v919_v16  ;;  %v893_v16 = vsub.f32 %v11620_v45, %v876_v31  ;;  %v11725_v45 = vpop.permute.xlu1 %1234 }
 0x43e   :  { %10287 = vpow2.f32 %v899_v54 }
 0x43f   :  { %941 = vadd.xlane.f32.xlu1 %v11666_v57  ;;  %10289 = vpow2.f32 %v907_v63  ;;  %v923_v1 = vmul.f32 1.442695, %v893_v16 }
 0x440   :  { %10291 = vpow2.f32 %v917_v27  ;;  %v1237_v63 = vpop.permute.xlu0 %1236 }
 0x441   :  { %10293 = vpow2.f32 %v921_v39  ;;  %v11733_v54 = vpop.permute.xlu1 %1230 }
 0x442   :  { %v11674_v42 = vpop.eup %10281  ;;  %10295 = vpow2.f32 %v925_v25 }
 0x443   :  { %1232 = vrot.lane.b32.xlu0 %v11341_v52, %s10936_s8  ;;  %945 = vadd.xlane.f32.xlu1 %v11669_v5  ;;  %10297 = vpow2.f32 %v923_v1 }
 0x445   :  { %v11739_v12 = vpop.permute.xlu1 %1228 }
 0x446   :  { %v11677_v2 = vpop.eup %10283 }
 0x447   :  { %943 = vadd.xlane.f32.xlu1 %v11674_v42 }
 0x449   :  { %v11749_v44 = vpop.permute.xlu1 %1226 }
 0x44a   :  { %v11681_v7 = vpop.eup %10285 }
 0x44b   :  { %947 = vadd.xlane.f32.xlu1 %v11677_v2  ;;  %v11690_v20 = vpop.eup %10287 }
 0x44c   :  { %v11695_v62 = vpop.eup %10289 }
 0x44d   :  { %v11700_v32 = vpop.eup %10291  ;;  %v11755_v19 = vpop.permute.xlu1 %1224 }
 0x44e   :  { %v11705_v3 = vpop.eup %10293 }
 0x44f   :  { %951 = vadd.xlane.f32.xlu1 %v11681_v7  ;;  %v11708_v41 = vpop.eup %10295 }
 0x450   :  { %v11716_v30 = vpop.eup %10297 }
 0x460   :  { %1220 = vrot.lane.b32.xlu1 %v11363_v11, %s10936_s8 }
 0x462   :  { %931 = vadd.xlane.f32.xlu0 %v11690_v20 }
 0x464   :  { %1218 = vrot.lane.b32.xlu1 %v11353_v36, %s10936_s8 }
 0x466   :  { %939 = vadd.xlane.f32.xlu0 %v11695_v62 }
 0x468   :  { %1216 = vrot.lane.b32.xlu1 %v11303_v38, %s10936_s8 }
 0x46a   :  { %949 = vadd.xlane.f32.xlu0 %v11700_v32 }
 0x46c   :  { %1184 = vrot.lane.b32.xlu1 %v11303_v38, %s10937_s17 }
 0x46e   :  { %953 = vadd.xlane.f32.xlu0 %v11705_v3 }
 0x472   :  { %957 = vadd.xlane.f32.xlu0 %v11708_v41 }
 0x488   :  { %1222 = vrot.lane.b32.xlu0 %v11345_v28, %s10936_s8 }
 0x48c   :  { %1190 = vrot.lane.b32.xlu0 %v11345_v28, %s10937_s17 }
 0x490   :  { %955 = vadd.xlane.f32.xlu1 %v11716_v30  ;;  %1194 = vrot.lane.b32.xlu0 %v11337_v51, %s10937_s17 }
 0x494   :  { %1198 = vrot.lane.b32.xlu0 %v11329_v49, %s10937_s17 }
 0x498   :  { %1202 = vrot.lane.b32.xlu0 %v11321_v24, %s10937_s17 }
 0x49c   :  { %1206 = vrot.lane.b32.xlu0 %v11313_v0, %s10937_s17 }
 0x4a0   :  { %1210 = vrot.lane.b32.xlu0 %v11317_v46, %s10937_s17 }
 0x4a1   :  { %1186 = vrot.lane.b32.xlu1 %v11353_v36, %s10937_s17 }
 0x4a4   :  { %1214 = vrot.lane.b32.xlu0 %v11307_v55, %s10937_s17 }
 0x4a5   :  { %1188 = vrot.lane.b32.xlu1 %v11363_v11, %s10937_s17 }
 0x4a8   :  { %1663 = vrot.lane.b32.xlu0 %v11307_v55, %s10938_s18 }
 0x4a9   :  { %1192 = vrot.lane.b32.xlu1 %v11357_v56, %s10937_s17 }
 0x4ac   :  { %1659 = vrot.lane.b32.xlu0 %v11317_v46, %s10938_s18 }
 0x4ad   :  { %1196 = vrot.lane.b32.xlu1 %v11349_v29, %s10937_s17 }
 0x4b0   :  { %1655 = vrot.lane.b32.xlu0 %v11313_v0, %s10938_s18 }
 0x4b1   :  { %1200 = vrot.lane.b32.xlu1 %v11341_v52, %s10937_s17 }
 0x4b4   :  { %1649 = vrot.lane.b32.xlu0 %v11341_v52, %s10938_s18 }
 0x4b5   :  { %1204 = vrot.lane.b32.xlu1 %v11333_v50, %s10937_s17 }
 0x4b6   :  { %v930_v27 = vpop.xlane.xlu0 %929 }
 0x4b7   :  { %10299 = vrcp.f32 %v930_v27 }
 0x4b8   :  { %1645 = vrot.lane.b32.xlu0 %v11349_v29, %s10938_s18  ;;  %v928_v60 = vpop.xlane.xlu1 %927 }
 0x4b9   :  { %10301 = vrcp.f32 %v928_v60  ;;  %1208 = vrot.lane.b32.xlu1 %v11325_v48, %s10937_s17 }
 0x4bc   :  { %1641 = vrot.lane.b32.xlu0 %v11357_v56, %s10938_s18 }
 0x4bd   :  { %1212 = vrot.lane.b32.xlu1 %v11309_v40, %s10937_s17 }
 0x4c0   :  { %1637 = vrot.lane.b32.xlu0 %v11363_v11, %s10938_s18 }
 0x4c1   :  { %1661 = vrot.lane.b32.xlu1 %v11309_v40, %s10938_s18 }
 0x4c4   :  { %1633 = vrot.lane.b32.xlu0 %v11303_v38, %s10938_s18  ;;  %v10300_v15 = vpop.eup %10299 }
 0x4c5   :  { %1657 = vrot.lane.b32.xlu1 %v11325_v48, %s10938_s18  ;;  %v962_v25 = vmul.f32 %v10300_v15, %v11647_v21 }
 0x4c6   :  { %v10302_v39 = vpop.eup %10301 }
 0x4c7   :  { %v960_v6 = vmul.f32 %v10302_v39, %v11651_v53  ;;  %v934_v53 = vpop.xlane.xlu1 %933 }
 0x4c8   :  { %1886 = vrot.lane.b32.xlu0 %v11309_v40, %s10939_s19  ;;  %10303 = vrcp.f32 %v934_v53 }
 0x4c9   :  { %1653 = vrot.lane.b32.xlu1 %v11333_v50, %s10938_s18  ;;  %9163 = vmatprep.mubr.f32.mxu0 %v960_v6 }
 0x4ca   :  { %9164 = vmatmul.mubr.f32.vlgmr.msra.gmra.mxu0 %v962_v25 }
 0x4cb   :  { %9188 = vmatpush3.xpose.msk.msra.mxu0 %vm605_vm1, %v11475_v61  ;;  %v938_v61 = vpop.xlane.xlu1 %937 }
 0x4cc   :  { %9189 = vmatprep.subr.msk.mxu0 %vm605_vm1, %v11637_v58  ;;  %1884 = vrot.lane.b32.xlu0 %v11317_v46, %s10939_s19 }
 0x4cd   :  { %1651 = vrot.lane.b32.xlu1 %v11321_v24, %s10938_s18 }
 0x4cf   :  { %9190 = vmatpush3.xpose.msk.msra.mxu0 %vm605_vm1, %v11637_v58  ;;  %v1233_v58 = vpop.permute.xlu0 %1232 }
 0x4d0   :  { %9191 = vmatprep.subr.msk.mxu0 %vm605_vm1, %v11635_v10  ;;  %1880 = vrot.lane.b32.xlu0 %v11313_v0, %s10939_s19 }
 0x4d1   :  { %1647 = vrot.lane.b32.xlu1 %v11329_v49, %s10938_s18 }
 0x4d3   :  { %9192 = vmatpush3.xpose.msk.msra.mxu0 %vm605_vm1, %v11635_v10  ;;  %v936_v10 = vpop.xlane.xlu1 %935 }
 0x4d4   :  { %9193 = vmatprep.subr.msk.mxu0 %vm605_vm1, %v11451_v34  ;;  %1876 = vrot.lane.b32.xlu0 %v11321_v24, %s10939_s19  ;;  %10305 = vrcp.f32 %v936_v10 }
 0x4d5   :  { %1643 = vrot.lane.b32.xlu1 %v11337_v51, %s10938_s18 }
 0x4d7   :  { %9194 = vmatpush3.xpose.msk.msra.mxu0 %vm605_vm1, %v11451_v34  ;;  %v942_v34 = vpop.xlane.xlu1 %941 }
 0x4d8   :  { %9195 = vmatprep.subr.msk.mxu0 %vm605_vm1, %v11639_v37  ;;  %1872 = vrot.lane.b32.xlu0 %v11329_v49, %s10939_s19 }
 0x4d9   :  { %1639 = vrot.lane.b32.xlu1 %v11345_v28, %s10938_s18 }
 0x4db   :  { %9196 = vmatpush3.xpose.msk.msra.mxu0 %vm605_vm1, %v11639_v37  ;;  %v946_v37 = vpop.xlane.xlu1 %945 }
 0x4dc   :  { %9197 = vmatprep.subr.msk.mxu0 %vm605_vm1, %v1237_v63 }
 0x4dd   :  { %1635 = vrot.lane.b32.xlu1 %v11353_v36, %s10938_s18 }
 0x4df   :  { %9198 = vmatpush3.xpose.msk.msra.mxu0 %vm605_vm1, %v1237_v63  ;;  %v944_v31 = vpop.xlane.xlu1 %943 }
 0x4e0   :  { %9199 = vmatprep.subr.msk.mxu0 %vm605_vm1, %v11725_v45 }
 0x4e1   :  { %1888 = vrot.lane.b32.xlu1 %v11307_v55, %s10939_s19 }
 0x4e3   :  { %9200 = vmatpush3.xpose.msk.msra.mxu0 %vm605_vm1, %v11725_v45  ;;  %v948_v1 = vpop.xlane.xlu1 %947 }
 0x4e4   :  { %9201 = vmatprep.subr.msk.mxu0 %vm605_vm1, %v1233_v58 }
 0x4e5   :  { %1882 = vrot.lane.b32.xlu1 %v11325_v48, %s10939_s19 }
 0x4e7   :  { %9202 = vmatpush3.xpose.msk.msra.mxu0 %vm605_vm1, %v1233_v58  ;;  %v952_v27 = vpop.xlane.xlu1 %951 }
 0x4e8   :  { %9203 = vmatprep.subr.msk.mxu0 %vm605_vm1, %v11733_v54 }
 0x4e9   :  { %1878 = vrot.lane.b32.xlu1 %v11333_v50, %s10939_s19 }
 0x4eb   :  { %9204 = vmatpush3.xpose.msk.msra.mxu0 %vm605_vm1, %v11733_v54  ;;  %v932_v21 = vpop.xlane.xlu0 %931  ;;  %v10304_v54 = vpop.eup %10303 }
 0x4ec   :  { %10307 = vrcp.f32 %v932_v21  ;;  %9205 = vmatprep.subr.msk.mxu0 %vm605_vm1, %v11739_v12  ;;  %v10306_v63 = vpop.eup %10305 }
 0x4ed   :  { %1874 = vrot.lane.b32.xlu1 %v11341_v52, %s10939_s19  ;;  %10309 = vrcp.f32 %v938_v61  ;;  %v968_v25 = vmul.f32 %v10306_v63, %v11663_v22  ;;  %v1221_v61 = vpop.permute.xlu1 %1220 }
 0x4ef   :  { %9206 = vmatpush3.xpose.msk.msra.mxu0 %vm605_vm1, %v11739_v12  ;;  %v940_v16 = vpop.xlane.xlu0 %939 }
 0x4f0   :  { %10311 = vrcp.f32 %v940_v16  ;;  %9207 = vmatprep.subr.msk.mxu0 %vm605_vm1, %v11749_v44 }
 0x4f1   :  { %10313 = vrcp.f32 %v942_v34  ;;  %v1219_v21 = vpop.permute.xlu1 %1218 }
 0x4f2   :  { %10315 = vrcp.f32 %v944_v31 }
 0x4f3   :  { %9208 = vmatpush3.xpose.msk.msra.mxu0 %vm605_vm1, %v11749_v44  ;;  %v950_v45 = vpop.xlane.xlu0 %949  ;;  %10317 = vrcp.f32 %v946_v37  ;;  %v966_v44 = vmul.f32 %v10304_v54, %v11655_v9 }
 0x4f4   :  { %9209 = vmatprep.subr.msk.mxu0 %vm605_vm1, %v11755_v19  ;;  %10319 = vrcp.f32 %v948_v1 }
 0x4f5   :  { %10321 = vrcp.f32 %v950_v45 }
 0x4f6   :  { %10323 = vrcp.f32 %v952_v27 }
 0x4f7   :  { %9210 = vmatpush3.xpose.msk.msra.mxu0 %vm605_vm1, %v11755_v19  ;;  %v954_v12 = vpop.xlane.xlu0 %953 }
 0x4f8   :  { %10325 = vrcp.f32 %v954_v12 }
 0x4f9   :  { %v10308_v60 = vpop.eup %10307 }
 0x4fa   :  { %v964_v15 = vmul.f32 %v10308_v60, %v11690_v20  ;;  %v10310_v6 = vpop.eup %10309 }
 0x4fb   :  { %v958_v39 = vpop.xlane.xlu0 %957  ;;  %v970_v10 = vmul.f32 %v10310_v6, %v11659_v47 }
 0x4fc   :  { %9166 = vmatprep.mubr.f32.mxu0 %v964_v15  ;;  %10327 = vrcp.f32 %v958_v39 }
 0x4fd   :  { %v10312_v53 = vpop.eup %10311  ;;  %9167 = vmatmul.mubr.f32.gmra.mxu0 %v966_v44 }
 0x4fe   :  { %9169 = vmatprep.mubr.f32.mxu0 %v968_v25  ;;  %v10314_v34 = vpop.eup %10313  ;;  %v972_v20 = vmul.f32 %v10312_v53, %v11695_v62 }
 0x4ff   :  { %v1223_v19 = vpop.permute.xlu0 %1222  ;;  %v10316_v58 = vpop.eup %10315  ;;  %v974_v22 = vmul.f32 %v10314_v34, %v11666_v57 }
 0x500   :  { %9211 = vmatprep.subr.msk.mxu0 %vm605_vm1, %v1223_v19  ;;  %v10318_v37 = vpop.eup %10317  ;;  %v976_v31 = vmul.f32 %v10316_v58, %v11674_v42  ;;  %v1217_v57 = vpop.permute.xlu1 %1216 }
 0x501   :  { %9170 = vmatmul.mubr.f32.gmra.mxu0 %v970_v10  ;;  %v10320_v47 = vpop.eup %10319  ;;  %v978_v16 = vmul.f32 %v10318_v37, %v11669_v5 }
 0x502   :  { %9212 = vmatpush3.xpose.msk.msra.mxu0 %vm605_vm1, %v1223_v19  ;;  %9172 = vmatprep.mubr.f32.mxu0 %v972_v20  ;;  %v10322_v1 = vpop.eup %10321  ;;  %v980_v45 = vmul.f32 %v10320_v47, %v11677_v2 }
 0x503   :  { %9213 = vmatprep.subr.msk.mxu0 %vm605_vm1, %v1221_v61  ;;  %v1191_v9 = vpop.permute.xlu0 %1190  ;;  %v10324_v54 = vpop.eup %10323  ;;  %v982_v12 = vmul.f32 %v10322_v1, %v11700_v32 }
 0x504   :  { %v984_v27 = vmul.f32 %v10324_v54, %v11681_v7  ;;  %v1185_v15 = vpop.permute.xlu1 %1184 }
 0x505   :  { %9173 = vmatmul.mubr.f32.gmra.mxu0 %v974_v22  ;;  %v10326_v63 = vpop.eup %10325 }
 0x506   :  { %9214 = vmatpush3.xpose.msk.msra.mxu0 %vm605_vm1, %v1221_v61  ;;  %9175 = vmatprep.mubr.f32.mxu0 %v976_v31  ;;  %v986_v2 = vmul.f32 %v10326_v63, %v11705_v3 }
 0x507   :  { %9215 = vmatprep.subr.msk.mxu0 %vm605_vm1, %v1219_v21  ;;  %v1195_v62 = vpop.permute.xlu0 %1194 }
 0x509   :  { %9176 = vmatmul.mubr.f32.gmra.mxu0 %v978_v16  ;;  %v10328_v19 = vpop.eup %10327 }
 0x50a   :  { %9216 = vmatpush3.xpose.msk.msra.mxu0 %vm605_vm1, %v1219_v21  ;;  %9178 = vmatprep.mubr.f32.mxu0 %v980_v45  ;;  %v990_v3 = vmul.f32 %v10328_v19, %v11708_v41 }
 0x50b   :  { %9217 = vmatprep.subr.msk.mxu0 %vm605_vm1, %v1217_v57  ;;  %v1199_v42 = vpop.permute.xlu0 %1198 }
 0x50d   :  { %9179 = vmatmul.mubr.f32.gmra.mxu0 %v982_v12 }
 0x50e   :  { %9218 = vmatpush3.xpose.msk.msra.mxu0 %vm605_vm1, %v1217_v57  ;;  %9181 = vmatprep.mubr.f32.mxu0 %v984_v27 }
 0x50f   :  { %v1203_v5 = vpop.permute.xlu0 %1202 }
 0x511   :  { %9182 = vmatmul.mubr.f32.gmra.mxu0 %v986_v2 }
 0x513   :  { %v1207_v60 = vpop.permute.xlu0 %1206 }
 0x517   :  { %v1211_v44 = vpop.permute.xlu0 %1210 }
 0x519   :  { %v956_v6 = vpop.xlane.xlu1 %955 }
 0x51a   :  { %10329 = vrcp.f32 %v956_v6 }
 0x51b   :  { %v1215_v25 = vpop.permute.xlu0 %1214 }
 0x51d   :  { %v1187_v53 = vpop.permute.xlu1 %1186 }
 0x51f   :  { %v1664_v32 = vpop.permute.xlu0 %1663 }
 0x520   :  { %9243 = vmatprep.subr.mxu1 %v1664_v32 }
 0x521   :  { %9244 = vmatpush3.msra.mxu1 %v1664_v32  ;;  %v1189_v7 = vpop.permute.xlu1 %1188 }
 0x523   :  { %v1660_v37 = vpop.permute.xlu0 %1659 }
 0x525   :  { %v1193_v61 = vpop.permute.xlu1 %1192 }
 0x527   :  { %v10330_v10 = vpop.eup %10329 }
 0x528   :  { %v988_v34 = vmul.f32 %v10330_v10, %v11716_v30  ;;  %v1656_v30 = vpop.permute.xlu0 %1655 }
 0x529   :  { %v1197_v20 = vpop.permute.xlu1 %1196 }
 0x52a   :  { %9184 = vmatprep.mubr.f32.mxu0 %v988_v34 }
 0x52b   :  { %9185 = vmatmul.mubr.f32.gmra.mxu0 %v990_v3 }
 0x52c   :  { %9219 = vmatprep.mubr.msk.f32.mxu0 %vm605_vm1, %v1185_v15  ;;  %v1650_v31 = vpop.permute.xlu0 %1649 }
 0x52d   :  { %v1201_v39 = vpop.permute.xlu1 %1200 }
 0x52f   :  { %9220 = vmatmul.mubr.msk.f32.vlgmr.msra.gmra.mxu0 %vm605_vm1, %v1187_v53 }
 0x530   :  { %9222 = vmatprep.mubr.msk.f32.mxu0 %vm605_vm1, %v1189_v7 }
 0x531   :  { %v1205_v58 = vpop.permute.xlu1 %1204 }
 0x533   :  { %9223 = vmatmul.mubr.msk.f32.gmra.mxu0 %vm605_vm1, %v1191_v9 }
 0x534   :  { %9225 = vmatprep.mubr.msk.f32.mxu0 %vm605_vm1, %v1193_v61 }
 0x535   :  { %v1209_v22 = vpop.permute.xlu1 %1208 }
 0x537   :  { %9226 = vmatmul.mubr.msk.f32.gmra.mxu0 %vm605_vm1, %v1195_v62  ;;  %v1646_v62 = vpop.permute.xlu0 %1645 }
 0x538   :  { %9228 = vmatprep.mubr.msk.f32.mxu0 %vm605_vm1, %v1197_v20 }
 0x539   :  { %v1213_v41 = vpop.permute.xlu1 %1212 }
 0x53b   :  { %9229 = vmatmul.mubr.msk.f32.gmra.mxu0 %vm605_vm1, %v1199_v42  ;;  %v1642_v45 = vpop.permute.xlu0 %1641 }
 0x53c   :  { %9231 = vmatprep.mubr.msk.f32.mxu0 %vm605_vm1, %v1201_v39 }
 0x53d   :  { %v1662_v21 = vpop.permute.xlu1 %1661 }
 0x53e   :  { %9245 = vmatprep.subr.mxu1 %v1662_v21 }
 0x53f   :  { %9232 = vmatmul.mubr.msk.f32.gmra.mxu0 %vm605_vm1, %v1203_v5  ;;  %9246 = vmatpush3.msra.mxu1 %v1662_v21  ;;  %v1638_v57 = vpop.permute.xlu0 %1637 }
 0x540   :  { %9234 = vmatprep.mubr.msk.f32.mxu0 %vm605_vm1, %v1205_v58  ;;  %9247 = vmatprep.subr.mxu1 %v1660_v37 }
 0x541   :  { %9248 = vmatpush3.msra.mxu1 %v1660_v37  ;;  %v1658_v9 = vpop.permute.xlu1 %1657 }
 0x542   :  { %9249 = vmatprep.subr.mxu1 %v1658_v9 }
 0x543   :  { %9235 = vmatmul.mubr.msk.f32.gmra.mxu0 %vm605_vm1, %v1207_v60  ;;  %9250 = vmatpush3.msra.mxu1 %v1658_v9  ;;  %v1634_v63 = vpop.permute.xlu0 %1633 }
 0x544   :  { %9237 = vmatprep.mubr.msk.f32.mxu0 %vm605_vm1, %v1209_v22  ;;  %9251 = vmatprep.subr.mxu1 %v1656_v30 }
 0x545   :  { %9252 = vmatpush3.msra.mxu1 %v1656_v30  ;;  %v1654_v47 = vpop.permute.xlu1 %1653 }
 0x546   :  { %9253 = vmatprep.subr.mxu1 %v1654_v47 }
 0x547   :  { %9238 = vmatmul.mubr.msk.f32.gmra.mxu0 %vm605_vm1, %v1211_v44  ;;  %9254 = vmatpush3.msra.mxu1 %v1654_v47 }
 0x548   :  { %9240 = vmatprep.mubr.msk.f32.mxu0 %vm605_vm1, %v1213_v41 }
 0x549   :  { %v1652_v16 = vpop.permute.xlu1 %1651 }
 0x54a   :  { %9255 = vmatprep.subr.mxu1 %v1652_v16 }
 0x54b   :  { %9241 = vmatmul.mubr.msk.f32.gmra.mxu0 %vm605_vm1, %v1215_v25  ;;  %9256 = vmatpush3.msra.mxu1 %v1652_v16 }
 0x54c   :  { %9257 = vmatprep.subr.mxu1 %v1650_v31 }
 0x54d   :  { %9258 = vmatpush3.msra.mxu1 %v1650_v31  ;;  %v1648_v1 = vpop.permute.xlu1 %1647 }
 0x54e   :  { %9259 = vmatprep.subr.mxu1 %v1648_v1 }
 0x54f   :  { %9260 = vmatpush3.msra.mxu1 %v1648_v1 }
 0x550   :  { %9261 = vmatprep.subr.mxu1 %v1646_v62 }
 0x551   :  { %9262 = vmatpush3.msra.mxu1 %v1646_v62  ;;  %v1644_v54 = vpop.permute.xlu1 %1643 }
 0x552   :  { %9263 = vmatprep.subr.mxu1 %v1644_v54 }
 0x553   :  { %9264 = vmatpush3.msra.mxu1 %v1644_v54 }
 0x554   :  { %9265 = vmatprep.subr.mxu1 %v1642_v45 }
 0x555   :  { %9266 = vmatpush3.msra.mxu1 %v1642_v45  ;;  %v1640_v42 = vpop.permute.xlu1 %1639 }
 0x556   :  { %9267 = vmatprep.subr.mxu1 %v1640_v42 }
 0x557   :  { %9268 = vmatpush3.msra.mxu1 %v1640_v42 }
 0x558   :  { %9269 = vmatprep.subr.mxu1 %v1638_v57 }
 0x559   :  { %9270 = vmatpush3.msra.mxu1 %v1638_v57  ;;  %v1636_v12 = vpop.permute.xlu1 %1635 }
 0x55a   :  { %9271 = vmatprep.subr.mxu1 %v1636_v12 }
 0x55b   :  { %9272 = vmatpush3.msra.mxu1 %v1636_v12 }
 0x55c   :  { %9273 = vmatprep.subr.mxu1 %v1634_v63 }
 0x55d   :  { %9274 = vmatpush3.msra.mxu1 %v1634_v63  ;;  %v11889_v27 = vpop.permute.xlu1 %1888 }
 0x55e   :  { %9299 = vmatprep.subr.msk.mxu1 %vm605_vm1, %v11889_v27 }
 0x58a   :  { %v11893_v5 = vpop.f32.mrf.mxu0 }
 0x58b   :  { %15821 = vst [vmem:[#allocation26_spill] sm:$0xff] %v11893_v5 }
 0x58c   :  { %v11895_v2 = vpop.f32.mrf.mxu0 }
 0x58d   :  { %15822 = vst [vmem:[#allocation27_spill] sm:$0xff] %v11895_v2 }
 0x5bd   :  { %v11897_v60 = vpop.f32.mrf.mxu0 }
 0x5be   :  { %15823 = vst [vmem:[#allocation28_spill] sm:$0xff] %v11897_v60 }
 0x5bf   :  { %v11899_v15 = vpop.f32.mrf.mxu0 }
 0x5c0   :  { %15824 = vst [vmem:[#allocation29_spill] sm:$0xff] %v11899_v15 }
 0x5c1   :  { %v11901_v44 = vpop.f32.mrf.mxu0 }
 0x5c2   :  { %15825 = vst [vmem:[#allocation30_spill] sm:$0xff] %v11901_v44 }
 0x5c3   :  { %v11903_v6 = vpop.f32.mrf.mxu0 }
 0x5c4   :  { %15826 = vst [vmem:[#allocation31_spill] sm:$0xff] %v11903_v6 }
 0x5c5   :  { %v11905_v25 = vpop.f32.mrf.mxu0 }
 0x5c6   :  { %15827 = vst [vmem:[#allocation32_spill] sm:$0xff] %v11905_v25 }
 0x5c7   :  { %v11907_v53 = vpop.f32.mrf.mxu0 }
 0x5c8   :  { %15828 = vst [vmem:[#allocation33_spill] sm:$0xff] %v11907_v53 }
 0x5c9   :  { %v11909_v32 = vpop.f32.mrf.mxu0 }
 0x5ca   :  { %15829 = vst [vmem:[#allocation34_spill] sm:$0xff] %v11909_v32 }
 0x5cb   :  { %v11911_v7 = vpop.f32.mrf.mxu0 }
 0x5cc   :  { %15830 = vst [vmem:[#allocation35_spill] sm:$0xff] %v11911_v7 }
 0x5cd   :  { %v11913_v61 = vpop.f32.mrf.mxu0 }
 0x5ce   :  { %15831 = vst [vmem:[#allocation36_spill] sm:$0xff] %v11913_v61 }
 0x5cf   :  { %v11915_v19 = vpop.f32.mrf.mxu0 }
 0x5d0   :  { %15832 = vst [vmem:[#allocation37_spill] sm:$0xff] %v11915_v19 }
 0x5d1   :  { %v11917_v10 = vpop.f32.mrf.mxu0 }
 0x5d2   :  { %15833 = vst [vmem:[#allocation38_spill] sm:$0xff] %v11917_v10 }
 0x5d3   :  { %v11919_v34 = vpop.f32.mrf.mxu0 }
 0x5d4   :  { %15834 = vst [vmem:[#allocation39_spill] sm:$0xff] %v11919_v34 }
 0x5eb   :  { %v11921_v20 = vpop.f32.mrf.mxu0 }
 0x5ec   :  { %15835 = vst [vmem:[#allocation40_spill] sm:$0xff] %v11921_v20 }
 0x5ed   :  { %v11923_v3 = vpop.f32.mrf.mxu0 }
 0x5ee   :  { %15836 = vst [vmem:[#allocation41_spill] sm:$0xff] %v11923_v3 }
 0x5ef   :  { %v9221_v39 = vpop.f32.mrf.mxu0 }
 0x5f0   :  { %v1458_v58 = vmul.f32 0.35355338, %v9221_v39 }
 0x5f1   :  { %v1378_v22 = vpop.f32.mrf.mxu0 }
 0x5f2   :  { %v11926_v37 = vadd.f32 %v1458_v58, %v11482_v17  ;;  %v1457_v41 = vmul.f32 0.35355338, %v1378_v22 }
 0x5f3   :  { %v9224_v21 = vpop.f32.mrf.mxu0 }
 0x5f4   :  { %v11929_v30 = vadd.f32 %v1457_v41, %v11487_v4  ;;  %1491 = vmax.xlane.f32.xlu0 %v11926_v37  ;;  %v1460_v1 = vmul.f32 0.35355338, %v9224_v21 }
 0x5f5   :  { %v1388_v9 = vpop.f32.mrf.mxu0 }
 0x5f6   :  { %1489 = vmax.xlane.f32.xlu1 %v11929_v30  ;;  %v1459_v45 = vmul.f32 0.35355338, %v1388_v9  ;;  %v11940_v57 = vadd.f32 %v1460_v1, %v11499_v14 }
 0x5f7   :  { %v9227_v17 = vpop.f32.mrf.mxu0 }
 0x5f8   :  { %v1462_v42 = vmul.f32 0.35355338, %v9227_v17  ;;  %v11943_v12 = vadd.f32 %v1459_v45, %v11513_v26 }
 0x5f9   :  { %v1398_v31 = vpop.f32.mrf.mxu0 }
 0x5fa   :  { %v1461_v63 = vmul.f32 0.35355338, %v1398_v31  ;;  %v11947_v58 = vadd.f32 %v1462_v42, %v11505_v43 }
 0x5fb   :  { %v9230_v47 = vpop.f32.mrf.mxu0 }
 0x5fc   :  { %v1464_v22 = vmul.f32 0.35355338, %v9230_v47  ;;  %v11951_v41 = vadd.f32 %v1461_v63, %v11531_v59  ;;  %v15838_v63 = vld [vmem:[#allocation24_spill] sm:$0xff] }
 0x5fd   :  { %v1408_v4 = vpop.f32.mrf.mxu0 }
 0x5fe   :  { %v1463_v21 = vmul.f32 0.35355338, %v1408_v4  ;;  %v11955_v26 = vadd.f32 %v1464_v22, %v11522_v33  ;;  %v15839_v22 = vld [vmem:[#allocation23_spill] sm:$0xff] }
 0x5ff   :  { %v9233_v62 = vpop.f32.mrf.mxu0 }
 0x600   :  { %v1466_v9 = vmul.f32 0.35355338, %v9233_v62  ;;  %v11959_v17 = vadd.f32 %v1463_v21, %v11549_v13 }
 0x601   :  { %v1418_v16 = vpop.f32.mrf.mxu0 }
 0x602   :  { %v1465_v43 = vmul.f32 0.35355338, %v1418_v16  ;;  %v11963_v59 = vadd.f32 %v1466_v9, %v11540_v35  ;;  %v11997_v9 = vpop.permute.xlu0 %1886 }
 0x603   :  { %v9236_v54 = vpop.f32.mrf.mxu0 }
 0x604   :  { %v1468_v47 = vmul.f32 0.35355338, %v9236_v54  ;;  %v11967_v4 = vadd.f32 %v1465_v43, %v11567_v23  ;;  %v15837_v54 = vld [vmem:[#allocation22_spill] sm:$0xff] }
 0x605   :  { %v1428_v39 = vpop.f32.mrf.mxu0 }
 0x606   :  { %v1467_v33 = vmul.f32 0.35355338, %v1428_v39  ;;  %v11971_v13 = vadd.f32 %v1468_v47, %v11558_v18  ;;  %v11999_v43 = vpop.permute.xlu0 %1884  ;;  %v12003_v47 = vpop.permute.xlu1 %1882 }
 0x607   :  { %1870 = vrot.lane.b32.xlu1 %v11349_v29, %s10939_s19  ;;  %v9239_v14 = vpop.f32.mrf.mxu0 }
 0x608   :  { %v1470_v16 = vmul.f32 0.35355338, %v9239_v14  ;;  %v11975_v1 = vadd.f32 %v1467_v33, %v11585_v8  ;;  %v15840_v8 = vld [vmem:[#allocation25_spill] sm:$0xff] }
 0x609   :  { %v1438_v31 = vpop.f32.mrf.mxu0 }
 0x60a   :  { %1868 = vrot.lane.b32.xlu0 %v11337_v51, %s10939_s19  ;;  %v1469_v35 = vmul.f32 0.35355338, %v1438_v31  ;;  %v11979_v23 = vadd.f32 %v1470_v16, %v15837_v54  ;;  %v12001_v31 = vpop.permute.xlu0 %1880 }
 0x60b   :  { %v9242_v62 = vpop.f32.mrf.mxu0 }
 0x60c   :  { %v1472_v42 = vmul.f32 0.35355338, %v9242_v62  ;;  %v11983_v39 = vadd.f32 %v1469_v35, %v15838_v63  ;;  %v12007_v62 = vpop.permute.xlu1 %1878 }
 0x60d   :  { %v1448_v45 = vpop.f32.mrf.mxu0 }
 0x60e   :  { %1866 = vrot.lane.b32.xlu0 %v11357_v56, %s10939_s19  ;;  %v1471_v18 = vmul.f32 0.35355338, %v1448_v45  ;;  %v11987_v21 = vadd.f32 %v1472_v42, %v15839_v22  ;;  %v12005_v33 = vpop.permute.xlu0 %1876 }
 0x610   :  { %v11991_v14 = vadd.f32 %v1471_v18, %v15840_v8  ;;  %v12011_v35 = vpop.permute.xlu1 %1874 }
 0x612   :  { %v12009_v16 = vpop.permute.xlu0 %1872 }
 0x62b   :  { %1495 = vmax.xlane.f32.xlu1 %v11940_v57 }
 0x62d   :  { %1493 = vmax.xlane.f32.xlu0 %v11943_v12 }
 0x62f   :  { %1499 = vmax.xlane.f32.xlu1 %v11947_v58 }
 0x631   :  { %1497 = vmax.xlane.f32.xlu0 %v11951_v41 }
 0x633   :  { %1503 = vmax.xlane.f32.xlu1 %v11955_v26 }
 0x635   :  { %1501 = vmax.xlane.f32.xlu0 %v11959_v17 }
 0x637   :  { %1507 = vmax.xlane.f32.xlu1 %v11963_v59 }
 0x639   :  { %1505 = vmax.xlane.f32.xlu0 %v11967_v4 }
 0x63b   :  { %1511 = vmax.xlane.f32.xlu1 %v11971_v13 }
 0x63d   :  { %1509 = vmax.xlane.f32.xlu0 %v11975_v1 }
 0x63f   :  { %1515 = vmax.xlane.f32.xlu1 %v11979_v23 }
 0x641   :  { %1513 = vmax.xlane.f32.xlu0 %v11983_v39 }
 0x643   :  { %1519 = vmax.xlane.f32.xlu1 %v11987_v21 }
 0x645   :  { %1517 = vmax.xlane.f32.xlu0 %v11991_v14 }
 0x65b   :  { %1864 = vrot.lane.b32.xlu0 %v11345_v28, %s10939_s19 }
 0x67d   :  { %v1492_v45 = vpop.xlane.xlu0 %1491 }
 0x67e   :  { %v1522_v54 = vsub.f32 %v11926_v37, %v1492_v45 }
 0x67f   :  { %v1490_v42 = vpop.xlane.xlu1 %1489 }
 0x680   :  { %v1539_v63 = vmul.f32 1.442695, %v1522_v54  ;;  %v1521_v18 = vsub.f32 %v11929_v30, %v1490_v42 }
 0x681   :  { %v12021_v3 = vpop.permute.xlu0 %1868 }
 0x682   :  { %10331 = vpow2.f32 %v1539_v63  ;;  %v1537_v22 = vmul.f32 1.442695, %v1521_v18 }
 0x683   :  { %v12023_v10 = vpop.permute.xlu1 %1870 }
 0x684   :  { %10333 = vpow2.f32 %v1537_v22 }
 0x685   :  { %v12025_v37 = vpop.permute.xlu0 %1866 }
 0x68f   :  { %v12015_v8 = vpop.eup %10331 }
 0x690   :  { %1571 = vadd.xlane.f32.xlu0 %v12015_v8 }
 0x691   :  { %v12018_v20 = vpop.eup %10333 }
 0x692   :  { %1569 = vadd.xlane.f32.xlu1 %v12018_v20 }
 0x6b4   :  { %v1496_v45 = vpop.xlane.xlu1 %1495 }
 0x6b5   :  { %v1524_v30 = vsub.f32 %v11940_v57, %v1496_v45 }
 0x6b6   :  { %v1494_v54 = vpop.xlane.xlu0 %1493 }
 0x6b7   :  { %v1543_v42 = vmul.f32 1.442695, %v1524_v30  ;;  %v1523_v63 = vsub.f32 %v11943_v12, %v1494_v54 }
 0x6b8   :  { %v1500_v18 = vpop.xlane.xlu1 %1499 }
 0x6b9   :  { %10335 = vpow2.f32 %v1543_v42  ;;  %v1541_v22 = vmul.f32 1.442695, %v1523_v63  ;;  %v1526_v34 = vsub.f32 %v11947_v58, %v1500_v18 }
 0x6ba   :  { %v1498_v61 = vpop.xlane.xlu0 %1497 }
 0x6bb   :  { %10337 = vpow2.f32 %v1541_v22  ;;  %v1547_v19 = vmul.f32 1.442695, %v1526_v34  ;;  %v1525_v32 = vsub.f32 %v11951_v41, %v1498_v61 }
 0x6bc   :  { %v1504_v7 = vpop.xlane.xlu1 %1503 }
 0x6bd   :  { %v1545_v25 = vmul.f32 1.442695, %v1525_v32  ;;  %10339 = vpow2.f32 %v1547_v19  ;;  %v1528_v57 = vsub.f32 %v11955_v26, %v1504_v7 }
 0x6be   :  { %v1502_v53 = vpop.xlane.xlu0 %1501 }
 0x6bf   :  { %v1527_v45 = vsub.f32 %v11959_v17, %v1502_v53  ;;  %10341 = vpow2.f32 %v1545_v25  ;;  %v1551_v12 = vmul.f32 1.442695, %v1528_v57 }
 0x6c0   :  { %v1508_v61 = vpop.xlane.xlu1 %1507 }
 0x6c1   :  { %v1549_v30 = vmul.f32 1.442695, %v1527_v45  ;;  %v1530_v42 = vsub.f32 %v11963_v59, %v1508_v61 }
 0x6c2   :  { %v1506_v19 = vpop.xlane.xlu0 %1505 }
 0x6c3   :  { %10343 = vpow2.f32 %v1549_v30  ;;  %v1555_v57 = vmul.f32 1.442695, %v1530_v42  ;;  %v1529_v45 = vsub.f32 %v11967_v4, %v1506_v19 }
 0x6c4   :  { %10345 = vpow2.f32 %v1551_v12  ;;  %v1512_v58 = vpop.xlane.xlu1 %1511 }
 0x6c5   :  { %v1553_v44 = vmul.f32 1.442695, %v1529_v45  ;;  %v1532_v60 = vsub.f32 %v11971_v13, %v1512_v58 }
 0x6c6   :  { %v12033_v54 = vpop.eup %10335  ;;  %v1510_v41 = vpop.xlane.xlu0 %1509 }
 0x6c7   :  { %1575 = vadd.xlane.f32.xlu0 %v12033_v54  ;;  %v1531_v17 = vsub.f32 %v11975_v1, %v1510_v41  ;;  %v1559_v59 = vmul.f32 1.442695, %v1532_v60 }
 0x6c8   :  { %v12036_v34 = vpop.eup %10337  ;;  %v1516_v26 = vpop.xlane.xlu1 %1515 }
 0x6c9   :  { %1573 = vadd.xlane.f32.xlu1 %v12036_v34  ;;  %v1557_v63 = vmul.f32 1.442695, %v1531_v17  ;;  %v1534_v18 = vsub.f32 %v11979_v23, %v1516_v26 }
 0x6ca   :  { %v12039_v32 = vpop.eup %10339  ;;  %v1514_v6 = vpop.xlane.xlu0 %1513 }
 0x6cb   :  { %10347 = vpow2.f32 %v1557_v63  ;;  %v1563_v30 = vmul.f32 1.442695, %v1534_v18  ;;  %v1533_v61 = vsub.f32 %v11983_v39, %v1514_v6 }
 0x6cc   :  { %v12042_v7 = vpop.eup %10341  ;;  %v1520_v22 = vpop.xlane.xlu1 %1519  ;;  %10349 = vpow2.f32 %v1555_v57 }
 0x6cd   :  { %1579 = vadd.xlane.f32.xlu1 %v12039_v32  ;;  %v1536_v12 = vsub.f32 %v11987_v21, %v1520_v22  ;;  %10351 = vpow2.f32 %v1563_v30  ;;  %v1561_v41 = vmul.f32 1.442695, %v1533_v61 }
 0x6ce   :  { %10353 = vpow2.f32 %v1553_v44  ;;  %v1518_v23 = vpop.xlane.xlu0 %1517 }
 0x6cf   :  { %v1567_v1 = vmul.f32 1.442695, %v1536_v12  ;;  %v1535_v4 = vsub.f32 %v11991_v14, %v1518_v23 }
 0x6d0   :  { %v12044_v53 = vpop.eup %10343 }
 0x6d1   :  { %1581 = vadd.xlane.f32.xlu0 %v12044_v53  ;;  %1577 = vadd.xlane.f32.xlu1 %v12042_v7  ;;  %v12048_v25 = vpop.eup %10345  ;;  %10355 = vpow2.f32 %v1567_v1  ;;  %v1565_v13 = vmul.f32 1.442695, %v1535_v4 }
 0x6d2   :  { %10357 = vpow2.f32 %v1559_v59  ;;  %v12083_v14 = vpop.permute.xlu0 %1864 }
 0x6d3   :  { %10359 = vpow2.f32 %v1561_v41 }
 0x6d4   :  { %10361 = vpow2.f32 %v1565_v13 }
 0x6d5   :  { %1583 = vadd.xlane.f32.xlu1 %v12048_v25 }
 0x6d8   :  { %v12063_v19 = vpop.eup %10347 }
 0x6d9   :  { %v12066_v21 = vpop.eup %10349 }
 0x6da   :  { %v12068_v58 = vpop.eup %10351 }
 0x6db   :  { %v12072_v60 = vpop.eup %10353 }
 0x6de   :  { %v12074_v44 = vpop.eup %10355 }
 0x6df   :  { %v12078_v6 = vpop.eup %10357 }
 0x6e0   :  { %v12081_v39 = vpop.eup %10359 }
 0x6e1   :  { %v12086_v26 = vpop.eup %10361 }
 0x6e6   :  { %1860 = vrot.lane.b32.xlu1 %v11353_v36, %s10939_s19 }
 0x6e7   :  { %1862 = vrot.lane.b32.xlu0 %v11363_v11, %s10939_s19 }
 0x706   :  { %1589 = vadd.xlane.f32.xlu0 %v12063_v19 }
 0x70a   :  { %1587 = vadd.xlane.f32.xlu1 %v12066_v21  ;;  %1595 = vadd.xlane.f32.xlu0 %v12068_v58 }
 0x70e   :  { %1585 = vadd.xlane.f32.xlu1 %v12072_v60  ;;  %1599 = vadd.xlane.f32.xlu0 %v12074_v44 }
 0x712   :  { %1591 = vadd.xlane.f32.xlu1 %v12078_v6 }
 0x716   :  { %1593 = vadd.xlane.f32.xlu1 %v12081_v39 }
 0x719   :  { %v1572_v17 = vpop.xlane.xlu0 %1571 }
 0x71a   :  { %1597 = vadd.xlane.f32.xlu1 %v12086_v26  ;;  %10363 = vrcp.f32 %v1572_v17 }
 0x71b   :  { %v1570_v42 = vpop.xlane.xlu1 %1569 }
 0x71c   :  { %10365 = vrcp.f32 %v1570_v42 }
 0x724   :  { %1858 = vrot.lane.b32.xlu0 %v11303_v38, %s10939_s19 }
 0x727   :  { %v10364_v63 = vpop.eup %10363 }
 0x728   :  { %1828 = vrot.lane.b32.xlu0 %v11353_v36, %s10940_s20  ;;  %v1604_v57 = vmul.f32 %v10364_v63, %v12015_v8 }
 0x729   :  { %v10366_v18 = vpop.eup %10365 }
 0x72a   :  { %v1602_v22 = vmul.f32 %v10366_v18, %v12018_v20 }
 0x72b   :  { %1826 = vrot.lane.b32.xlu1 %v11303_v38, %s10940_s20 }
 0x72c   :  { %1832 = vrot.lane.b32.xlu0 %v11345_v28, %s10940_s20  ;;  %9275 = vmatprep.mubr.f32.mxu1 %v1602_v22 }
 0x72d   :  { %9276 = vmatmul.mubr.f32.vlgmr.msra.gmra.mxu1 %v1604_v57 }
 0x72e   :  { %9300 = vmatpush3.xpose.msk.msra.mxu1 %vm605_vm1, %v11889_v27 }
 0x72f   :  { %9301 = vmatprep.subr.msk.mxu1 %vm605_vm1, %v11997_v9  ;;  %1830 = vrot.lane.b32.xlu1 %v11363_v11, %s10940_s20 }
 0x730   :  { %1836 = vrot.lane.b32.xlu0 %v11337_v51, %s10940_s20 }
 0x732   :  { %9302 = vmatpush3.xpose.msk.msra.mxu1 %vm605_vm1, %v11997_v9 }
 0x733   :  { %9303 = vmatprep.subr.msk.mxu1 %vm605_vm1, %v11999_v43  ;;  %1834 = vrot.lane.b32.xlu1 %v11357_v56, %s10940_s20 }
 0x734   :  { %1840 = vrot.lane.b32.xlu0 %v11329_v49, %s10940_s20 }
 0x736   :  { %9304 = vmatpush3.xpose.msk.msra.mxu1 %vm605_vm1, %v11999_v43 }
 0x737   :  { %9305 = vmatprep.subr.msk.mxu1 %vm605_vm1, %v12003_v47  ;;  %1838 = vrot.lane.b32.xlu1 %v11349_v29, %s10940_s20 }
 0x738   :  { %1844 = vrot.lane.b32.xlu0 %v11321_v24, %s10940_s20 }
 0x73a   :  { %9306 = vmatpush3.xpose.msk.msra.mxu1 %vm605_vm1, %v12003_v47 }
 0x73b   :  { %9307 = vmatprep.subr.msk.mxu1 %vm605_vm1, %v12001_v31  ;;  %1842 = vrot.lane.b32.xlu1 %v11341_v52, %s10940_s20 }
 0x73c   :  { %1848 = vrot.lane.b32.xlu0 %v11313_v0, %s10940_s20 }
 0x73e   :  { %9308 = vmatpush3.xpose.msk.msra.mxu1 %vm605_vm1, %v12001_v31 }
 0x73f   :  { %9309 = vmatprep.subr.msk.mxu1 %vm605_vm1, %v12007_v62  ;;  %1846 = vrot.lane.b32.xlu1 %v11333_v50, %s10940_s20 }
 0x740   :  { %1852 = vrot.lane.b32.xlu0 %v11317_v46, %s10940_s20 }
 0x742   :  { %9310 = vmatpush3.xpose.msk.msra.mxu1 %vm605_vm1, %v12007_v62 }
 0x743   :  { %9311 = vmatprep.subr.msk.mxu1 %vm605_vm1, %v12005_v33  ;;  %1850 = vrot.lane.b32.xlu1 %v11325_v48, %s10940_s20 }
 0x744   :  { %1856 = vrot.lane.b32.xlu0 %v11307_v55, %s10940_s20 }
 0x746   :  { %9312 = vmatpush3.xpose.msk.msra.mxu1 %vm605_vm1, %v12005_v33 }
 0x747   :  { %9313 = vmatprep.subr.msk.mxu1 %vm605_vm1, %v12011_v35  ;;  %1854 = vrot.lane.b32.xlu1 %v11309_v40, %s10940_s20 }
 0x748   :  { %2305 = vrot.lane.b32.xlu0 %v11307_v55, %s10941_s0 }
 0x74a   :  { %9314 = vmatpush3.xpose.msk.msra.mxu1 %vm605_vm1, %v12011_v35 }
 0x74b   :  { %9315 = vmatprep.subr.msk.mxu1 %vm605_vm1, %v12009_v16  ;;  %2303 = vrot.lane.b32.xlu1 %v11309_v40, %s10941_s0 }
 0x74c   :  { %2301 = vrot.lane.b32.xlu0 %v11317_v46, %s10941_s0 }
 0x74e   :  { %9316 = vmatpush3.xpose.msk.msra.mxu1 %vm605_vm1, %v12009_v16 }
 0x74f   :  { %9317 = vmatprep.subr.msk.mxu1 %vm605_vm1, %v12023_v10  ;;  %2299 = vrot.lane.b32.xlu1 %v11325_v48, %s10941_s0 }
 0x750   :  { %v1576_v27 = vpop.xlane.xlu0 %1575  ;;  %2297 = vrot.lane.b32.xlu0 %v11313_v0, %s10941_s0 }
 0x751   :  { %10367 = vrcp.f32 %v1576_v27 }
 0x752   :  { %9318 = vmatpush3.xpose.msk.msra.mxu1 %vm605_vm1, %v12023_v10  ;;  %v1574_v20 = vpop.xlane.xlu1 %1573 }
 0x753   :  { %9319 = vmatprep.subr.msk.mxu1 %vm605_vm1, %v12021_v3  ;;  %10369 = vrcp.f32 %v1574_v20  ;;  %2295 = vrot.lane.b32.xlu1 %v11333_v50, %s10941_s0 }
 0x754   :  { %2291 = vrot.lane.b32.xlu0 %v11341_v52, %s10941_s0 }
 0x756   :  { %9320 = vmatpush3.xpose.msk.msra.mxu1 %vm605_vm1, %v12021_v3  ;;  %v1580_v9 = vpop.xlane.xlu1 %1579 }
 0x757   :  { %9321 = vmatprep.subr.msk.mxu1 %vm605_vm1, %v12025_v37  ;;  %2293 = vrot.lane.b32.xlu1 %v11321_v24, %s10941_s0  ;;  %10371 = vrcp.f32 %v1580_v9 }
 0x758   :  { %2287 = vrot.lane.b32.xlu0 %v11349_v29, %s10941_s0 }
 0x75a   :  { %9322 = vmatpush3.xpose.msk.msra.mxu1 %vm605_vm1, %v12025_v37  ;;  %v1582_v10 = vpop.xlane.xlu0 %1581  ;;  %v1578_v43 = vpop.xlane.xlu1 %1577 }
 0x75b   :  { %10373 = vrcp.f32 %v1582_v10  ;;  %9323 = vmatprep.subr.msk.mxu1 %vm605_vm1, %v12083_v14  ;;  %2289 = vrot.lane.b32.xlu1 %v11329_v49, %s10941_s0 }
 0x75c   :  { %10375 = vrcp.f32 %v1578_v43  ;;  %2283 = vrot.lane.b32.xlu0 %v11357_v56, %s10941_s0 }
 0x75e   :  { %9324 = vmatpush3.xpose.msk.msra.mxu1 %vm605_vm1, %v12083_v14  ;;  %v1863_v3 = vpop.permute.xlu0 %1862  ;;  %v1584_v31 = vpop.xlane.xlu1 %1583 }
 0x75f   :  { %v10368_v47 = vpop.eup %10367  ;;  %10377 = vrcp.f32 %v1584_v31  ;;  %2285 = vrot.lane.b32.xlu1 %v11337_v51, %s10941_s0  ;;  %9325 = vmatprep.subr.msk.mxu1 %vm605_vm1, %v1863_v3 }
 0x760   :  { %v10370_v33 = vpop.eup %10369  ;;  %2279 = vrot.lane.b32.xlu0 %v11363_v11, %s10941_s0  ;;  %v1608_v35 = vmul.f32 %v10368_v47, %v12033_v54 }
 0x761   :  { %v1606_v62 = vmul.f32 %v10370_v33, %v12036_v34 }
 0x762   :  { %9326 = vmatpush3.xpose.msk.msra.mxu1 %vm605_vm1, %v1863_v3  ;;  %v1861_v16 = vpop.permute.xlu1 %1860 }
 0x763   :  { %2281 = vrot.lane.b32.xlu1 %v11345_v28, %s10941_s0  ;;  %9278 = vmatprep.mubr.f32.mxu1 %v1606_v62 }
 0x764   :  { %9327 = vmatprep.subr.msk.mxu1 %vm605_vm1, %v1861_v16  ;;  %2275 = vrot.lane.b32.xlu0 %v11303_v38, %s10941_s0  ;;  %v10372_v8 = vpop.eup %10371 }
 0x765   :  { %9279 = vmatmul.mubr.f32.gmra.mxu1 %v1608_v35  ;;  %v1612_v45 = vmul.f32 %v10372_v8, %v12039_v32 }
 0x766   :  { %9328 = vmatpush3.xpose.msk.msra.mxu1 %vm605_vm1, %v1861_v16 }
 0x767   :  { %2277 = vrot.lane.b32.xlu1 %v11353_v36, %s10941_s0 }
 0x768   :  { %v10374_v37 = vpop.eup %10373  ;;  %2528 = vrot.lane.b32.xlu0 %v11309_v40, %s10942_s21 }
 0x769   :  { %v10376_v34 = vpop.eup %10375  ;;  %v1614_v12 = vmul.f32 %v10374_v37, %v12044_v53 }
 0x76a   :  { %v1610_v54 = vmul.f32 %v10376_v34, %v12042_v7 }
 0x76b   :  { %2530 = vrot.lane.b32.xlu1 %v11307_v55, %s10942_s21 }
 0x76c   :  { %v10378_v30 = vpop.eup %10377  ;;  %9281 = vmatprep.mubr.f32.mxu1 %v1610_v54  ;;  %2526 = vrot.lane.b32.xlu0 %v11317_v46, %s10942_s21 }
 0x76d   :  { %9282 = vmatmul.mubr.f32.gmra.mxu1 %v1612_v45  ;;  %v1616_v1 = vmul.f32 %v10378_v30, %v12048_v25 }
 0x76e   :  { %9284 = vmatprep.mubr.f32.mxu1 %v1614_v12 }
 0x76f   :  { %2524 = vrot.lane.b32.xlu1 %v11325_v48, %s10942_s21 }
 0x770   :  { %2522 = vrot.lane.b32.xlu0 %v11313_v0, %s10942_s21 }
 0x771   :  { %9285 = vmatmul.mubr.f32.gmra.mxu1 %v1616_v1 }
 0x773   :  { %2520 = vrot.lane.b32.xlu1 %v11333_v50, %s10942_s21 }
 0x774   :  { %2518 = vrot.lane.b32.xlu0 %v11321_v24, %s10942_s21 }
 0x777   :  { %2516 = vrot.lane.b32.xlu1 %v11341_v52, %s10942_s21 }
 0x778   :  { %2514 = vrot.lane.b32.xlu0 %v11329_v49, %s10942_s21 }
 0x77b   :  { %2512 = vrot.lane.b32.xlu1 %v11349_v29, %s10942_s21 }
 0x77c   :  { %2510 = vrot.lane.b32.xlu0 %v11337_v51, %s10942_s21 }
 0x780   :  { %2508 = vrot.lane.b32.xlu0 %v11357_v56, %s10942_s21 }
 0x78f   :  { %v1590_v32 = vpop.xlane.xlu0 %1589 }
 0x790   :  { %10379 = vrcp.f32 %v1590_v32 }
 0x793   :  { %v1596_v7 = vpop.xlane.xlu0 %1595  ;;  %v1588_v53 = vpop.xlane.xlu1 %1587 }
 0x794   :  { %10381 = vrcp.f32 %v1588_v53 }
 0x797   :  { %v1600_v25 = vpop.xlane.xlu0 %1599  ;;  %v1586_v59 = vpop.xlane.xlu1 %1585 }
 0x798   :  { %10383 = vrcp.f32 %v1586_v59 }
 0x79b   :  { %v1859_v61 = vpop.permute.xlu0 %1858  ;;  %v1592_v23 = vpop.xlane.xlu1 %1591 }
 0x79c   :  { %10385 = vrcp.f32 %v1592_v23  ;;  %9329 = vmatprep.subr.msk.mxu1 %vm605_vm1, %v1859_v61 }
 0x79d   :  { %9330 = vmatpush3.xpose.msk.msra.mxu1 %vm605_vm1, %v1859_v61  ;;  %10387 = vrcp.f32 %v1596_v7  ;;  %v10380_v17 = vpop.eup %10379 }
 0x79e   :  { %v1622_v9 = vmul.f32 %v10380_v17, %v12063_v19 }
 0x79f   :  { %v1829_v41 = vpop.permute.xlu0 %1828  ;;  %v1594_v4 = vpop.xlane.xlu1 %1593 }
 0x7a0   :  { %10389 = vrcp.f32 %v1594_v4 }
 0x7a1   :  { %10391 = vrcp.f32 %v1600_v25  ;;  %v10382_v42 = vpop.eup %10381 }
 0x7a2   :  { %v1620_v27 = vmul.f32 %v10382_v42, %v12066_v21 }
 0x7a3   :  { %v1833_v13 = vpop.permute.xlu0 %1832  ;;  %v1598_v14 = vpop.xlane.xlu1 %1597 }
 0x7a4   :  { %10393 = vrcp.f32 %v1598_v14 }
 0x7a5   :  { %v10384_v63 = vpop.eup %10383 }
 0x7a6   :  { %v1618_v57 = vmul.f32 %v10384_v63, %v12072_v60 }
 0x7a7   :  { %v1837_v18 = vpop.permute.xlu0 %1836  ;;  %v1827_v22 = vpop.permute.xlu1 %1826 }
 0x7a8   :  { %9287 = vmatprep.mubr.f32.mxu1 %v1618_v57 }
 0x7a9   :  { %v10386_v20 = vpop.eup %10385  ;;  %9288 = vmatmul.mubr.f32.gmra.mxu1 %v1620_v27 }
 0x7aa   :  { %v1624_v10 = vmul.f32 %v10386_v20, %v12078_v6  ;;  %9290 = vmatprep.mubr.f32.mxu1 %v1622_v9  ;;  %v10388_v31 = vpop.eup %10387 }
 0x7ab   :  { %v1841_v43 = vpop.permute.xlu0 %1840  ;;  %v1831_v3 = vpop.permute.xlu1 %1830  ;;  %v1628_v21 = vmul.f32 %v10388_v31, %v12068_v58 }
 0x7ad   :  { %v10390_v47 = vpop.eup %10389  ;;  %9291 = vmatmul.mubr.f32.gmra.mxu1 %v1624_v10 }
 0x7ae   :  { %v1626_v33 = vmul.f32 %v10390_v47, %v12081_v39  ;;  %v10392_v60 = vpop.eup %10391 }
 0x7af   :  { %v1845_v62 = vpop.permute.xlu0 %1844  ;;  %v1835_v16 = vpop.permute.xlu1 %1834  ;;  %v1632_v37 = vmul.f32 %v10392_v60, %v12074_v44 }
 0x7b0   :  { %9293 = vmatprep.mubr.f32.mxu1 %v1626_v33 }
 0x7b1   :  { %v10394_v35 = vpop.eup %10393  ;;  %9294 = vmatmul.mubr.f32.gmra.mxu1 %v1628_v21 }
 0x7b2   :  { %v1630_v19 = vmul.f32 %v10394_v35, %v12086_v26 }
 0x7b3   :  { %v1849_v8 = vpop.permute.xlu0 %1848  ;;  %v1839_v6 = vpop.permute.xlu1 %1838 }
 0x7b4   :  { %9296 = vmatprep.mubr.f32.mxu1 %v1630_v19 }
 0x7b5   :  { %9297 = vmatmul.mubr.f32.gmra.mxu1 %v1632_v37 }
 0x7b6   :  { %9331 = vmatprep.mubr.msk.f32.mxu1 %vm605_vm1, %v1827_v22 }
 0x7b7   :  { %v1853_v34 = vpop.permute.xlu0 %1852  ;;  %v1843_v39 = vpop.permute.xlu1 %1842 }
 0x7b9   :  { %9332 = vmatmul.mubr.msk.f32.vlgmr.msra.gmra.mxu1 %vm605_vm1, %v1829_v41 }
 0x7ba   :  { %9334 = vmatprep.mubr.msk.f32.mxu1 %vm605_vm1, %v1831_v3 }
 0x7bb   :  { %v1857_v54 = vpop.permute.xlu0 %1856  ;;  %v1847_v58 = vpop.permute.xlu1 %1846 }
 0x7bd   :  { %9335 = vmatmul.mubr.msk.f32.gmra.mxu1 %vm605_vm1, %v1833_v13 }
 0x7be   :  { %9337 = vmatprep.mubr.msk.f32.mxu1 %vm605_vm1, %v1835_v16 }
 0x7bf   :  { %v2306_v26 = vpop.permute.xlu0 %2305  ;;  %v1851_v45 = vpop.permute.xlu1 %1850 }
 0x7c0   :  { %9355 = vmatprep.subr.mxu0 %v2306_v26 }
 0x7c1   :  { %9356 = vmatpush3.msra.mxu0 %v2306_v26  ;;  %9338 = vmatmul.mubr.msk.f32.gmra.mxu1 %vm605_vm1, %v1837_v18 }
 0x7c2   :  { %9340 = vmatprep.mubr.msk.f32.mxu1 %vm605_vm1, %v1839_v6 }
 0x7c3   :  { %v2302_v44 = vpop.permute.xlu0 %2301  ;;  %v1855_v30 = vpop.permute.xlu1 %1854 }
 0x7c5   :  { %9341 = vmatmul.mubr.msk.f32.gmra.mxu1 %vm605_vm1, %v1841_v43 }
 0x7c6   :  { %9343 = vmatprep.mubr.msk.f32.mxu1 %vm605_vm1, %v1843_v39  ;;  %v12314_v39 = vld [vmem:[%s15733_s1] sm:$0xff] }
 0x7c7   :  { %v2298_v12 = vpop.permute.xlu0 %2297  ;;  %v2304_v1 = vpop.permute.xlu1 %2303 }
 0x7c8   :  { %9357 = vmatprep.subr.mxu0 %v2304_v1 }
 0x7c9   :  { %9358 = vmatpush3.msra.mxu0 %v2304_v1  ;;  %9344 = vmatmul.mubr.msk.f32.gmra.mxu1 %vm605_vm1, %v1845_v62  ;;  %v12332_v1 = vld [vmem:[%s15733_s1 + $0x10] sm:$0xff] }
 0x7ca   :  { %9359 = vmatprep.subr.mxu0 %v2302_v44  ;;  %9346 = vmatprep.mubr.msk.f32.mxu1 %vm605_vm1, %v1847_v58  ;;  %15857 = vst [vmem:[#allocation54_spill] sm:$0xff] %v12332_v1 }
 0x7cb   :  { %9360 = vmatpush3.msra.mxu0 %v2302_v44  ;;  %v2300_v32 = vpop.permute.xlu1 %2299  ;;  %v2292_v7 = vpop.permute.xlu0 %2291 }
 0x7cc   :  { %9361 = vmatprep.subr.mxu0 %v2300_v32 }
 0x7cd   :  { %9362 = vmatpush3.msra.mxu0 %v2300_v32  ;;  %9347 = vmatmul.mubr.msk.f32.gmra.mxu1 %vm605_vm1, %v1849_v8  ;;  %v12306_v8 = vld [vmem:[%s15733_s1 + $0x8] sm:$0xff] }
 0x7ce   :  { %9363 = vmatprep.subr.mxu0 %v2298_v12  ;;  %9349 = vmatprep.mubr.msk.f32.mxu1 %vm605_vm1, %v1851_v45 }
 0x7cf   :  { %9364 = vmatpush3.msra.mxu0 %v2298_v12  ;;  %v2296_v53 = vpop.permute.xlu1 %2295  ;;  %v2288_v25 = vpop.permute.xlu0 %2287 }
 0x7d0   :  { %9365 = vmatprep.subr.mxu0 %v2296_v53 }
 0x7d1   :  { %9366 = vmatpush3.msra.mxu0 %v2296_v53  ;;  %9350 = vmatmul.mubr.msk.f32.gmra.mxu1 %vm605_vm1, %v1853_v34 }
 0x7d2   :  { %9352 = vmatprep.mubr.msk.f32.mxu1 %vm605_vm1, %v1855_v30  ;;  %v12324_v30 = vld [vmem:[%s15733_s1 + $0x18] sm:$0xff] }
 0x7d3   :  { %v2294_v59 = vpop.permute.xlu1 %2293  ;;  %v2284_v23 = vpop.permute.xlu0 %2283 }
 0x7d4   :  { %9367 = vmatprep.subr.mxu0 %v2294_v59 }
 0x7d5   :  { %9368 = vmatpush3.msra.mxu0 %v2294_v59  ;;  %9353 = vmatmul.mubr.msk.f32.gmra.mxu1 %vm605_vm1, %v1857_v54 }
 0x7d6   :  { %9369 = vmatprep.subr.mxu0 %v2292_v7 }
 0x7d7   :  { %9370 = vmatpush3.msra.mxu0 %v2292_v7  ;;  %v2290_v61 = vpop.permute.xlu1 %2289  ;;  %v2280_v4 = vpop.permute.xlu0 %2279 }
 0x7d8   :  { %9371 = vmatprep.subr.mxu0 %v2290_v61 }
 0x7d9   :  { %9372 = vmatpush3.msra.mxu0 %v2290_v61  ;;  %v12342_v61 = vld [vmem:[%s15733_s1 + $0x28] sm:$0xff] }
 0x7da   :  { %9373 = vmatprep.subr.mxu0 %v2288_v25  ;;  %15858 = vst [vmem:[#allocation55_spill] sm:$0xff] %v12342_v61 }
 0x7db   :  { %9374 = vmatpush3.msra.mxu0 %v2288_v25  ;;  %v2286_v41 = vpop.permute.xlu1 %2285  ;;  %v2276_v17 = vpop.permute.xlu0 %2275 }
 0x7dc   :  { %9375 = vmatprep.subr.mxu0 %v2286_v41 }
 0x7dd   :  { %9376 = vmatpush3.msra.mxu0 %v2286_v41  ;;  %v12350_v41 = vld [vmem:[%s15733_s1 + $0x20] sm:$0xff] }
 0x7de   :  { %9377 = vmatprep.subr.mxu0 %v2284_v23  ;;  %15859 = vst [vmem:[#allocation56_spill] sm:$0xff] %v12350_v41 }
 0x7df   :  { %9378 = vmatpush3.msra.mxu0 %v2284_v23  ;;  %v2282_v13 = vpop.permute.xlu1 %2281 }
 0x7e0   :  { %9379 = vmatprep.subr.mxu0 %v2282_v13 }
 0x7e1   :  { %9380 = vmatpush3.msra.mxu0 %v2282_v13 }
 0x7e2   :  { %9381 = vmatprep.subr.mxu0 %v2280_v4 }
 0x7e3   :  { %9382 = vmatpush3.msra.mxu0 %v2280_v4  ;;  %v2278_v14 = vpop.permute.xlu1 %2277 }
 0x7e4   :  { %9383 = vmatprep.subr.mxu0 %v2278_v14 }
 0x7e5   :  { %9384 = vmatpush3.msra.mxu0 %v2278_v14 }
 0x7e6   :  { %9385 = vmatprep.subr.mxu0 %v2276_v17 }
 0x7e7   :  { %9386 = vmatpush3.msra.mxu0 %v2276_v17  ;;  %v12267_v42 = vpop.permute.xlu1 %2530 }
 0x7e8   :  { %9411 = vmatprep.subr.msk.mxu0 %vm605_vm1, %v12267_v42 }
 0x7ed   :  { %v12271_v63 = vpop.f32.mrf.mxu1 }
 0x7ee   :  { %15841 = vst [vmem:[#allocation22_spill] sm:$0xff] %v12271_v63 }
 0x7ef   :  { %v12273_v18 = vpop.f32.mrf.mxu1 }
 0x7f0   :  { %15842 = vst [vmem:[#allocation24_spill] sm:$0xff] %v12273_v18 }
 0x825   :  { %v12275_v22 = vpop.f32.mrf.mxu1 }
 0x826   :  { %15843 = vst [vmem:[#allocation23_spill] sm:$0xff] %v12275_v22 }
 0x827   :  { %v12277_v57 = vpop.f32.mrf.mxu1 }
 0x828   :  { %15844 = vst [vmem:[#allocation25_spill] sm:$0xff] %v12277_v57 }
 0x82d   :  { %v12279_v27 = vpop.f32.mrf.mxu1 }
 0x82e   :  { %15845 = vst [vmem:[#allocation42_spill] sm:$0xff] %v12279_v27 }
 0x82f   :  { %v12281_v20 = vpop.f32.mrf.mxu1 }
 0x830   :  { %15846 = vst [vmem:[#allocation43_spill] sm:$0xff] %v12281_v20 }
 0x831   :  { %v12283_v9 = vpop.f32.mrf.mxu1 }
 0x832   :  { %15847 = vst [vmem:[#allocation44_spill] sm:$0xff] %v12283_v9 }
 0x833   :  { %v12285_v10 = vpop.f32.mrf.mxu1 }
 0x834   :  { %15848 = vst [vmem:[#allocation45_spill] sm:$0xff] %v12285_v10 }
 0x869   :  { %v12287_v43 = vpop.f32.mrf.mxu1 }
 0x86a   :  { %15849 = vst [vmem:[#allocation46_spill] sm:$0xff] %v12287_v43  ;;  %v12457_v43 = vpop.permute.xlu1 %2524 }
 0x86b   :  { %v12289_v3 = vpop.f32.mrf.mxu1 }
 0x86c   :  { %15850 = vst [vmem:[#allocation47_spill] sm:$0xff] %v12289_v3 }
 0x86d   :  { %v12291_v31 = vpop.f32.mrf.mxu1 }
 0x86e   :  { %15851 = vst [vmem:[#allocation48_spill] sm:$0xff] %v12291_v31 }
 0x86f   :  { %v12293_v47 = vpop.f32.mrf.mxu1 }
 0x870   :  { %15852 = vst [vmem:[#allocation49_spill] sm:$0xff] %v12293_v47 }
 0x871   :  { %v12295_v33 = vpop.f32.mrf.mxu1 }
 0x872   :  { %15853 = vst [vmem:[#allocation50_spill] sm:$0xff] %v12295_v33 }
 0x873   :  { %v12297_v62 = vpop.f32.mrf.mxu1 }
 0x874   :  { %15854 = vst [vmem:[#allocation51_spill] sm:$0xff] %v12297_v62 }
 0x875   :  { %v12299_v16 = vpop.f32.mrf.mxu1 }
 0x876   :  { %15855 = vst [vmem:[#allocation52_spill] sm:$0xff] %v12299_v16 }
 0x877   :  { %v12301_v60 = vpop.f32.mrf.mxu1 }
 0x878   :  { %15856 = vst [vmem:[#allocation53_spill] sm:$0xff] %v12301_v60 }
 0x879   :  { %v9333_v21 = vpop.f32.mrf.mxu1 }
 0x87a   :  { %v2100_v35 = vmul.f32 0.35355338, %v9333_v21 }
 0x87b   :  { %v2020_v19 = vpop.f32.mrf.mxu1 }
 0x87c   :  { %v12309_v6 = vadd.f32 %v12306_v8, %v2100_v35  ;;  %v2099_v37 = vmul.f32 0.35355338, %v2020_v19  ;;  %v12360_v35 = vld [vmem:[%s15733_s1 + $0x38] sm:$0xff] }
 0x87d   :  { %v9336_v34 = vpop.f32.mrf.mxu1  ;;  %15860 = vst [vmem:[#allocation57_spill] sm:$0xff] %v12360_v35 }
 0x87e   :  { %v12317_v54 = vadd.f32 %v12314_v39, %v2099_v37  ;;  %v2102_v58 = vmul.f32 0.35355338, %v9336_v34  ;;  %2133 = vmax.xlane.f32.xlu0 %v12309_v6  ;;  %v12368_v37 = vld [vmem:[%s15733_s1 + $0x30] sm:$0xff] }
 0x87f   :  { %v2030_v26 = vpop.f32.mrf.mxu1  ;;  %15861 = vst [vmem:[#allocation58_spill] sm:$0xff] %v12368_v37 }
 0x880   :  { %v2101_v45 = vmul.f32 0.35355338, %v2030_v26  ;;  %2131 = vmax.xlane.f32.xlu1 %v12317_v54  ;;  %v12327_v12 = vadd.f32 %v12324_v30, %v2102_v58 }
 0x881   :  { %v9339_v44 = vpop.f32.mrf.mxu1 }
 0x882   :  { %v12335_v32 = vadd.f32 %v12332_v1, %v2101_v45  ;;  %v2104_v7 = vmul.f32 0.35355338, %v9339_v44 }
 0x883   :  { %v2040_v53 = vpop.f32.mrf.mxu1 }
 0x884   :  { %v2103_v25 = vmul.f32 0.35355338, %v2040_v53  ;;  %2137 = vmax.xlane.f32.xlu1 %v12327_v12  ;;  %2135 = vmax.xlane.f32.xlu0 %v12335_v32  ;;  %v12345_v23 = vadd.f32 %v12342_v61, %v2104_v7  ;;  %v12378_v7 = vld [vmem:[%s15733_s1 + $0x48] sm:$0xff] }
 0x885   :  { %v9342_v59 = vpop.f32.mrf.mxu1  ;;  %15862 = vst [vmem:[#allocation59_spill] sm:$0xff] %v12378_v7 }
 0x886   :  { %v12353_v4 = vadd.f32 %v12350_v41, %v2103_v25  ;;  %v2106_v13 = vmul.f32 0.35355338, %v9342_v59  ;;  %v12386_v25 = vld [vmem:[%s15733_s1 + $0x40] sm:$0xff] }
 0x887   :  { %v2050_v14 = vpop.f32.mrf.mxu1  ;;  %15863 = vst [vmem:[#allocation60_spill] sm:$0xff] %v12386_v25 }
 0x888   :  { %v2105_v17 = vmul.f32 0.35355338, %v2050_v14  ;;  %2141 = vmax.xlane.f32.xlu1 %v12345_v23  ;;  %2139 = vmax.xlane.f32.xlu0 %v12353_v4  ;;  %v12363_v19 = vadd.f32 %v12360_v35, %v2106_v13 }
 0x889   :  { %v9345_v21 = vpop.f32.mrf.mxu1 }
 0x88a   :  { %v12371_v34 = vadd.f32 %v12368_v37, %v2105_v17  ;;  %v2108_v58 = vmul.f32 0.35355338, %v9345_v21 }
 0x88b   :  { %v2060_v26 = vpop.f32.mrf.mxu1 }
 0x88c   :  { %v2107_v45 = vmul.f32 0.35355338, %v2060_v26  ;;  %2145 = vmax.xlane.f32.xlu1 %v12363_v19  ;;  %2143 = vmax.xlane.f32.xlu0 %v12371_v34  ;;  %v12381_v53 = vadd.f32 %v12378_v7, %v2108_v58  ;;  %v12396_v58 = vld [vmem:[%s15733_s1 + $0x58] sm:$0xff] }
 0x88d   :  { %v9348_v44 = vpop.f32.mrf.mxu1  ;;  %15864 = vst [vmem:[#allocation61_spill] sm:$0xff] %v12396_v58 }
 0x88e   :  { %v12389_v59 = vadd.f32 %v12386_v25, %v2107_v45  ;;  %v2110_v13 = vmul.f32 0.35355338, %v9348_v44  ;;  %v12404_v45 = vld [vmem:[%s15733_s1 + $0x50] sm:$0xff] }
 0x88f   :  { %v2070_v14 = vpop.f32.mrf.mxu1  ;;  %15865 = vst [vmem:[#allocation62_spill] sm:$0xff] %v12404_v45 }
 0x890   :  { %v2109_v17 = vmul.f32 0.35355338, %v2070_v14  ;;  %2149 = vmax.xlane.f32.xlu1 %v12381_v53  ;;  %2147 = vmax.xlane.f32.xlu0 %v12389_v59  ;;  %v12399_v26 = vadd.f32 %v12396_v58, %v2110_v13  ;;  %v12414_v13 = vld [vmem:[%s15733_s1 + $0x68] sm:$0xff] }
 0x891   :  { %v9351_v21 = vpop.f32.mrf.mxu1  ;;  %15866 = vst [vmem:[#allocation63_spill] sm:$0xff] %v12414_v13 }
 0x892   :  { %v12407_v44 = vadd.f32 %v12404_v45, %v2109_v17  ;;  %v2112_v14 = vmul.f32 0.35355338, %v9351_v21  ;;  %v12422_v17 = vld [vmem:[%s15733_s1 + $0x60] sm:$0xff] }
 0x893   :  { %v2080_v15 = vpop.f32.mrf.mxu1  ;;  %15867 = vst [vmem:[#allocation64_spill] sm:$0xff] %v12422_v17 }
 0x894   :  { %v2111_v5 = vmul.f32 0.35355338, %v2080_v15  ;;  %2153 = vmax.xlane.f32.xlu1 %v12399_v26  ;;  %2151 = vmax.xlane.f32.xlu0 %v12407_v44  ;;  %v12417_v16 = vadd.f32 %v12414_v13, %v2112_v14  ;;  %v12432_v14 = vld [vmem:[%s15733_s1 + $0x78] sm:$0xff] }
 0x895   :  { %v9354_v2 = vpop.f32.mrf.mxu1  ;;  %15868 = vst [vmem:[#allocation65_spill] sm:$0xff] %v12432_v14 }
 0x896   :  { %v12425_v15 = vadd.f32 %v12422_v17, %v2111_v5  ;;  %v2114_v21 = vmul.f32 0.35355338, %v9354_v2  ;;  %v12440_v5 = vld [vmem:[%s15733_s1 + $0x70] sm:$0xff] }
 0x897   :  { %v2090_v60 = vpop.f32.mrf.mxu1  ;;  %15869 = vst [vmem:[#allocation66_spill] sm:$0xff] %v12440_v5 }
 0x898   :  { %v2113_v33 = vmul.f32 0.35355338, %v2090_v60  ;;  %2157 = vmax.xlane.f32.xlu1 %v12417_v16  ;;  %2155 = vmax.xlane.f32.xlu0 %v12425_v15  ;;  %v12435_v62 = vadd.f32 %v12432_v14, %v2114_v21  ;;  %v12449_v60 = vpop.permute.xlu0 %2528 }
 0x89a   :  { %v12443_v2 = vadd.f32 %v12440_v5, %v2113_v33  ;;  %v12461_v33 = vpop.permute.xlu1 %2520 }
 0x89c   :  { %2161 = vmax.xlane.f32.xlu1 %v12435_v62  ;;  %2159 = vmax.xlane.f32.xlu0 %v12443_v2  ;;  %v12451_v31 = vpop.permute.xlu0 %2526 }
 0x89e   :  { %v12465_v10 = vpop.permute.xlu1 %2516 }
 0x8a0   :  { %v12453_v21 = vpop.permute.xlu0 %2522 }
 0x8a2   :  { %v12469_v20 = vpop.permute.xlu1 %2512 }
 0x8a4   :  { %v12455_v47 = vpop.permute.xlu0 %2518 }
 0x8a8   :  { %v12459_v3 = vpop.permute.xlu0 %2514 }
 0x8ac   :  { %v12463_v9 = vpop.permute.xlu0 %2510 }
 0x8b0   :  { %v12467_v27 = vpop.permute.xlu0 %2508 }
 0x8b2   :  { %2506 = vrot.lane.b32.xlu0 %v11345_v28, %s10942_s21 }
 0x907   :  { %v2134_v22 = vpop.xlane.xlu0 %2133 }
 0x908   :  { %v2164_v57 = vsub.f32 %v12309_v6, %v2134_v22 }
 0x909   :  { %v2132_v18 = vpop.xlane.xlu1 %2131 }
 0x90a   :  { %v2181_v63 = vmul.f32 1.442695, %v2164_v57  ;;  %v2163_v5 = vsub.f32 %v12317_v54, %v2132_v18 }
 0x90c   :  { %10395 = vpow2.f32 %v2181_v63  ;;  %v2179_v14 = vmul.f32 1.442695, %v2163_v5 }
 0x90d   :  { %v2136_v17 = vpop.xlane.xlu0 %2135  ;;  %v2138_v13 = vpop.xlane.xlu1 %2137 }
 0x90e   :  { %10397 = vpow2.f32 %v2179_v14  ;;  %v2165_v45 = vsub.f32 %v12335_v32, %v2136_v17  ;;  %v2166_v58 = vsub.f32 %v12327_v12, %v2138_v13 }
 0x910   :  { %v2183_v25 = vmul.f32 1.442695, %v2165_v45  ;;  %v2185_v7 = vmul.f32 1.442695, %v2166_v58 }
 0x911   :  { %v2140_v37 = vpop.xlane.xlu0 %2139  ;;  %v2142_v35 = vpop.xlane.xlu1 %2141 }
 0x912   :  { %10399 = vpow2.f32 %v2183_v25  ;;  %v2168_v22 = vsub.f32 %v12345_v23, %v2142_v35  ;;  %v2167_v57 = vsub.f32 %v12353_v4, %v2140_v37 }
 0x913   :  { %10401 = vpow2.f32 %v2185_v7 }
 0x914   :  { %v2189_v18 = vmul.f32 1.442695, %v2168_v22  ;;  %v2187_v14 = vmul.f32 1.442695, %v2167_v57 }
 0x915   :  { %v2144_v63 = vpop.xlane.xlu0 %2143  ;;  %v2146_v6 = vpop.xlane.xlu1 %2145 }
 0x916   :  { %v2169_v54 = vsub.f32 %v12371_v34, %v2144_v63  ;;  %10403 = vpow2.f32 %v2189_v18  ;;  %v2170_v32 = vsub.f32 %v12363_v19, %v2146_v6 }
 0x918   :  { %v2191_v12 = vmul.f32 1.442695, %v2169_v54  ;;  %v2193_v23 = vmul.f32 1.442695, %v2170_v32 }
 0x919   :  { %v12479_v45 = vpop.eup %10395  ;;  %v2150_v58 = vpop.xlane.xlu1 %2149 }
 0x91a   :  { %10405 = vpow2.f32 %v2191_v12  ;;  %2213 = vadd.xlane.f32.xlu0 %v12479_v45  ;;  %v2148_v13 = vpop.xlane.xlu0 %2147  ;;  %v2172_v6 = vsub.f32 %v12381_v53, %v2150_v58 }
 0x91b   :  { %v12482_v25 = vpop.eup %10397  ;;  %10407 = vpow2.f32 %v2187_v14  ;;  %v2171_v12 = vsub.f32 %v12389_v59, %v2148_v13 }
 0x91c   :  { %2211 = vadd.xlane.f32.xlu1 %v12482_v25  ;;  %10409 = vpow2.f32 %v2193_v23  ;;  %v2197_v23 = vmul.f32 1.442695, %v2172_v6 }
 0x91d   :  { %v2154_v17 = vpop.xlane.xlu1 %2153  ;;  %v2195_v61 = vmul.f32 1.442695, %v2171_v12 }
 0x91e   :  { %v2152_v5 = vpop.xlane.xlu0 %2151  ;;  %v2174_v1 = vsub.f32 %v12399_v26, %v2154_v17 }
 0x91f   :  { %v12485_v4 = vpop.eup %10399  ;;  %v2173_v57 = vsub.f32 %v12407_v44, %v2152_v5 }
 0x920   :  { %v12487_v35 = vpop.eup %10401  ;;  %2215 = vadd.xlane.f32.xlu1 %v12485_v4 }
 0x921   :  { %2217 = vadd.xlane.f32.xlu0 %v12487_v35  ;;  %v2158_v22 = vpop.xlane.xlu1 %2157  ;;  %v2199_v18 = vmul.f32 1.442695, %v2173_v57 }
 0x922   :  { %v2176_v63 = vsub.f32 %v12417_v16, %v2158_v22  ;;  %v2156_v44 = vpop.xlane.xlu0 %2155  ;;  %v2201_v16 = vmul.f32 1.442695, %v2174_v1 }
 0x923   :  { %v12491_v19 = vpop.eup %10403  ;;  %10411 = vpow2.f32 %v2199_v18  ;;  %v2175_v53 = vsub.f32 %v12425_v15, %v2156_v44 }
 0x924   :  { %2221 = vadd.xlane.f32.xlu1 %v12491_v19  ;;  %v2205_v14 = vmul.f32 1.442695, %v2176_v63 }
 0x925   :  { %v2162_v54 = vpop.xlane.xlu1 %2161  ;;  %v2203_v5 = vmul.f32 1.442695, %v2175_v53 }
 0x926   :  { %v2178_v32 = vsub.f32 %v12435_v62, %v2162_v54  ;;  %10413 = vpow2.f32 %v2205_v14  ;;  %v2160_v15 = vpop.xlane.xlu0 %2159 }
 0x927   :  { %v12494_v37 = vpop.eup %10405  ;;  %10415 = vpow2.f32 %v2197_v23  ;;  %v2177_v13 = vsub.f32 %v12443_v2, %v2160_v15 }
 0x928   :  { %v12496_v34 = vpop.eup %10407  ;;  %2223 = vadd.xlane.f32.xlu0 %v12494_v37  ;;  %v2209_v41 = vmul.f32 1.442695, %v2178_v32 }
 0x929   :  { %2219 = vadd.xlane.f32.xlu1 %v12496_v34  ;;  %v12500_v7 = vpop.eup %10409  ;;  %v2207_v17 = vmul.f32 1.442695, %v2177_v13 }
 0x92a   :  { %10417 = vpow2.f32 %v2209_v41  ;;  %v12556_v22 = vpop.permute.xlu0 %2506 }
 0x92b   :  { %10419 = vpow2.f32 %v2195_v61 }
 0x92c   :  { %10421 = vpow2.f32 %v2201_v16 }
 0x92d   :  { %2225 = vadd.xlane.f32.xlu1 %v12500_v7  ;;  %10423 = vpow2.f32 %v2203_v5 }
 0x92e   :  { %10425 = vpow2.f32 %v2207_v17 }
 0x930   :  { %v12514_v58 = vpop.eup %10411 }
 0x933   :  { %v12517_v62 = vpop.eup %10413 }
 0x934   :  { %v12519_v59 = vpop.eup %10415 }
 0x937   :  { %v12523_v41 = vpop.eup %10417 }
 0x938   :  { %v12525_v1 = vpop.eup %10419 }
 0x939   :  { %v12529_v61 = vpop.eup %10421 }
 0x93a   :  { %v12532_v26 = vpop.eup %10423 }
 0x93b   :  { %v12560_v2 = vpop.eup %10425 }
 0x93e   :  { %2502 = vrot.lane.b32.xlu1 %v11353_v36, %s10942_s21  ;;  %2504 = vrot.lane.b32.xlu0 %v11363_v11, %s10942_s21 }
 0x95d   :  { %2231 = vadd.xlane.f32.xlu0 %v12514_v58 }
 0x961   :  { %2237 = vadd.xlane.f32.xlu0 %v12517_v62 }
 0x962   :  { %2229 = vadd.xlane.f32.xlu1 %v12519_v59 }
 0x965   :  { %2241 = vadd.xlane.f32.xlu0 %v12523_v41 }
 0x966   :  { %2227 = vadd.xlane.f32.xlu1 %v12525_v1 }
 0x96a   :  { %2233 = vadd.xlane.f32.xlu1 %v12529_v61 }
 0x96e   :  { %2235 = vadd.xlane.f32.xlu1 %v12532_v26 }
 0x97b   :  { %2500 = vrot.lane.b32.xlu0 %v11303_v38, %s10942_s21 }
 0x97f   :  { %2468 = vrot.lane.b32.xlu1 %v11303_v38, %s10943_s13  ;;  %2470 = vrot.lane.b32.xlu0 %v11353_v36, %s10943_s13 }
 0x983   :  { %2474 = vrot.lane.b32.xlu0 %v11345_v28, %s10943_s13 }
 0x987   :  { %2478 = vrot.lane.b32.xlu0 %v11337_v51, %s10943_s13 }
 0x98b   :  { %2482 = vrot.lane.b32.xlu0 %v11329_v49, %s10943_s13 }
 0x98f   :  { %2486 = vrot.lane.b32.xlu0 %v11321_v24, %s10943_s13 }
 0x993   :  { %2490 = vrot.lane.b32.xlu0 %v11313_v0, %s10943_s13 }
 0x997   :  { %2494 = vrot.lane.b32.xlu0 %v11317_v46, %s10943_s13 }
 0x99b   :  { %2498 = vrot.lane.b32.xlu0 %v11307_v55, %s10943_s13 }
 0x99f   :  { %2947 = vrot.lane.b32.xlu0 %v11307_v55, %s10944_s14 }
 0x9a3   :  { %2239 = vadd.xlane.f32.xlu1 %v12560_v2  ;;  %v2214_v57 = vpop.xlane.xlu0 %2213  ;;  %2943 = vrot.lane.b32.xlu0 %v11317_v46, %s10944_s14 }
 0x9a4   :  { %10427 = vrcp.f32 %v2214_v57 }
 0x9a5   :  { %v2212_v18 = vpop.xlane.xlu1 %2211 }
 0x9a6   :  { %10429 = vrcp.f32 %v2212_v18 }
 0x9a7   :  { %2939 = vrot.lane.b32.xlu0 %v11313_v0, %s10944_s14 }
 0x9a9   :  { %v2216_v63 = vpop.xlane.xlu1 %2215 }
 0x9aa   :  { %v2218_v6 = vpop.xlane.xlu0 %2217  ;;  %10431 = vrcp.f32 %v2216_v63 }
 0x9ab   :  { %10433 = vrcp.f32 %v2218_v6  ;;  %2935 = vrot.lane.b32.xlu0 %v11321_v24, %s10944_s14 }
 0x9ad   :  { %v2222_v55 = vpop.xlane.xlu1 %2221 }
 0x9ae   :  { %10435 = vrcp.f32 %v2222_v55 }
 0x9af   :  { %2931 = vrot.lane.b32.xlu0 %v11329_v49, %s10944_s14 }
 0x9b1   :  { %v2224_v54 = vpop.xlane.xlu0 %2223  ;;  %v10428_v46 = vpop.eup %10427 }
 0x9b2   :  { %10437 = vrcp.f32 %v2224_v54  ;;  %v2220_v14 = vpop.xlane.xlu1 %2219  ;;  %v2246_v12 = vmul.f32 %v10428_v46, %v12479_v45 }
 0x9b3   :  { %v10430_v32 = vpop.eup %10429  ;;  %10439 = vrcp.f32 %v2220_v14 }
 0x9b4   :  { %2472 = vrot.lane.b32.xlu1 %v11363_v11, %s10943_s13  ;;  %v2244_v0 = vmul.f32 %v10430_v32, %v12482_v25 }
 0x9b6   :  { %v2226_v23 = vpop.xlane.xlu1 %2225  ;;  %9387 = vmatprep.mubr.f32.mxu0 %v2244_v0 }
 0x9b7   :  { %v10432_v24 = vpop.eup %10431  ;;  %10441 = vrcp.f32 %v2226_v23  ;;  %9388 = vmatmul.mubr.f32.vlgmr.msra.gmra.mxu0 %v2246_v12 }
 0x9b8   :  { %v10434_v49 = vpop.eup %10433  ;;  %2476 = vrot.lane.b32.xlu1 %v11357_v56, %s10943_s13  ;;  %9412 = vmatpush3.xpose.msk.msra.mxu0 %vm605_vm1, %v12267_v42  ;;  %v2248_v44 = vmul.f32 %v10432_v24, %v12485_v4 }
 0x9b9   :  { %9413 = vmatprep.subr.msk.mxu0 %vm605_vm1, %v12449_v60  ;;  %v2250_v25 = vmul.f32 %v10434_v49, %v12487_v35 }
 0x9ba   :  { %9390 = vmatprep.mubr.f32.mxu0 %v2248_v44 }
 0x9bb   :  { %9391 = vmatmul.mubr.f32.gmra.mxu0 %v2250_v25  ;;  %v10436_v45 = vpop.eup %10435 }
 0x9bc   :  { %2480 = vrot.lane.b32.xlu1 %v11349_v29, %s10943_s13  ;;  %9414 = vmatpush3.xpose.msk.msra.mxu0 %vm605_vm1, %v12449_v60  ;;  %v2254_v35 = vmul.f32 %v10436_v45, %v12491_v19 }
 0x9bd   :  { %9415 = vmatprep.subr.msk.mxu0 %vm605_vm1, %v12451_v31 }
 0x9bf   :  { %v10438_v42 = vpop.eup %10437 }
 0x9c0   :  { %v10440_v16 = vpop.eup %10439  ;;  %2484 = vrot.lane.b32.xlu1 %v11341_v52, %s10943_s13  ;;  %9416 = vmatpush3.xpose.msk.msra.mxu0 %vm605_vm1, %v12451_v31  ;;  %v2256_v60 = vmul.f32 %v10438_v42, %v12494_v37 }
 0x9c1   :  { %9417 = vmatprep.subr.msk.mxu0 %vm605_vm1, %v12457_v43  ;;  %v2252_v4 = vmul.f32 %v10440_v16, %v12496_v34 }
 0x9c3   :  { %9393 = vmatprep.mubr.f32.mxu0 %v2252_v4 }
 0x9c4   :  { %v10442_v53 = vpop.eup %10441  ;;  %2488 = vrot.lane.b32.xlu1 %v11333_v50, %s10943_s13  ;;  %9394 = vmatmul.mubr.f32.gmra.mxu0 %v2254_v35 }
 0x9c5   :  { %9418 = vmatpush3.xpose.msk.msra.mxu0 %vm605_vm1, %v12457_v43  ;;  %9396 = vmatprep.mubr.f32.mxu0 %v2256_v60  ;;  %v2258_v31 = vmul.f32 %v10442_v53, %v12500_v7 }
 0x9c6   :  { %9419 = vmatprep.subr.msk.mxu0 %vm605_vm1, %v12453_v21 }
 0x9c8   :  { %2492 = vrot.lane.b32.xlu1 %v11325_v48, %s10943_s13  ;;  %9397 = vmatmul.mubr.f32.gmra.mxu0 %v2258_v31 }
 0x9c9   :  { %9420 = vmatpush3.xpose.msk.msra.mxu0 %vm605_vm1, %v12453_v21 }
 0x9ca   :  { %9421 = vmatprep.subr.msk.mxu0 %vm605_vm1, %v12461_v33 }
 0x9cc   :  { %2496 = vrot.lane.b32.xlu1 %v11309_v40, %s10943_s13 }
 0x9cd   :  { %9422 = vmatpush3.xpose.msk.msra.mxu0 %vm605_vm1, %v12461_v33 }
 0x9ce   :  { %9423 = vmatprep.subr.msk.mxu0 %vm605_vm1, %v12455_v47 }
 0x9d0   :  { %2945 = vrot.lane.b32.xlu1 %v11309_v40, %s10944_s14  ;;  %v2505_v40 = vpop.permute.xlu0 %2504 }
 0x9d1   :  { %9424 = vmatpush3.xpose.msk.msra.mxu0 %vm605_vm1, %v12455_v47 }
 0x9d2   :  { %9425 = vmatprep.subr.msk.mxu0 %vm605_vm1, %v12465_v10 }
 0x9d4   :  { %2941 = vrot.lane.b32.xlu1 %v11325_v48, %s10944_s14 }
 0x9d5   :  { %9426 = vmatpush3.xpose.msk.msra.mxu0 %vm605_vm1, %v12465_v10 }
 0x9d6   :  { %9427 = vmatprep.subr.msk.mxu0 %vm605_vm1, %v12459_v3 }
 0x9d8   :  { %2937 = vrot.lane.b32.xlu1 %v11333_v50, %s10944_s14  ;;  %v2503_v50 = vpop.permute.xlu1 %2502 }
 0x9d9   :  { %9428 = vmatpush3.xpose.msk.msra.mxu0 %vm605_vm1, %v12459_v3 }
 0x9da   :  { %9429 = vmatprep.subr.msk.mxu0 %vm605_vm1, %v12469_v20 }
 0x9dc   :  { %2933 = vrot.lane.b32.xlu1 %v11341_v52, %s10944_s14 }
 0x9dd   :  { %9430 = vmatpush3.xpose.msk.msra.mxu0 %vm605_vm1, %v12469_v20 }
 0x9de   :  { %9431 = vmatprep.subr.msk.mxu0 %vm605_vm1, %v12463_v9 }
 0x9e0   :  { %2929 = vrot.lane.b32.xlu1 %v11349_v29, %s10944_s14 }
 0x9e1   :  { %9432 = vmatpush3.xpose.msk.msra.mxu0 %vm605_vm1, %v12463_v9 }
 0x9e2   :  { %9433 = vmatprep.subr.msk.mxu0 %vm605_vm1, %v12467_v27 }
 0x9e5   :  { %9434 = vmatpush3.xpose.msk.msra.mxu0 %vm605_vm1, %v12467_v27 }
 0x9e6   :  { %9435 = vmatprep.subr.msk.mxu0 %vm605_vm1, %v12556_v22  ;;  %v2232_v48 = vpop.xlane.xlu0 %2231 }
 0x9e7   :  { %10443 = vrcp.f32 %v2232_v48 }
 0x9e9   :  { %9436 = vmatpush3.xpose.msk.msra.mxu0 %vm605_vm1, %v12556_v22 }
 0x9ea   :  { %9437 = vmatprep.subr.msk.mxu0 %vm605_vm1, %v2505_v40  ;;  %v2238_v52 = vpop.xlane.xlu0 %2237 }
 0x9eb   :  { %v2230_v29 = vpop.xlane.xlu1 %2229 }
 0x9ec   :  { %10445 = vrcp.f32 %v2230_v29 }
 0x9ed   :  { %9438 = vmatpush3.xpose.msk.msra.mxu0 %vm605_vm1, %v2505_v40 }
 0x9ee   :  { %9439 = vmatprep.subr.msk.mxu0 %vm605_vm1, %v2503_v50  ;;  %v2242_v20 = vpop.xlane.xlu0 %2241 }
 0x9ef   :  { %v2228_v27 = vpop.xlane.xlu1 %2227 }
 0x9f0   :  { %10447 = vrcp.f32 %v2228_v27 }
 0x9f1   :  { %9440 = vmatpush3.xpose.msk.msra.mxu0 %vm605_vm1, %v2503_v50 }
 0x9f2   :  { %v2501_v9 = vpop.permute.xlu0 %2500 }
 0x9f3   :  { %v2234_v10 = vpop.xlane.xlu1 %2233  ;;  %9441 = vmatprep.subr.msk.mxu0 %vm605_vm1, %v2501_v9 }
 0x9f4   :  { %10449 = vrcp.f32 %v2234_v10  ;;  %v10444_v21 = vpop.eup %10443 }
 0x9f5   :  { %9442 = vmatpush3.xpose.msk.msra.mxu0 %vm605_vm1, %v2501_v9  ;;  %10451 = vrcp.f32 %v2238_v52  ;;  %v2264_v5 = vmul.f32 %v10444_v21, %v12514_v58 }
 0x9f6   :  { %v2471_v43 = vpop.permute.xlu0 %2470 }
 0x9f7   :  { %v2236_v3 = vpop.xlane.xlu1 %2235 }
 0x9f8   :  { %10453 = vrcp.f32 %v2236_v3 }
 0x9f9   :  { %v10446_v33 = vpop.eup %10445  ;;  %10455 = vrcp.f32 %v2242_v20 }
 0x9fa   :  { %v2475_v47 = vpop.permute.xlu0 %2474  ;;  %v2262_v7 = vmul.f32 %v10446_v33, %v12519_v59 }
 0x9fb   :  { %v2469_v54 = vpop.permute.xlu1 %2468 }
 0x9fd   :  { %v10448_v19 = vpop.eup %10447 }
 0x9fe   :  { %v2479_v37 = vpop.permute.xlu0 %2478  ;;  %v2260_v34 = vmul.f32 %v10448_v19, %v12525_v1 }
 0xa00   :  { %9399 = vmatprep.mubr.f32.mxu0 %v2260_v34 }
 0xa01   :  { %v10450_v15 = vpop.eup %10449  ;;  %9400 = vmatmul.mubr.f32.gmra.mxu0 %v2262_v7 }
 0xa02   :  { %9402 = vmatprep.mubr.f32.mxu0 %v2264_v5  ;;  %v2483_v13 = vpop.permute.xlu0 %2482  ;;  %v2266_v17 = vmul.f32 %v10450_v15, %v12529_v61  ;;  %v10452_v22 = vpop.eup %10451 }
 0xa03   :  { %v2270_v6 = vmul.f32 %v10452_v22, %v12517_v62 }
 0xa05   :  { %v10454_v57 = vpop.eup %10453  ;;  %9403 = vmatmul.mubr.f32.gmra.mxu0 %v2266_v17 }
 0xa06   :  { %v2487_v18 = vpop.permute.xlu0 %2486  ;;  %v2268_v63 = vmul.f32 %v10454_v57, %v12532_v26  ;;  %v10456_v0 = vpop.eup %10455 }
 0xa07   :  { %v2274_v23 = vmul.f32 %v10456_v0, %v12523_v41 }
 0xa08   :  { %9405 = vmatprep.mubr.f32.mxu0 %v2268_v63 }
 0xa09   :  { %9406 = vmatmul.mubr.f32.gmra.mxu0 %v2270_v6  ;;  %v15870_v6 = vld [vmem:[#allocation54_spill] sm:$0xff] }
 0xa0a   :  { %v2491_v59 = vpop.permute.xlu0 %2490 }
 0xa0e   :  { %v2495_v1 = vpop.permute.xlu0 %2494 }
 0xa12   :  { %v2499_v55 = vpop.permute.xlu0 %2498 }
 0xa16   :  { %v2948_v58 = vpop.permute.xlu0 %2947 }
 0xa17   :  { %9467 = vmatprep.subr.mxu1 %v2948_v58 }
 0xa18   :  { %9468 = vmatpush3.msra.mxu1 %v2948_v58  ;;  %v15871_v58 = vld [vmem:[#allocation55_spill] sm:$0xff] }
 0xa1a   :  { %v2944_v44 = vpop.permute.xlu0 %2943 }
 0xa2c   :  { %v2240_v46 = vpop.xlane.xlu1 %2239 }
 0xa2d   :  { %10457 = vrcp.f32 %v2240_v46  ;;  %v15872_v46 = vld [vmem:[#allocation56_spill] sm:$0xff] }
 0xa30   :  { %v2473_v61 = vpop.permute.xlu1 %2472 }
 0xa34   :  { %v2477_v14 = vpop.permute.xlu1 %2476 }
 0xa38   :  { %v2481_v32 = vpop.permute.xlu1 %2480 }
 0xa3a   :  { %v10458_v12 = vpop.eup %10457 }
 0xa3b   :  { %v2272_v26 = vmul.f32 %v10458_v12, %v12560_v2  ;;  %v2940_v2 = vpop.permute.xlu0 %2939  ;;  %v15873_v12 = vld [vmem:[#allocation57_spill] sm:$0xff] }
 0xa3c   :  { %v2485_v62 = vpop.permute.xlu1 %2484 }
 0xa3d   :  { %9408 = vmatprep.mubr.f32.mxu0 %v2272_v26 }
 0xa3e   :  { %9409 = vmatmul.mubr.f32.gmra.mxu0 %v2274_v23 }
 0xa3f   :  { %9443 = vmatprep.mubr.msk.f32.mxu0 %vm605_vm1, %v2469_v54  ;;  %v2936_v42 = vpop.permute.xlu0 %2935 }
 0xa40   :  { %v2489_v24 = vpop.permute.xlu1 %2488 }
 0xa42   :  { %9444 = vmatmul.mubr.msk.f32.vlgmr.msra.gmra.mxu0 %vm605_vm1, %v2471_v43 }
 0xa43   :  { %9446 = vmatprep.mubr.msk.f32.mxu0 %vm605_vm1, %v2473_v61  ;;  %v2932_v35 = vpop.permute.xlu0 %2931 }
 0xa44   :  { %v2493_v49 = vpop.permute.xlu1 %2492 }
 0xa46   :  { %9447 = vmatmul.mubr.msk.f32.gmra.mxu0 %vm605_vm1, %v2475_v47 }
 0xa47   :  { %9449 = vmatprep.mubr.msk.f32.mxu0 %vm605_vm1, %v2477_v14 }
 0xa48   :  { %v2497_v25 = vpop.permute.xlu1 %2496 }
 0xa4a   :  { %9450 = vmatmul.mubr.msk.f32.gmra.mxu0 %vm605_vm1, %v2479_v37 }
 0xa4b   :  { %9452 = vmatprep.mubr.msk.f32.mxu0 %vm605_vm1, %v2481_v32 }
 0xa4c   :  { %v2946_v41 = vpop.permute.xlu1 %2945 }
 0xa4d   :  { %9469 = vmatprep.subr.mxu1 %v2946_v41 }
 0xa4e   :  { %9453 = vmatmul.mubr.msk.f32.gmra.mxu0 %vm605_vm1, %v2483_v13  ;;  %9470 = vmatpush3.msra.mxu1 %v2946_v41  ;;  %v15875_v41 = vld [vmem:[#allocation59_spill] sm:$0xff] }
 0xa4f   :  { %9455 = vmatprep.mubr.msk.f32.mxu0 %vm605_vm1, %v2485_v62  ;;  %9471 = vmatprep.subr.mxu1 %v2944_v44  ;;  %v15874_v62 = vld [vmem:[#allocation58_spill] sm:$0xff] }
 0xa50   :  { %9472 = vmatpush3.msra.mxu1 %v2944_v44  ;;  %v2942_v45 = vpop.permute.xlu1 %2941 }
 0xa51   :  { %9473 = vmatprep.subr.mxu1 %v2942_v45 }
 0xa52   :  { %9456 = vmatmul.mubr.msk.f32.gmra.mxu0 %vm605_vm1, %v2487_v18  ;;  %9474 = vmatpush3.msra.mxu1 %v2942_v45  ;;  %v15876_v45 = vld [vmem:[#allocation60_spill] sm:$0xff] }
 0xa53   :  { %9458 = vmatprep.mubr.msk.f32.mxu0 %vm605_vm1, %v2489_v24  ;;  %9475 = vmatprep.subr.mxu1 %v2940_v2 }
 0xa54   :  { %9476 = vmatpush3.msra.mxu1 %v2940_v2  ;;  %v2938_v16 = vpop.permute.xlu1 %2937 }
 0xa55   :  { %9477 = vmatprep.subr.mxu1 %v2938_v16 }
 0xa56   :  { %9459 = vmatmul.mubr.msk.f32.gmra.mxu0 %vm605_vm1, %v2491_v59  ;;  %9478 = vmatpush3.msra.mxu1 %v2938_v16 }
 0xa57   :  { %9461 = vmatprep.mubr.msk.f32.mxu0 %vm605_vm1, %v2493_v49  ;;  %9479 = vmatprep.subr.mxu1 %v2936_v42 }
 0xa58   :  { %9480 = vmatpush3.msra.mxu1 %v2936_v42  ;;  %v2934_v4 = vpop.permute.xlu1 %2933 }
 0xa59   :  { %9481 = vmatprep.subr.mxu1 %v2934_v4 }
 0xa5a   :  { %9462 = vmatmul.mubr.msk.f32.gmra.mxu0 %vm605_vm1, %v2495_v1  ;;  %9482 = vmatpush3.msra.mxu1 %v2934_v4 }
 0xa5b   :  { %9464 = vmatprep.mubr.msk.f32.mxu0 %vm605_vm1, %v2497_v25  ;;  %9483 = vmatprep.subr.mxu1 %v2932_v35 }
 0xa5c   :  { %9484 = vmatpush3.msra.mxu1 %v2932_v35  ;;  %v2930_v60 = vpop.permute.xlu1 %2929 }
 0xa5d   :  { %9485 = vmatprep.subr.mxu1 %v2930_v60 }
 0xa5e   :  { %9465 = vmatmul.mubr.msk.f32.gmra.mxu0 %vm605_vm1, %v2499_v55  ;;  %9486 = vmatpush3.msra.mxu1 %v2930_v60 }
 0xa77   :  { %v12683_v53 = vpop.f32.mrf.mxu0 }
 0xa79   :  { %v12685_v31 = vpop.f32.mrf.mxu0 }
 0xa7b   :  { %v12687_v40 = vpop.f32.mrf.mxu0 }
 0xa7d   :  { %v12689_v48 = vpop.f32.mrf.mxu0 }
 0xa84   :  { %v12691_v50 = vpop.f32.mrf.mxu0 }
 0xa86   :  { %v12693_v52 = vpop.f32.mrf.mxu0 }
 0xa88   :  { %v12695_v29 = vpop.f32.mrf.mxu0 }
 0xa8a   :  { %v12697_v20 = vpop.f32.mrf.mxu0 }
 0xac1   :  { %v12699_v27 = vpop.f32.mrf.mxu0 }
 0xac3   :  { %v12701_v9 = vpop.f32.mrf.mxu0 }
 0xac5   :  { %v12703_v10 = vpop.f32.mrf.mxu0 }
 0xac7   :  { %v12705_v43 = vpop.f32.mrf.mxu0 }
 0xac9   :  { %v12707_v3 = vpop.f32.mrf.mxu0 }
 0xacb   :  { %v12709_v47 = vpop.f32.mrf.mxu0 }
 0xafe   :  { %v12711_v21 = vpop.f32.mrf.mxu0 }
 0xb00   :  { %v12713_v33 = vpop.f32.mrf.mxu0 }
 0xb02   :  { %v9445_v19 = vpop.f32.mrf.mxu0 }
 0xb03   :  { %v2742_v37 = vmul.f32 0.35355338, %v9445_v19  ;;  %v15877_v19 = vld [vmem:[#allocation61_spill] sm:$0xff] }
 0xb04   :  { %v2662_v34 = vpop.f32.mrf.mxu0 }
 0xb05   :  { %v12716_v7 = vadd.f32 %v12306_v8, %v2742_v37  ;;  %v2741_v5 = vmul.f32 0.35355338, %v2662_v34  ;;  %v15878_v34 = vld [vmem:[#allocation62_spill] sm:$0xff] }
 0xb06   :  { %v9448_v15 = vpop.f32.mrf.mxu0 }
 0xb07   :  { %v12719_v13 = vadd.f32 %v12314_v39, %v2741_v5  ;;  %v2744_v17 = vmul.f32 0.35355338, %v9448_v15  ;;  %2775 = vmax.xlane.f32.xlu0 %v12716_v7 }
 0xb08   :  { %v2672_v22 = vpop.f32.mrf.mxu0 }
 0xb09   :  { %v2743_v57 = vmul.f32 0.35355338, %v2672_v22  ;;  %2773 = vmax.xlane.f32.xlu1 %v12719_v13  ;;  %v12724_v63 = vadd.f32 %v12324_v30, %v2744_v17 }
 0xb0a   :  { %v9451_v18 = vpop.f32.mrf.mxu0 }
 0xb0b   :  { %v12727_v59 = vadd.f32 %v15870_v6, %v2743_v57  ;;  %v2746_v8 = vmul.f32 0.35355338, %v9451_v18  ;;  %v15879_v18 = vld [vmem:[#allocation63_spill] sm:$0xff] }
 0xb0c   :  { %v2682_v1 = vpop.f32.mrf.mxu0 }
 0xb0d   :  { %v2745_v55 = vmul.f32 0.35355338, %v2682_v1  ;;  %2779 = vmax.xlane.f32.xlu1 %v12724_v63  ;;  %2777 = vmax.xlane.f32.xlu0 %v12727_v59  ;;  %v12732_v54 = vadd.f32 %v15871_v58, %v2746_v8  ;;  %v15880_v8 = vld [vmem:[#allocation64_spill] sm:$0xff] }
 0xb0e   :  { %v9454_v39 = vpop.f32.mrf.mxu0 }
 0xb0f   :  { %v12735_v61 = vadd.f32 %v15872_v46, %v2745_v55  ;;  %v2748_v14 = vmul.f32 0.35355338, %v9454_v39  ;;  %v15881_v46 = vld [vmem:[#allocation65_spill] sm:$0xff] }
 0xb10   :  { %v2692_v30 = vpop.f32.mrf.mxu0 }
 0xb11   :  { %v2747_v32 = vmul.f32 0.35355338, %v2692_v30  ;;  %2783 = vmax.xlane.f32.xlu1 %v12732_v54  ;;  %2781 = vmax.xlane.f32.xlu0 %v12735_v61  ;;  %v12740_v26 = vadd.f32 %v15873_v12, %v2748_v14  ;;  %v15882_v30 = vld [vmem:[#allocation66_spill] sm:$0xff] }
 0xb12   :  { %v9457_v0 = vpop.f32.mrf.mxu0 }
 0xb13   :  { %v12743_v23 = vadd.f32 %v15874_v62, %v2747_v32  ;;  %v2750_v24 = vmul.f32 0.35355338, %v9457_v0 }
 0xb14   :  { %v2702_v49 = vpop.f32.mrf.mxu0 }
 0xb15   :  { %v2749_v44 = vmul.f32 0.35355338, %v2702_v49  ;;  %2787 = vmax.xlane.f32.xlu1 %v12740_v26  ;;  %2785 = vmax.xlane.f32.xlu0 %v12743_v23  ;;  %v12748_v2 = vadd.f32 %v15875_v41, %v2750_v24 }
 0xb16   :  { %v9460_v25 = vpop.f32.mrf.mxu0 }
 0xb17   :  { %v12751_v42 = vadd.f32 %v15876_v45, %v2749_v44  ;;  %v2752_v16 = vmul.f32 0.35355338, %v9460_v25 }
 0xb18   :  { %v2712_v4 = vpop.f32.mrf.mxu0 }
 0xb19   :  { %v2751_v35 = vmul.f32 0.35355338, %v2712_v4  ;;  %2791 = vmax.xlane.f32.xlu1 %v12748_v2  ;;  %2789 = vmax.xlane.f32.xlu0 %v12751_v42  ;;  %v12756_v37 = vadd.f32 %v15877_v19, %v2752_v16 }
 0xb1a   :  { %v9463_v60 = vpop.f32.mrf.mxu0 }
 0xb1b   :  { %v12759_v5 = vadd.f32 %v15878_v34, %v2751_v35  ;;  %v2754_v15 = vmul.f32 0.35355338, %v9463_v60 }
 0xb1c   :  { %v2722_v17 = vpop.f32.mrf.mxu0 }
 0xb1d   :  { %v2753_v22 = vmul.f32 0.35355338, %v2722_v17  ;;  %2795 = vmax.xlane.f32.xlu1 %v12756_v37  ;;  %2793 = vmax.xlane.f32.xlu0 %v12759_v5  ;;  %v12764_v6 = vadd.f32 %v15879_v18, %v2754_v15 }
 0xb1e   :  { %v9466_v57 = vpop.f32.mrf.mxu0 }
 0xb1f   :  { %v12767_v1 = vadd.f32 %v15880_v8, %v2753_v22  ;;  %v2756_v55 = vmul.f32 0.35355338, %v9466_v57 }
 0xb20   :  { %v2732_v39 = vpop.f32.mrf.mxu0 }
 0xb21   :  { %v2755_v58 = vmul.f32 0.35355338, %v2732_v39  ;;  %2799 = vmax.xlane.f32.xlu1 %v12764_v6  ;;  %2797 = vmax.xlane.f32.xlu0 %v12767_v1  ;;  %v12772_v14 = vadd.f32 %v15881_v46, %v2756_v55 }
 0xb23   :  { %v12775_v32 = vadd.f32 %v15882_v30, %v2755_v58 }
 0xb25   :  { %2803 = vmax.xlane.f32.xlu1 %v12772_v14  ;;  %2801 = vmax.xlane.f32.xlu0 %v12775_v32 }
 0xb36   :  { %2925 = vrot.lane.b32.xlu1 %v11357_v56, %s10944_s14 }
 0xb3a   :  { %2921 = vrot.lane.b32.xlu1 %v11363_v11, %s10944_s14 }
 0xb3b   :  { %2927 = vrot.lane.b32.xlu0 %v11337_v51, %s10944_s14 }
 0xb3e   :  { %2917 = vrot.lane.b32.xlu1 %v11303_v38, %s10944_s14 }
 0xb3f   :  { %2923 = vrot.lane.b32.xlu0 %v11345_v28, %s10944_s14 }
 0xb43   :  { %2919 = vrot.lane.b32.xlu0 %v11353_v36, %s10944_s14 }
 0xb90   :  { %v2776_v0 = vpop.xlane.xlu0 %2775 }
 0xb91   :  { %v2806_v12 = vsub.f32 %v12716_v7, %v2776_v0 }
 0xb92   :  { %v2774_v62 = vpop.xlane.xlu1 %2773 }
 0xb93   :  { %v2823_v56 = vmul.f32 1.442695, %v2806_v12  ;;  %v2805_v24 = vsub.f32 %v12719_v13, %v2774_v62 }
 0xb95   :  { %10459 = vpow2.f32 %v2823_v56  ;;  %v2821_v11 = vmul.f32 1.442695, %v2805_v24 }
 0xb96   :  { %v2778_v49 = vpop.xlane.xlu0 %2777  ;;  %v2780_v51 = vpop.xlane.xlu1 %2779 }
 0xb97   :  { %10461 = vpow2.f32 %v2821_v11  ;;  %v2807_v38 = vsub.f32 %v12727_v59, %v2778_v49  ;;  %v2808_v44 = vsub.f32 %v12724_v63, %v2780_v51 }
 0xb99   :  { %v2825_v28 = vmul.f32 1.442695, %v2807_v38  ;;  %v2827_v25 = vmul.f32 1.442695, %v2808_v44 }
 0xb9a   :  { %v2782_v41 = vpop.xlane.xlu0 %2781  ;;  %v2784_v36 = vpop.xlane.xlu1 %2783 }
 0xb9b   :  { %10463 = vpow2.f32 %v2825_v28  ;;  %v2809_v7 = vsub.f32 %v12735_v61, %v2782_v41  ;;  %v2810_v45 = vsub.f32 %v12732_v54, %v2784_v36 }
 0xb9c   :  { %10465 = vpow2.f32 %v2827_v25 }
 0xb9d   :  { %v2829_v13 = vmul.f32 1.442695, %v2809_v7  ;;  %v2831_v16 = vmul.f32 1.442695, %v2810_v45 }
 0xb9e   :  { %v2786_v4 = vpop.xlane.xlu0 %2785  ;;  %v2788_v35 = vpop.xlane.xlu1 %2787 }
 0xb9f   :  { %10467 = vpow2.f32 %v2829_v13  ;;  %v2811_v60 = vsub.f32 %v12743_v23, %v2786_v4  ;;  %v2812_v59 = vsub.f32 %v12740_v26, %v2788_v35 }
 0xba0   :  { %10469 = vpow2.f32 %v2831_v16 }
 0xba1   :  { %v2833_v63 = vmul.f32 1.442695, %v2811_v60  ;;  %v2835_v19 = vmul.f32 1.442695, %v2812_v59 }
 0xba2   :  { %v12799_v34 = vpop.eup %10459  ;;  %v2790_v15 = vpop.xlane.xlu0 %2789 }
 0xba3   :  { %v2792_v17 = vpop.xlane.xlu1 %2791  ;;  %10471 = vpow2.f32 %v2833_v63  ;;  %v2813_v54 = vsub.f32 %v12751_v42, %v2790_v15  ;;  %2855 = vadd.xlane.f32.xlu0 %v12799_v34  ;;  %v15883_v63 = vld [vmem:[#allocation22_spill] sm:$0xff]  ;;  %v15885_v15 = vld [vmem:[#allocation25_spill] sm:$0xff] }
 0xba4   :  { %v2814_v61 = vsub.f32 %v12748_v2, %v2792_v17  ;;  %v12804_v22 = vpop.eup %10461  ;;  %10473 = vpow2.f32 %v2835_v19  ;;  %v15884_v19 = vld [vmem:[#allocation24_spill] sm:$0xff]  ;;  %v15886_v17 = vld [vmem:[#allocation23_spill] sm:$0xff] }
 0xba5   :  { %v2837_v23 = vmul.f32 1.442695, %v2813_v54  ;;  %2853 = vadd.xlane.f32.xlu1 %v12804_v22  ;;  %v15887_v54 = vld [vmem:[#allocation43_spill] sm:$0xff] }
 0xba6   :  { %v2839_v57 = vmul.f32 1.442695, %v2814_v61  ;;  %v2794_v26 = vpop.xlane.xlu0 %2793 }
 0xba7   :  { %v2796_v18 = vpop.xlane.xlu1 %2795  ;;  %10475 = vpow2.f32 %v2837_v23  ;;  %v2815_v8 = vsub.f32 %v12759_v5, %v2794_v26 }
 0xba8   :  { %v2816_v55 = vsub.f32 %v12756_v37, %v2796_v18  ;;  %v12809_v39 = vpop.eup %10463  ;;  %10477 = vpow2.f32 %v2839_v57 }
 0xba9   :  { %v12811_v2 = vpop.eup %10465  ;;  %v2841_v42 = vmul.f32 1.442695, %v2815_v8  ;;  %2857 = vadd.xlane.f32.xlu1 %v12809_v39 }
 0xbaa   :  { %v2843_v58 = vmul.f32 1.442695, %v2816_v55  ;;  %2859 = vadd.xlane.f32.xlu0 %v12811_v2  ;;  %v2798_v46 = vpop.xlane.xlu0 %2797 }
 0xbab   :  { %v2800_v30 = vpop.xlane.xlu1 %2799  ;;  %10479 = vpow2.f32 %v2841_v42  ;;  %v2817_v0 = vsub.f32 %v12767_v1, %v2798_v46 }
 0xbac   :  { %v2818_v5 = vsub.f32 %v12764_v6, %v2800_v30  ;;  %v12817_v12 = vpop.eup %10467  ;;  %10481 = vpow2.f32 %v2843_v58 }
 0xbad   :  { %v12819_v37 = vpop.eup %10469  ;;  %v2845_v62 = vmul.f32 1.442695, %v2817_v0  ;;  %2861 = vadd.xlane.f32.xlu1 %v12817_v12 }
 0xbae   :  { %v2847_v56 = vmul.f32 1.442695, %v2818_v5  ;;  %2863 = vadd.xlane.f32.xlu0 %v12819_v37  ;;  %v2802_v24 = vpop.xlane.xlu0 %2801 }
 0xbaf   :  { %v2804_v11 = vpop.xlane.xlu1 %2803  ;;  %10483 = vpow2.f32 %v2845_v62  ;;  %v2819_v49 = vsub.f32 %v12775_v32, %v2802_v24 }
 0xbb0   :  { %v2820_v1 = vsub.f32 %v12772_v14, %v2804_v11  ;;  %v12825_v51 = vpop.eup %10471  ;;  %10485 = vpow2.f32 %v2847_v56 }
 0xbb1   :  { %v12827_v6 = vpop.eup %10473  ;;  %v2849_v38 = vmul.f32 1.442695, %v2819_v49  ;;  %2865 = vadd.xlane.f32.xlu1 %v12825_v51 }
 0xbb2   :  { %v2851_v44 = vmul.f32 1.442695, %v2820_v1  ;;  %2867 = vadd.xlane.f32.xlu0 %v12827_v6  ;;  %v2928_v28 = vpop.permute.xlu0 %2927 }
 0xbb3   :  { %v2926_v25 = vpop.permute.xlu1 %2925  ;;  %10487 = vpow2.f32 %v2849_v38  ;;  %9487 = vmatprep.subr.mxu1 %v2928_v28 }
 0xbb4   :  { %v12831_v41 = vpop.eup %10475  ;;  %10489 = vpow2.f32 %v2851_v44  ;;  %9488 = vmatpush3.msra.mxu1 %v2928_v28 }
 0xbb5   :  { %v12833_v14 = vpop.eup %10477  ;;  %2869 = vadd.xlane.f32.xlu1 %v12831_v41  ;;  %9489 = vmatprep.subr.mxu1 %v2926_v25 }
 0xbb6   :  { %2871 = vadd.xlane.f32.xlu0 %v12833_v14  ;;  %v2924_v32 = vpop.permute.xlu0 %2923  ;;  %9490 = vmatpush3.msra.mxu1 %v2926_v25 }
 0xbb7   :  { %v2922_v36 = vpop.permute.xlu1 %2921  ;;  %9491 = vmatprep.subr.mxu1 %v2924_v32 }
 0xbb8   :  { %v12837_v7 = vpop.eup %10479  ;;  %9492 = vmatpush3.msra.mxu1 %v2924_v32 }
 0xbb9   :  { %v12839_v45 = vpop.eup %10481  ;;  %2873 = vadd.xlane.f32.xlu1 %v12837_v7  ;;  %9493 = vmatprep.subr.mxu1 %v2922_v36 }
 0xbba   :  { %2875 = vadd.xlane.f32.xlu0 %v12839_v45  ;;  %v2920_v13 = vpop.permute.xlu0 %2919  ;;  %9494 = vmatpush3.msra.mxu1 %v2922_v36 }
 0xbbb   :  { %9495 = vmatprep.subr.mxu1 %v2920_v13  ;;  %v2918_v4 = vpop.permute.xlu1 %2917 }
 0xbbc   :  { %v12843_v16 = vpop.eup %10483  ;;  %9496 = vmatpush3.msra.mxu1 %v2920_v13 }
 0xbbd   :  { %v12845_v35 = vpop.eup %10485  ;;  %2877 = vadd.xlane.f32.xlu1 %v12843_v16  ;;  %9497 = vmatprep.subr.mxu1 %v2918_v4 }
 0xbbe   :  { %2879 = vadd.xlane.f32.xlu0 %v12845_v35  ;;  %9498 = vmatpush3.msra.mxu1 %v2918_v4 }
 0xbc0   :  { %v12849_v60 = vpop.eup %10487 }
 0xbc1   :  { %v12851_v59 = vpop.eup %10489  ;;  %2881 = vadd.xlane.f32.xlu1 %v12849_v60 }
 0xbc2   :  { %2883 = vadd.xlane.f32.xlu0 %v12851_v59 }
 0xbd2   :  { %3128 = vrot.lane.b32.xlu1 %v15883_v63, %s10945_s15 }
 0xbd6   :  { %3190 = vrot.lane.b32.xlu1 %v12685_v31, %s10946_s16  ;;  %v15888_v31 = vld [vmem:[#allocation42_spill] sm:$0xff] }
 0xbd8   :  { %3126 = vrot.lane.b32.xlu0 %v15884_v19, %s10945_s15 }
 0xbda   :  { %3130 = vrot.lane.b32.xlu1 %v15885_v15, %s10945_s15 }
 0xbdc   :  { %3192 = vrot.lane.b32.xlu0 %v12683_v53, %s10946_s16  ;;  %v15889_v53 = vld [vmem:[#allocation45_spill] sm:$0xff] }
 0xbde   :  { %3194 = vrot.lane.b32.xlu1 %v12689_v48, %s10946_s16  ;;  %v15890_v48 = vld [vmem:[#allocation44_spill] sm:$0xff] }
 0xbe0   :  { %3132 = vrot.lane.b32.xlu0 %v15886_v17, %s10945_s15 }
 0xbe2   :  { %3134 = vrot.lane.b32.xlu1 %v15887_v54, %s10945_s15 }
 0xbe4   :  { %3196 = vrot.lane.b32.xlu0 %v12687_v40, %s10946_s16  ;;  %v15891_v40 = vld [vmem:[#allocation47_spill] sm:$0xff] }
 0xbe6   :  { %3198 = vrot.lane.b32.xlu1 %v12693_v52, %s10946_s16  ;;  %v15892_v52 = vld [vmem:[#allocation46_spill] sm:$0xff] }
 0xbe8   :  { %3136 = vrot.lane.b32.xlu0 %v15888_v31, %s10945_s15 }
 0xbea   :  { %3138 = vrot.lane.b32.xlu1 %v15889_v53, %s10945_s15 }
 0xbec   :  { %3200 = vrot.lane.b32.xlu0 %v12691_v50, %s10946_s16  ;;  %v15893_v50 = vld [vmem:[#allocation49_spill] sm:$0xff] }
 0xbee   :  { %3202 = vrot.lane.b32.xlu1 %v12697_v20, %s10946_s16  ;;  %v15894_v20 = vld [vmem:[#allocation48_spill] sm:$0xff] }
 0xbf0   :  { %3140 = vrot.lane.b32.xlu0 %v15890_v48, %s10945_s15 }
 0xbf2   :  { %3142 = vrot.lane.b32.xlu1 %v15891_v40, %s10945_s15 }
 0xbf4   :  { %3204 = vrot.lane.b32.xlu0 %v12695_v29, %s10946_s16  ;;  %v15895_v29 = vld [vmem:[#allocation51_spill] sm:$0xff] }
 0xbf6   :  { %3206 = vrot.lane.b32.xlu1 %v12701_v9, %s10946_s16  ;;  %v15896_v9 = vld [vmem:[#allocation50_spill] sm:$0xff] }
 0xbf8   :  { %3144 = vrot.lane.b32.xlu0 %v15892_v52, %s10945_s15 }
 0xbfa   :  { %3146 = vrot.lane.b32.xlu1 %v15893_v50, %s10945_s15 }
 0xbfc   :  { %3208 = vrot.lane.b32.xlu0 %v12699_v27, %s10946_s16  ;;  %v15897_v27 = vld [vmem:[#allocation53_spill] sm:$0xff] }
 0xbfe   :  { %3210 = vrot.lane.b32.xlu1 %v12705_v43, %s10946_s16  ;;  %v15898_v43 = vld [vmem:[#allocation52_spill] sm:$0xff] }
 0xc00   :  { %3148 = vrot.lane.b32.xlu0 %v15894_v20, %s10945_s15 }
 0xc02   :  { %3150 = vrot.lane.b32.xlu1 %v15895_v29, %s10945_s15 }
 0xc04   :  { %3212 = vrot.lane.b32.xlu0 %v12703_v10, %s10946_s16 }
 0xc06   :  { %3214 = vrot.lane.b32.xlu1 %v12709_v47, %s10946_s16 }
 0xc08   :  { %3152 = vrot.lane.b32.xlu0 %v15896_v9, %s10945_s15 }
 0xc0a   :  { %3154 = vrot.lane.b32.xlu1 %v15897_v27, %s10945_s15 }
 0xc0c   :  { %3216 = vrot.lane.b32.xlu0 %v12707_v3, %s10946_s16 }
 0xc0e   :  { %3218 = vrot.lane.b32.xlu1 %v12713_v33, %s10946_s16 }
 0xc10   :  { %3156 = vrot.lane.b32.xlu0 %v15898_v43, %s10945_s15 }
 0xc14   :  { %3220 = vrot.lane.b32.xlu0 %v12711_v21, %s10946_s16 }
 0xc2c   :  { %v2856_v10 = vpop.xlane.xlu0 %2855 }
 0xc2d   :  { %10491 = vrcp.f32 %v2856_v10 }
 0xc2e   :  { %v2854_v47 = vpop.xlane.xlu1 %2853 }
 0xc2f   :  { %10493 = vrcp.f32 %v2854_v47 }
 0xc32   :  { %v2858_v61 = vpop.xlane.xlu1 %2857 }
 0xc33   :  { %v2860_v23 = vpop.xlane.xlu0 %2859  ;;  %10495 = vrcp.f32 %v2858_v61 }
 0xc34   :  { %10497 = vrcp.f32 %v2860_v23 }
 0xc36   :  { %v2862_v57 = vpop.xlane.xlu1 %2861 }
 0xc37   :  { %v2864_v26 = vpop.xlane.xlu0 %2863  ;;  %10499 = vrcp.f32 %v2862_v57 }
 0xc38   :  { %10501 = vrcp.f32 %v2864_v26 }
 0xc3a   :  { %v2866_v3 = vpop.xlane.xlu1 %2865  ;;  %v10492_v33 = vpop.eup %10491 }
 0xc3b   :  { %v2868_v18 = vpop.xlane.xlu0 %2867  ;;  %10503 = vrcp.f32 %v2866_v3  ;;  %v2888_v42 = vmul.f32 %v10492_v33, %v12799_v34 }
 0xc3c   :  { %v10494_v8 = vpop.eup %10493  ;;  %10505 = vrcp.f32 %v2868_v18 }
 0xc3d   :  { %v2886_v21 = vmul.f32 %v10494_v8, %v12804_v22 }
 0xc3e   :  { %v2870_v55 = vpop.xlane.xlu1 %2869 }
 0xc3f   :  { %v2872_v58 = vpop.xlane.xlu0 %2871  ;;  %10507 = vrcp.f32 %v2870_v55  ;;  %9499 = vmatprep.mubr.f32.mxu1 %v2886_v21 }
 0xc40   :  { %v10496_v46 = vpop.eup %10495  ;;  %10509 = vrcp.f32 %v2872_v58  ;;  %9500 = vmatmul.mubr.f32.vlgmr.msra.gmra.mxu1 %v2888_v42 }
 0xc41   :  { %v10498_v30 = vpop.eup %10497  ;;  %v2890_v0 = vmul.f32 %v10496_v46, %v12809_v39 }
 0xc42   :  { %v2874_v5 = vpop.xlane.xlu1 %2873  ;;  %v2892_v62 = vmul.f32 %v10498_v30, %v12811_v2 }
 0xc43   :  { %v2876_v56 = vpop.xlane.xlu0 %2875  ;;  %10511 = vrcp.f32 %v2874_v5  ;;  %9502 = vmatprep.mubr.f32.mxu1 %v2890_v0 }
 0xc44   :  { %v10500_v24 = vpop.eup %10499  ;;  %10513 = vrcp.f32 %v2876_v56  ;;  %9503 = vmatmul.mubr.f32.gmra.mxu1 %v2892_v62 }
 0xc45   :  { %v10502_v22 = vpop.eup %10501  ;;  %v2894_v34 = vmul.f32 %v10500_v24, %v12817_v12 }
 0xc46   :  { %v2878_v11 = vpop.xlane.xlu1 %2877  ;;  %v2896_v49 = vmul.f32 %v10502_v22, %v12819_v37 }
 0xc47   :  { %v2880_v1 = vpop.xlane.xlu0 %2879  ;;  %10515 = vrcp.f32 %v2878_v11  ;;  %9505 = vmatprep.mubr.f32.mxu1 %v2894_v34 }
 0xc48   :  { %v10504_v38 = vpop.eup %10503  ;;  %10517 = vrcp.f32 %v2880_v1  ;;  %9506 = vmatmul.mubr.f32.gmra.mxu1 %v2896_v49 }
 0xc49   :  { %v10506_v39 = vpop.eup %10505  ;;  %v2898_v2 = vmul.f32 %v10504_v38, %v12825_v51 }
 0xc4a   :  { %v2882_v44 = vpop.xlane.xlu1 %2881  ;;  %v2900_v28 = vmul.f32 %v10506_v39, %v12827_v6 }
 0xc4b   :  { %v2884_v25 = vpop.xlane.xlu0 %2883  ;;  %10519 = vrcp.f32 %v2882_v44  ;;  %9508 = vmatprep.mubr.f32.mxu1 %v2898_v2 }
 0xc4c   :  { %v10508_v32 = vpop.eup %10507  ;;  %10521 = vrcp.f32 %v2884_v25  ;;  %9509 = vmatmul.mubr.f32.gmra.mxu1 %v2900_v28 }
 0xc4d   :  { %v10510_v12 = vpop.eup %10509  ;;  %v2902_v37 = vmul.f32 %v10508_v32, %v12831_v41 }
 0xc4e   :  { %v2904_v36 = vmul.f32 %v10510_v12, %v12833_v14  ;;  %v3129_v47 = vpop.permute.xlu1 %3128 }
 0xc4f   :  { %9511 = vmatprep.mubr.f32.mxu1 %v2902_v37  ;;  %v3127_v43 = vpop.permute.xlu0 %3126 }
 0xc50   :  { %v10512_v13 = vpop.eup %10511  ;;  %9512 = vmatmul.mubr.f32.gmra.mxu1 %v2904_v36 }
 0xc51   :  { %v10514_v4 = vpop.eup %10513  ;;  %v2906_v51 = vmul.f32 %v10512_v13, %v12837_v7  ;;  %v103_v7 = vld [vmem:[%s15734_s2 + $0x98] sm:$0xff] }
 0xc52   :  { %v2908_v63 = vmul.f32 %v10514_v4, %v12839_v45  ;;  %v97_v45 = vld [vmem:[%s15734_s2 + $0x68] sm:$0xff]  ;;  %9523 = vmatprep.subr.mxu1 %v103_v7  ;;  %v3191_v3 = vpop.permute.xlu1 %3190  ;;  %v15899_v4 = vld [vmem:[#allocation27_spill] sm:$0xff] }
 0xc53   :  { %9514 = vmatprep.mubr.f32.mxu1 %v2906_v51  ;;  %9524 = vmatpush3.msra.mxu1 %v103_v7  ;;  %v3193_v57 = vpop.permute.xlu0 %3192  ;;  %v3302_v51 = vsel %vm605_vm1, %v15899_v4, %v3127_v43 }
 0xc54   :  { %v10516_v6 = vpop.eup %10515  ;;  %9515 = vmatmul.mubr.f32.gmra.mxu1 %v2908_v63  ;;  %9525 = vmatprep.subr.mxu1 %v97_v45  ;;  %v15900_v63 = vld [vmem:[#allocation26_spill] sm:$0xff] }
 0xc55   :  { %v10518_v19 = vpop.eup %10517  ;;  %v2910_v15 = vmul.f32 %v10516_v6, %v12843_v16  ;;  %v91_v16 = vld [vmem:[%s15734_s2 + $0x38] sm:$0xff]  ;;  %9526 = vmatpush3.msra.mxu1 %v97_v45  ;;  %v3303_v6 = vsel %vm605_vm1, %v15900_v63, %v3129_v47  ;;  %v15909_v63 = vld [vmem:[#allocation37_spill] sm:$0xff] }
 0xc56   :  { %v2912_v17 = vmul.f32 %v10518_v19, %v12845_v35  ;;  %v85_v35 = vld [vmem:[%s15734_s2 + $0x8] sm:$0xff]  ;;  %9527 = vmatprep.subr.mxu1 %v91_v16  ;;  %v3131_v8 = vpop.permute.xlu1 %3130  ;;  %v3319_v19 = vsel %vm3318_vm2, %v3302_v51, %v3191_v3  ;;  %v15902_v45 = vld [vmem:[#allocation28_spill] sm:$0xff] }
 0xc57   :  { %9517 = vmatprep.mubr.f32.mxu1 %v2910_v15  ;;  %9528 = vmatpush3.msra.mxu1 %v91_v16  ;;  %v3133_v18 = vpop.permute.xlu0 %3132 }
 0xc58   :  { %v10520_v41 = vpop.eup %10519  ;;  %9518 = vmatmul.mubr.f32.gmra.mxu1 %v2912_v17  ;;  %9529 = vmatprep.subr.mxu1 %v85_v35  ;;  %v3320_v17 = vsel %vm3318_vm2, %v3303_v6, %v3193_v57  ;;  %v3305_v16 = vsel %vm605_vm1, %v15902_v45, %v3133_v18 }
 0xc59   :  { %v10522_v14 = vpop.eup %10521  ;;  %v2914_v54 = vmul.f32 %v10520_v41, %v12849_v60  ;;  %9530 = vmatpush3.msra.mxu1 %v85_v35 }
 0xc5a   :  { %v2916_v31 = vmul.f32 %v10522_v14, %v12851_v59  ;;  %v3195_v55 = vpop.permute.xlu1 %3194 }
 0xc5b   :  { %9520 = vmatprep.mubr.f32.mxu1 %v2914_v54  ;;  %v3197_v21 = vpop.permute.xlu0 %3196 }
 0xc5c   :  { %9521 = vmatmul.mubr.f32.gmra.mxu1 %v2916_v31  ;;  %v15901_v31 = vld [vmem:[#allocation29_spill] sm:$0xff] }
 0xc5d   :  { %v3304_v7 = vsel %vm605_vm1, %v15901_v31, %v3131_v8 }
 0xc5e   :  { %v3135_v58 = vpop.permute.xlu1 %3134  ;;  %v3321_v35 = vsel %vm3318_vm2, %v3304_v7, %v3195_v55 }
 0xc5f   :  { %v3137_v42 = vpop.permute.xlu0 %3136 }
 0xc62   :  { %v3199_v30 = vpop.permute.xlu1 %3198 }
 0xc63   :  { %v3201_v46 = vpop.permute.xlu0 %3200 }
 0xc66   :  { %v3139_v5 = vpop.permute.xlu1 %3138 }
 0xc67   :  { %v3141_v0 = vpop.permute.xlu0 %3140 }
 0xc6a   :  { %v3203_v56 = vpop.permute.xlu1 %3202 }
 0xc6b   :  { %v3205_v62 = vpop.permute.xlu0 %3204 }
 0xc6e   :  { %v3143_v22 = vpop.permute.xlu1 %3142 }
 0xc6f   :  { %v3145_v24 = vpop.permute.xlu0 %3144 }
 0xc72   :  { %v3207_v11 = vpop.permute.xlu1 %3206 }
 0xc73   :  { %v3209_v34 = vpop.permute.xlu0 %3208 }
 0xc76   :  { %v12965_v1 = vpop.permute.xlu1 %3146 }
 0xc77   :  { %v12963_v49 = vpop.permute.xlu0 %3148 }
 0xc7a   :  { %v12969_v39 = vpop.permute.xlu1 %3210 }
 0xc7b   :  { %v12967_v38 = vpop.permute.xlu0 %3212 }
 0xc7e   :  { %v12973_v44 = vpop.permute.xlu1 %3150 }
 0xc7f   :  { %v12971_v2 = vpop.permute.xlu0 %3152 }
 0xc82   :  { %v12977_v25 = vpop.permute.xlu1 %3214 }
 0xc83   :  { %v12975_v28 = vpop.permute.xlu0 %3216 }
 0xc86   :  { %v12981_v12 = vpop.permute.xlu1 %3154 }
 0xc87   :  { %v12979_v32 = vpop.permute.xlu0 %3156 }
 0xc8a   :  { %v12985_v36 = vpop.permute.xlu1 %3218 }
 0xc8b   :  { %v12983_v37 = vpop.permute.xlu0 %3220 }
 0xd00   :  { %v9501_v60 = vpop.f32.mrf.mxu1 }
 0xd01   :  { %3256 = vrot.lane.b32.xlu0 %v9501_v60, %s10947_s30 }
 0xd02   :  { %v3031_v59 = vpop.f32.mrf.mxu1 }
 0xd03   :  { %3254 = vrot.lane.b32.xlu1 %v3031_v59, %s10947_s30  ;;  %v3322_v59 = vsel %vm3318_vm2, %v3305_v16, %v3197_v21 }
 0xd04   :  { %v9504_v53 = vpop.f32.mrf.mxu1 }
 0xd05   :  { %3260 = vrot.lane.b32.xlu0 %v9504_v53, %s10947_s30 }
 0xd06   :  { %v3041_v48 = vpop.f32.mrf.mxu1 }
 0xd07   :  { %3258 = vrot.lane.b32.xlu1 %v3041_v48, %s10947_s30 }
 0xd08   :  { %v9507_v40 = vpop.f32.mrf.mxu1 }
 0xd09   :  { %3264 = vrot.lane.b32.xlu0 %v9507_v40, %s10947_s30 }
 0xd0a   :  { %v3051_v52 = vpop.f32.mrf.mxu1 }
 0xd0b   :  { %3262 = vrot.lane.b32.xlu1 %v3051_v52, %s10947_s30  ;;  %v15903_v52 = vld [vmem:[#allocation31_spill] sm:$0xff] }
 0xd0c   :  { %v9510_v50 = vpop.f32.mrf.mxu1 }
 0xd0d   :  { %3268 = vrot.lane.b32.xlu0 %v9510_v50, %s10947_s30  ;;  %v3306_v50 = vsel %vm605_vm1, %v15903_v52, %v3135_v58  ;;  %v15907_v58 = vld [vmem:[#allocation35_spill] sm:$0xff] }
 0xd0e   :  { %v3061_v20 = vpop.f32.mrf.mxu1 }
 0xd0f   :  { %3266 = vrot.lane.b32.xlu1 %v3061_v20, %s10947_s30  ;;  %v15904_v20 = vld [vmem:[#allocation30_spill] sm:$0xff] }
 0xd10   :  { %v9513_v29 = vpop.f32.mrf.mxu1 }
 0xd11   :  { %3272 = vrot.lane.b32.xlu0 %v9513_v29, %s10947_s30  ;;  %v3307_v29 = vsel %vm605_vm1, %v15904_v20, %v3137_v42  ;;  %v15916_v20 = vld [vmem:[#allocation7_spill] sm:$0xff] }
 0xd12   :  { %v3071_v9 = vpop.f32.mrf.mxu1  ;;  %v3324_v43 = vsel %vm3318_vm2, %v3307_v29, %v3201_v46  ;;  %v3310_v46 = vsel %vm605_vm1, %v15907_v58, %v3143_v22  ;;  %v3312_v22 = vsel %vm605_vm1, %v15909_v63, %v12965_v1  ;;  %v15911_v1 = vld [vmem:[#allocation39_spill] sm:$0xff]  ;;  %v15922_v63 = vld [vmem:[#allocation13_spill] sm:$0xff] }
 0xd13   :  { %3270 = vrot.lane.b32.xlu1 %v3071_v9, %s10947_s30  ;;  %v3323_v9 = vsel %vm3318_vm2, %v3306_v50, %v3199_v30  ;;  %v15908_v30 = vld [vmem:[#allocation34_spill] sm:$0xff]  ;;  %v15920_v58 = vld [vmem:[#allocation11_spill] sm:$0xff] }
 0xd14   :  { %v9516_v27 = vpop.f32.mrf.mxu1 }
 0xd15   :  { %3276 = vrot.lane.b32.xlu0 %v9516_v27, %s10947_s30 }
 0xd16   :  { %v3081_v10 = vpop.f32.mrf.mxu1 }
 0xd17   :  { %3274 = vrot.lane.b32.xlu1 %v3081_v10, %s10947_s30 }
 0xd18   :  { %v9519_v61 = vpop.f32.mrf.mxu1 }
 0xd19   :  { %3280 = vrot.lane.b32.xlu0 %v9519_v61, %s10947_s30 }
 0xd1a   :  { %v3091_v23 = vpop.f32.mrf.mxu1 }
 0xd1b   :  { %3278 = vrot.lane.b32.xlu1 %v3091_v23, %s10947_s30  ;;  %v15905_v23 = vld [vmem:[#allocation33_spill] sm:$0xff] }
 0xd1c   :  { %v9522_v26 = vpop.f32.mrf.mxu1  ;;  %v3308_v57 = vsel %vm605_vm1, %v15905_v23, %v3139_v5  ;;  %v3327_v5 = vsel %vm3318_vm2, %v3310_v46, %v3207_v11 }
 0xd1d   :  { %3284 = vrot.lane.b32.xlu0 %v9522_v26, %s10947_s30  ;;  %v15906_v26 = vld [vmem:[#allocation32_spill] sm:$0xff] }
 0xd1e   :  { %v3101_v33 = vpop.f32.mrf.mxu1  ;;  %v3309_v3 = vsel %vm605_vm1, %v15906_v26, %v3141_v0  ;;  %v3311_v0 = vsel %vm605_vm1, %v15908_v30, %v3145_v24  ;;  %v15910_v24 = vld [vmem:[#allocation36_spill] sm:$0xff] }
 0xd1f   :  { %3282 = vrot.lane.b32.xlu1 %v3101_v33, %s10947_s30  ;;  %v3325_v33 = vsel %vm3318_vm2, %v3308_v57, %v3203_v56  ;;  %v3326_v8 = vsel %vm3318_vm2, %v3309_v3, %v3205_v62  ;;  %v3328_v62 = vsel %vm3318_vm2, %v3311_v0, %v3209_v34  ;;  %v3313_v11 = vsel %vm605_vm1, %v15910_v24, %v12963_v49  ;;  %v15912_v49 = vld [vmem:[#allocation38_spill] sm:$0xff]  ;;  %v15918_v57 = vld [vmem:[#allocation9_spill] sm:$0xff] }
 0xd20   :  { %v3329_v34 = vsel %vm3318_vm2, %v3312_v22, %v12969_v39  ;;  %v3315_v39 = vsel %vm605_vm1, %v15912_v49, %v12971_v2  ;;  %v15914_v2 = vld [vmem:[#allocation40_spill] sm:$0xff] }
 0xd21   :  { %v3332_v31 = vsel %vm3318_vm2, %v3315_v39, %v12975_v28 }
 0xd73   :  { %v3257_v13 = vpop.permute.xlu0 %3256 }
 0xd74   :  { %v3337_v14 = vsel %vm3335_vm3, %v3320_v17, %v3257_v13 }
 0xd75   :  { %v3255_v15 = vpop.permute.xlu1 %3254 }
 0xd76   :  { %v3336_v41 = vsel %vm3335_vm3, %v3319_v19, %v3255_v15  ;;  %v3330_v19 = vsel %vm3318_vm2, %v3313_v11, %v12967_v38 }
 0xd77   :  { %v3261_v54 = vpop.permute.xlu0 %3260  ;;  %9531 = vmatprep.mubr.msk.f32.mxu1 %vm110_vm0, %v3336_v41 }
 0xd78   :  { %9532 = vmatmul.mubr.msk.f32.vlgmr.msra.gmra.mxu1 %vm110_vm0, %v3337_v14  ;;  %v3339_v48 = vsel %vm3335_vm3, %v3322_v59, %v3261_v54  ;;  %v3314_v14 = vsel %vm605_vm1, %v15911_v1, %v12973_v44  ;;  %v15913_v44 = vld [vmem:[#allocation41_spill] sm:$0xff]  ;;  %v15924_v1 = vld [vmem:[#allocation15_spill] sm:$0xff] }
 0xd79   :  { %v3259_v60 = vpop.permute.xlu1 %3258  ;;  %v3331_v38 = vsel %vm3318_vm2, %v3314_v14, %v12977_v25  ;;  %v3316_v16 = vsel %vm605_vm1, %v15913_v44, %v12981_v12  ;;  %v3317_v25 = vsel %vm605_vm1, %v15914_v2, %v12979_v32  ;;  %v15915_v12 = vld [vmem:[#allocation5_spill] sm:$0xff] }
 0xd7a   :  { %v3338_v53 = vsel %vm3335_vm3, %v3321_v35, %v3259_v60  ;;  %v3333_v28 = vsel %vm3318_vm2, %v3316_v16, %v12985_v36  ;;  %v3334_v59 = vsel %vm3318_vm2, %v3317_v25, %v12983_v37  ;;  %v13083_v32 = vld [vmem:[%s15735_s3] sm:$0xff] }
 0xd7b   :  { %v3265_v40 = vpop.permute.xlu0 %3264  ;;  %9534 = vmatprep.mubr.msk.f32.mxu1 %vm110_vm0, %v3338_v53  ;;  %v15926_v16 = vld [vmem:[#allocation17_spill] sm:$0xff] }
 0xd7c   :  { %9535 = vmatmul.mubr.msk.f32.gmra.mxu1 %vm110_vm0, %v3339_v48  ;;  %v3341_v47 = vsel %vm3335_vm3, %v3324_v43, %v3265_v40  ;;  %v3354_v40 = vsub.s32 6, %v15915_v12 }
 0xd7d   :  { %v3263_v27 = vpop.permute.xlu1 %3262 }
 0xd7e   :  { %v3340_v10 = vsel %vm3335_vm3, %v3323_v9, %v3263_v27  ;;  %v13086_v36 = vrot.slane %v13083_v32, %v3354_v40 }
 0xd7f   :  { %v3269_v61 = vpop.permute.xlu0 %3268  ;;  %9537 = vmatprep.mubr.msk.f32.mxu1 %vm110_vm0, %v3340_v10 }
 0xd80   :  { %9538 = vmatmul.mubr.msk.f32.gmra.mxu1 %vm110_vm0, %v3341_v47  ;;  %v3343_v55 = vsel %vm3335_vm3, %v3326_v8, %v3269_v61  ;;  %v15917_v47 = vld [vmem:[#allocation6_spill] sm:$0xff]  ;;  %v15919_v8 = vld [vmem:[#allocation8_spill] sm:$0xff] }
 0xd81   :  { %v3267_v18 = vpop.permute.xlu1 %3266 }
 0xd82   :  { %v3342_v21 = vsel %vm3335_vm3, %v3325_v33, %v3267_v18 }
 0xd83   :  { %v3273_v42 = vpop.permute.xlu0 %3272  ;;  %9540 = vmatprep.mubr.msk.f32.mxu1 %vm110_vm0, %v3342_v21 }
 0xd84   :  { %9541 = vmatmul.mubr.msk.f32.gmra.mxu1 %vm110_vm0, %v3343_v55  ;;  %v3345_v4 = vsel %vm3335_vm3, %v3328_v62, %v3273_v42  ;;  %v15921_v62 = vld [vmem:[#allocation10_spill] sm:$0xff] }
 0xd85   :  { %v3271_v56 = vpop.permute.xlu1 %3270 }
 0xd86   :  { %v3344_v13 = vsel %vm3335_vm3, %v3327_v5, %v3271_v56 }
 0xd87   :  { %v3277_v51 = vpop.permute.xlu0 %3276  ;;  %9543 = vmatprep.mubr.msk.f32.mxu1 %vm110_vm0, %v3344_v13 }
 0xd88   :  { %9544 = vmatmul.mubr.msk.f32.gmra.mxu1 %vm110_vm0, %v3345_v4  ;;  %v3347_v17 = vsel %vm3335_vm3, %v3330_v19, %v3277_v51  ;;  %v15923_v19 = vld [vmem:[#allocation12_spill] sm:$0xff] }
 0xd89   :  { %v3275_v6 = vpop.permute.xlu1 %3274 }
 0xd8a   :  { %v3346_v15 = vsel %vm3335_vm3, %v3329_v34, %v3275_v6 }
 0xd8b   :  { %v3281_v41 = vpop.permute.xlu0 %3280  ;;  %9546 = vmatprep.mubr.msk.f32.mxu1 %vm110_vm0, %v3346_v15 }
 0xd8c   :  { %9547 = vmatmul.mubr.msk.f32.gmra.mxu1 %vm110_vm0, %v3347_v17  ;;  %v3349_v45 = vsel %vm3335_vm3, %v3332_v31, %v3281_v41  ;;  %v15925_v31 = vld [vmem:[#allocation14_spill] sm:$0xff] }
 0xd8d   :  { %v3279_v54 = vpop.permute.xlu1 %3278 }
 0xd8e   :  { %v3348_v7 = vsel %vm3335_vm3, %v3331_v38, %v3279_v54 }
 0xd8f   :  { %9549 = vmatprep.mubr.msk.f32.mxu1 %vm110_vm0, %v3348_v7  ;;  %v3285_v35 = vpop.permute.xlu0 %3284 }
 0xd90   :  { %9550 = vmatmul.mubr.msk.f32.gmra.mxu1 %vm110_vm0, %v3349_v45  ;;  %v3351_v48 = vsel %vm3335_vm3, %v3334_v59, %v3285_v35  ;;  %v15927_v59 = vld [vmem:[#allocation16_spill] sm:$0xff] }
 0xd91   :  { %v3283_v60 = vpop.permute.xlu1 %3282 }
 0xd92   :  { %v3350_v53 = vsel %vm3335_vm3, %v3333_v28, %v3283_v60 }
 0xd93   :  { %9552 = vmatprep.mubr.msk.f32.mxu1 %vm110_vm0, %v3350_v53 }
 0xd94   :  { %9553 = vmatmul.mubr.msk.f32.gmra.mxu1 %vm110_vm0, %v3351_v48 }
 0xe38   :  { %v9533_v52 = vpop.f32.mrf.mxu1 }
 0xe39   :  { %v3476_v37 = vadd.f32 %v9533_v52, %v13086_v36  ;;  %v15928_v52 = vld [vmem:[#allocation19_spill] sm:$0xff] }
 0xe3a   :  { %v3470_v50 = vpop.f32.mrf.mxu1 }
 0xe3b   :  { %v13090_v29 = vadd.f32 %v3476_v37, %v15916_v20  ;;  %v3471_v9 = vadd.f32 %v3470_v50, %v13086_v36 }
 0xe3c   :  { %v9536_v27 = vpop.f32.mrf.mxu1 }
 0xe3d   :  { %v3486_v43 = vadd.f32 %v9536_v27, %v13086_v36  ;;  %v3568_v10 = vsel %vm110_vm0, %v13090_v29, 0.0  ;;  %v13097_v61 = vadd.f32 %v3471_v9, %v15917_v47 }
 0xe3e   :  { %3569 = vadd.xlane.f32.xlu0 %v3568_v10  ;;  %v3480_v23 = vpop.f32.mrf.mxu1 }
 0xe3f   :  { %v13100_v26 = vadd.f32 %v3486_v43, %v15918_v57  ;;  %v3481_v3 = vadd.f32 %v3480_v23, %v13086_v36  ;;  %v3565_v33 = vsel %vm110_vm0, %v13097_v61, 0.0  ;;  %v15929_v43 = vld [vmem:[#allocation18_spill] sm:$0xff]  ;;  %v15930_v57 = vld [vmem:[#allocation21_spill] sm:$0xff] }
 0xe40   :  { %3566 = vadd.xlane.f32.xlu1 %v3565_v33  ;;  %v9539_v18 = vpop.f32.mrf.mxu1 }
 0xe41   :  { %v13106_v21 = vadd.f32 %v3481_v3, %v15919_v8  ;;  %v3496_v55 = vadd.f32 %v9539_v18, %v13086_v36  ;;  %v3574_v0 = vsel %vm110_vm0, %v13100_v26, 0.0 }
 0xe42   :  { %v3490_v42 = vpop.f32.mrf.mxu1 }
 0xe43   :  { %v13110_v46 = vadd.f32 %v3496_v55, %v15920_v58  ;;  %v3491_v30 = vadd.f32 %v3490_v42, %v13086_v36  ;;  %v3571_v5 = vsel %vm110_vm0, %v13106_v21, 0.0  ;;  %v15931_v55 = vld [vmem:[#allocation20_spill] sm:$0xff] }
 0xe44   :  { %3575 = vadd.xlane.f32.xlu1 %v3574_v0  ;;  %3572 = vadd.xlane.f32.xlu0 %v3571_v5  ;;  %v9542_v56 = vpop.f32.mrf.mxu1 }
 0xe45   :  { %v13118_v13 = vadd.f32 %v3491_v30, %v15921_v62  ;;  %v3506_v4 = vadd.f32 %v9542_v56, %v13086_v36  ;;  %v3580_v11 = vsel %vm110_vm0, %v13110_v46, 0.0 }
 0xe46   :  { %v3500_v51 = vpop.f32.mrf.mxu1 }
 0xe47   :  { %v13122_v22 = vadd.f32 %v3506_v4, %v15922_v63  ;;  %v3501_v24 = vadd.f32 %v3500_v51, %v13086_v36  ;;  %v3577_v34 = vsel %vm110_vm0, %v13118_v13, 0.0 }
 0xe48   :  { %3581 = vadd.xlane.f32.xlu1 %v3580_v11  ;;  %3578 = vadd.xlane.f32.xlu0 %v3577_v34  ;;  %v9545_v6 = vpop.f32.mrf.mxu1 }
 0xe49   :  { %v13130_v15 = vadd.f32 %v3501_v24, %v15923_v19  ;;  %v3516_v17 = vadd.f32 %v9545_v6, %v13086_v36  ;;  %v3586_v39 = vsel %vm110_vm0, %v13122_v22, 0.0 }
 0xe4a   :  { %v3510_v41 = vpop.f32.mrf.mxu1 }
 0xe4b   :  { %v13134_v14 = vadd.f32 %v3516_v17, %v15924_v1  ;;  %v3511_v49 = vadd.f32 %v3510_v41, %v13086_v36  ;;  %v3583_v38 = vsel %vm110_vm0, %v13130_v15, 0.0 }
 0xe4c   :  { %3587 = vadd.xlane.f32.xlu1 %v3586_v39  ;;  %3584 = vadd.xlane.f32.xlu0 %v3583_v38  ;;  %v9548_v54 = vpop.f32.mrf.mxu1 }
 0xe4d   :  { %v13142_v7 = vadd.f32 %v3511_v49, %v15925_v31  ;;  %v3526_v45 = vadd.f32 %v9548_v54, %v13086_v36  ;;  %v3592_v25 = vsel %vm110_vm0, %v13134_v14, 0.0 }
 0xe4e   :  { %v3520_v44 = vpop.f32.mrf.mxu1 }
 0xe4f   :  { %v13146_v35 = vadd.f32 %v3526_v45, %v15926_v16  ;;  %v3521_v2 = vadd.f32 %v3520_v44, %v13086_v36  ;;  %v3589_v28 = vsel %vm110_vm0, %v13142_v7, 0.0 }
 0xe50   :  { %3593 = vadd.xlane.f32.xlu1 %v3592_v25  ;;  %3590 = vadd.xlane.f32.xlu0 %v3589_v28  ;;  %v9551_v60 = vpop.f32.mrf.mxu1 }
 0xe51   :  { %v13154_v53 = vadd.f32 %v3521_v2, %v15927_v59  ;;  %v3536_v48 = vadd.f32 %v9551_v60, %v13086_v36  ;;  %v3598_v20 = vsel %vm110_vm0, %v13146_v35, 0.0 }
 0xe52   :  { %v3530_v40 = vpop.f32.mrf.mxu1 }
 0xe53   :  { %v13158_v37 = vadd.f32 %v3536_v48, %v15928_v52  ;;  %v3531_v50 = vadd.f32 %v3530_v40, %v13086_v36  ;;  %v3595_v9 = vsel %vm110_vm0, %v13154_v53, 0.0 }
 0xe54   :  { %3599 = vadd.xlane.f32.xlu1 %v3598_v20  ;;  %3596 = vadd.xlane.f32.xlu0 %v3595_v9  ;;  %v9554_v27 = vpop.f32.mrf.mxu1 }
 0xe55   :  { %v13166_v10 = vadd.f32 %v3531_v50, %v15929_v43  ;;  %v3546_v47 = vadd.f32 %v9554_v27, %v13086_v36  ;;  %v3604_v18 = vsel %vm110_vm0, %v13158_v37, 0.0 }
 0xe56   :  { %v3540_v23 = vpop.f32.mrf.mxu1 }
 0xe57   :  { %v13170_v3 = vadd.f32 %v3546_v47, %v15930_v57  ;;  %v3541_v33 = vadd.f32 %v3540_v23, %v13086_v36  ;;  %v3601_v8 = vsel %vm110_vm0, %v13166_v10, 0.0  ;;  %v104_v36 = vld [vmem:[%s15734_s2 + $0xa0] sm:$0xff] }
 0xe58   :  { %3605 = vadd.xlane.f32.xlu1 %v3604_v18  ;;  %3602 = vadd.xlane.f32.xlu0 %v3601_v8 }
 0xe59   :  { %v13178_v42 = vadd.f32 %v3541_v33, %v15931_v55  ;;  %v3610_v58 = vsel %vm110_vm0, %v13170_v3, 0.0  ;;  %9555 = vmatprep.subr.mxu0 %v104_v36 }
 0xe5a   :  { %9556 = vmatpush3.msra.mxu0 %v104_v36 }
 0xe5b   :  { %v3607_v30 = vsel %vm110_vm0, %v13178_v42, 0.0 }
 0xe5c   :  { %3611 = vadd.xlane.f32.xlu1 %v3610_v58  ;;  %3608 = vadd.xlane.f32.xlu0 %v3607_v30 }
 0xec7   :  { %v3570_v0 = vpop.xlane.xlu0 %3569 }
 0xec8   :  { %v3614_v5 = vmul.f32 0.03125, %v3570_v0 }
 0xec9   :  { %v3567_v56 = vpop.xlane.xlu1 %3566 }
 0xeca   :  { %v13188_v62 = vsub.f32 %v13090_v29, %v3614_v5  ;;  %v3613_v4 = vmul.f32 0.03125, %v3567_v56 }
 0xecc   :  { %v13191_v51 = vsub.f32 %v13097_v61, %v3613_v4  ;;  %v3646_v63 = vmul.f32 %v13188_v62, %v13188_v62 }
 0xecd   :  { %v3573_v24 = vpop.xlane.xlu0 %3572  ;;  %v3576_v11 = vpop.xlane.xlu1 %3575 }
 0xece   :  { %v3615_v34 = vmul.f32 0.03125, %v3573_v24  ;;  %v3616_v6 = vmul.f32 0.03125, %v3576_v11  ;;  %v3664_v19 = vsel %vm110_vm0, %v3646_v63, 0.0  ;;  %v3645_v17 = vmul.f32 %v13191_v51, %v13191_v51 }
 0xecf   :  { %3665 = vadd.xlane.f32.xlu1 %v3664_v19 }
 0xed0   :  { %v13199_v29 = vsub.f32 %v13106_v21, %v3615_v34  ;;  %v13202_v41 = vsub.f32 %v13100_v26, %v3616_v6  ;;  %v3661_v61 = vsel %vm110_vm0, %v3645_v17, 0.0 }
 0xed1   :  { %v3579_v1 = vpop.xlane.xlu0 %3578  ;;  %3662 = vadd.xlane.f32.xlu0 %v3661_v61  ;;  %v3582_v49 = vpop.xlane.xlu1 %3581 }
 0xed2   :  { %v3617_v39 = vmul.f32 0.03125, %v3579_v1  ;;  %v3618_v38 = vmul.f32 0.03125, %v3582_v49  ;;  %v3647_v54 = vmul.f32 %v13199_v29, %v13199_v29  ;;  %v3648_v31 = vmul.f32 %v13202_v41, %v13202_v41 }
 0xed4   :  { %v13210_v45 = vsub.f32 %v13118_v13, %v3617_v39  ;;  %v13213_v21 = vsub.f32 %v13110_v46, %v3618_v38  ;;  %v3667_v26 = vsel %vm110_vm0, %v3647_v54, 0.0  ;;  %v3670_v44 = vsel %vm110_vm0, %v3648_v31, 0.0 }
 0xed5   :  { %v3585_v16 = vpop.xlane.xlu0 %3584  ;;  %3668 = vadd.xlane.f32.xlu0 %v3667_v26  ;;  %3671 = vadd.xlane.f32.xlu1 %v3670_v44  ;;  %v3588_v2 = vpop.xlane.xlu1 %3587  ;;  %v92_v44 = vld [vmem:[%s15734_s2 + $0x40] sm:$0xff] }
 0xed6   :  { %v3619_v25 = vmul.f32 0.03125, %v3585_v16  ;;  %v3620_v28 = vmul.f32 0.03125, %v3588_v2  ;;  %v3649_v60 = vmul.f32 %v13210_v45, %v13210_v45  ;;  %v3650_v13 = vmul.f32 %v13213_v21, %v13213_v21  ;;  %v86_v16 = vld [vmem:[%s15734_s2 + $0x10] sm:$0xff] }
 0xed8   :  { %v13222_v59 = vsub.f32 %v13130_v15, %v3619_v25  ;;  %v13225_v46 = vsub.f32 %v13122_v22, %v3620_v28  ;;  %v3673_v48 = vsel %vm110_vm0, %v3649_v60, 0.0  ;;  %v3676_v40 = vsel %vm110_vm0, %v3650_v13, 0.0 }
 0xed9   :  { %v3591_v52 = vpop.xlane.xlu0 %3590  ;;  %3674 = vadd.xlane.f32.xlu0 %v3673_v48  ;;  %3677 = vadd.xlane.f32.xlu1 %v3676_v40  ;;  %v3594_v50 = vpop.xlane.xlu1 %3593 }
 0xeda   :  { %v3621_v20 = vmul.f32 0.03125, %v3591_v52  ;;  %v3622_v9 = vmul.f32 0.03125, %v3594_v50  ;;  %v3651_v27 = vmul.f32 %v13222_v59, %v13222_v59  ;;  %v3652_v15 = vmul.f32 %v13225_v46, %v13225_v46 }
 0xedc   :  { %v13234_v43 = vsub.f32 %v13142_v7, %v3621_v20  ;;  %v13237_v22 = vsub.f32 %v13134_v14, %v3622_v9  ;;  %v3679_v47 = vsel %vm110_vm0, %v3651_v27, 0.0  ;;  %v3682_v23 = vsel %vm110_vm0, %v3652_v15, 0.0 }
 0xedd   :  { %v3597_v57 = vpop.xlane.xlu0 %3596  ;;  %3680 = vadd.xlane.f32.xlu0 %v3679_v47  ;;  %3683 = vadd.xlane.f32.xlu1 %v3682_v23  ;;  %v3600_v33 = vpop.xlane.xlu1 %3599 }
 0xede   :  { %v3623_v18 = vmul.f32 0.03125, %v3597_v57  ;;  %v3624_v8 = vmul.f32 0.03125, %v3600_v33  ;;  %v3653_v55 = vmul.f32 %v13234_v43, %v13234_v43  ;;  %v3654_v7 = vmul.f32 %v13237_v22, %v13237_v22 }
 0xee0   :  { %v13246_v58 = vsub.f32 %v13154_v53, %v3623_v18  ;;  %v13249_v14 = vsub.f32 %v13146_v35, %v3624_v8  ;;  %v3685_v30 = vsel %vm110_vm0, %v3653_v55, 0.0  ;;  %v3688_v36 = vsel %vm110_vm0, %v3654_v7, 0.0 }
 0xee1   :  { %v3603_v0 = vpop.xlane.xlu0 %3602  ;;  %3686 = vadd.xlane.f32.xlu0 %v3685_v30  ;;  %3689 = vadd.xlane.f32.xlu1 %v3688_v36  ;;  %v3606_v5 = vpop.xlane.xlu1 %3605  ;;  %v3775_v8 = vsub.s32 2, %v15915_v12 }
 0xee2   :  { %v3625_v56 = vmul.f32 0.03125, %v3603_v0  ;;  %v3626_v4 = vmul.f32 0.03125, %v3606_v5  ;;  %v3655_v63 = vmul.f32 %v13246_v58, %v13246_v58  ;;  %v3656_v53 = vmul.f32 %v13249_v14, %v13249_v14 }
 0xee4   :  { %v13258_v24 = vsub.f32 %v13166_v10, %v3625_v56  ;;  %v13261_v35 = vsub.f32 %v13158_v37, %v3626_v4  ;;  %v3691_v11 = vsel %vm110_vm0, %v3655_v63, 0.0  ;;  %v3694_v34 = vsel %vm110_vm0, %v3656_v53, 0.0 }
 0xee5   :  { %v3609_v6 = vpop.xlane.xlu0 %3608  ;;  %3692 = vadd.xlane.f32.xlu0 %v3691_v11  ;;  %3695 = vadd.xlane.f32.xlu1 %v3694_v34  ;;  %v3612_v19 = vpop.xlane.xlu1 %3611  ;;  %v13296_v4 = vrot.slane %v13083_v32, %v3775_v8  ;;  %v3795_v11 = vsub.s32 3, %v15915_v12 }
 0xee6   :  { %v3627_v17 = vmul.f32 0.03125, %v3609_v6  ;;  %v3628_v61 = vmul.f32 0.03125, %v3612_v19  ;;  %v3657_v1 = vmul.f32 %v13258_v24, %v13258_v24  ;;  %v3658_v10 = vmul.f32 %v13261_v35, %v13261_v35 }
 0xee8   :  { %v13270_v49 = vsub.f32 %v13178_v42, %v3627_v17  ;;  %v13273_v37 = vsub.f32 %v13170_v3, %v3628_v61  ;;  %v3697_v39 = vsel %vm110_vm0, %v3657_v1, 0.0  ;;  %v3700_v38 = vsel %vm110_vm0, %v3658_v10, 0.0  ;;  %v98_v3 = vld [vmem:[%s15734_s2 + $0x70] sm:$0xff] }
 0xee9   :  { %3698 = vadd.xlane.f32.xlu0 %v3697_v39  ;;  %3701 = vadd.xlane.f32.xlu1 %v3700_v38 }
 0xeea   :  { %v3659_v54 = vmul.f32 %v13270_v49, %v13270_v49  ;;  %v3660_v31 = vmul.f32 %v13273_v37, %v13273_v37  ;;  %9557 = vmatprep.subr.mxu0 %v98_v3 }
 0xeeb   :  { %9558 = vmatpush3.msra.mxu0 %v98_v3 }
 0xeec   :  { %v3703_v26 = vsel %vm110_vm0, %v3659_v54, 0.0  ;;  %v3706_v42 = vsel %vm110_vm0, %v3660_v31, 0.0  ;;  %9559 = vmatprep.subr.mxu0 %v92_v44  ;;  %v13305_v31 = vrot.slane %v13083_v32, %v3795_v11 }
 0xeed   :  { %3704 = vadd.xlane.f32.xlu0 %v3703_v26  ;;  %3707 = vadd.xlane.f32.xlu1 %v3706_v42 }
 0xeee   :  { %9560 = vmatpush3.msra.mxu0 %v92_v44 }
 0xeef   :  { %9561 = vmatprep.subr.mxu0 %v86_v16 }
 0xef0   :  { %9562 = vmatpush3.msra.mxu0 %v86_v16 }
 0xf58   :  { %v3666_v2 = vpop.xlane.xlu1 %3665 }
 0xf59   :  { %v3710_v25 = vmul.f32 0.03125, %v3666_v2 }
 0xf5a   :  { %v3663_v28 = vpop.xlane.xlu0 %3662 }
 0xf5b   :  { %v3726_v60 = vadd.f32 1e-12, %v3710_v25  ;;  %v3709_v13 = vmul.f32 0.03125, %v3663_v28 }
 0xf5d   :  { %10523 = vrsqrt.f32 %v3726_v60  ;;  %v3725_v48 = vadd.f32 1e-12, %v3709_v13 }
 0xf5e   :  { %v3669_v40 = vpop.xlane.xlu0 %3668  ;;  %v3672_v52 = vpop.xlane.xlu1 %3671 }
 0xf5f   :  { %10525 = vrsqrt.f32 %v3725_v48  ;;  %v3711_v50 = vmul.f32 0.03125, %v3669_v40  ;;  %v3712_v20 = vmul.f32 0.03125, %v3672_v52 }
 0xf61   :  { %v3727_v9 = vadd.f32 1e-12, %v3711_v50  ;;  %v3728_v27 = vadd.f32 1e-12, %v3712_v20 }
 0xf62   :  { %v3675_v15 = vpop.xlane.xlu0 %3674  ;;  %v3678_v47 = vpop.xlane.xlu1 %3677 }
 0xf63   :  { %10527 = vrsqrt.f32 %v3727_v9  ;;  %v3713_v23 = vmul.f32 0.03125, %v3675_v15  ;;  %v3714_v57 = vmul.f32 0.03125, %v3678_v47 }
 0xf64   :  { %10529 = vrsqrt.f32 %v3728_v27 }
 0xf65   :  { %v3729_v33 = vadd.f32 1e-12, %v3713_v23  ;;  %v3730_v18 = vadd.f32 1e-12, %v3714_v57 }
 0xf66   :  { %v3681_v55 = vpop.xlane.xlu0 %3680  ;;  %v3684_v7 = vpop.xlane.xlu1 %3683 }
 0xf67   :  { %10531 = vrsqrt.f32 %v3729_v33  ;;  %v3715_v30 = vmul.f32 0.03125, %v3681_v55  ;;  %v3716_v36 = vmul.f32 0.03125, %v3684_v7 }
 0xf68   :  { %10533 = vrsqrt.f32 %v3730_v18 }
 0xf69   :  { %v3731_v0 = vadd.f32 1e-12, %v3715_v30  ;;  %v3732_v5 = vadd.f32 1e-12, %v3716_v36 }
 0xf6a   :  { %v10524_v56 = vpop.eup %10523  ;;  %v3687_v63 = vpop.xlane.xlu0 %3686 }
 0xf6b   :  { %v3690_v53 = vpop.xlane.xlu1 %3689  ;;  %v3758_v34 = vmul.f32 %v10524_v56, %v13188_v62  ;;  %10535 = vrsqrt.f32 %v3731_v0  ;;  %v3717_v6 = vmul.f32 0.03125, %v3687_v63 }
 0xf6c   :  { %v3718_v19 = vmul.f32 0.03125, %v3690_v53  ;;  %v10526_v17 = vpop.eup %10525  ;;  %10537 = vrsqrt.f32 %v3732_v5 }
 0xf6d   :  { %v3733_v61 = vadd.f32 1e-12, %v3717_v6  ;;  %v3757_v10 = vmul.f32 %v10526_v17, %v13191_v51  ;;  %v3778_v39 = vmul.f32 %v13296_v4, %v3758_v34 }
 0xf6e   :  { %v3734_v1 = vadd.f32 1e-12, %v3718_v19  ;;  %v3693_v38 = vpop.xlane.xlu0 %3692 }
 0xf6f   :  { %v3696_v54 = vpop.xlane.xlu1 %3695  ;;  %10539 = vrsqrt.f32 %v3733_v61  ;;  %v3719_v62 = vmul.f32 0.03125, %v3693_v38  ;;  %v3777_v42 = vmul.f32 %v13296_v4, %v3757_v10  ;;  %v13313_v32 = vadd.f32 %v13305_v31, %v3778_v39 }
 0xf70   :  { %v3720_v26 = vmul.f32 0.03125, %v3696_v54  ;;  %v10528_v3 = vpop.eup %10527  ;;  %10541 = vrsqrt.f32 %v3734_v1 }
 0xf71   :  { %v10530_v44 = vpop.eup %10529  ;;  %v3735_v16 = vadd.f32 1e-12, %v3719_v62  ;;  %v13309_v51 = vadd.f32 %v13305_v31, %v3777_v42  ;;  %v3759_v25 = vmul.f32 %v10528_v3, %v13199_v29 }
 0xf72   :  { %v3736_v2 = vadd.f32 1e-12, %v3720_v26  ;;  %v3699_v28 = vpop.xlane.xlu0 %3698  ;;  %v3760_v13 = vmul.f32 %v10530_v44, %v13202_v41 }
 0xf73   :  { %v3702_v60 = vpop.xlane.xlu1 %3701  ;;  %10543 = vrsqrt.f32 %v3735_v16  ;;  %v3721_v48 = vmul.f32 0.03125, %v3699_v28  ;;  %9563 = vmatprep.mubr.msk.f32.mxu0 %vm110_vm0, %v13309_v51  ;;  %v3779_v52 = vmul.f32 %v13296_v4, %v3759_v25 }
 0xf74   :  { %v3722_v40 = vmul.f32 0.03125, %v3702_v60  ;;  %v10532_v50 = vpop.eup %10531  ;;  %10545 = vrsqrt.f32 %v3736_v2  ;;  %9564 = vmatmul.mubr.msk.f32.vlgmr.msra.gmra.mxu0 %vm110_vm0, %v13313_v32  ;;  %v3780_v29 = vmul.f32 %v13296_v4, %v3760_v13 }
 0xf75   :  { %v10534_v20 = vpop.eup %10533  ;;  %v3737_v9 = vadd.f32 1e-12, %v3721_v48  ;;  %v13323_v41 = vadd.f32 %v13305_v31, %v3779_v52  ;;  %v3761_v15 = vmul.f32 %v10532_v50, %v13210_v45 }
 0xf76   :  { %v3738_v27 = vadd.f32 1e-12, %v3722_v40  ;;  %v3705_v47 = vpop.xlane.xlu0 %3704  ;;  %v13327_v57 = vadd.f32 %v13305_v31, %v3780_v29  ;;  %v3762_v33 = vmul.f32 %v10534_v20, %v13213_v21 }
 0xf77   :  { %v3708_v23 = vpop.xlane.xlu1 %3707  ;;  %10547 = vrsqrt.f32 %v3737_v9  ;;  %v3723_v18 = vmul.f32 0.03125, %v3705_v47  ;;  %9566 = vmatprep.mubr.msk.f32.mxu0 %vm110_vm0, %v13323_v41  ;;  %v3781_v7 = vmul.f32 %v13296_v4, %v3761_v15  ;;  %v87_v9 = vld [vmem:[%s15734_s2 + $0x18] sm:$0xff] }
 0xf78   :  { %v3724_v55 = vmul.f32 0.03125, %v3708_v23  ;;  %v10536_v30 = vpop.eup %10535  ;;  %10549 = vrsqrt.f32 %v3738_v27  ;;  %9567 = vmatmul.mubr.msk.f32.gmra.mxu0 %vm110_vm0, %v13327_v57  ;;  %v3782_v45 = vmul.f32 %v13296_v4, %v3762_v33  ;;  %v10892_v27 = vld [vmem:[%s15735_s3 + $0x8] sm:$0xf] }
 0xf79   :  { %v10538_v36 = vpop.eup %10537  ;;  %v3739_v0 = vadd.f32 1e-12, %v3723_v18  ;;  %v13337_v21 = vadd.f32 %v13305_v31, %v3781_v7  ;;  %v3763_v56 = vmul.f32 %v10536_v30, %v13222_v59  ;;  %v13441_v15 = vrot.slane %v10892_v27, %v3795_v11 }
 0xf7a   :  { %v3740_v5 = vadd.f32 1e-12, %v3724_v55  ;;  %v13341_v63 = vadd.f32 %v13305_v31, %v3782_v45  ;;  %v3764_v53 = vmul.f32 %v10538_v36, %v13225_v46 }
 0xf7b   :  { %10551 = vrsqrt.f32 %v3739_v0  ;;  %9569 = vmatprep.mubr.msk.f32.mxu0 %vm110_vm0, %v13337_v21  ;;  %v3783_v34 = vmul.f32 %v13296_v4, %v3763_v56 }
 0xf7c   :  { %v10540_v6 = vpop.eup %10539  ;;  %10553 = vrsqrt.f32 %v3740_v5  ;;  %9570 = vmatmul.mubr.msk.f32.gmra.mxu0 %vm110_vm0, %v13341_v63  ;;  %v3784_v19 = vmul.f32 %v13296_v4, %v3764_v53 }
 0xf7d   :  { %v10542_v17 = vpop.eup %10541  ;;  %v13351_v59 = vadd.f32 %v13305_v31, %v3783_v34  ;;  %v3765_v61 = vmul.f32 %v10540_v6, %v13234_v43 }
 0xf7e   :  { %v13355_v46 = vadd.f32 %v13305_v31, %v3784_v19  ;;  %v3766_v1 = vmul.f32 %v10542_v17, %v13237_v22 }
 0xf7f   :  { %9572 = vmatprep.mubr.msk.f32.mxu0 %vm110_vm0, %v13351_v59  ;;  %v3785_v10 = vmul.f32 %v13296_v4, %v3765_v61 }
 0xf80   :  { %v10544_v39 = vpop.eup %10543  ;;  %9573 = vmatmul.mubr.msk.f32.gmra.mxu0 %vm110_vm0, %v13355_v46  ;;  %v3786_v38 = vmul.f32 %v13296_v4, %v3766_v1 }
 0xf81   :  { %v10546_v54 = vpop.eup %10545  ;;  %v13365_v62 = vadd.f32 %v13305_v31, %v3785_v10  ;;  %v3767_v43 = vmul.f32 %v10544_v39, %v13246_v58 }
 0xf82   :  { %v13369_v26 = vadd.f32 %v13305_v31, %v3786_v38  ;;  %v3768_v22 = vmul.f32 %v10546_v54, %v13249_v14 }
 0xf83   :  { %9575 = vmatprep.mubr.msk.f32.mxu0 %vm110_vm0, %v13365_v62  ;;  %v3787_v42 = vmul.f32 %v13296_v4, %v3767_v43 }
 0xf84   :  { %v10548_v3 = vpop.eup %10547  ;;  %9576 = vmatmul.mubr.msk.f32.gmra.mxu0 %vm110_vm0, %v13369_v26  ;;  %v3788_v44 = vmul.f32 %v13296_v4, %v3768_v22 }
 0xf85   :  { %v10550_v16 = vpop.eup %10549  ;;  %v13379_v2 = vadd.f32 %v13305_v31, %v3787_v42  ;;  %v3769_v58 = vmul.f32 %v10548_v3, %v13258_v24 }
 0xf86   :  { %v13383_v25 = vadd.f32 %v13305_v31, %v3788_v44  ;;  %v3770_v14 = vmul.f32 %v10550_v16, %v13261_v35 }
 0xf87   :  { %9578 = vmatprep.mubr.msk.f32.mxu0 %vm110_vm0, %v13379_v2  ;;  %v3789_v28 = vmul.f32 %v13296_v4, %v3769_v58 }
 0xf88   :  { %v10552_v60 = vpop.eup %10551  ;;  %9579 = vmatmul.mubr.msk.f32.gmra.mxu0 %vm110_vm0, %v13383_v25  ;;  %v3790_v13 = vmul.f32 %v13296_v4, %v3770_v14 }
 0xf89   :  { %v10554_v48 = vpop.eup %10553  ;;  %v13393_v40 = vadd.f32 %v13305_v31, %v3789_v28  ;;  %v3771_v24 = vmul.f32 %v10552_v60, %v13270_v49 }
 0xf8a   :  { %v13397_v52 = vadd.f32 %v13305_v31, %v3790_v13  ;;  %v3772_v35 = vmul.f32 %v10554_v48, %v13273_v37  ;;  %v105_v37 = vld [vmem:[%s15734_s2 + $0xa8] sm:$0xff] }
 0xf8b   :  { %9581 = vmatprep.mubr.msk.f32.mxu0 %vm110_vm0, %v13393_v40  ;;  %v3791_v50 = vmul.f32 %v13296_v4, %v3771_v24  ;;  %9587 = vmatprep.subr.msk.mxu1 %vm4158_vm4, %v105_v37 }
 0xf8c   :  { %9582 = vmatmul.mubr.msk.f32.gmra.mxu0 %vm110_vm0, %v13397_v52  ;;  %v3792_v29 = vmul.f32 %v13296_v4, %v3772_v35  ;;  %9588 = vmatpush3.xpose.msk.msra.mxu1 %vm4158_vm4, %v105_v37  ;;  %v99_v4 = vld [vmem:[%s15734_s2 + $0x78] sm:$0xff] }
 0xf8d   :  { %v13407_v20 = vadd.f32 %v13305_v31, %v3791_v50  ;;  %9589 = vmatprep.subr.msk.mxu1 %vm4158_vm4, %v99_v4 }
 0xf8e   :  { %v13410_v49 = vadd.f32 %v13305_v31, %v3792_v29  ;;  %v93_v31 = vld [vmem:[%s15734_s2 + $0x48] sm:$0xff] }
 0xf8f   :  { %9584 = vmatprep.mubr.msk.f32.mxu0 %vm110_vm0, %v13407_v20 }
 0xf90   :  { %9585 = vmatmul.mubr.msk.f32.gmra.mxu0 %vm110_vm0, %v13410_v49  ;;  %9590 = vmatpush3.xpose.msk.msra.mxu1 %vm4158_vm4, %v99_v4 }
 0xf91   :  { %9591 = vmatprep.subr.msk.mxu1 %vm4158_vm4, %v93_v31 }
 0xf94   :  { %9592 = vmatpush3.xpose.msk.msra.mxu1 %vm4158_vm4, %v93_v31 }
 0xf95   :  { %9593 = vmatprep.subr.msk.mxu1 %vm4158_vm4, %v87_v9 }
 0xf98   :  { %9594 = vmatpush3.xpose.msk.msra.mxu1 %vm4158_vm4, %v87_v9 }
0x1034   :  { %v9565_v47 = vpop.f32.mrf.mxu0 }
0x1035   :  { %v13444_v23 = vadd.f32 %v9565_v47, %v13441_v15 }
0x1036   :  { %v3931_v33 = vpop.f32.mrf.mxu0 }
0x1037   :  { %v4011_v18 = vmul.f32 %v13444_v23, %v13444_v23  ;;  %v13449_v55 = vadd.f32 %v3931_v33, %v13441_v15 }
0x1038   :  { %v9568_v7 = vpop.f32.mrf.mxu0 }
0x1039   :  { %v4027_v30 = vmul.f32 %v4011_v18, %v13444_v23  ;;  %v4010_v45 = vmul.f32 %v13449_v55, %v13449_v55  ;;  %v13455_v11 = vadd.f32 %v9568_v7, %v13441_v15 }
0x103a   :  { %v3941_v36 = vpop.f32.mrf.mxu0 }
0x103b   :  { %v4043_v0 = vmul.f32 0.044715, %v4027_v30  ;;  %v4026_v5 = vmul.f32 %v4010_v45, %v13449_v55  ;;  %v4013_v56 = vmul.f32 %v13455_v11, %v13455_v11  ;;  %v13461_v53 = vadd.f32 %v3941_v36, %v13441_v15 }
0x103c   :  { %v9571_v34 = vpop.f32.mrf.mxu0 }
0x103d   :  { %v4059_v6 = vadd.f32 %v4043_v0, %v13444_v23  ;;  %v4042_v19 = vmul.f32 0.044715, %v4026_v5  ;;  %v4029_v17 = vmul.f32 %v4013_v56, %v13455_v11  ;;  %v4012_v61 = vmul.f32 %v13461_v53, %v13461_v53 }
0x103e   :  { %v13468_v1 = vadd.f32 %v9571_v34, %v13441_v15  ;;  %v3951_v10 = vpop.f32.mrf.mxu0 }
0x103f   :  { %v4075_v39 = vmul.f32 0.7978846, %v4059_v6  ;;  %v4058_v38 = vadd.f32 %v4042_v19, %v13449_v55  ;;  %v4045_v54 = vmul.f32 0.044715, %v4029_v17  ;;  %v4028_v43 = vmul.f32 %v4012_v61, %v13461_v53 }
0x1040   :  { %v4015_v22 = vmul.f32 %v13468_v1, %v13468_v1  ;;  %v13475_v42 = vadd.f32 %v3951_v10, %v13441_v15  ;;  %v9574_v3 = vpop.f32.mrf.mxu0 }
0x1041   :  { %10555 = vtanh.f32 %v4075_v39  ;;  %v4074_v44 = vmul.f32 0.7978846, %v4058_v38  ;;  %v4061_v16 = vadd.f32 %v4045_v54, %v13455_v11  ;;  %v4044_v58 = vmul.f32 0.044715, %v4028_v43 }
0x1042   :  { %v4031_v14 = vmul.f32 %v4015_v22, %v13468_v1  ;;  %v4014_v28 = vmul.f32 %v13475_v42, %v13475_v42  ;;  %v13482_v60 = vadd.f32 %v9574_v3, %v13441_v15  ;;  %v3961_v13 = vpop.f32.mrf.mxu0 }
0x1043   :  { %v4060_v48 = vadd.f32 %v4044_v58, %v13461_v53  ;;  %v13486_v24 = vadd.f32 %v3961_v13, %v13441_v15  ;;  %v4077_v35 = vmul.f32 0.7978846, %v4061_v16  ;;  %10557 = vtanh.f32 %v4074_v44 }
0x1044   :  { %v4047_v50 = vmul.f32 0.044715, %v4031_v14  ;;  %v4030_v29 = vmul.f32 %v4014_v28, %v13475_v42  ;;  %v4017_v37 = vmul.f32 %v13482_v60, %v13482_v60  ;;  %v9577_v4 = vpop.f32.mrf.mxu0 }
0x1045   :  { %v4076_v31 = vmul.f32 0.7978846, %v4060_v48  ;;  %v4016_v9 = vmul.f32 %v13486_v24, %v13486_v24  ;;  %v13494_v27 = vadd.f32 %v9577_v4, %v13441_v15 }
0x1046   :  { %v4063_v47 = vadd.f32 %v4047_v50, %v13468_v1  ;;  %v4046_v33 = vmul.f32 0.044715, %v4030_v29  ;;  %v4033_v18 = vmul.f32 %v4017_v37, %v13482_v60  ;;  %v3971_v7 = vpop.f32.mrf.mxu0 }
0x1047   :  { %10559 = vtanh.f32 %v4076_v31  ;;  %v4032_v30 = vmul.f32 %v4016_v9, %v13486_v24  ;;  %v4019_v45 = vmul.f32 %v13494_v27, %v13494_v27  ;;  %v13502_v36 = vadd.f32 %v3971_v7, %v13441_v15 }
0x1048   :  { %10561 = vtanh.f32 %v4077_v35  ;;  %v4079_v0 = vmul.f32 0.7978846, %v4063_v47  ;;  %v4062_v5 = vadd.f32 %v4046_v33, %v13475_v42  ;;  %v4049_v56 = vmul.f32 0.044715, %v4033_v18  ;;  %v9580_v34 = vpop.f32.mrf.mxu0 }
0x1049   :  { %v4048_v6 = vmul.f32 0.044715, %v4032_v30  ;;  %v4035_v19 = vmul.f32 %v4019_v45, %v13494_v27  ;;  %v4018_v17 = vmul.f32 %v13502_v36, %v13502_v36  ;;  %v13509_v61 = vadd.f32 %v9580_v34, %v13441_v15 }
0x104a   :  { %10563 = vtanh.f32 %v4079_v0  ;;  %v4078_v10 = vmul.f32 0.7978846, %v4062_v5  ;;  %v4065_v39 = vadd.f32 %v4049_v56, %v13482_v60  ;;  %v3981_v38 = vpop.f32.mrf.mxu0 }
0x104b   :  { %v4064_v54 = vadd.f32 %v4048_v6, %v13486_v24  ;;  %v4051_v43 = vmul.f32 0.044715, %v4035_v19  ;;  %v4034_v22 = vmul.f32 %v4018_v17, %v13502_v36  ;;  %v4021_v3 = vmul.f32 %v13509_v61, %v13509_v61 }
0x104c   :  { %10565 = vtanh.f32 %v4078_v10  ;;  %v4081_v44 = vmul.f32 0.7978846, %v4065_v39  ;;  %v13517_v16 = vadd.f32 %v3981_v38, %v13441_v15  ;;  %v9583_v58 = vpop.f32.mrf.mxu0 }
0x104d   :  { %v4080_v14 = vmul.f32 0.7978846, %v4064_v54  ;;  %v4067_v28 = vadd.f32 %v4051_v43, %v13494_v27  ;;  %v4050_v13 = vmul.f32 0.044715, %v4034_v22  ;;  %v4037_v48 = vmul.f32 %v4021_v3, %v13509_v61 }
0x104e   :  { %v10556_v35 = vpop.eup %10555  ;;  %10567 = vtanh.f32 %v4081_v44  ;;  %v4020_v50 = vmul.f32 %v13517_v16, %v13517_v16  ;;  %v13524_v29 = vadd.f32 %v9583_v58, %v13441_v15  ;;  %v3991_v37 = vpop.f32.mrf.mxu0 }
0x104f   :  { %v4107_v4 = vadd.f32 1.0, %v10556_v35  ;;  %10569 = vtanh.f32 %v4080_v14  ;;  %v4083_v31 = vmul.f32 0.7978846, %v4067_v28  ;;  %v4066_v9 = vadd.f32 %v4050_v13, %v13502_v36 }
0x1050   :  { %v4053_v47 = vmul.f32 0.044715, %v4037_v48  ;;  %v4036_v33 = vmul.f32 %v4020_v50, %v13517_v16  ;;  %v4023_v18 = vmul.f32 %v13524_v29, %v13524_v29  ;;  %v13531_v7 = vadd.f32 %v3991_v37, %v13441_v15  ;;  %v9586_v30 = vpop.f32.mrf.mxu0  ;;  %v10558_v56 = vpop.eup %10557 }
0x1051   :  { %v4123_v45 = vmul.f32 0.5, %v4107_v4  ;;  %10571 = vtanh.f32 %v4083_v31  ;;  %v4082_v0 = vmul.f32 0.7978846, %v4066_v9  ;;  %v13534_v5 = vadd.f32 %v9586_v30, %v13441_v15 }
0x1052   :  { %v4069_v34 = vadd.f32 %v4053_v47, %v13509_v61  ;;  %v4052_v6 = vmul.f32 0.044715, %v4036_v33  ;;  %v4039_v19 = vmul.f32 %v4023_v18, %v13524_v29  ;;  %v4022_v17 = vmul.f32 %v13531_v7, %v13531_v7  ;;  %v4001_v10 = vpop.f32.mrf.mxu0 }
0x1053   :  { %v4139_v39 = vmul.f32 %v4123_v45, %v13444_v23  ;;  %10573 = vtanh.f32 %v4082_v0  ;;  %v4025_v38 = vmul.f32 %v13534_v5, %v13534_v5  ;;  %v13544_v54 = vadd.f32 %v4001_v10, %v13441_v15 }
0x1054   :  { %v10560_v43 = vpop.eup %10559  ;;  %v4085_v22 = vmul.f32 0.7978846, %v4069_v34  ;;  %v4068_v3 = vadd.f32 %v4052_v6, %v13517_v16  ;;  %v4055_v44 = vmul.f32 0.044715, %v4039_v19  ;;  %v4038_v58 = vmul.f32 %v4022_v17, %v13531_v7 }
0x1055   :  { %v10562_v14 = vpop.eup %10561  ;;  %v4041_v28 = vmul.f32 %v4025_v38, %v13534_v5  ;;  %v4024_v23 = vmul.f32 %v13544_v54, %v13544_v54  ;;  %v4106_v13 = vadd.f32 1.0, %v10558_v56  ;;  %v4108_v48 = vadd.f32 1.0, %v10560_v43 }
0x1056   :  { %10575 = vtanh.f32 %v4085_v22  ;;  %v4084_v35 = vmul.f32 0.7978846, %v4068_v3  ;;  %v4071_v15 = vadd.f32 %v4055_v44, %v13524_v29  ;;  %v4054_v50 = vmul.f32 0.044715, %v4038_v58 }
0x1057   :  { %v10564_v37 = vpop.eup %10563  ;;  %v4057_v4 = vmul.f32 0.044715, %v4041_v28  ;;  %v4040_v31 = vmul.f32 %v4024_v23, %v13544_v54  ;;  %v4122_v9 = vmul.f32 0.5, %v4106_v13  ;;  %v4124_v47 = vmul.f32 0.5, %v4108_v48 }
0x1058   :  { %10577 = vtanh.f32 %v4084_v35  ;;  %v4087_v33 = vmul.f32 0.7978846, %v4071_v15  ;;  %v4070_v18 = vadd.f32 %v4054_v50, %v13531_v7  ;;  %v4109_v30 = vadd.f32 1.0, %v10562_v14 }
0x1059   :  { %v10566_v45 = vpop.eup %10565  ;;  %v4073_v0 = vadd.f32 %v4057_v4, %v13534_v5  ;;  %v4056_v56 = vmul.f32 0.044715, %v4040_v31  ;;  %v4138_v34 = vmul.f32 %v4122_v9, %v13449_v55  ;;  %v4140_v6 = vmul.f32 %v4124_v47, %v13461_v53 }
0x105a   :  { %10579 = vtanh.f32 %v4087_v33  ;;  %v4086_v19 = vmul.f32 0.7978846, %v4070_v18  ;;  %v4125_v17 = vmul.f32 0.5, %v4109_v30  ;;  %v4110_v10 = vadd.f32 1.0, %v10566_v45 }
0x105b   :  { %v10568_v38 = vpop.eup %10567  ;;  %v4089_v43 = vmul.f32 0.7978846, %v4073_v0  ;;  %v4072_v22 = vadd.f32 %v4056_v56, %v13544_v54  ;;  %9595 = vmatprep.mubr.msk.f32.mxu1 %vm4158_vm4, %v4138_v34  ;;  %v4111_v3 = vadd.f32 1.0, %v10564_v37 }
0x105c   :  { %v10570_v44 = vpop.eup %10569  ;;  %10581 = vtanh.f32 %v4086_v19  ;;  %9596 = vmatmul.mubr.msk.f32.vlgmr.msra.gmra.mxu1 %vm4158_vm4, %v4139_v39  ;;  %v4126_v58 = vmul.f32 0.5, %v4110_v10  ;;  %v4141_v55 = vmul.f32 %v4125_v17, %v13455_v11  ;;  %v4113_v48 = vadd.f32 1.0, %v10568_v38 }
0x105d   :  { %v4088_v14 = vmul.f32 0.7978846, %v4072_v22  ;;  %9598 = vmatprep.mubr.msk.f32.mxu1 %vm4158_vm4, %v4140_v6  ;;  %v4112_v53 = vadd.f32 1.0, %v10570_v44  ;;  %10583 = vtanh.f32 %v4089_v43  ;;  %v4127_v13 = vmul.f32 0.5, %v4111_v3 }
0x105e   :  { %v10572_v28 = vpop.eup %10571  ;;  %v4142_v23 = vmul.f32 %v4126_v58, %v13475_v42  ;;  %v4129_v4 = vmul.f32 0.5, %v4113_v48 }
0x105f   :  { %10585 = vtanh.f32 %v4088_v14  ;;  %v4128_v35 = vmul.f32 0.5, %v4112_v53  ;;  %v4115_v37 = vadd.f32 1.0, %v10572_v28  ;;  %v4143_v11 = vmul.f32 %v4127_v13, %v13468_v1 }
0x1060   :  { %v10574_v15 = vpop.eup %10573  ;;  %9599 = vmatmul.mubr.msk.f32.gmra.mxu1 %vm4158_vm4, %v4141_v55  ;;  %v4145_v18 = vmul.f32 %v4129_v4, %v13482_v60 }
0x1061   :  { %9601 = vmatprep.mubr.msk.f32.mxu1 %vm4158_vm4, %v4142_v23  ;;  %v4144_v39 = vmul.f32 %v4128_v35, %v13486_v24  ;;  %v4114_v50 = vadd.f32 1.0, %v10574_v15  ;;  %v4131_v33 = vmul.f32 0.5, %v4115_v37 }
0x1063   :  { %v10576_v31 = vpop.eup %10575  ;;  %v4130_v9 = vmul.f32 0.5, %v4114_v50  ;;  %v4147_v56 = vmul.f32 %v4131_v33, %v13494_v27  ;;  %v4156_v50 = vsub.s32 7, %v15915_v12 }
0x1064   :  { %9602 = vmatmul.mubr.msk.f32.gmra.mxu1 %vm4158_vm4, %v4143_v11  ;;  %v4117_v45 = vadd.f32 1.0, %v10576_v31  ;;  %v13595_v11 = vld [vmem:[%s15735_s3] sm:$0xff] }
0x1065   :  { %v10578_v42 = vpop.eup %10577  ;;  %9604 = vmatprep.mubr.msk.f32.mxu1 %vm4158_vm4, %v4144_v39  ;;  %v4146_v47 = vmul.f32 %v4130_v9, %v13502_v36  ;;  %v4157_v4 = vrot.slane %v13595_v11, %v4156_v50 }
0x1066   :  { %v4116_v30 = vadd.f32 1.0, %v10578_v42  ;;  %v4133_v6 = vmul.f32 0.5, %v4117_v45 }
0x1067   :  { %v10580_v24 = vpop.eup %10579 }
0x1068   :  { %9605 = vmatmul.mubr.msk.f32.gmra.mxu1 %vm4158_vm4, %v4145_v18  ;;  %v4132_v0 = vmul.f32 0.5, %v4116_v30  ;;  %v4119_v17 = vadd.f32 1.0, %v10580_v24  ;;  %v4149_v43 = vmul.f32 %v4133_v6, %v13509_v61 }
0x1069   :  { %v10582_v1 = vpop.eup %10581  ;;  %9607 = vmatprep.mubr.msk.f32.mxu1 %vm4158_vm4, %v4146_v47 }
0x106a   :  { %v4148_v34 = vmul.f32 %v4132_v0, %v13517_v16  ;;  %v4118_v19 = vadd.f32 1.0, %v10582_v1  ;;  %v10584_v36 = vpop.eup %10583  ;;  %v4135_v3 = vmul.f32 0.5, %v4119_v17 }
0x106b   :  { %v4121_v44 = vadd.f32 1.0, %v10584_v36 }
0x106c   :  { %v10586_v10 = vpop.eup %10585  ;;  %9608 = vmatmul.mubr.msk.f32.gmra.mxu1 %vm4158_vm4, %v4147_v56  ;;  %v4134_v60 = vmul.f32 0.5, %v4118_v19  ;;  %v4151_v58 = vmul.f32 %v4135_v3, %v13524_v29 }
0x106d   :  { %9610 = vmatprep.mubr.msk.f32.mxu1 %vm4158_vm4, %v4148_v34  ;;  %v4120_v38 = vadd.f32 1.0, %v10586_v10  ;;  %v4137_v14 = vmul.f32 0.5, %v4121_v44 }
0x106e   :  { %v4150_v22 = vmul.f32 %v4134_v60, %v13531_v7 }
0x106f   :  { %v4136_v27 = vmul.f32 0.5, %v4120_v38  ;;  %v4153_v61 = vmul.f32 %v4137_v14, %v13534_v5 }
0x1070   :  { %9611 = vmatmul.mubr.msk.f32.gmra.mxu1 %vm4158_vm4, %v4149_v43 }
0x1071   :  { %9613 = vmatprep.mubr.msk.f32.mxu1 %vm4158_vm4, %v4150_v22  ;;  %v4152_v16 = vmul.f32 %v4136_v27, %v13544_v54 }
0x1074   :  { %9614 = vmatmul.mubr.msk.f32.gmra.mxu1 %vm4158_vm4, %v4151_v58 }
0x1075   :  { %9616 = vmatprep.mubr.msk.f32.mxu1 %vm4158_vm4, %v4152_v16 }
0x1078   :  { %9617 = vmatmul.mubr.msk.f32.gmra.mxu1 %vm4158_vm4, %v4153_v61 }
0x111c   :  { %v13587_v7 = vpop.f32.mrf.mxu1 }
0x111d   :  { %v4291_v61 = vadd.f32 %v13587_v7, %v4157_v4 }
0x111e   :  { %v13589_v55 = vpop.f32.mrf.mxu1 }
0x1120   :  { %v9600_v53 = vpop.f32.mrf.mxu1 }
0x1121   :  { %v4301_v27 = vadd.f32 %v9600_v53, %v4157_v4  ;;  %v4286_v53 = vadd.f32 %v13589_v55, %v4157_v4 }
0x1122   :  { %v4295_v28 = vpop.f32.mrf.mxu1 }
0x1123   :  { %v4296_v58 = vadd.f32 %v4295_v28, %v4157_v4  ;;  %v13672_v7 = vadd.f32 %v4286_v53, %v13309_v51 }
0x1124   :  { %v9603_v23 = vpop.f32.mrf.mxu1 }
0x1125   :  { %v4311_v43 = vadd.f32 %v9603_v23, %v4157_v4  ;;  %v13656_v23 = vadd.f32 %v4301_v27, %v13327_v57  ;;  %v13662_v28 = vadd.f32 %v4296_v58, %v13323_v41 }
0x1126   :  { %v4305_v13 = vpop.f32.mrf.mxu1 }
0x1127   :  { %v4306_v3 = vadd.f32 %v4305_v13, %v4157_v4  ;;  %v13645_v16 = vadd.f32 %v4311_v43, %v13341_v63  ;;  %v13667_v13 = vadd.f32 %v4291_v61, %v13313_v32  ;;  %v4389_v57 = vsel %vm110_vm0, %v13656_v23, 0.0 }
0x1128   :  { %v9606_v54 = vpop.f32.mrf.mxu1  ;;  %v4386_v55 = vsel %vm110_vm0, %v13662_v28, 0.0 }
0x1129   :  { %v4321_v36 = vadd.f32 %v9606_v54, %v4157_v4  ;;  %v13650_v14 = vadd.f32 %v4306_v3, %v13337_v21  ;;  %v4395_v63 = vsel %vm110_vm0, %v13645_v16, 0.0  ;;  %v4383_v41 = vsel %vm110_vm0, %v13667_v13, 0.0 }
0x112a   :  { %v4315_v48 = vpop.f32.mrf.mxu1  ;;  %v4380_v54 = vsel %vm110_vm0, %v13672_v7, 0.0 }
0x112b   :  { %v4316_v60 = vadd.f32 %v4315_v48, %v4157_v4  ;;  %v13635_v22 = vadd.f32 %v4321_v36, %v13355_v46  ;;  %v4392_v21 = vsel %vm110_vm0, %v13650_v14, 0.0 }
0x112c   :  { %v9609_v29 = vpop.f32.mrf.mxu1 }
0x112d   :  { %v4331_v6 = vadd.f32 %v9609_v29, %v4157_v4  ;;  %v13640_v44 = vadd.f32 %v4316_v60, %v13351_v59  ;;  %v4401_v46 = vsel %vm110_vm0, %v13635_v22, 0.0 }
0x112e   :  { %v4325_v35 = vpop.f32.mrf.mxu1 }
0x112f   :  { %v13625_v10 = vadd.f32 %v4331_v6, %v13369_v26  ;;  %v4398_v59 = vsel %vm110_vm0, %v13640_v44, 0.0 }
0x1130   :  { %v9612_v15 = vpop.f32.mrf.mxu1 }
0x1131   :  { %v4341_v45 = vadd.f32 %v9612_v15, %v4157_v4  ;;  %v4407_v26 = vsel %vm110_vm0, %v13625_v10, 0.0 }
0x1132   :  { %v4335_v39 = vpop.f32.mrf.mxu1 }
0x1133   :  { %v4336_v56 = vadd.f32 %v4335_v39, %v4157_v4  ;;  %v13615_v19 = vadd.f32 %v4341_v45, %v13383_v25 }
0x1134   :  { %v9615_v37 = vpop.f32.mrf.mxu1 }
0x1135   :  { %v4351_v9 = vadd.f32 %v9615_v37, %v4157_v4  ;;  %v13620_v17 = vadd.f32 %v4336_v56, %v13379_v2  ;;  %v4413_v25 = vsel %vm110_vm0, %v13615_v19, 0.0 }
0x1136   :  { %v4345_v5 = vpop.f32.mrf.mxu1 }
0x1137   :  { %v4346_v33 = vadd.f32 %v4345_v5, %v4157_v4  ;;  %v13602_v24 = vadd.f32 %v4351_v9, %v13397_v52  ;;  %v4410_v2 = vsel %vm110_vm0, %v13620_v17, 0.0 }
0x1138   :  { %v9618_v31 = vpop.f32.mrf.mxu1 }
0x1139   :  { %v4361_v42 = vadd.f32 %v9618_v31, %v4157_v4  ;;  %v13610_v34 = vadd.f32 %v4346_v33, %v13393_v40  ;;  %v4419_v52 = vsel %vm110_vm0, %v13602_v24, 0.0 }
0x113a   :  { %v4355_v47 = vpop.f32.mrf.mxu1 }
0x113b   :  { %v13599_v18 = vadd.f32 %v4361_v42, %v13410_v49  ;;  %v4356_v30 = vadd.f32 %v4355_v47, %v4157_v4  ;;  %v4416_v40 = vsel %vm110_vm0, %v13610_v34, 0.0 }
0x113d   :  { %v13605_v0 = vadd.f32 %v4356_v30, %v13407_v20  ;;  %v4425_v1 = vsel %vm110_vm0, %v13599_v18, 0.0  ;;  %v4326_v20 = vadd.f32 %v4325_v35, %v4157_v4 }
0x113e   :  { %4426 = vadd.xlane.f32.xlu0 %v4425_v1 }
0x113f   :  { %v4422_v49 = vsel %vm110_vm0, %v13605_v0, 0.0  ;;  %v13630_v38 = vadd.f32 %v4326_v20, %v13365_v62 }
0x1140   :  { %4423 = vadd.xlane.f32.xlu1 %v4422_v49 }
0x1141   :  { %v4404_v62 = vsel %vm110_vm0, %v13630_v38, 0.0 }
0x1142   :  { %4420 = vadd.xlane.f32.xlu0 %v4419_v52 }
0x1144   :  { %4417 = vadd.xlane.f32.xlu1 %v4416_v40 }
0x1146   :  { %4414 = vadd.xlane.f32.xlu0 %v4413_v25 }
0x1148   :  { %4411 = vadd.xlane.f32.xlu1 %v4410_v2 }
0x114a   :  { %4408 = vadd.xlane.f32.xlu0 %v4407_v26 }
0x114c   :  { %4405 = vadd.xlane.f32.xlu1 %v4404_v62 }
0x114e   :  { %4402 = vadd.xlane.f32.xlu0 %v4401_v46 }
0x1150   :  { %4399 = vadd.xlane.f32.xlu1 %v4398_v59 }
0x1152   :  { %4396 = vadd.xlane.f32.xlu0 %v4395_v63 }
0x1154   :  { %4393 = vadd.xlane.f32.xlu1 %v4392_v21 }
0x1156   :  { %4390 = vadd.xlane.f32.xlu0 %v4389_v57 }
0x1158   :  { %4387 = vadd.xlane.f32.xlu1 %v4386_v55 }
0x115a   :  { %4384 = vadd.xlane.f32.xlu0 %v4383_v41 }
0x115c   :  { %4381 = vadd.xlane.f32.xlu1 %v4380_v54 }
0x11c7   :  { %v4427_v32 = vpop.xlane.xlu0 %4426 }
0x11c8   :  { %v4443_v48 = vmul.f32 0.03125, %v4427_v32 }
0x11c9   :  { %v4424_v29 = vpop.xlane.xlu1 %4423 }
0x11ca   :  { %v13681_v35 = vsub.f32 %v13599_v18, %v4443_v48  ;;  %v4442_v51 = vmul.f32 0.03125, %v4424_v29 }
0x11cb   :  { %v4421_v15 = vpop.xlane.xlu0 %4420 }
0x11cc   :  { %v13684_v39 = vsub.f32 %v13605_v0, %v4442_v51  ;;  %v4441_v50 = vmul.f32 0.03125, %v4421_v15  ;;  %v4475_v37 = vmul.f32 %v13681_v35, %v13681_v35 }
0x11cd   :  { %v4418_v5 = vpop.xlane.xlu1 %4417 }
0x11ce   :  { %v13689_v4 = vsub.f32 %v13602_v24, %v4441_v50  ;;  %v4440_v31 = vmul.f32 0.03125, %v4418_v5  ;;  %v4521_v9 = vsel %vm110_vm0, %v4475_v37, 0.0  ;;  %v4474_v42 = vmul.f32 %v13684_v39, %v13684_v39 }
0x11cf   :  { %4522 = vadd.xlane.f32.xlu0 %v4521_v9  ;;  %v4415_v47 = vpop.xlane.xlu0 %4414 }
0x11d0   :  { %v13695_v33 = vsub.f32 %v13610_v34, %v4440_v31  ;;  %v4439_v18 = vmul.f32 0.03125, %v4415_v47  ;;  %v4518_v30 = vsel %vm110_vm0, %v4474_v42, 0.0  ;;  %v4473_v45 = vmul.f32 %v13689_v4, %v13689_v4 }
0x11d1   :  { %4519 = vadd.xlane.f32.xlu1 %v4518_v30  ;;  %v4412_v24 = vpop.xlane.xlu1 %4411 }
0x11d2   :  { %v13701_v0 = vsub.f32 %v13615_v19, %v4439_v18  ;;  %v4438_v1 = vmul.f32 0.03125, %v4412_v24  ;;  %v4515_v56 = vsel %vm110_vm0, %v4473_v45, 0.0  ;;  %v4472_v49 = vmul.f32 %v13695_v33, %v13695_v33 }
0x11d3   :  { %4516 = vadd.xlane.f32.xlu0 %v4515_v56  ;;  %v4409_v34 = vpop.xlane.xlu0 %4408 }
0x11d4   :  { %v13707_v6 = vsub.f32 %v13620_v17, %v4438_v1  ;;  %v4437_v52 = vmul.f32 0.03125, %v4409_v34  ;;  %v4512_v20 = vsel %vm110_vm0, %v4472_v49, 0.0  ;;  %v4471_v40 = vmul.f32 %v13701_v0, %v13701_v0 }
0x11d5   :  { %4513 = vadd.xlane.f32.xlu1 %v4512_v20  ;;  %v4406_v19 = vpop.xlane.xlu1 %4405  ;;  %v100_v20 = vld [vmem:[%s15734_s2 + $0x80] sm:$0xff] }
0x11d6   :  { %v13713_v36 = vsub.f32 %v13625_v10, %v4437_v52  ;;  %v4436_v25 = vmul.f32 0.03125, %v4406_v19  ;;  %v4509_v60 = vsel %vm110_vm0, %v4471_v40, 0.0  ;;  %v4470_v2 = vmul.f32 %v13707_v6, %v13707_v6  ;;  %v106_v52 = vld [vmem:[%s15734_s2 + $0xb0] sm:$0xff]  ;;  %v88_v19 = vld [vmem:[%s15734_s2 + $0x20] sm:$0xff] }
0x11d7   :  { %4510 = vadd.xlane.f32.xlu0 %v4509_v60  ;;  %v4403_v17 = vpop.xlane.xlu0 %4402  ;;  %9675 = vmatprep.subr.mxu1 %v106_v52  ;;  %v94_v40 = vld [vmem:[%s15734_s2 + $0x50] sm:$0xff] }
0x11d8   :  { %v13719_v43 = vsub.f32 %v13630_v38, %v4436_v25  ;;  %v4435_v26 = vmul.f32 0.03125, %v4403_v17  ;;  %v4506_v3 = vsel %vm110_vm0, %v4470_v2, 0.0  ;;  %v4469_v62 = vmul.f32 %v13713_v36, %v13713_v36  ;;  %9676 = vmatpush3.msra.mxu1 %v106_v52 }
0x11d9   :  { %4507 = vadd.xlane.f32.xlu1 %v4506_v3  ;;  %v4400_v10 = vpop.xlane.xlu1 %4399  ;;  %9677 = vmatprep.subr.mxu1 %v100_v20 }
0x11da   :  { %v13725_v27 = vsub.f32 %v13635_v22, %v4435_v26  ;;  %v4434_v46 = vmul.f32 0.03125, %v4400_v10  ;;  %v4503_v58 = vsel %vm110_vm0, %v4469_v62, 0.0  ;;  %v4468_v59 = vmul.f32 %v13719_v43, %v13719_v43  ;;  %9678 = vmatpush3.msra.mxu1 %v100_v20 }
0x11db   :  { %4504 = vadd.xlane.f32.xlu0 %v4503_v58  ;;  %v4397_v38 = vpop.xlane.xlu0 %4396  ;;  %9679 = vmatprep.subr.mxu1 %v94_v40 }
0x11dc   :  { %v13731_v61 = vsub.f32 %v13640_v44, %v4434_v46  ;;  %v4433_v63 = vmul.f32 0.03125, %v4397_v38  ;;  %v4500_v53 = vsel %vm110_vm0, %v4468_v59, 0.0  ;;  %v4467_v21 = vmul.f32 %v13725_v27, %v13725_v27  ;;  %9680 = vmatpush3.msra.mxu1 %v94_v40 }
0x11dd   :  { %4501 = vadd.xlane.f32.xlu1 %v4500_v53  ;;  %v4394_v22 = vpop.xlane.xlu1 %4393  ;;  %9681 = vmatprep.subr.mxu1 %v88_v19 }
0x11de   :  { %v13737_v57 = vsub.f32 %v13645_v16, %v4433_v63  ;;  %v4432_v55 = vmul.f32 0.03125, %v4394_v22  ;;  %v4497_v41 = vsel %vm110_vm0, %v4467_v21, 0.0  ;;  %v4466_v54 = vmul.f32 %v13731_v61, %v13731_v61  ;;  %9682 = vmatpush3.msra.mxu1 %v88_v19 }
0x11df   :  { %4498 = vadd.xlane.f32.xlu0 %v4497_v41  ;;  %v4391_v44 = vpop.xlane.xlu0 %4390 }
0x11e0   :  { %v13743_v32 = vsub.f32 %v13650_v14, %v4432_v55  ;;  %v4431_v48 = vmul.f32 0.03125, %v4391_v44  ;;  %v4494_v29 = vsel %vm110_vm0, %v4466_v54, 0.0  ;;  %v4465_v51 = vmul.f32 %v13737_v57, %v13737_v57 }
0x11e1   :  { %4495 = vadd.xlane.f32.xlu1 %v4494_v29  ;;  %v4388_v16 = vpop.xlane.xlu1 %4387 }
0x11e2   :  { %v13749_v15 = vsub.f32 %v13656_v23, %v4431_v48  ;;  %v4430_v50 = vmul.f32 0.03125, %v4388_v16  ;;  %v4491_v37 = vsel %vm110_vm0, %v4465_v51, 0.0  ;;  %v4464_v5 = vmul.f32 %v13743_v32, %v13743_v32 }
0x11e3   :  { %4492 = vadd.xlane.f32.xlu0 %v4491_v37  ;;  %v4385_v14 = vpop.xlane.xlu0 %4384  ;;  %v4590_v48 = vsub.s32 4, %v15915_v12  ;;  %v4610_v51 = vsub.s32 5, %v15915_v12 }
0x11e4   :  { %v13755_v31 = vsub.f32 %v13662_v28, %v4430_v50  ;;  %v4429_v9 = vmul.f32 0.03125, %v4385_v14  ;;  %v4488_v42 = vsel %vm110_vm0, %v4464_v5, 0.0  ;;  %v4463_v47 = vmul.f32 %v13749_v15, %v13749_v15 }
0x11e5   :  { %4489 = vadd.xlane.f32.xlu1 %v4488_v42  ;;  %v4382_v23 = vpop.xlane.xlu1 %4381 }
0x11e6   :  { %v13761_v18 = vsub.f32 %v13667_v13, %v4429_v9  ;;  %v4428_v30 = vmul.f32 0.03125, %v4382_v23  ;;  %v4485_v45 = vsel %vm110_vm0, %v4463_v47, 0.0  ;;  %v4462_v24 = vmul.f32 %v13755_v31, %v13755_v31 }
0x11e7   :  { %4486 = vadd.xlane.f32.xlu0 %v4485_v45  ;;  %v13794_v9 = vrot.slane %v13595_v11, %v4590_v48  ;;  %v13797_v23 = vrot.slane %v13595_v11, %v4610_v51 }
0x11e8   :  { %v13767_v28 = vsub.f32 %v13672_v7, %v4428_v30  ;;  %v4482_v1 = vsel %vm110_vm0, %v4462_v24, 0.0  ;;  %v4461_v56 = vmul.f32 %v13761_v18, %v13761_v18  ;;  %v8007_v7 = vld [vmem:[%s15733_s1 + $0x100] sm:$0xff] }
0x11e9   :  { %4483 = vadd.xlane.f32.xlu1 %v4482_v1  ;;  %9651 = vmatprep.mubr.f32.mxu0 %v8007_v7 }
0x11ea   :  { %v4479_v49 = vsel %vm110_vm0, %v4461_v56, 0.0  ;;  %v4460_v13 = vmul.f32 %v13767_v28, %v13767_v28 }
0x11eb   :  { %4480 = vadd.xlane.f32.xlu0 %v4479_v49 }
0x11ec   :  { %v4476_v34 = vsel %vm110_vm0, %v4460_v13, 0.0 }
0x11ed   :  { %4477 = vadd.xlane.f32.xlu1 %v4476_v34 }
0x1258   :  { %v4523_v25 = vpop.xlane.xlu0 %4522 }
0x1259   :  { %v4539_v60 = vmul.f32 0.03125, %v4523_v25 }
0x125a   :  { %v4520_v2 = vpop.xlane.xlu1 %4519 }
0x125b   :  { %v4555_v17 = vadd.f32 1e-12, %v4539_v60  ;;  %v4538_v26 = vmul.f32 0.03125, %v4520_v2 }
0x125c   :  { %v4517_v3 = vpop.xlane.xlu0 %4516 }
0x125d   :  { %10587 = vrsqrt.f32 %v4555_v17  ;;  %v4554_v62 = vadd.f32 1e-12, %v4538_v26  ;;  %v4537_v10 = vmul.f32 0.03125, %v4517_v3 }
0x125e   :  { %v4514_v46 = vpop.xlane.xlu1 %4513 }
0x125f   :  { %10589 = vrsqrt.f32 %v4554_v62  ;;  %v4553_v58 = vadd.f32 1e-12, %v4537_v10  ;;  %v4536_v59 = vmul.f32 0.03125, %v4514_v46 }
0x1260   :  { %v4511_v38 = vpop.xlane.xlu0 %4510 }
0x1261   :  { %10591 = vrsqrt.f32 %v4553_v58  ;;  %v4552_v63 = vadd.f32 1e-12, %v4536_v59  ;;  %v4535_v53 = vmul.f32 0.03125, %v4511_v38 }
0x1262   :  { %v4508_v21 = vpop.xlane.xlu1 %4507 }
0x1263   :  { %10593 = vrsqrt.f32 %v4552_v63  ;;  %v4551_v22 = vadd.f32 1e-12, %v4535_v53  ;;  %v4534_v55 = vmul.f32 0.03125, %v4508_v21 }
0x1264   :  { %v4505_v41 = vpop.xlane.xlu0 %4504 }
0x1265   :  { %10595 = vrsqrt.f32 %v4551_v22  ;;  %v4550_v54 = vadd.f32 1e-12, %v4534_v55  ;;  %v4533_v44 = vmul.f32 0.03125, %v4505_v41 }
0x1266   :  { %v4502_v29 = vpop.xlane.xlu1 %4501 }
0x1267   :  { %10597 = vrsqrt.f32 %v4550_v54  ;;  %v4549_v16 = vadd.f32 1e-12, %v4533_v44  ;;  %v4532_v50 = vmul.f32 0.03125, %v4502_v29 }
0x1268   :  { %v4499_v37 = vpop.xlane.xlu0 %4498 }
0x1269   :  { %10599 = vrsqrt.f32 %v4549_v16  ;;  %v4548_v5 = vadd.f32 1e-12, %v4532_v50  ;;  %v4531_v14 = vmul.f32 0.03125, %v4499_v37 }
0x126a   :  { %v10588_v42 = vpop.eup %10587  ;;  %v4496_v47 = vpop.xlane.xlu1 %4495 }
0x126b   :  { %10601 = vrsqrt.f32 %v4548_v5  ;;  %v4547_v30 = vadd.f32 1e-12, %v4531_v14  ;;  %v4530_v45 = vmul.f32 0.03125, %v4496_v47  ;;  %v4587_v24 = vmul.f32 %v10588_v42, %v13681_v35 }
0x126c   :  { %v10590_v1 = vpop.eup %10589  ;;  %v4493_v56 = vpop.xlane.xlu0 %4492 }
0x126d   :  { %10603 = vrsqrt.f32 %v4547_v30  ;;  %v4546_v49 = vadd.f32 1e-12, %v4530_v45  ;;  %v4529_v13 = vmul.f32 0.03125, %v4493_v56  ;;  %v4607_v34 = vmul.f32 %v13794_v9, %v4587_v24 }
0x126e   :  { %v10592_v7 = vpop.eup %10591  ;;  %v4490_v52 = vpop.xlane.xlu1 %4489  ;;  %v4586_v20 = vmul.f32 %v10590_v1, %v13684_v39 }
0x126f   :  { %10605 = vrsqrt.f32 %v4546_v49  ;;  %v4545_v40 = vadd.f32 1e-12, %v4529_v13  ;;  %v4528_v11 = vmul.f32 0.03125, %v4490_v52  ;;  %v4627_v19 = vadd.f32 %v13797_v23, %v4607_v34 }
0x1270   :  { %v10594_v25 = vpop.eup %10593  ;;  %v4487_v60 = vpop.xlane.xlu0 %4486  ;;  %v4606_v35 = vmul.f32 %v13794_v9, %v4586_v20  ;;  %v4585_v2 = vmul.f32 %v10592_v7, %v13689_v4 }
0x1271   :  { %10607 = vrsqrt.f32 %v4545_v40  ;;  %v4544_v17 = vadd.f32 1e-12, %v4528_v11  ;;  %v4527_v26 = vmul.f32 0.03125, %v4487_v60  ;;  %9619 = vmatprep.subr.mxu0 %v4627_v19  ;;  %v4584_v3 = vmul.f32 %v10594_v25, %v13695_v33 }
0x1272   :  { %v10596_v62 = vpop.eup %10595  ;;  %9620 = vmatpush3.msra.mxu0 %v4627_v19  ;;  %v4484_v39 = vpop.xlane.xlu1 %4483  ;;  %v4626_v10 = vadd.f32 %v13797_v23, %v4606_v35  ;;  %v4605_v46 = vmul.f32 %v13794_v9, %v4585_v2 }
0x1273   :  { %10609 = vrsqrt.f32 %v4544_v17  ;;  %v4543_v58 = vadd.f32 1e-12, %v4527_v26  ;;  %v4526_v59 = vmul.f32 0.03125, %v4484_v39  ;;  %v4604_v38 = vmul.f32 %v13794_v9, %v4584_v3 }
0x1274   :  { %v10598_v63 = vpop.eup %10597  ;;  %9621 = vmatprep.subr.mxu0 %v4626_v10  ;;  %v4481_v4 = vpop.xlane.xlu0 %4480  ;;  %v4625_v53 = vadd.f32 %v13797_v23, %v4605_v46  ;;  %v4583_v21 = vmul.f32 %v10596_v62, %v13701_v0 }
0x1275   :  { %10611 = vrsqrt.f32 %v4543_v58  ;;  %v4542_v33 = vadd.f32 1e-12, %v4526_v59  ;;  %v4525_v22 = vmul.f32 0.03125, %v4481_v4  ;;  %9622 = vmatpush3.msra.mxu0 %v4626_v10  ;;  %v4624_v55 = vadd.f32 %v13797_v23, %v4604_v38  ;;  %v8012_v59 = vld [vmem:[%s15733_s1 + $0x128] sm:$0xff]  ;;  %v8013_v38 = vld [vmem:[%s15733_s1 + $0x130] sm:$0xff]  ;;  %v8015_v4 = vld [vmem:[%s15733_s1 + $0x140] sm:$0xff] }
0x1276   :  { %v10600_v41 = vpop.eup %10599  ;;  %9623 = vmatprep.subr.mxu0 %v4625_v53  ;;  %v4478_v54 = vpop.xlane.xlu1 %4477  ;;  %v4603_v44 = vmul.f32 %v13794_v9, %v4583_v21  ;;  %v4582_v48 = vmul.f32 %v10598_v63, %v13707_v6  ;;  %v8014_v63 = vld [vmem:[%s15733_s1 + $0x138] sm:$0xff]  ;;  %v8017_v21 = vld [vmem:[%s15733_s1 + $0x150] sm:$0xff] }
0x1277   :  { %10613 = vrsqrt.f32 %v4542_v33  ;;  %v4541_v29 = vadd.f32 1e-12, %v4525_v22  ;;  %9624 = vmatpush3.msra.mxu0 %v4625_v53  ;;  %v4524_v51 = vmul.f32 0.03125, %v4478_v54  ;;  %v4581_v16 = vmul.f32 %v10600_v41, %v13713_v36  ;;  %v8016_v53 = vld [vmem:[%s15733_s1 + $0x148] sm:$0xff]  ;;  %v8018_v33 = vld [vmem:[%s15733_s1 + $0x158] sm:$0xff]  ;;  %v8019_v22 = vld [vmem:[%s15733_s1 + $0x160] sm:$0xff] }
0x1278   :  { %v10602_v0 = vpop.eup %10601  ;;  %9625 = vmatprep.subr.mxu0 %v4624_v55  ;;  %v4623_v50 = vadd.f32 %v13797_v23, %v4603_v44  ;;  %v4602_v37 = vmul.f32 %v13794_v9, %v4582_v48  ;;  %v8021_v41 = vld [vmem:[%s15733_s1 + $0x170] sm:$0xff]  ;;  %v8022_v54 = vld [vmem:[%s15733_s1 + $0x178] sm:$0xff] }
0x1279   :  { %10615 = vrsqrt.f32 %v4541_v29  ;;  %v4540_v5 = vadd.f32 1e-12, %v4524_v51  ;;  %9626 = vmatpush3.msra.mxu0 %v4624_v55  ;;  %v4601_v14 = vmul.f32 %v13794_v9, %v4581_v16  ;;  %v4580_v42 = vmul.f32 %v10602_v0, %v13719_v43  ;;  %v8020_v55 = vld [vmem:[%s15733_s1 + $0x168] sm:$0xff] }
0x127a   :  { %v10604_v6 = vpop.eup %10603  ;;  %9627 = vmatprep.subr.mxu0 %v4623_v50  ;;  %v4622_v47 = vadd.f32 %v13797_v23, %v4602_v37 }
0x127b   :  { %10617 = vrsqrt.f32 %v4540_v5  ;;  %9628 = vmatpush3.msra.mxu0 %v4623_v50  ;;  %v4621_v36 = vadd.f32 %v13797_v23, %v4601_v14  ;;  %v4600_v30 = vmul.f32 %v13794_v9, %v4580_v42  ;;  %v4579_v45 = vmul.f32 %v10604_v6, %v13725_v27 }
0x127c   :  { %v10606_v24 = vpop.eup %10605  ;;  %9629 = vmatprep.subr.mxu0 %v4622_v47 }
0x127d   :  { %9630 = vmatpush3.msra.mxu0 %v4622_v47  ;;  %v4620_v1 = vadd.f32 %v13797_v23, %v4600_v30  ;;  %v4599_v56 = vmul.f32 %v13794_v9, %v4579_v45  ;;  %v4578_v43 = vmul.f32 %v10606_v24, %v13731_v61 }
0x127e   :  { %v10608_v49 = vpop.eup %10607  ;;  %9631 = vmatprep.subr.mxu0 %v4621_v36 }
0x127f   :  { %9632 = vmatpush3.msra.mxu0 %v4621_v36  ;;  %v4619_v13 = vadd.f32 %v13797_v23, %v4599_v56  ;;  %v4598_v34 = vmul.f32 %v13794_v9, %v4578_v43  ;;  %v4577_v7 = vmul.f32 %v10608_v49, %v13737_v57 }
0x1280   :  { %v10610_v52 = vpop.eup %10609  ;;  %9633 = vmatprep.subr.mxu0 %v4620_v1 }
0x1281   :  { %9634 = vmatpush3.msra.mxu0 %v4620_v1  ;;  %v4618_v27 = vadd.f32 %v13797_v23, %v4598_v34  ;;  %v4597_v20 = vmul.f32 %v13794_v9, %v4577_v7  ;;  %v4576_v40 = vmul.f32 %v10610_v52, %v13743_v32  ;;  %v10894_v1 = vld [vmem:[%s15735_s3 + $0x8] sm:$0xf] }
0x1282   :  { %v10612_v11 = vpop.eup %10611  ;;  %9635 = vmatprep.subr.mxu0 %v4619_v13  ;;  %v4776_v56 = vrot.slane %v10894_v1, %v3775_v8 }
0x1283   :  { %9636 = vmatpush3.msra.mxu0 %v4619_v13  ;;  %v4617_v61 = vadd.f32 %v13797_v23, %v4597_v20  ;;  %v4596_v19 = vmul.f32 %v13794_v9, %v4576_v40  ;;  %v4575_v25 = vmul.f32 %v10612_v11, %v13749_v15 }
0x1284   :  { %v10614_v60 = vpop.eup %10613  ;;  %9637 = vmatprep.subr.mxu0 %v4618_v27 }
0x1285   :  { %9638 = vmatpush3.msra.mxu0 %v4618_v27  ;;  %v4616_v57 = vadd.f32 %v13797_v23, %v4596_v19  ;;  %v4595_v35 = vmul.f32 %v13794_v9, %v4575_v25  ;;  %v4574_v2 = vmul.f32 %v10614_v60, %v13755_v31 }
0x1286   :  { %v10616_v17 = vpop.eup %10615  ;;  %9639 = vmatprep.subr.mxu0 %v4617_v61 }
0x1287   :  { %9640 = vmatpush3.msra.mxu0 %v4617_v61  ;;  %v4615_v32 = vadd.f32 %v13797_v23, %v4595_v35  ;;  %v4594_v26 = vmul.f32 %v13794_v9, %v4574_v2  ;;  %v4573_v3 = vmul.f32 %v10616_v17, %v13761_v18  ;;  %v8008_v18 = vld [vmem:[%s15733_s1 + $0x108] sm:$0xff] }
0x1288   :  { %v10618_v62 = vpop.eup %10617  ;;  %9641 = vmatprep.subr.mxu0 %v4616_v57 }
0x1289   :  { %9642 = vmatpush3.msra.mxu0 %v4616_v57  ;;  %v4614_v15 = vadd.f32 %v13797_v23, %v4594_v26  ;;  %v4593_v39 = vmul.f32 %v13794_v9, %v4573_v3  ;;  %v4572_v10 = vmul.f32 %v10618_v62, %v13767_v28  ;;  %v8009_v28 = vld [vmem:[%s15733_s1 + $0x110] sm:$0xff] }
0x128a   :  { %9643 = vmatprep.subr.mxu0 %v4615_v32 }
0x128b   :  { %9644 = vmatpush3.msra.mxu0 %v4615_v32  ;;  %v4613_v31 = vadd.f32 %v13797_v23, %v4593_v39  ;;  %v4592_v46 = vmul.f32 %v13794_v9, %v4572_v10  ;;  %v8010_v9 = vld [vmem:[%s15733_s1 + $0x118] sm:$0xff] }
0x128c   :  { %9645 = vmatprep.subr.mxu0 %v4614_v15 }
0x128d   :  { %9646 = vmatpush3.msra.mxu0 %v4614_v15  ;;  %v4612_v58 = vadd.f32 %v13797_v23, %v4592_v46  ;;  %v8011_v23 = vld [vmem:[%s15733_s1 + $0x120] sm:$0xff] }
0x128e   :  { %9647 = vmatprep.subr.mxu0 %v4613_v31 }
0x128f   :  { %9648 = vmatpush3.msra.mxu0 %v4613_v31 }
0x1290   :  { %9649 = vmatprep.subr.mxu0 %v4612_v58 }
0x1291   :  { %9650 = vmatpush3.msra.mxu0 %v4612_v58 }
0x1292   :  { %9652 = vmatmul.mubr.f32.vlgmr.msra.gmra.mxu0 %v8008_v18 }
0x1293   :  { %9654 = vmatprep.mubr.f32.mxu0 %v8009_v28 }
0x1296   :  { %9655 = vmatmul.mubr.f32.gmra.mxu0 %v8010_v9 }
0x1297   :  { %9657 = vmatprep.mubr.f32.mxu0 %v8011_v23 }
0x129a   :  { %9658 = vmatmul.mubr.f32.gmra.mxu0 %v8012_v59 }
0x129b   :  { %9660 = vmatprep.mubr.f32.mxu0 %v8013_v38 }
0x129e   :  { %9661 = vmatmul.mubr.f32.gmra.mxu0 %v8014_v63 }
0x129f   :  { %9663 = vmatprep.mubr.f32.mxu0 %v8015_v4 }
0x12a2   :  { %9664 = vmatmul.mubr.f32.gmra.mxu0 %v8016_v53 }
0x12a3   :  { %9666 = vmatprep.mubr.f32.mxu0 %v8017_v21 }
0x12a6   :  { %9667 = vmatmul.mubr.f32.gmra.mxu0 %v8018_v33 }
0x12a7   :  { %9669 = vmatprep.mubr.f32.mxu0 %v8019_v22 }
0x12aa   :  { %9670 = vmatmul.mubr.f32.gmra.mxu0 %v8020_v55 }
0x12ab   :  { %9672 = vmatprep.mubr.f32.mxu0 %v8021_v41 }
0x12ae   :  { %9673 = vmatmul.mubr.f32.gmra.mxu0 %v8022_v54 }
0x1352   :  { %v9653_v44 = vpop.f32.mrf.mxu0 }
0x1354   :  { %v4694_v48 = vpop.f32.mrf.mxu0 }
0x1355   :  { %9683 = vmatprep.mubr.msk.f32.mxu1 %vm110_vm0, %v4694_v48 }
0x1356   :  { %v9656_v29 = vpop.f32.mrf.mxu0  ;;  %9684 = vmatmul.mubr.msk.f32.vlgmr.msra.gmra.mxu1 %vm110_vm0, %v9653_v44 }
0x1358   :  { %v4704_v51 = vpop.f32.mrf.mxu0 }
0x1359   :  { %9686 = vmatprep.mubr.msk.f32.mxu1 %vm110_vm0, %v4704_v51 }
0x135a   :  { %v9659_v16 = vpop.f32.mrf.mxu0  ;;  %9687 = vmatmul.mubr.msk.f32.gmra.mxu1 %vm110_vm0, %v9656_v29 }
0x135c   :  { %v4714_v0 = vpop.f32.mrf.mxu0 }
0x135d   :  { %9689 = vmatprep.mubr.msk.f32.mxu1 %vm110_vm0, %v4714_v0 }
0x135e   :  { %v9662_v50 = vpop.f32.mrf.mxu0  ;;  %9690 = vmatmul.mubr.msk.f32.gmra.mxu1 %vm110_vm0, %v9659_v16 }
0x1360   :  { %v4724_v37 = vpop.f32.mrf.mxu0 }
0x1361   :  { %9692 = vmatprep.mubr.msk.f32.mxu1 %vm110_vm0, %v4724_v37 }
0x1362   :  { %v9665_v5 = vpop.f32.mrf.mxu0  ;;  %9693 = vmatmul.mubr.msk.f32.gmra.mxu1 %vm110_vm0, %v9662_v50 }
0x1364   :  { %v4734_v14 = vpop.f32.mrf.mxu0 }
0x1365   :  { %9695 = vmatprep.mubr.msk.f32.mxu1 %vm110_vm0, %v4734_v14 }
0x1366   :  { %v9668_v42 = vpop.f32.mrf.mxu0  ;;  %9696 = vmatmul.mubr.msk.f32.gmra.mxu1 %vm110_vm0, %v9665_v5 }
0x1368   :  { %v4744_v6 = vpop.f32.mrf.mxu0 }
0x1369   :  { %9698 = vmatprep.mubr.msk.f32.mxu1 %vm110_vm0, %v4744_v6 }
0x136a   :  { %v9671_v47 = vpop.f32.mrf.mxu0  ;;  %9699 = vmatmul.mubr.msk.f32.gmra.mxu1 %vm110_vm0, %v9668_v42 }
0x136c   :  { %v4754_v36 = vpop.f32.mrf.mxu0 }
0x136d   :  { %9701 = vmatprep.mubr.msk.f32.mxu1 %vm110_vm0, %v4754_v36 }
0x136e   :  { %v9674_v30 = vpop.f32.mrf.mxu0  ;;  %9702 = vmatmul.mubr.msk.f32.gmra.mxu1 %vm110_vm0, %v9671_v47 }
0x1370   :  { %v4764_v45 = vpop.f32.mrf.mxu0 }
0x1371   :  { %9704 = vmatprep.mubr.msk.f32.mxu1 %vm110_vm0, %v4764_v45 }
0x1372   :  { %9705 = vmatmul.mubr.msk.f32.gmra.mxu1 %vm110_vm0, %v9674_v30 }
0x1416   :  { %v9685_v24 = vpop.f32.mrf.mxu1 }
0x1417   :  { %v13973_v28 = vadd.f32 %v9685_v24, %v4776_v56 }
0x1418   :  { %v4891_v43 = vpop.f32.mrf.mxu1 }
0x1419   :  { %v13913_v49 = vadd.f32 %v4891_v43, %v4776_v56 }
0x141a   :  { %v9688_v13 = vpop.f32.mrf.mxu1 }
0x141b   :  { %9739 = vmatprep.mubr.msk.f32.mxu0 %vm605_vm1, %v13913_v49  ;;  %v13967_v18 = vadd.f32 %v9688_v13, %v4776_v56 }
0x141c   :  { %v4901_v34 = vpop.f32.mrf.mxu1 }
0x141d   :  { %v13963_v58 = vadd.f32 %v4901_v34, %v4776_v56 }
0x141e   :  { %v9691_v7 = vpop.f32.mrf.mxu1 }
0x141f   :  { %v13959_v46 = vadd.f32 %v9691_v7, %v4776_v56 }
0x1420   :  { %v4911_v52 = vpop.f32.mrf.mxu1 }
0x1421   :  { %v13955_v31 = vadd.f32 %v4911_v52, %v4776_v56  ;;  %v14104_v52 = vld [vmem:[%s15733_s1 + $0x88] sm:$0xff] }
0x1422   :  { %v9694_v27 = vpop.f32.mrf.mxu1 }
0x1423   :  { %v13951_v10 = vadd.f32 %v9694_v27, %v4776_v56 }
0x1424   :  { %v4921_v20 = vpop.f32.mrf.mxu1 }
0x1425   :  { %v13947_v39 = vadd.f32 %v4921_v20, %v4776_v56 }
0x1426   :  { %v9697_v40 = vpop.f32.mrf.mxu1 }
0x1427   :  { %v13943_v15 = vadd.f32 %v9697_v40, %v4776_v56  ;;  %v14109_v40 = vld [vmem:[%s15733_s1 + $0x80] sm:$0xff] }
0x1428   :  { %v4931_v11 = vpop.f32.mrf.mxu1 }
0x1429   :  { %v13939_v62 = vadd.f32 %v4931_v11, %v4776_v56 }
0x142a   :  { %v9700_v61 = vpop.f32.mrf.mxu1 }
0x142b   :  { %v13935_v3 = vadd.f32 %v9700_v61, %v4776_v56 }
0x142c   :  { %v4941_v19 = vpop.f32.mrf.mxu1 }
0x142d   :  { %v13931_v26 = vadd.f32 %v4941_v19, %v4776_v56 }
0x142e   :  { %v9703_v25 = vpop.f32.mrf.mxu1 }
0x142f   :  { %v13927_v32 = vadd.f32 %v9703_v25, %v4776_v56 }
0x1430   :  { %v4951_v60 = vpop.f32.mrf.mxu1 }
0x1431   :  { %v13923_v17 = vadd.f32 %v4951_v60, %v4776_v56 }
0x1432   :  { %v9706_v57 = vpop.f32.mrf.mxu1 }
0x1433   :  { %v13917_v8 = vadd.f32 %v9706_v57, %v4776_v56 }
0x1434   :  { %v4961_v35 = vpop.f32.mrf.mxu1 }
0x1435   :  { %v13919_v2 = vadd.f32 %v4961_v35, %v4776_v56  ;;  %5016 = vrot.lane.b32.xlu0 %v13917_v8, %s10934_s6 }
0x1437   :  { %5014 = vrot.lane.b32.xlu1 %v13919_v2, %s10934_s6 }
0x1439   :  { %5010 = vrot.lane.b32.xlu0 %v13923_v17, %s10934_s6 }
0x143b   :  { %5012 = vrot.lane.b32.xlu1 %v13927_v32, %s10934_s6 }
0x143d   :  { %5006 = vrot.lane.b32.xlu0 %v13931_v26, %s10934_s6 }
0x143f   :  { %5008 = vrot.lane.b32.xlu1 %v13935_v3, %s10934_s6 }
0x1441   :  { %5002 = vrot.lane.b32.xlu0 %v13939_v62, %s10934_s6 }
0x1443   :  { %5004 = vrot.lane.b32.xlu1 %v13943_v15, %s10934_s6 }
0x1445   :  { %4998 = vrot.lane.b32.xlu0 %v13947_v39, %s10934_s6 }
0x1447   :  { %5000 = vrot.lane.b32.xlu1 %v13951_v10, %s10934_s6 }
0x1449   :  { %4994 = vrot.lane.b32.xlu0 %v13955_v31, %s10934_s6 }
0x144b   :  { %4996 = vrot.lane.b32.xlu1 %v13959_v46, %s10934_s6 }
0x144d   :  { %4990 = vrot.lane.b32.xlu0 %v13963_v58, %s10934_s6 }
0x144f   :  { %4992 = vrot.lane.b32.xlu1 %v13967_v18, %s10934_s6 }
0x1451   :  { %4986 = vrot.lane.b32.xlu0 %v13913_v49, %s10934_s6 }
0x1453   :  { %4988 = vrot.lane.b32.xlu1 %v13973_v28, %s10934_s6 }
0x1455   :  { %5433 = vrot.lane.b32.xlu0 %v13917_v8, %s10935_s7 }
0x1457   :  { %5427 = vrot.lane.b32.xlu1 %v13923_v17, %s10935_s7 }
0x1459   :  { %5429 = vrot.lane.b32.xlu0 %v13927_v32, %s10935_s7 }
0x145b   :  { %5423 = vrot.lane.b32.xlu1 %v13931_v26, %s10935_s7 }
0x145d   :  { %5425 = vrot.lane.b32.xlu0 %v13935_v3, %s10935_s7 }
0x145f   :  { %5421 = vrot.lane.b32.xlu1 %v13943_v15, %s10935_s7 }
0x1461   :  { %5419 = vrot.lane.b32.xlu0 %v13939_v62, %s10935_s7 }
0x1463   :  { %5417 = vrot.lane.b32.xlu1 %v13951_v10, %s10935_s7 }
0x1465   :  { %5415 = vrot.lane.b32.xlu0 %v13947_v39, %s10935_s7 }
0x1467   :  { %5413 = vrot.lane.b32.xlu1 %v13959_v46, %s10935_s7 }
0x1469   :  { %5411 = vrot.lane.b32.xlu0 %v13955_v31, %s10935_s7 }
0x146b   :  { %5409 = vrot.lane.b32.xlu1 %v13967_v18, %s10935_s7 }
0x146d   :  { %5407 = vrot.lane.b32.xlu0 %v13963_v58, %s10935_s7 }
0x146f   :  { %5405 = vrot.lane.b32.xlu1 %v13973_v28, %s10935_s7 }
0x1471   :  { %5403 = vrot.lane.b32.xlu0 %v13913_v49, %s10935_s7 }
0x1473   :  { %5658 = vrot.lane.b32.xlu1 %v13917_v8, %s10936_s8 }
0x1475   :  { %5654 = vrot.lane.b32.xlu0 %v13927_v32, %s10936_s8 }
0x1477   :  { %5652 = vrot.lane.b32.xlu1 %v13923_v17, %s10936_s8 }
0x1479   :  { %5650 = vrot.lane.b32.xlu0 %v13935_v3, %s10936_s8 }
0x147b   :  { %5648 = vrot.lane.b32.xlu1 %v13931_v26, %s10936_s8 }
0x147d   :  { %5646 = vrot.lane.b32.xlu0 %v13943_v15, %s10936_s8 }
0x147f   :  { %5644 = vrot.lane.b32.xlu1 %v13939_v62, %s10936_s8 }
0x1481   :  { %5642 = vrot.lane.b32.xlu0 %v13951_v10, %s10936_s8 }
0x1483   :  { %5431 = vrot.lane.b32.xlu1 %v13919_v2, %s10935_s7 }
0x1485   :  { %5656 = vrot.lane.b32.xlu0 %v13919_v2, %s10936_s8 }
0x14a7   :  { %v5017_v9 = vpop.permute.xlu0 %5016 }
0x14a8   :  { %9707 = vmatprep.subr.msk.mxu0 %vm605_vm1, %v5017_v9 }
0x14a9   :  { %9708 = vmatpush3.xpose.msk.msra.mxu0 %vm605_vm1, %v5017_v9  ;;  %v5015_v23 = vpop.permute.xlu1 %5014 }
0x14aa   :  { %9709 = vmatprep.subr.msk.mxu0 %vm605_vm1, %v5015_v23 }
0x14ab   :  { %v5011_v59 = vpop.permute.xlu0 %5010 }
0x14ad   :  { %9710 = vmatpush3.xpose.msk.msra.mxu0 %vm605_vm1, %v5015_v23  ;;  %v5013_v38 = vpop.permute.xlu1 %5012 }
0x14ae   :  { %9711 = vmatprep.subr.msk.mxu0 %vm605_vm1, %v5013_v38 }
0x14af   :  { %v5007_v63 = vpop.permute.xlu0 %5006 }
0x14b1   :  { %9712 = vmatpush3.xpose.msk.msra.mxu0 %vm605_vm1, %v5013_v38  ;;  %v5009_v4 = vpop.permute.xlu1 %5008 }
0x14b2   :  { %9713 = vmatprep.subr.msk.mxu0 %vm605_vm1, %v5011_v59 }
0x14b3   :  { %v5003_v53 = vpop.permute.xlu0 %5002 }
0x14b5   :  { %9714 = vmatpush3.xpose.msk.msra.mxu0 %vm605_vm1, %v5011_v59  ;;  %v5005_v21 = vpop.permute.xlu1 %5004 }
0x14b6   :  { %9715 = vmatprep.subr.msk.mxu0 %vm605_vm1, %v5009_v4 }
0x14b7   :  { %v4999_v33 = vpop.permute.xlu0 %4998 }
0x14b9   :  { %9716 = vmatpush3.xpose.msk.msra.mxu0 %vm605_vm1, %v5009_v4  ;;  %v5001_v22 = vpop.permute.xlu1 %5000 }
0x14ba   :  { %9717 = vmatprep.subr.msk.mxu0 %vm605_vm1, %v5007_v63 }
0x14bb   :  { %v4995_v55 = vpop.permute.xlu0 %4994 }
0x14bd   :  { %9718 = vmatpush3.xpose.msk.msra.mxu0 %vm605_vm1, %v5007_v63  ;;  %v4997_v41 = vpop.permute.xlu1 %4996 }
0x14be   :  { %9719 = vmatprep.subr.msk.mxu0 %vm605_vm1, %v5005_v21 }
0x14bf   :  { %v4991_v54 = vpop.permute.xlu0 %4990 }
0x14c1   :  { %9720 = vmatpush3.xpose.msk.msra.mxu0 %vm605_vm1, %v5005_v21  ;;  %v4993_v44 = vpop.permute.xlu1 %4992 }
0x14c2   :  { %9721 = vmatprep.subr.msk.mxu0 %vm605_vm1, %v5003_v53 }
0x14c3   :  { %v4987_v48 = vpop.permute.xlu0 %4986 }
0x14c5   :  { %9722 = vmatpush3.xpose.msk.msra.mxu0 %vm605_vm1, %v5003_v53  ;;  %v4989_v29 = vpop.permute.xlu1 %4988  ;;  %v14128_v53 = vld [vmem:[%s15733_s1 + $0x98] sm:$0xff] }
0x14c6   :  { %9723 = vmatprep.subr.msk.mxu0 %vm605_vm1, %v5001_v22 }
0x14c7   :  { %v5434_v51 = vpop.permute.xlu0 %5433 }
0x14c8   :  { %9763 = vmatprep.subr.mxu1 %v5434_v51 }
0x14c9   :  { %9724 = vmatpush3.xpose.msk.msra.mxu0 %vm605_vm1, %v5001_v22  ;;  %9764 = vmatpush3.msra.mxu1 %v5434_v51  ;;  %v5428_v16 = vpop.permute.xlu1 %5427 }
0x14ca   :  { %9725 = vmatprep.subr.msk.mxu0 %vm605_vm1, %v4999_v33 }
0x14cb   :  { %v5430_v36 = vpop.permute.xlu0 %5429 }
0x14cd   :  { %9726 = vmatpush3.xpose.msk.msra.mxu0 %vm605_vm1, %v4999_v33  ;;  %v5424_v0 = vpop.permute.xlu1 %5423  ;;  %v14133_v33 = vld [vmem:[%s15733_s1 + $0x90] sm:$0xff] }
0x14ce   :  { %9727 = vmatprep.subr.msk.mxu0 %vm605_vm1, %v4997_v41  ;;  %15932 = vst [vmem:[#allocation54_spill] sm:$0xff] %v14133_v33 }
0x14cf   :  { %v5426_v24 = vpop.permute.xlu0 %5425 }
0x14d1   :  { %9728 = vmatpush3.xpose.msk.msra.mxu0 %vm605_vm1, %v4997_v41  ;;  %v5422_v50 = vpop.permute.xlu1 %5421 }
0x14d2   :  { %9729 = vmatprep.subr.msk.mxu0 %vm605_vm1, %v4995_v55 }
0x14d3   :  { %v5420_v56 = vpop.permute.xlu0 %5419 }
0x14d5   :  { %9730 = vmatpush3.xpose.msk.msra.mxu0 %vm605_vm1, %v4995_v55  ;;  %v5418_v37 = vpop.permute.xlu1 %5417 }
0x14d6   :  { %9731 = vmatprep.subr.msk.mxu0 %vm605_vm1, %v4993_v44 }
0x14d7   :  { %v5416_v43 = vpop.permute.xlu0 %5415 }
0x14d9   :  { %9732 = vmatpush3.xpose.msk.msra.mxu0 %vm605_vm1, %v4993_v44  ;;  %v5414_v5 = vpop.permute.xlu1 %5413 }
0x14da   :  { %9733 = vmatprep.subr.msk.mxu0 %vm605_vm1, %v4991_v54 }
0x14db   :  { %v5412_v13 = vpop.permute.xlu0 %5411 }
0x14dd   :  { %9734 = vmatpush3.xpose.msk.msra.mxu0 %vm605_vm1, %v4991_v54  ;;  %v5410_v14 = vpop.permute.xlu1 %5409  ;;  %v14141_v54 = vld [vmem:[%s15733_s1 + $0xa8] sm:$0xff] }
0x14de   :  { %9735 = vmatprep.subr.msk.mxu0 %vm605_vm1, %v4989_v29  ;;  %15933 = vst [vmem:[#allocation55_spill] sm:$0xff] %v14141_v54 }
0x14df   :  { %v5408_v34 = vpop.permute.xlu0 %5407 }
0x14e1   :  { %9736 = vmatpush3.xpose.msk.msra.mxu0 %vm605_vm1, %v4989_v29  ;;  %v5406_v42 = vpop.permute.xlu1 %5405  ;;  %v14150_v29 = vld [vmem:[%s15733_s1 + $0xa0] sm:$0xff] }
0x14e2   :  { %9737 = vmatprep.subr.msk.mxu0 %vm605_vm1, %v4987_v48  ;;  %15934 = vst [vmem:[#allocation56_spill] sm:$0xff] %v14150_v29 }
0x14e3   :  { %v5404_v7 = vpop.permute.xlu0 %5403 }
0x14e5   :  { %9738 = vmatpush3.xpose.msk.msra.mxu0 %vm605_vm1, %v4987_v48  ;;  %v14061_v6 = vpop.permute.xlu1 %5658 }
0x14e8   :  { %9740 = vmatmul.mubr.msk.f32.vlgmr.msra.gmra.mxu0 %vm605_vm1, %v13973_v28 }
0x14e9   :  { %9742 = vmatprep.mubr.msk.f32.mxu0 %vm605_vm1, %v13963_v58  ;;  %v14067_v47 = vpop.permute.xlu1 %5652 }
0x14ec   :  { %9743 = vmatmul.mubr.msk.f32.gmra.mxu0 %vm605_vm1, %v13967_v18 }
0x14ed   :  { %9745 = vmatprep.mubr.msk.f32.mxu0 %vm605_vm1, %v13955_v31  ;;  %v14073_v30 = vpop.permute.xlu1 %5648 }
0x14f0   :  { %9746 = vmatmul.mubr.msk.f32.gmra.mxu0 %vm605_vm1, %v13959_v46 }
0x14f1   :  { %9748 = vmatprep.mubr.msk.f32.mxu0 %vm605_vm1, %v13947_v39  ;;  %v14079_v45 = vpop.permute.xlu1 %5644 }
0x14f4   :  { %9749 = vmatmul.mubr.msk.f32.gmra.mxu0 %vm605_vm1, %v13951_v10 }
0x14f5   :  { %9751 = vmatprep.mubr.msk.f32.mxu0 %vm605_vm1, %v13939_v62  ;;  %v5432_v1 = vpop.permute.xlu1 %5431 }
0x14f6   :  { %9765 = vmatprep.subr.mxu1 %v5432_v1 }
0x14f7   :  { %9766 = vmatpush3.msra.mxu1 %v5432_v1  ;;  %v14177_v1 = vld [vmem:[%s15733_s1 + $0xc8] sm:$0xff] }
0x14f8   :  { %9752 = vmatmul.mubr.msk.f32.gmra.mxu0 %vm605_vm1, %v13943_v15  ;;  %9767 = vmatprep.subr.mxu1 %v5430_v36  ;;  %15937 = vst [vmem:[#allocation59_spill] sm:$0xff] %v14177_v1 }
0x14f9   :  { %9754 = vmatprep.mubr.msk.f32.mxu0 %vm605_vm1, %v13931_v26  ;;  %9768 = vmatpush3.msra.mxu1 %v5430_v36 }
0x14fa   :  { %9769 = vmatprep.subr.mxu1 %v5428_v16 }
0x14fb   :  { %9770 = vmatpush3.msra.mxu1 %v5428_v16 }
0x14fc   :  { %9755 = vmatmul.mubr.msk.f32.gmra.mxu0 %vm605_vm1, %v13935_v3  ;;  %9771 = vmatprep.subr.mxu1 %v5426_v24 }
0x14fd   :  { %9757 = vmatprep.mubr.msk.f32.mxu0 %vm605_vm1, %v13923_v17  ;;  %9772 = vmatpush3.msra.mxu1 %v5426_v24 }
0x14fe   :  { %9773 = vmatprep.subr.mxu1 %v5424_v0 }
0x14ff   :  { %9774 = vmatpush3.msra.mxu1 %v5424_v0 }
0x1500   :  { %9758 = vmatmul.mubr.msk.f32.gmra.mxu0 %vm605_vm1, %v13927_v32  ;;  %9775 = vmatprep.subr.mxu1 %v5422_v50 }
0x1501   :  { %9760 = vmatprep.mubr.msk.f32.mxu0 %vm605_vm1, %v13919_v2  ;;  %9776 = vmatpush3.msra.mxu1 %v5422_v50  ;;  %v14159_v50 = vld [vmem:[%s15733_s1 + $0xb8] sm:$0xff] }
0x1502   :  { %9777 = vmatprep.subr.mxu1 %v5420_v56  ;;  %15935 = vst [vmem:[#allocation57_spill] sm:$0xff] %v14159_v50 }
0x1503   :  { %9778 = vmatpush3.msra.mxu1 %v5420_v56 }
0x1504   :  { %9761 = vmatmul.mubr.msk.f32.gmra.mxu0 %vm605_vm1, %v13917_v8  ;;  %9779 = vmatprep.subr.mxu1 %v5418_v37 }
0x1505   :  { %9780 = vmatpush3.msra.mxu1 %v5418_v37 }
0x1506   :  { %9781 = vmatprep.subr.mxu1 %v5416_v43 }
0x1507   :  { %9782 = vmatpush3.msra.mxu1 %v5416_v43 }
0x1508   :  { %9783 = vmatprep.subr.mxu1 %v5414_v5 }
0x1509   :  { %9784 = vmatpush3.msra.mxu1 %v5414_v5 }
0x150a   :  { %9785 = vmatprep.subr.mxu1 %v5412_v13 }
0x150b   :  { %9786 = vmatpush3.msra.mxu1 %v5412_v13  ;;  %v14186_v13 = vld [vmem:[%s15733_s1 + $0xc0] sm:$0xff] }
0x150c   :  { %9787 = vmatprep.subr.mxu1 %v5410_v14  ;;  %15938 = vst [vmem:[#allocation60_spill] sm:$0xff] %v14186_v13 }
0x150d   :  { %9788 = vmatpush3.msra.mxu1 %v5410_v14  ;;  %v14168_v14 = vld [vmem:[%s15733_s1 + $0xb0] sm:$0xff] }
0x150e   :  { %9789 = vmatprep.subr.mxu1 %v5408_v34  ;;  %15936 = vst [vmem:[#allocation58_spill] sm:$0xff] %v14168_v14 }
0x150f   :  { %9790 = vmatpush3.msra.mxu1 %v5408_v34 }
0x1510   :  { %9791 = vmatprep.subr.mxu1 %v5406_v42 }
0x1511   :  { %9792 = vmatpush3.msra.mxu1 %v5406_v42 }
0x1512   :  { %9793 = vmatprep.subr.mxu1 %v5404_v7 }
0x1513   :  { %9794 = vmatpush3.msra.mxu1 %v5404_v7 }
0x1514   :  { %9819 = vmatprep.subr.msk.mxu1 %vm605_vm1, %v14061_v6 }
0x15a8   :  { %v9741_v27 = vpop.f32.mrf.mxu0 }
0x15a9   :  { %v5228_v20 = vmul.f32 0.35355338, %v9741_v27 }
0x15aa   :  { %v5148_v11 = vpop.f32.mrf.mxu0 }
0x15ab   :  { %v14112_v61 = vadd.f32 %v14104_v52, %v5228_v20  ;;  %v5227_v19 = vmul.f32 0.35355338, %v5148_v11  ;;  %v14195_v20 = vld [vmem:[%s15733_s1 + $0xd8] sm:$0xff] }
0x15ac   :  { %v9744_v60 = vpop.f32.mrf.mxu0  ;;  %15939 = vst [vmem:[#allocation61_spill] sm:$0xff] %v14195_v20 }
0x15ad   :  { %v14115_v25 = vadd.f32 %v14109_v40, %v5227_v19  ;;  %5261 = vmax.xlane.f32.xlu0 %v14112_v61  ;;  %v5230_v4 = vmul.f32 0.35355338, %v9744_v60  ;;  %v14204_v60 = vld [vmem:[%s15733_s1 + $0xd0] sm:$0xff] }
0x15ae   :  { %v5158_v57 = vpop.f32.mrf.mxu0  ;;  %15940 = vst [vmem:[#allocation62_spill] sm:$0xff] %v14204_v60 }
0x15af   :  { %5259 = vmax.xlane.f32.xlu1 %v14115_v25  ;;  %v5229_v21 = vmul.f32 0.35355338, %v5158_v57  ;;  %v14136_v55 = vadd.f32 %v14128_v53, %v5230_v4 }
0x15b0   :  { %v9747_v35 = vpop.f32.mrf.mxu0 }
0x15b1   :  { %v5232_v41 = vmul.f32 0.35355338, %v9747_v35  ;;  %v14144_v44 = vadd.f32 %v14133_v33, %v5229_v21 }
0x15b2   :  { %v5168_v9 = vpop.f32.mrf.mxu0 }
0x15b3   :  { %v5231_v48 = vmul.f32 0.35355338, %v5168_v9  ;;  %v14153_v16 = vadd.f32 %v14141_v54, %v5232_v41  ;;  %v14231_v41 = vld [vmem:[%s15733_s1 + $0xf8] sm:$0xff] }
0x15b4   :  { %v9750_v23 = vpop.f32.mrf.mxu0  ;;  %15943 = vst [vmem:[#allocation65_spill] sm:$0xff] %v14231_v41 }
0x15b5   :  { %v5234_v0 = vmul.f32 0.35355338, %v9750_v23  ;;  %v14162_v37 = vadd.f32 %v14150_v29, %v5231_v48  ;;  %v14213_v23 = vld [vmem:[%s15733_s1 + $0xe8] sm:$0xff] }
0x15b6   :  { %v5178_v59 = vpop.f32.mrf.mxu0  ;;  %15941 = vst [vmem:[#allocation63_spill] sm:$0xff] %v14213_v23 }
0x15b7   :  { %v5233_v5 = vmul.f32 0.35355338, %v5178_v59  ;;  %v14171_v36 = vadd.f32 %v14159_v50, %v5234_v0  ;;  %v14240_v0 = vld [vmem:[%s15733_s1 + $0xf0] sm:$0xff] }
0x15b8   :  { %v9753_v38 = vpop.f32.mrf.mxu0  ;;  %15944 = vst [vmem:[#allocation66_spill] sm:$0xff] %v14240_v0 }
0x15b9   :  { %v5236_v24 = vmul.f32 0.35355338, %v9753_v38  ;;  %v14180_v56 = vadd.f32 %v14168_v14, %v5233_v5 }
0x15ba   :  { %v5188_v63 = vpop.f32.mrf.mxu0 }
0x15bb   :  { %v5235_v43 = vmul.f32 0.35355338, %v5188_v63  ;;  %v14189_v7 = vadd.f32 %v14177_v1, %v5236_v24  ;;  %v14222_v63 = vld [vmem:[%s15733_s1 + $0xe0] sm:$0xff]  ;;  %v14253_v24 = vpop.permute.xlu0 %5654 }
0x15bc   :  { %v9756_v22 = vpop.f32.mrf.mxu0  ;;  %15942 = vst [vmem:[#allocation64_spill] sm:$0xff] %v14222_v63 }
0x15bd   :  { %v5238_v27 = vmul.f32 0.35355338, %v9756_v22  ;;  %v14198_v11 = vadd.f32 %v14186_v13, %v5235_v43 }
0x15be   :  { %v5198_v51 = vpop.f32.mrf.mxu0 }
0x15bf   :  { %v5237_v19 = vmul.f32 0.35355338, %v5198_v51  ;;  %v14207_v35 = vadd.f32 %v14195_v20, %v5238_v27  ;;  %v14255_v43 = vpop.permute.xlu0 %5650 }
0x15c0   :  { %5640 = vrot.lane.b32.xlu1 %v13947_v39, %s10936_s8  ;;  %v9759_v42 = vpop.f32.mrf.mxu0 }
0x15c1   :  { %v5240_v9 = vmul.f32 0.35355338, %v9759_v42  ;;  %v14216_v59 = vadd.f32 %v14204_v60, %v5237_v19 }
0x15c2   :  { %v5208_v34 = vpop.f32.mrf.mxu0 }
0x15c3   :  { %5638 = vrot.lane.b32.xlu0 %v13959_v46, %s10936_s8  ;;  %v5239_v38 = vmul.f32 0.35355338, %v5208_v34  ;;  %v14225_v21 = vadd.f32 %v14213_v23, %v5240_v9  ;;  %v14257_v34 = vpop.permute.xlu0 %5646 }
0x15c4   :  { %v9762_v57 = vpop.f32.mrf.mxu0 }
0x15c5   :  { %v5242_v22 = vmul.f32 0.35355338, %v9762_v57  ;;  %v14234_v48 = vadd.f32 %v14222_v63, %v5239_v38 }
0x15c6   :  { %v5218_v4 = vpop.f32.mrf.mxu0 }
0x15c7   :  { %5636 = vrot.lane.b32.xlu0 %v13955_v31, %s10936_s8  ;;  %v5241_v51 = vmul.f32 0.35355338, %v5218_v4  ;;  %v14243_v5 = vadd.f32 %v14231_v41, %v5242_v22  ;;  %v14259_v27 = vpop.permute.xlu0 %5642 }
0x15c9   :  { %v14247_v42 = vadd.f32 %v14240_v0, %v5241_v51 }
0x15cb   :  { %v14261_v19 = vpop.permute.xlu0 %5656 }
0x15e4   :  { %5265 = vmax.xlane.f32.xlu1 %v14136_v55 }
0x15e6   :  { %5263 = vmax.xlane.f32.xlu0 %v14144_v44 }
0x15e8   :  { %5269 = vmax.xlane.f32.xlu1 %v14153_v16 }
0x15ea   :  { %5267 = vmax.xlane.f32.xlu0 %v14162_v37 }
0x15ec   :  { %5273 = vmax.xlane.f32.xlu1 %v14171_v36 }
0x15ee   :  { %5271 = vmax.xlane.f32.xlu0 %v14180_v56 }
0x15f0   :  { %5277 = vmax.xlane.f32.xlu1 %v14189_v7 }
0x15f2   :  { %5275 = vmax.xlane.f32.xlu0 %v14198_v11 }
0x15f4   :  { %5281 = vmax.xlane.f32.xlu1 %v14207_v35 }
0x15f6   :  { %5279 = vmax.xlane.f32.xlu0 %v14216_v59 }
0x15f8   :  { %5285 = vmax.xlane.f32.xlu1 %v14225_v21 }
0x15fa   :  { %5283 = vmax.xlane.f32.xlu0 %v14234_v48 }
0x15fc   :  { %5289 = vmax.xlane.f32.xlu1 %v14243_v5 }
0x15fe   :  { %5287 = vmax.xlane.f32.xlu0 %v14247_v42 }
0x1614   :  { %5634 = vrot.lane.b32.xlu0 %v13967_v18, %s10936_s8 }
0x1636   :  { %v5262_v57 = vpop.xlane.xlu0 %5261 }
0x1637   :  { %v5292_v9 = vsub.f32 %v14112_v61, %v5262_v57 }
0x1638   :  { %v5260_v38 = vpop.xlane.xlu1 %5259 }
0x1639   :  { %v5309_v4 = vmul.f32 1.442695, %v5292_v9  ;;  %v5291_v22 = vsub.f32 %v14115_v25, %v5260_v38 }
0x163a   :  { %v14271_v41 = vpop.permute.xlu0 %5638 }
0x163b   :  { %10619 = vpow2.f32 %v5309_v4  ;;  %v5307_v51 = vmul.f32 1.442695, %v5291_v22 }
0x163c   :  { %v14273_v63 = vpop.permute.xlu1 %5640 }
0x163d   :  { %10621 = vpow2.f32 %v5307_v51 }
0x163e   :  { %v14275_v61 = vpop.permute.xlu0 %5636 }
0x1648   :  { %v14265_v12 = vpop.eup %10619 }
0x1649   :  { %5341 = vadd.xlane.f32.xlu0 %v14265_v12 }
0x164a   :  { %v14268_v0 = vpop.eup %10621 }
0x164b   :  { %5339 = vadd.xlane.f32.xlu1 %v14268_v0 }
0x166d   :  { %v5266_v57 = vpop.xlane.xlu1 %5265 }
0x166e   :  { %v5294_v25 = vsub.f32 %v14136_v55, %v5266_v57 }
0x166f   :  { %v5264_v9 = vpop.xlane.xlu0 %5263 }
0x1670   :  { %v5313_v38 = vmul.f32 1.442695, %v5294_v25  ;;  %v5293_v4 = vsub.f32 %v14144_v44, %v5264_v9 }
0x1671   :  { %v5270_v22 = vpop.xlane.xlu1 %5269 }
0x1672   :  { %10623 = vpow2.f32 %v5313_v38  ;;  %v5311_v51 = vmul.f32 1.442695, %v5293_v4  ;;  %v5296_v23 = vsub.f32 %v14153_v16, %v5270_v22 }
0x1673   :  { %v5268_v60 = vpop.xlane.xlu0 %5267 }
0x1674   :  { %10625 = vpow2.f32 %v5311_v51  ;;  %v5317_v20 = vmul.f32 1.442695, %v5296_v23  ;;  %v5295_v13 = vsub.f32 %v14162_v37, %v5268_v60 }
0x1675   :  { %v5274_v1 = vpop.xlane.xlu1 %5273 }
0x1676   :  { %v5315_v14 = vmul.f32 1.442695, %v5295_v13  ;;  %10627 = vpow2.f32 %v5317_v20  ;;  %v5298_v55 = vsub.f32 %v14171_v36, %v5274_v1 }
0x1677   :  { %v5272_v50 = vpop.xlane.xlu0 %5271 }
0x1678   :  { %v5297_v57 = vsub.f32 %v14180_v56, %v5272_v50  ;;  %10629 = vpow2.f32 %v5315_v14  ;;  %v5321_v44 = vmul.f32 1.442695, %v5298_v55 }
0x1679   :  { %v5278_v1 = vpop.xlane.xlu1 %5277 }
0x167a   :  { %v5319_v25 = vmul.f32 1.442695, %v5297_v57  ;;  %v5300_v38 = vsub.f32 %v14189_v7, %v5278_v1 }
0x167b   :  { %v5276_v56 = vpop.xlane.xlu0 %5275 }
0x167c   :  { %10631 = vpow2.f32 %v5319_v25  ;;  %v5325_v55 = vmul.f32 1.442695, %v5300_v38  ;;  %v5299_v57 = vsub.f32 %v14198_v11, %v5276_v56 }
0x167d   :  { %10633 = vpow2.f32 %v5321_v44  ;;  %v5282_v13 = vpop.xlane.xlu1 %5281 }
0x167e   :  { %v5323_v29 = vmul.f32 1.442695, %v5299_v57  ;;  %v5302_v33 = vsub.f32 %v14207_v35, %v5282_v13 }
0x167f   :  { %v14283_v9 = vpop.eup %10623  ;;  %v5280_v20 = vpop.xlane.xlu0 %5279 }
0x1680   :  { %5345 = vadd.xlane.f32.xlu0 %v14283_v9  ;;  %v5301_v23 = vsub.f32 %v14216_v59, %v5280_v20  ;;  %v5329_v7 = vmul.f32 1.442695, %v5302_v33 }
0x1681   :  { %v14286_v16 = vpop.eup %10625  ;;  %v5286_v60 = vpop.xlane.xlu1 %5285 }
0x1682   :  { %5343 = vadd.xlane.f32.xlu1 %v14286_v16  ;;  %v5327_v4 = vmul.f32 1.442695, %v5301_v23  ;;  %v5304_v22 = vsub.f32 %v14225_v21, %v5286_v60 }
0x1683   :  { %v14289_v37 = vpop.eup %10627  ;;  %v5284_v54 = vpop.xlane.xlu0 %5283 }
0x1684   :  { %10635 = vpow2.f32 %v5327_v4  ;;  %v5333_v25 = vmul.f32 1.442695, %v5304_v22  ;;  %v5303_v1 = vsub.f32 %v14234_v48, %v5284_v54 }
0x1685   :  { %v14292_v36 = vpop.eup %10629  ;;  %v5290_v51 = vpop.xlane.xlu1 %5289  ;;  %10637 = vpow2.f32 %v5325_v55 }
0x1686   :  { %5349 = vadd.xlane.f32.xlu1 %v14289_v37  ;;  %v5306_v44 = vsub.f32 %v14243_v5, %v5290_v51  ;;  %10639 = vpow2.f32 %v5333_v25  ;;  %v5331_v20 = vmul.f32 1.442695, %v5303_v1 }
0x1687   :  { %10641 = vpow2.f32 %v5323_v29  ;;  %v5288_v21 = vpop.xlane.xlu0 %5287 }
0x1688   :  { %v5337_v59 = vmul.f32 1.442695, %v5306_v44  ;;  %v5305_v11 = vsub.f32 %v14247_v42, %v5288_v21 }
0x1689   :  { %v14294_v50 = vpop.eup %10631 }
0x168a   :  { %5351 = vadd.xlane.f32.xlu0 %v14294_v50  ;;  %5347 = vadd.xlane.f32.xlu1 %v14292_v36  ;;  %v14298_v14 = vpop.eup %10633  ;;  %10643 = vpow2.f32 %v5337_v59  ;;  %v5335_v35 = vmul.f32 1.442695, %v5305_v11 }
0x168b   :  { %10645 = vpow2.f32 %v5329_v7  ;;  %v14333_v42 = vpop.permute.xlu0 %5634 }
0x168c   :  { %10647 = vpow2.f32 %v5331_v20 }
0x168d   :  { %10649 = vpow2.f32 %v5335_v35 }
0x168e   :  { %5353 = vadd.xlane.f32.xlu1 %v14298_v14 }
0x1691   :  { %v14313_v56 = vpop.eup %10635 }
0x1692   :  { %v14316_v5 = vpop.eup %10637 }
0x1693   :  { %v14318_v13 = vpop.eup %10639 }
0x1694   :  { %v14322_v33 = vpop.eup %10641 }
0x1697   :  { %v14324_v54 = vpop.eup %10643 }
0x1698   :  { %v14328_v29 = vpop.eup %10645 }
0x1699   :  { %v14331_v48 = vpop.eup %10647 }
0x169a   :  { %v14336_v60 = vpop.eup %10649 }
0x169f   :  { %5630 = vrot.lane.b32.xlu1 %v13973_v28, %s10936_s8 }
0x16a0   :  { %5632 = vrot.lane.b32.xlu0 %v13963_v58, %s10936_s8 }
0x16bf   :  { %5359 = vadd.xlane.f32.xlu0 %v14313_v56 }
0x16c3   :  { %5357 = vadd.xlane.f32.xlu1 %v14316_v5  ;;  %5365 = vadd.xlane.f32.xlu0 %v14318_v13 }
0x16c7   :  { %5355 = vadd.xlane.f32.xlu1 %v14322_v33  ;;  %5369 = vadd.xlane.f32.xlu0 %v14324_v54 }
0x16cb   :  { %5361 = vadd.xlane.f32.xlu1 %v14328_v29 }
0x16cf   :  { %5363 = vadd.xlane.f32.xlu1 %v14331_v48 }
0x16d2   :  { %v5342_v23 = vpop.xlane.xlu0 %5341 }
0x16d3   :  { %5367 = vadd.xlane.f32.xlu1 %v14336_v60  ;;  %10651 = vrcp.f32 %v5342_v23 }
0x16d4   :  { %v5340_v38 = vpop.xlane.xlu1 %5339 }
0x16d5   :  { %10653 = vrcp.f32 %v5340_v38 }
0x16dd   :  { %5628 = vrot.lane.b32.xlu0 %v13913_v49, %s10936_s8 }
0x16e0   :  { %v10652_v4 = vpop.eup %10651 }
0x16e1   :  { %5598 = vrot.lane.b32.xlu0 %v13973_v28, %s10937_s17  ;;  %v5374_v55 = vmul.f32 %v10652_v4, %v14265_v12 }
0x16e2   :  { %v10654_v22 = vpop.eup %10653 }
0x16e3   :  { %v5372_v51 = vmul.f32 %v10654_v22, %v14268_v0 }
0x16e4   :  { %5596 = vrot.lane.b32.xlu1 %v13913_v49, %s10937_s17 }
0x16e5   :  { %5602 = vrot.lane.b32.xlu0 %v13967_v18, %s10937_s17  ;;  %9795 = vmatprep.mubr.f32.mxu1 %v5372_v51 }
0x16e6   :  { %9796 = vmatmul.mubr.f32.vlgmr.msra.gmra.mxu1 %v5374_v55 }
0x16e7   :  { %9820 = vmatpush3.xpose.msk.msra.mxu1 %vm605_vm1, %v14061_v6 }
0x16e8   :  { %9821 = vmatprep.subr.msk.mxu1 %vm605_vm1, %v14261_v19  ;;  %5600 = vrot.lane.b32.xlu1 %v13963_v58, %s10937_s17 }
0x16e9   :  { %5606 = vrot.lane.b32.xlu0 %v13959_v46, %s10937_s17 }
0x16eb   :  { %9822 = vmatpush3.xpose.msk.msra.mxu1 %vm605_vm1, %v14261_v19 }
0x16ec   :  { %9823 = vmatprep.subr.msk.mxu1 %vm605_vm1, %v14253_v24  ;;  %5604 = vrot.lane.b32.xlu1 %v13955_v31, %s10937_s17 }
0x16ed   :  { %5610 = vrot.lane.b32.xlu0 %v13951_v10, %s10937_s17 }
0x16ef   :  { %9824 = vmatpush3.xpose.msk.msra.mxu1 %vm605_vm1, %v14253_v24 }
0x16f0   :  { %9825 = vmatprep.subr.msk.mxu1 %vm605_vm1, %v14067_v47  ;;  %5608 = vrot.lane.b32.xlu1 %v13947_v39, %s10937_s17 }
0x16f1   :  { %5614 = vrot.lane.b32.xlu0 %v13943_v15, %s10937_s17 }
0x16f3   :  { %9826 = vmatpush3.xpose.msk.msra.mxu1 %vm605_vm1, %v14067_v47 }
0x16f4   :  { %9827 = vmatprep.subr.msk.mxu1 %vm605_vm1, %v14255_v43  ;;  %5612 = vrot.lane.b32.xlu1 %v13939_v62, %s10937_s17 }
0x16f5   :  { %5618 = vrot.lane.b32.xlu0 %v13935_v3, %s10937_s17 }
0x16f7   :  { %9828 = vmatpush3.xpose.msk.msra.mxu1 %vm605_vm1, %v14255_v43 }
0x16f8   :  { %9829 = vmatprep.subr.msk.mxu1 %vm605_vm1, %v14073_v30  ;;  %5616 = vrot.lane.b32.xlu1 %v13931_v26, %s10937_s17 }
0x16f9   :  { %5622 = vrot.lane.b32.xlu0 %v13927_v32, %s10937_s17 }
0x16fb   :  { %9830 = vmatpush3.xpose.msk.msra.mxu1 %vm605_vm1, %v14073_v30 }
0x16fc   :  { %9831 = vmatprep.subr.msk.mxu1 %vm605_vm1, %v14257_v34  ;;  %5620 = vrot.lane.b32.xlu1 %v13923_v17, %s10937_s17 }
0x16fd   :  { %5626 = vrot.lane.b32.xlu0 %v13917_v8, %s10937_s17 }
0x16ff   :  { %9832 = vmatpush3.xpose.msk.msra.mxu1 %vm605_vm1, %v14257_v34 }
0x1700   :  { %9833 = vmatprep.subr.msk.mxu1 %vm605_vm1, %v14079_v45  ;;  %5624 = vrot.lane.b32.xlu1 %v13919_v2, %s10937_s17 }
0x1701   :  { %6075 = vrot.lane.b32.xlu0 %v13917_v8, %s10938_s18 }
0x1703   :  { %9834 = vmatpush3.xpose.msk.msra.mxu1 %vm605_vm1, %v14079_v45 }
0x1704   :  { %9835 = vmatprep.subr.msk.mxu1 %vm605_vm1, %v14259_v27  ;;  %6073 = vrot.lane.b32.xlu1 %v13919_v2, %s10938_s18 }
0x1705   :  { %6071 = vrot.lane.b32.xlu0 %v13927_v32, %s10938_s18 }
0x1707   :  { %9836 = vmatpush3.xpose.msk.msra.mxu1 %vm605_vm1, %v14259_v27 }
0x1708   :  { %9837 = vmatprep.subr.msk.mxu1 %vm605_vm1, %v14273_v63  ;;  %6069 = vrot.lane.b32.xlu1 %v13923_v17, %s10938_s18 }
0x1709   :  { %v5346_v12 = vpop.xlane.xlu0 %5345  ;;  %6067 = vrot.lane.b32.xlu0 %v13935_v3, %s10938_s18 }
0x170a   :  { %10655 = vrcp.f32 %v5346_v12 }
0x170b   :  { %9838 = vmatpush3.xpose.msk.msra.mxu1 %vm605_vm1, %v14273_v63  ;;  %v5344_v6 = vpop.xlane.xlu1 %5343 }
0x170c   :  { %9839 = vmatprep.subr.msk.mxu1 %vm605_vm1, %v14271_v41  ;;  %10657 = vrcp.f32 %v5344_v6  ;;  %6065 = vrot.lane.b32.xlu1 %v13931_v26, %s10938_s18 }
0x170d   :  { %6061 = vrot.lane.b32.xlu0 %v13939_v62, %s10938_s18 }
0x170f   :  { %9840 = vmatpush3.xpose.msk.msra.mxu1 %vm605_vm1, %v14271_v41  ;;  %v5350_v47 = vpop.xlane.xlu1 %5349 }
0x1710   :  { %9841 = vmatprep.subr.msk.mxu1 %vm605_vm1, %v14275_v61  ;;  %6063 = vrot.lane.b32.xlu1 %v13943_v15, %s10938_s18  ;;  %10659 = vrcp.f32 %v5350_v47 }
0x1711   :  { %6057 = vrot.lane.b32.xlu0 %v13947_v39, %s10938_s18 }
0x1713   :  { %9842 = vmatpush3.xpose.msk.msra.mxu1 %vm605_vm1, %v14275_v61  ;;  %v5352_v30 = vpop.xlane.xlu0 %5351  ;;  %v5348_v45 = vpop.xlane.xlu1 %5347 }
0x1714   :  { %10661 = vrcp.f32 %v5352_v30  ;;  %9843 = vmatprep.subr.msk.mxu1 %vm605_vm1, %v14333_v42  ;;  %6059 = vrot.lane.b32.xlu1 %v13951_v10, %s10938_s18 }
0x1715   :  { %10663 = vrcp.f32 %v5348_v45  ;;  %6053 = vrot.lane.b32.xlu0 %v13955_v31, %s10938_s18 }
0x1717   :  { %9844 = vmatpush3.xpose.msk.msra.mxu1 %vm605_vm1, %v14333_v42  ;;  %v5633_v63 = vpop.permute.xlu0 %5632  ;;  %v5354_v41 = vpop.xlane.xlu1 %5353 }
0x1718   :  { %v10656_v0 = vpop.eup %10655  ;;  %10665 = vrcp.f32 %v5354_v41  ;;  %6055 = vrot.lane.b32.xlu1 %v13959_v46, %s10938_s18  ;;  %9845 = vmatprep.subr.msk.mxu1 %vm605_vm1, %v5633_v63 }
0x1719   :  { %v10658_v24 = vpop.eup %10657  ;;  %6049 = vrot.lane.b32.xlu0 %v13963_v58, %s10938_s18  ;;  %v5378_v27 = vmul.f32 %v10656_v0, %v14283_v9 }
0x171a   :  { %v5376_v43 = vmul.f32 %v10658_v24, %v14286_v16 }
0x171b   :  { %9846 = vmatpush3.xpose.msk.msra.mxu1 %vm605_vm1, %v5633_v63  ;;  %v5631_v34 = vpop.permute.xlu1 %5630 }
0x171c   :  { %6051 = vrot.lane.b32.xlu1 %v13967_v18, %s10938_s18  ;;  %9798 = vmatprep.mubr.f32.mxu1 %v5376_v43 }
0x171d   :  { %9847 = vmatprep.subr.msk.mxu1 %vm605_vm1, %v5631_v34  ;;  %6045 = vrot.lane.b32.xlu0 %v13913_v49, %s10938_s18  ;;  %v10660_v19 = vpop.eup %10659 }
0x171e   :  { %9799 = vmatmul.mubr.f32.gmra.mxu1 %v5378_v27  ;;  %v5382_v9 = vmul.f32 %v10660_v19, %v14289_v37 }
0x171f   :  { %9848 = vmatpush3.xpose.msk.msra.mxu1 %vm605_vm1, %v5631_v34 }
0x1720   :  { %6047 = vrot.lane.b32.xlu1 %v13973_v28, %s10938_s18 }
0x1721   :  { %v10662_v61 = vpop.eup %10661  ;;  %6298 = vrot.lane.b32.xlu0 %v13919_v2, %s10939_s19 }
0x1722   :  { %v10664_v16 = vpop.eup %10663  ;;  %v5384_v44 = vmul.f32 %v10662_v61, %v14294_v50 }
0x1723   :  { %v5380_v57 = vmul.f32 %v10664_v16, %v14292_v36 }
0x1724   :  { %6300 = vrot.lane.b32.xlu1 %v13917_v8, %s10939_s19 }
0x1725   :  { %v10666_v25 = vpop.eup %10665  ;;  %9801 = vmatprep.mubr.f32.mxu1 %v5380_v57  ;;  %6296 = vrot.lane.b32.xlu0 %v13927_v32, %s10939_s19 }
0x1726   :  { %9802 = vmatmul.mubr.f32.gmra.mxu1 %v5382_v9  ;;  %v5386_v59 = vmul.f32 %v10666_v25, %v14298_v14 }
0x1727   :  { %9804 = vmatprep.mubr.f32.mxu1 %v5384_v44 }
0x1728   :  { %6294 = vrot.lane.b32.xlu1 %v13923_v17, %s10939_s19 }
0x1729   :  { %6292 = vrot.lane.b32.xlu0 %v13935_v3, %s10939_s19 }
0x172a   :  { %9805 = vmatmul.mubr.f32.gmra.mxu1 %v5386_v59 }
0x172c   :  { %6290 = vrot.lane.b32.xlu1 %v13931_v26, %s10939_s19 }
0x172d   :  { %6288 = vrot.lane.b32.xlu0 %v13943_v15, %s10939_s19 }
0x1730   :  { %6286 = vrot.lane.b32.xlu1 %v13939_v62, %s10939_s19 }
0x1731   :  { %6284 = vrot.lane.b32.xlu0 %v13951_v10, %s10939_s19 }
0x1748   :  { %v5360_v37 = vpop.xlane.xlu0 %5359 }
0x1749   :  { %10667 = vrcp.f32 %v5360_v37 }
0x174c   :  { %v5366_v36 = vpop.xlane.xlu0 %5365  ;;  %v5358_v50 = vpop.xlane.xlu1 %5357 }
0x174d   :  { %10669 = vrcp.f32 %v5358_v50 }
0x1750   :  { %v5370_v14 = vpop.xlane.xlu0 %5369  ;;  %v5356_v7 = vpop.xlane.xlu1 %5355 }
0x1751   :  { %10671 = vrcp.f32 %v5356_v7 }
0x1754   :  { %v5629_v1 = vpop.permute.xlu0 %5628  ;;  %v5362_v21 = vpop.xlane.xlu1 %5361 }
0x1755   :  { %10673 = vrcp.f32 %v5362_v21  ;;  %9849 = vmatprep.subr.msk.mxu1 %vm605_vm1, %v5629_v1 }
0x1756   :  { %9850 = vmatpush3.xpose.msk.msra.mxu1 %vm605_vm1, %v5629_v1  ;;  %10675 = vrcp.f32 %v5366_v36  ;;  %v10668_v23 = vpop.eup %10667 }
0x1757   :  { %v5392_v47 = vmul.f32 %v10668_v23, %v14313_v56 }
0x1758   :  { %v5599_v20 = vpop.permute.xlu0 %5598  ;;  %v5364_v11 = vpop.xlane.xlu1 %5363 }
0x1759   :  { %10677 = vrcp.f32 %v5364_v11 }
0x175a   :  { %10679 = vrcp.f32 %v5370_v14  ;;  %v10670_v38 = vpop.eup %10669 }
0x175b   :  { %v5390_v12 = vmul.f32 %v10670_v38, %v14316_v5 }
0x175c   :  { %v5603_v35 = vpop.permute.xlu0 %5602  ;;  %v5368_v42 = vpop.xlane.xlu1 %5367 }
0x175d   :  { %10681 = vrcp.f32 %v5368_v42 }
0x175e   :  { %v10672_v4 = vpop.eup %10671 }
0x175f   :  { %v5388_v55 = vmul.f32 %v10672_v4, %v14322_v33 }
0x1760   :  { %v5607_v22 = vpop.permute.xlu0 %5606  ;;  %v5597_v51 = vpop.permute.xlu1 %5596 }
0x1761   :  { %9807 = vmatprep.mubr.f32.mxu1 %v5388_v55 }
0x1762   :  { %v10674_v6 = vpop.eup %10673  ;;  %9808 = vmatmul.mubr.f32.gmra.mxu1 %v5390_v12 }
0x1763   :  { %v5394_v30 = vmul.f32 %v10674_v6, %v14328_v29  ;;  %9810 = vmatprep.mubr.f32.mxu1 %v5392_v47  ;;  %v10676_v41 = vpop.eup %10675 }
0x1764   :  { %v5611_v45 = vpop.permute.xlu0 %5610  ;;  %v5601_v63 = vpop.permute.xlu1 %5600  ;;  %v5398_v5 = vmul.f32 %v10676_v41, %v14318_v13 }
0x1766   :  { %v10678_v0 = vpop.eup %10677  ;;  %9811 = vmatmul.mubr.f32.gmra.mxu1 %v5394_v30 }
0x1767   :  { %v5396_v24 = vmul.f32 %v10678_v0, %v14331_v48  ;;  %v10680_v33 = vpop.eup %10679 }
0x1768   :  { %v5615_v43 = vpop.permute.xlu0 %5614  ;;  %v5605_v34 = vpop.permute.xlu1 %5604  ;;  %v5402_v61 = vmul.f32 %v10680_v33, %v14324_v54 }
0x1769   :  { %9813 = vmatprep.mubr.f32.mxu1 %v5396_v24 }
0x176a   :  { %v10682_v27 = vpop.eup %10681  ;;  %9814 = vmatmul.mubr.f32.gmra.mxu1 %v5398_v5 }
0x176b   :  { %v5400_v56 = vmul.f32 %v10682_v27, %v14336_v60 }
0x176c   :  { %v5619_v19 = vpop.permute.xlu0 %5618  ;;  %v5609_v29 = vpop.permute.xlu1 %5608 }
0x176d   :  { %9816 = vmatprep.mubr.f32.mxu1 %v5400_v56 }
0x176e   :  { %9817 = vmatmul.mubr.f32.gmra.mxu1 %v5402_v61 }
0x176f   :  { %9851 = vmatprep.mubr.msk.f32.mxu1 %vm605_vm1, %v5597_v51 }
0x1770   :  { %v5623_v16 = vpop.permute.xlu0 %5622  ;;  %v5613_v48 = vpop.permute.xlu1 %5612 }
0x1772   :  { %9852 = vmatmul.mubr.msk.f32.vlgmr.msra.gmra.mxu1 %vm605_vm1, %v5599_v20 }
0x1773   :  { %9854 = vmatprep.mubr.msk.f32.mxu1 %vm605_vm1, %v5601_v63 }
0x1774   :  { %v5627_v57 = vpop.permute.xlu0 %5626  ;;  %v5617_v13 = vpop.permute.xlu1 %5616 }
0x1776   :  { %9855 = vmatmul.mubr.msk.f32.gmra.mxu1 %vm605_vm1, %v5603_v35 }
0x1777   :  { %9857 = vmatprep.mubr.msk.f32.mxu1 %vm605_vm1, %v5605_v34 }
0x1778   :  { %v6076_v60 = vpop.permute.xlu0 %6075  ;;  %v5621_v9 = vpop.permute.xlu1 %5620 }
0x1779   :  { %9875 = vmatprep.subr.mxu0 %v6076_v60 }
0x177a   :  { %9876 = vmatpush3.msra.mxu0 %v6076_v60  ;;  %9858 = vmatmul.mubr.msk.f32.gmra.mxu1 %vm605_vm1, %v5607_v22 }
0x177b   :  { %9860 = vmatprep.mubr.msk.f32.mxu1 %vm605_vm1, %v5609_v29 }
0x177c   :  { %v6072_v54 = vpop.permute.xlu0 %6071  ;;  %v5625_v25 = vpop.permute.xlu1 %5624 }
0x177e   :  { %9861 = vmatmul.mubr.msk.f32.gmra.mxu1 %vm605_vm1, %v5611_v45 }
0x177f   :  { %9863 = vmatprep.mubr.msk.f32.mxu1 %vm605_vm1, %v5613_v48 }
0x1780   :  { %v6068_v44 = vpop.permute.xlu0 %6067  ;;  %v6074_v59 = vpop.permute.xlu1 %6073 }
0x1781   :  { %9877 = vmatprep.subr.mxu0 %v6074_v59 }
0x1782   :  { %9878 = vmatpush3.msra.mxu0 %v6074_v59  ;;  %9864 = vmatmul.mubr.msk.f32.gmra.mxu1 %vm605_vm1, %v5615_v43 }
0x1783   :  { %9879 = vmatprep.subr.mxu0 %v6072_v54  ;;  %9866 = vmatprep.mubr.msk.f32.mxu1 %vm605_vm1, %v5617_v13 }
0x1784   :  { %9880 = vmatpush3.msra.mxu0 %v6072_v54  ;;  %v6070_v37 = vpop.permute.xlu1 %6069  ;;  %v6062_v36 = vpop.permute.xlu0 %6061 }
0x1785   :  { %9881 = vmatprep.subr.mxu0 %v6070_v37 }
0x1786   :  { %9882 = vmatpush3.msra.mxu0 %v6070_v37  ;;  %9867 = vmatmul.mubr.msk.f32.gmra.mxu1 %vm605_vm1, %v5619_v19 }
0x1787   :  { %9883 = vmatprep.subr.mxu0 %v6068_v44  ;;  %9869 = vmatprep.mubr.msk.f32.mxu1 %vm605_vm1, %v5621_v9 }
0x1788   :  { %9884 = vmatpush3.msra.mxu0 %v6068_v44  ;;  %v6066_v50 = vpop.permute.xlu1 %6065  ;;  %v6058_v14 = vpop.permute.xlu0 %6057 }
0x1789   :  { %9885 = vmatprep.subr.mxu0 %v6066_v50 }
0x178a   :  { %9886 = vmatpush3.msra.mxu0 %v6066_v50  ;;  %9870 = vmatmul.mubr.msk.f32.gmra.mxu1 %vm605_vm1, %v5623_v16 }
0x178b   :  { %9872 = vmatprep.mubr.msk.f32.mxu1 %vm605_vm1, %v5625_v25 }
0x178c   :  { %v6064_v7 = vpop.permute.xlu1 %6063  ;;  %v6054_v21 = vpop.permute.xlu0 %6053 }
0x178d   :  { %9887 = vmatprep.subr.mxu0 %v6064_v7 }
0x178e   :  { %9888 = vmatpush3.msra.mxu0 %v6064_v7  ;;  %9873 = vmatmul.mubr.msk.f32.gmra.mxu1 %vm605_vm1, %v5627_v57 }
0x178f   :  { %9889 = vmatprep.subr.mxu0 %v6062_v36 }
0x1790   :  { %9890 = vmatpush3.msra.mxu0 %v6062_v36  ;;  %v6060_v1 = vpop.permute.xlu1 %6059  ;;  %v6050_v11 = vpop.permute.xlu0 %6049  ;;  %v15961_v36 = vld [vmem:[#allocation54_spill] sm:$0xff] }
0x1791   :  { %9891 = vmatprep.subr.mxu0 %v6060_v1 }
0x1792   :  { %9892 = vmatpush3.msra.mxu0 %v6060_v1  ;;  %v15962_v1 = vld [vmem:[#allocation55_spill] sm:$0xff] }
0x1793   :  { %9893 = vmatprep.subr.mxu0 %v6058_v14 }
0x1794   :  { %9894 = vmatpush3.msra.mxu0 %v6058_v14  ;;  %v6056_v20 = vpop.permute.xlu1 %6055  ;;  %v6046_v23 = vpop.permute.xlu0 %6045 }
0x1795   :  { %9895 = vmatprep.subr.mxu0 %v6056_v20 }
0x1796   :  { %9896 = vmatpush3.msra.mxu0 %v6056_v20 }
0x1797   :  { %9897 = vmatprep.subr.mxu0 %v6054_v21 }
0x1798   :  { %9898 = vmatpush3.msra.mxu0 %v6054_v21  ;;  %v6052_v35 = vpop.permute.xlu1 %6051 }
0x1799   :  { %9899 = vmatprep.subr.mxu0 %v6052_v35 }
0x179a   :  { %9900 = vmatpush3.msra.mxu0 %v6052_v35 }
0x179b   :  { %9901 = vmatprep.subr.mxu0 %v6050_v11 }
0x179c   :  { %9902 = vmatpush3.msra.mxu0 %v6050_v11  ;;  %v6048_v42 = vpop.permute.xlu1 %6047  ;;  %v15963_v11 = vld [vmem:[#allocation56_spill] sm:$0xff] }
0x179d   :  { %9903 = vmatprep.subr.mxu0 %v6048_v42 }
0x179e   :  { %9904 = vmatpush3.msra.mxu0 %v6048_v42 }
0x179f   :  { %9905 = vmatprep.subr.mxu0 %v6046_v23 }
0x17a0   :  { %9906 = vmatpush3.msra.mxu0 %v6046_v23  ;;  %v14511_v38 = vpop.permute.xlu1 %6300  ;;  %v15964_v23 = vld [vmem:[#allocation57_spill] sm:$0xff] }
0x17a1   :  { %9931 = vmatprep.subr.msk.mxu0 %vm605_vm1, %v14511_v38 }
0x17a6   :  { %v14515_v4 = vpop.f32.mrf.mxu1 }
0x17a7   :  { %15945 = vst [vmem:[#allocation22_spill] sm:$0xff] %v14515_v4 }
0x17a8   :  { %v14517_v22 = vpop.f32.mrf.mxu1 }
0x17a9   :  { %15946 = vst [vmem:[#allocation24_spill] sm:$0xff] %v14517_v22 }
0x17de   :  { %v14519_v51 = vpop.f32.mrf.mxu1 }
0x17df   :  { %15947 = vst [vmem:[#allocation25_spill] sm:$0xff] %v14519_v51 }
0x17e0   :  { %v14521_v55 = vpop.f32.mrf.mxu1 }
0x17e1   :  { %15948 = vst [vmem:[#allocation23_spill] sm:$0xff] %v14521_v55 }
0x17e6   :  { %v14523_v12 = vpop.f32.mrf.mxu1 }
0x17e7   :  { %15949 = vst [vmem:[#allocation43_spill] sm:$0xff] %v14523_v12 }
0x17e8   :  { %v14525_v6 = vpop.f32.mrf.mxu1 }
0x17e9   :  { %15950 = vst [vmem:[#allocation42_spill] sm:$0xff] %v14525_v6 }
0x17ea   :  { %v14527_v47 = vpop.f32.mrf.mxu1 }
0x17eb   :  { %15951 = vst [vmem:[#allocation45_spill] sm:$0xff] %v14527_v47 }
0x17ec   :  { %v14529_v30 = vpop.f32.mrf.mxu1 }
0x17ed   :  { %15952 = vst [vmem:[#allocation44_spill] sm:$0xff] %v14529_v30 }
0x1822   :  { %v14531_v45 = vpop.f32.mrf.mxu1 }
0x1823   :  { %15953 = vst [vmem:[#allocation47_spill] sm:$0xff] %v14531_v45 }
0x1824   :  { %v14533_v63 = vpop.f32.mrf.mxu1 }
0x1825   :  { %15954 = vst [vmem:[#allocation46_spill] sm:$0xff] %v14533_v63 }
0x1826   :  { %v14535_v41 = vpop.f32.mrf.mxu1 }
0x1827   :  { %15955 = vst [vmem:[#allocation49_spill] sm:$0xff] %v14535_v41 }
0x1828   :  { %v14537_v0 = vpop.f32.mrf.mxu1 }
0x1829   :  { %15956 = vst [vmem:[#allocation48_spill] sm:$0xff] %v14537_v0 }
0x182a   :  { %v14539_v24 = vpop.f32.mrf.mxu1 }
0x182b   :  { %15957 = vst [vmem:[#allocation51_spill] sm:$0xff] %v14539_v24 }
0x182c   :  { %v14541_v43 = vpop.f32.mrf.mxu1 }
0x182d   :  { %15958 = vst [vmem:[#allocation50_spill] sm:$0xff] %v14541_v43 }
0x182e   :  { %v14543_v34 = vpop.f32.mrf.mxu1 }
0x182f   :  { %15959 = vst [vmem:[#allocation53_spill] sm:$0xff] %v14543_v34 }
0x1830   :  { %v14545_v33 = vpop.f32.mrf.mxu1 }
0x1831   :  { %15960 = vst [vmem:[#allocation52_spill] sm:$0xff] %v14545_v33 }
0x1832   :  { %v9853_v5 = vpop.f32.mrf.mxu1 }
0x1833   :  { %v5870_v27 = vmul.f32 0.35355338, %v9853_v5 }
0x1834   :  { %v5790_v56 = vpop.f32.mrf.mxu1 }
0x1835   :  { %v14548_v19 = vadd.f32 %v14104_v52, %v5870_v27  ;;  %v5869_v29 = vmul.f32 0.35355338, %v5790_v56  ;;  %v15965_v56 = vld [vmem:[#allocation58_spill] sm:$0xff] }
0x1836   :  { %v9856_v16 = vpop.f32.mrf.mxu1 }
0x1837   :  { %v14551_v61 = vadd.f32 %v14109_v40, %v5869_v29  ;;  %5903 = vmax.xlane.f32.xlu0 %v14548_v19  ;;  %v5872_v54 = vmul.f32 0.35355338, %v9856_v16 }
0x1838   :  { %v5800_v48 = vpop.f32.mrf.mxu1 }
0x1839   :  { %5901 = vmax.xlane.f32.xlu1 %v14551_v61  ;;  %v5871_v25 = vmul.f32 0.35355338, %v5800_v48  ;;  %v14562_v59 = vadd.f32 %v14128_v53, %v5872_v54 }
0x183a   :  { %v9859_v52 = vpop.f32.mrf.mxu1 }
0x183b   :  { %v5874_v37 = vmul.f32 0.35355338, %v9859_v52  ;;  %v14565_v50 = vadd.f32 %v15961_v36, %v5871_v25  ;;  %v15966_v52 = vld [vmem:[#allocation59_spill] sm:$0xff] }
0x183c   :  { %v5810_v57 = vpop.f32.mrf.mxu1 }
0x183d   :  { %v5873_v14 = vmul.f32 0.35355338, %v5810_v57  ;;  %v14569_v21 = vadd.f32 %v15962_v1, %v5874_v37  ;;  %v15968_v37 = vld [vmem:[#allocation61_spill] sm:$0xff] }
0x183e   :  { %v9862_v13 = vpop.f32.mrf.mxu1 }
0x183f   :  { %v5876_v20 = vmul.f32 0.35355338, %v9862_v13  ;;  %v14573_v35 = vadd.f32 %v15963_v11, %v5873_v14  ;;  %v15969_v14 = vld [vmem:[#allocation62_spill] sm:$0xff]  ;;  %v15970_v11 = vld [vmem:[#allocation63_spill] sm:$0xff] }
0x1840   :  { %v5820_v40 = vpop.f32.mrf.mxu1 }
0x1841   :  { %v5875_v42 = vmul.f32 0.35355338, %v5820_v40  ;;  %v14577_v5 = vadd.f32 %v15964_v23, %v5876_v20  ;;  %v15967_v40 = vld [vmem:[#allocation60_spill] sm:$0xff] }
0x1842   :  { %v9865_v60 = vpop.f32.mrf.mxu1  ;;  %v15971_v23 = vld [vmem:[#allocation64_spill] sm:$0xff] }
0x1843   :  { %v5878_v27 = vmul.f32 0.35355338, %v9865_v60  ;;  %v14581_v29 = vadd.f32 %v15965_v56, %v5875_v42 }
0x1844   :  { %v5830_v9 = vpop.f32.mrf.mxu1 }
0x1845   :  { %v5877_v16 = vmul.f32 0.35355338, %v5830_v9  ;;  %v14585_v57 = vadd.f32 %v15966_v52, %v5878_v27 }
0x1846   :  { %v9868_v44 = vpop.f32.mrf.mxu1 }
0x1847   :  { %v5880_v13 = vmul.f32 0.35355338, %v9868_v44  ;;  %v14589_v54 = vadd.f32 %v15967_v40, %v5877_v16 }
0x1848   :  { %v5840_v7 = vpop.f32.mrf.mxu1 }
0x1849   :  { %v5879_v25 = vmul.f32 0.35355338, %v5840_v7  ;;  %v14593_v36 = vadd.f32 %v15968_v37, %v5880_v13  ;;  %v14619_v13 = vpop.permute.xlu0 %6298 }
0x184a   :  { %6282 = vrot.lane.b32.xlu1 %v13947_v39, %s10939_s19  ;;  %v9871_v53 = vpop.f32.mrf.mxu1 }
0x184b   :  { %v5882_v9 = vmul.f32 0.35355338, %v9871_v53  ;;  %v14597_v1 = vadd.f32 %v15969_v14, %v5879_v25  ;;  %v15972_v53 = vld [vmem:[#allocation65_spill] sm:$0xff] }
0x184c   :  { %v5850_v48 = vpop.f32.mrf.mxu1 }
0x184d   :  { %6280 = vrot.lane.b32.xlu0 %v13959_v46, %s10939_s19  ;;  %v5881_v20 = vmul.f32 0.35355338, %v5850_v48  ;;  %v14601_v42 = vadd.f32 %v15970_v11, %v5882_v9  ;;  %v15973_v48 = vld [vmem:[#allocation66_spill] sm:$0xff]  ;;  %v14621_v40 = vpop.permute.xlu0 %6296 }
0x184e   :  { %v9874_v60 = vpop.f32.mrf.mxu1 }
0x184f   :  { %v5884_v7 = vmul.f32 0.35355338, %v9874_v60  ;;  %v14605_v27 = vadd.f32 %v15971_v23, %v5881_v20  ;;  %v14625_v60 = vpop.permute.xlu1 %6294 }
0x1850   :  { %v5860_v44 = vpop.f32.mrf.mxu1 }
0x1851   :  { %6278 = vrot.lane.b32.xlu0 %v13955_v31, %s10939_s19  ;;  %v5883_v56 = vmul.f32 0.35355338, %v5860_v44  ;;  %v14609_v16 = vadd.f32 %v15972_v53, %v5884_v7  ;;  %v14623_v25 = vpop.permute.xlu0 %6292 }
0x1853   :  { %v14613_v52 = vadd.f32 %v15973_v48, %v5883_v56  ;;  %v14629_v9 = vpop.permute.xlu1 %6290 }
0x1855   :  { %v14627_v37 = vpop.permute.xlu0 %6288 }
0x1857   :  { %v14633_v20 = vpop.permute.xlu1 %6286 }
0x1859   :  { %v14631_v14 = vpop.permute.xlu0 %6284 }
0x186e   :  { %5907 = vmax.xlane.f32.xlu1 %v14562_v59 }
0x1870   :  { %5905 = vmax.xlane.f32.xlu0 %v14565_v50 }
0x1872   :  { %5911 = vmax.xlane.f32.xlu1 %v14569_v21 }
0x1874   :  { %5909 = vmax.xlane.f32.xlu0 %v14573_v35 }
0x1876   :  { %5915 = vmax.xlane.f32.xlu1 %v14577_v5 }
0x1878   :  { %5913 = vmax.xlane.f32.xlu0 %v14581_v29 }
0x187a   :  { %5919 = vmax.xlane.f32.xlu1 %v14585_v57 }
0x187c   :  { %5917 = vmax.xlane.f32.xlu0 %v14589_v54 }
0x187e   :  { %5923 = vmax.xlane.f32.xlu1 %v14593_v36 }
0x1880   :  { %5921 = vmax.xlane.f32.xlu0 %v14597_v1 }
0x1882   :  { %5927 = vmax.xlane.f32.xlu1 %v14601_v42 }
0x1884   :  { %5925 = vmax.xlane.f32.xlu0 %v14605_v27 }
0x1886   :  { %5931 = vmax.xlane.f32.xlu1 %v14609_v16 }
0x1888   :  { %5929 = vmax.xlane.f32.xlu0 %v14613_v52 }
0x189e   :  { %6276 = vrot.lane.b32.xlu0 %v13967_v18, %s10939_s19 }
0x18c0   :  { %v5904_v44 = vpop.xlane.xlu0 %5903 }
0x18c1   :  { %v5934_v11 = vsub.f32 %v14548_v19, %v5904_v44 }
0x18c2   :  { %v5902_v7 = vpop.xlane.xlu1 %5901 }
0x18c3   :  { %v5951_v23 = vmul.f32 1.442695, %v5934_v11  ;;  %v5933_v56 = vsub.f32 %v14551_v61, %v5902_v7 }
0x18c4   :  { %v14643_v33 = vpop.permute.xlu0 %6280 }
0x18c5   :  { %10683 = vpow2.f32 %v5951_v23  ;;  %v5949_v53 = vmul.f32 1.442695, %v5933_v56 }
0x18c6   :  { %v14645_v24 = vpop.permute.xlu1 %6282 }
0x18c7   :  { %10685 = vpow2.f32 %v5949_v53 }
0x18c8   :  { %v14647_v19 = vpop.permute.xlu0 %6278 }
0x18d2   :  { %v14637_v48 = vpop.eup %10683 }
0x18d3   :  { %5983 = vadd.xlane.f32.xlu0 %v14637_v48 }
0x18d4   :  { %v14640_v34 = vpop.eup %10685 }
0x18d5   :  { %5981 = vadd.xlane.f32.xlu1 %v14640_v34 }
0x18f7   :  { %v5908_v44 = vpop.xlane.xlu1 %5907 }
0x18f8   :  { %v5936_v61 = vsub.f32 %v14562_v59, %v5908_v44 }
0x18f9   :  { %v5906_v11 = vpop.xlane.xlu0 %5905 }
0x18fa   :  { %v5955_v7 = vmul.f32 1.442695, %v5936_v61  ;;  %v5935_v23 = vsub.f32 %v14565_v50, %v5906_v11 }
0x18fb   :  { %v5912_v56 = vpop.xlane.xlu1 %5911 }
0x18fc   :  { %10687 = vpow2.f32 %v5955_v7  ;;  %v5953_v53 = vmul.f32 1.442695, %v5935_v23  ;;  %v5938_v43 = vsub.f32 %v14569_v21, %v5912_v56 }
0x18fd   :  { %v5910_v41 = vpop.xlane.xlu0 %5909 }
0x18fe   :  { %10689 = vpow2.f32 %v5953_v53  ;;  %v5959_v0 = vmul.f32 1.442695, %v5938_v43  ;;  %v5937_v45 = vsub.f32 %v14573_v35, %v5910_v41 }
0x18ff   :  { %v5916_v63 = vpop.xlane.xlu1 %5915 }
0x1900   :  { %v5957_v47 = vmul.f32 1.442695, %v5937_v45  ;;  %10691 = vpow2.f32 %v5959_v0  ;;  %v5940_v59 = vsub.f32 %v14577_v5, %v5916_v63 }
0x1901   :  { %v5914_v30 = vpop.xlane.xlu0 %5913 }
0x1902   :  { %v5939_v44 = vsub.f32 %v14581_v29, %v5914_v30  ;;  %10693 = vpow2.f32 %v5957_v47  ;;  %v5963_v50 = vmul.f32 1.442695, %v5940_v59 }
0x1903   :  { %v5920_v41 = vpop.xlane.xlu1 %5919 }
0x1904   :  { %v5961_v61 = vmul.f32 1.442695, %v5939_v44  ;;  %v5942_v7 = vsub.f32 %v14585_v57, %v5920_v41 }
0x1905   :  { %v5918_v0 = vpop.xlane.xlu0 %5917 }
0x1906   :  { %10695 = vpow2.f32 %v5961_v61  ;;  %v5967_v59 = vmul.f32 1.442695, %v5942_v7  ;;  %v5941_v44 = vsub.f32 %v14589_v54, %v5918_v0 }
0x1907   :  { %10697 = vpow2.f32 %v5963_v50  ;;  %v5924_v21 = vpop.xlane.xlu1 %5923 }
0x1908   :  { %v5965_v12 = vmul.f32 1.442695, %v5941_v44  ;;  %v5944_v51 = vsub.f32 %v14593_v36, %v5924_v21 }
0x1909   :  { %v14655_v11 = vpop.eup %10687  ;;  %v5922_v35 = vpop.xlane.xlu0 %5921 }
0x190a   :  { %5987 = vadd.xlane.f32.xlu0 %v14655_v11  ;;  %v5943_v29 = vsub.f32 %v14597_v1, %v5922_v35  ;;  %v5971_v57 = vmul.f32 1.442695, %v5944_v51 }
0x190b   :  { %v14658_v43 = vpop.eup %10689  ;;  %v5928_v5 = vpop.xlane.xlu1 %5927 }
0x190c   :  { %5985 = vadd.xlane.f32.xlu1 %v14658_v43  ;;  %v5969_v23 = vmul.f32 1.442695, %v5943_v29  ;;  %v5946_v56 = vsub.f32 %v14601_v42, %v5928_v5 }
0x190d   :  { %v14661_v45 = vpop.eup %10691  ;;  %v5926_v6 = vpop.xlane.xlu0 %5925 }
0x190e   :  { %10699 = vpow2.f32 %v5969_v23  ;;  %v5975_v61 = vmul.f32 1.442695, %v5946_v56  ;;  %v5945_v41 = vsub.f32 %v14605_v27, %v5926_v6 }
0x190f   :  { %v14664_v63 = vpop.eup %10693  ;;  %v5932_v53 = vpop.xlane.xlu1 %5931  ;;  %10701 = vpow2.f32 %v5967_v59 }
0x1910   :  { %5991 = vadd.xlane.f32.xlu1 %v14661_v45  ;;  %v5948_v50 = vsub.f32 %v14609_v16, %v5932_v53  ;;  %10703 = vpow2.f32 %v5975_v61  ;;  %v5973_v35 = vmul.f32 1.442695, %v5945_v41 }
0x1911   :  { %10705 = vpow2.f32 %v5965_v12  ;;  %v5930_v42 = vpop.xlane.xlu0 %5929 }
0x1912   :  { %v5979_v1 = vmul.f32 1.442695, %v5948_v50  ;;  %v5947_v54 = vsub.f32 %v14613_v52, %v5930_v42 }
0x1913   :  { %v14666_v30 = vpop.eup %10695 }
0x1914   :  { %5993 = vadd.xlane.f32.xlu0 %v14666_v30  ;;  %5989 = vadd.xlane.f32.xlu1 %v14664_v63  ;;  %v14670_v47 = vpop.eup %10697  ;;  %10707 = vpow2.f32 %v5979_v1  ;;  %v5977_v36 = vmul.f32 1.442695, %v5947_v54 }
0x1915   :  { %10709 = vpow2.f32 %v5971_v57  ;;  %v14705_v52 = vpop.permute.xlu0 %6276 }
0x1916   :  { %10711 = vpow2.f32 %v5973_v35 }
0x1917   :  { %10713 = vpow2.f32 %v5977_v36 }
0x1918   :  { %5995 = vadd.xlane.f32.xlu1 %v14670_v47 }
0x191b   :  { %v14685_v0 = vpop.eup %10699 }
0x191c   :  { %v14688_v16 = vpop.eup %10701 }
0x191d   :  { %v14690_v21 = vpop.eup %10703 }
0x191e   :  { %v14694_v51 = vpop.eup %10705 }
0x1921   :  { %v14696_v12 = vpop.eup %10707 }
0x1922   :  { %v14700_v6 = vpop.eup %10709 }
0x1923   :  { %v14703_v27 = vpop.eup %10711 }
0x1924   :  { %v14708_v5 = vpop.eup %10713 }
0x1929   :  { %6272 = vrot.lane.b32.xlu1 %v13973_v28, %s10939_s19 }
0x192a   :  { %6274 = vrot.lane.b32.xlu0 %v13963_v58, %s10939_s19 }
0x1949   :  { %6001 = vadd.xlane.f32.xlu0 %v14685_v0 }
0x194d   :  { %5999 = vadd.xlane.f32.xlu1 %v14688_v16  ;;  %6007 = vadd.xlane.f32.xlu0 %v14690_v21 }
0x1951   :  { %5997 = vadd.xlane.f32.xlu1 %v14694_v51  ;;  %6011 = vadd.xlane.f32.xlu0 %v14696_v12 }
0x1955   :  { %6003 = vadd.xlane.f32.xlu1 %v14700_v6 }
0x1959   :  { %6005 = vadd.xlane.f32.xlu1 %v14703_v27 }
0x195c   :  { %v5984_v29 = vpop.xlane.xlu0 %5983 }
0x195d   :  { %6009 = vadd.xlane.f32.xlu1 %v14708_v5  ;;  %10715 = vrcp.f32 %v5984_v29 }
0x195e   :  { %v5982_v7 = vpop.xlane.xlu1 %5981 }
0x195f   :  { %10717 = vrcp.f32 %v5982_v7 }
0x1967   :  { %6270 = vrot.lane.b32.xlu0 %v13913_v49, %s10939_s19 }
0x196a   :  { %v10716_v23 = vpop.eup %10715 }
0x196b   :  { %6240 = vrot.lane.b32.xlu0 %v13973_v28, %s10940_s20  ;;  %v6016_v59 = vmul.f32 %v10716_v23, %v14637_v48 }
0x196c   :  { %v10718_v56 = vpop.eup %10717 }
0x196d   :  { %v6014_v53 = vmul.f32 %v10718_v56, %v14640_v34 }
0x196e   :  { %6238 = vrot.lane.b32.xlu1 %v13913_v49, %s10940_s20 }
0x196f   :  { %6244 = vrot.lane.b32.xlu0 %v13967_v18, %s10940_s20  ;;  %9907 = vmatprep.mubr.f32.mxu0 %v6014_v53 }
0x1970   :  { %9908 = vmatmul.mubr.f32.vlgmr.msra.gmra.mxu0 %v6016_v59 }
0x1971   :  { %9932 = vmatpush3.xpose.msk.msra.mxu0 %vm605_vm1, %v14511_v38 }
0x1972   :  { %9933 = vmatprep.subr.msk.mxu0 %vm605_vm1, %v14619_v13  ;;  %6242 = vrot.lane.b32.xlu1 %v13963_v58, %s10940_s20 }
0x1973   :  { %6248 = vrot.lane.b32.xlu0 %v13959_v46, %s10940_s20 }
0x1975   :  { %9934 = vmatpush3.xpose.msk.msra.mxu0 %vm605_vm1, %v14619_v13 }
0x1976   :  { %9935 = vmatprep.subr.msk.mxu0 %vm605_vm1, %v14621_v40  ;;  %6246 = vrot.lane.b32.xlu1 %v13955_v31, %s10940_s20 }
0x1977   :  { %6252 = vrot.lane.b32.xlu0 %v13951_v10, %s10940_s20 }
0x1979   :  { %9936 = vmatpush3.xpose.msk.msra.mxu0 %vm605_vm1, %v14621_v40 }
0x197a   :  { %9937 = vmatprep.subr.msk.mxu0 %vm605_vm1, %v14625_v60  ;;  %6250 = vrot.lane.b32.xlu1 %v13947_v39, %s10940_s20 }
0x197b   :  { %6256 = vrot.lane.b32.xlu0 %v13943_v15, %s10940_s20 }
0x197d   :  { %9938 = vmatpush3.xpose.msk.msra.mxu0 %vm605_vm1, %v14625_v60 }
0x197e   :  { %9939 = vmatprep.subr.msk.mxu0 %vm605_vm1, %v14623_v25  ;;  %6254 = vrot.lane.b32.xlu1 %v13939_v62, %s10940_s20 }
0x197f   :  { %6260 = vrot.lane.b32.xlu0 %v13935_v3, %s10940_s20 }
0x1981   :  { %9940 = vmatpush3.xpose.msk.msra.mxu0 %vm605_vm1, %v14623_v25 }
0x1982   :  { %9941 = vmatprep.subr.msk.mxu0 %vm605_vm1, %v14629_v9  ;;  %6258 = vrot.lane.b32.xlu1 %v13931_v26, %s10940_s20 }
0x1983   :  { %6264 = vrot.lane.b32.xlu0 %v13927_v32, %s10940_s20 }
0x1985   :  { %9942 = vmatpush3.xpose.msk.msra.mxu0 %vm605_vm1, %v14629_v9 }
0x1986   :  { %9943 = vmatprep.subr.msk.mxu0 %vm605_vm1, %v14627_v37  ;;  %6262 = vrot.lane.b32.xlu1 %v13923_v17, %s10940_s20 }
0x1987   :  { %6268 = vrot.lane.b32.xlu0 %v13917_v8, %s10940_s20 }
0x1989   :  { %9944 = vmatpush3.xpose.msk.msra.mxu0 %vm605_vm1, %v14627_v37 }
0x198a   :  { %9945 = vmatprep.subr.msk.mxu0 %vm605_vm1, %v14633_v20  ;;  %6266 = vrot.lane.b32.xlu1 %v13919_v2, %s10940_s20 }
0x198b   :  { %6717 = vrot.lane.b32.xlu0 %v13917_v8, %s10941_s0 }
0x198d   :  { %9946 = vmatpush3.xpose.msk.msra.mxu0 %vm605_vm1, %v14633_v20 }
0x198e   :  { %9947 = vmatprep.subr.msk.mxu0 %vm605_vm1, %v14631_v14  ;;  %6715 = vrot.lane.b32.xlu1 %v13919_v2, %s10941_s0 }
0x198f   :  { %6713 = vrot.lane.b32.xlu0 %v13927_v32, %s10941_s0 }
0x1991   :  { %9948 = vmatpush3.xpose.msk.msra.mxu0 %vm605_vm1, %v14631_v14 }
0x1992   :  { %9949 = vmatprep.subr.msk.mxu0 %vm605_vm1, %v14645_v24  ;;  %6711 = vrot.lane.b32.xlu1 %v13923_v17, %s10941_s0 }
0x1993   :  { %v5988_v38 = vpop.xlane.xlu0 %5987  ;;  %6709 = vrot.lane.b32.xlu0 %v13935_v3, %s10941_s0 }
0x1994   :  { %10719 = vrcp.f32 %v5988_v38 }
0x1995   :  { %9950 = vmatpush3.xpose.msk.msra.mxu0 %vm605_vm1, %v14645_v24  ;;  %v5986_v34 = vpop.xlane.xlu1 %5985 }
0x1996   :  { %9951 = vmatprep.subr.msk.mxu0 %vm605_vm1, %v14643_v33  ;;  %10721 = vrcp.f32 %v5986_v34  ;;  %6707 = vrot.lane.b32.xlu1 %v13931_v26, %s10941_s0 }
0x1997   :  { %6703 = vrot.lane.b32.xlu0 %v13939_v62, %s10941_s0 }
0x1999   :  { %9952 = vmatpush3.xpose.msk.msra.mxu0 %vm605_vm1, %v14643_v33  ;;  %v5992_v13 = vpop.xlane.xlu1 %5991 }
0x199a   :  { %9953 = vmatprep.subr.msk.mxu0 %vm605_vm1, %v14647_v19  ;;  %6705 = vrot.lane.b32.xlu1 %v13943_v15, %s10941_s0  ;;  %10723 = vrcp.f32 %v5992_v13 }
0x199b   :  { %6699 = vrot.lane.b32.xlu0 %v13947_v39, %s10941_s0 }
0x199d   :  { %9954 = vmatpush3.xpose.msk.msra.mxu0 %vm605_vm1, %v14647_v19  ;;  %v5994_v24 = vpop.xlane.xlu0 %5993  ;;  %v5990_v40 = vpop.xlane.xlu1 %5989 }
0x199e   :  { %10725 = vrcp.f32 %v5994_v24  ;;  %9955 = vmatprep.subr.msk.mxu0 %vm605_vm1, %v14705_v52  ;;  %6701 = vrot.lane.b32.xlu1 %v13951_v10, %s10941_s0 }
0x199f   :  { %10727 = vrcp.f32 %v5990_v40  ;;  %6695 = vrot.lane.b32.xlu0 %v13955_v31, %s10941_s0 }
0x19a1   :  { %9956 = vmatpush3.xpose.msk.msra.mxu0 %vm605_vm1, %v14705_v52  ;;  %v6275_v33 = vpop.permute.xlu0 %6274  ;;  %v5996_v25 = vpop.xlane.xlu1 %5995 }
0x19a2   :  { %v10720_v60 = vpop.eup %10719  ;;  %10729 = vrcp.f32 %v5996_v25  ;;  %6697 = vrot.lane.b32.xlu1 %v13959_v46, %s10941_s0  ;;  %9957 = vmatprep.subr.msk.mxu0 %vm605_vm1, %v6275_v33 }
0x19a3   :  { %v10722_v37 = vpop.eup %10721  ;;  %6691 = vrot.lane.b32.xlu0 %v13963_v58, %s10941_s0  ;;  %v6020_v20 = vmul.f32 %v10720_v60, %v14655_v11 }
0x19a4   :  { %v6018_v9 = vmul.f32 %v10722_v37, %v14658_v43 }
0x19a5   :  { %9958 = vmatpush3.xpose.msk.msra.mxu0 %vm605_vm1, %v6275_v33  ;;  %v6273_v14 = vpop.permute.xlu1 %6272 }
0x19a6   :  { %6693 = vrot.lane.b32.xlu1 %v13967_v18, %s10941_s0  ;;  %9910 = vmatprep.mubr.f32.mxu0 %v6018_v9 }
0x19a7   :  { %9959 = vmatprep.subr.msk.mxu0 %vm605_vm1, %v6273_v14  ;;  %6687 = vrot.lane.b32.xlu0 %v13913_v49, %s10941_s0  ;;  %v10724_v48 = vpop.eup %10723 }
0x19a8   :  { %9911 = vmatmul.mubr.f32.gmra.mxu0 %v6020_v20  ;;  %v6024_v11 = vmul.f32 %v10724_v48, %v14661_v45 }
0x19a9   :  { %9960 = vmatpush3.xpose.msk.msra.mxu0 %vm605_vm1, %v6273_v14 }
0x19aa   :  { %6689 = vrot.lane.b32.xlu1 %v13973_v28, %s10941_s0 }
0x19ab   :  { %v10726_v19 = vpop.eup %10725  ;;  %6940 = vrot.lane.b32.xlu0 %v13919_v2, %s10942_s21 }
0x19ac   :  { %v10728_v43 = vpop.eup %10727  ;;  %v6026_v50 = vmul.f32 %v10726_v19, %v14666_v30 }
0x19ad   :  { %v6022_v44 = vmul.f32 %v10728_v43, %v14664_v63 }
0x19ae   :  { %6942 = vrot.lane.b32.xlu1 %v13917_v8, %s10942_s21 }
0x19af   :  { %v10730_v61 = vpop.eup %10729  ;;  %9913 = vmatprep.mubr.f32.mxu0 %v6022_v44  ;;  %6938 = vrot.lane.b32.xlu0 %v13927_v32, %s10942_s21 }
0x19b0   :  { %9914 = vmatmul.mubr.f32.gmra.mxu0 %v6024_v11  ;;  %v6028_v1 = vmul.f32 %v10730_v61, %v14670_v47 }
0x19b1   :  { %9916 = vmatprep.mubr.f32.mxu0 %v6026_v50 }
0x19b2   :  { %6936 = vrot.lane.b32.xlu1 %v13923_v17, %s10942_s21 }
0x19b3   :  { %6934 = vrot.lane.b32.xlu0 %v13935_v3, %s10942_s21 }
0x19b4   :  { %9917 = vmatmul.mubr.f32.gmra.mxu0 %v6028_v1 }
0x19b6   :  { %6932 = vrot.lane.b32.xlu1 %v13931_v26, %s10942_s21 }
0x19b7   :  { %6930 = vrot.lane.b32.xlu0 %v13943_v15, %s10942_s21 }
0x19ba   :  { %6928 = vrot.lane.b32.xlu1 %v13939_v62, %s10942_s21 }
0x19bb   :  { %6926 = vrot.lane.b32.xlu0 %v13951_v10, %s10942_s21 }
0x19be   :  { %6924 = vrot.lane.b32.xlu1 %v13947_v39, %s10942_s21 }
0x19bf   :  { %6922 = vrot.lane.b32.xlu0 %v13959_v46, %s10942_s21 }
0x19c3   :  { %6920 = vrot.lane.b32.xlu0 %v13955_v31, %s10942_s21 }
0x19d2   :  { %v6002_v45 = vpop.xlane.xlu0 %6001 }
0x19d3   :  { %10731 = vrcp.f32 %v6002_v45 }
0x19d6   :  { %v6008_v63 = vpop.xlane.xlu0 %6007  ;;  %v6000_v30 = vpop.xlane.xlu1 %5999 }
0x19d7   :  { %10733 = vrcp.f32 %v6000_v30 }
0x19da   :  { %v6012_v47 = vpop.xlane.xlu0 %6011  ;;  %v5998_v57 = vpop.xlane.xlu1 %5997 }
0x19db   :  { %10735 = vrcp.f32 %v5998_v57 }
0x19de   :  { %v6271_v41 = vpop.permute.xlu0 %6270  ;;  %v6004_v42 = vpop.xlane.xlu1 %6003 }
0x19df   :  { %10737 = vrcp.f32 %v6004_v42  ;;  %9961 = vmatprep.subr.msk.mxu0 %vm605_vm1, %v6271_v41 }
0x19e0   :  { %9962 = vmatpush3.xpose.msk.msra.mxu0 %vm605_vm1, %v6271_v41  ;;  %10739 = vrcp.f32 %v6008_v63  ;;  %v10732_v29 = vpop.eup %10731 }
0x19e1   :  { %v6034_v13 = vmul.f32 %v10732_v29, %v14685_v0 }
0x19e2   :  { %v6241_v35 = vpop.permute.xlu0 %6240  ;;  %v6006_v54 = vpop.xlane.xlu1 %6005 }
0x19e3   :  { %10741 = vrcp.f32 %v6006_v54 }
0x19e4   :  { %10743 = vrcp.f32 %v6012_v47  ;;  %v10734_v7 = vpop.eup %10733 }
0x19e5   :  { %v6032_v38 = vmul.f32 %v10734_v7, %v14688_v16 }
0x19e6   :  { %v6245_v36 = vpop.permute.xlu0 %6244  ;;  %v6010_v52 = vpop.xlane.xlu1 %6009 }
0x19e7   :  { %10745 = vrcp.f32 %v6010_v52 }
0x19e8   :  { %v10736_v23 = vpop.eup %10735 }
0x19e9   :  { %v6030_v59 = vmul.f32 %v10736_v23, %v14694_v51 }
0x19ea   :  { %v6249_v56 = vpop.permute.xlu0 %6248  ;;  %v6239_v53 = vpop.permute.xlu1 %6238 }
0x19eb   :  { %9919 = vmatprep.mubr.f32.mxu0 %v6030_v59 }
0x19ec   :  { %v10738_v34 = vpop.eup %10737  ;;  %9920 = vmatmul.mubr.f32.gmra.mxu0 %v6032_v38 }
0x19ed   :  { %v6036_v24 = vmul.f32 %v10738_v34, %v14700_v6  ;;  %9922 = vmatprep.mubr.f32.mxu0 %v6034_v13  ;;  %v10740_v25 = vpop.eup %10739 }
0x19ee   :  { %v6253_v40 = vpop.permute.xlu0 %6252  ;;  %v6243_v33 = vpop.permute.xlu1 %6242  ;;  %v6040_v16 = vmul.f32 %v10740_v25, %v14690_v21 }
0x19f0   :  { %v10742_v60 = vpop.eup %10741  ;;  %9923 = vmatmul.mubr.f32.gmra.mxu0 %v6036_v24 }
0x19f1   :  { %v6038_v37 = vmul.f32 %v10742_v60, %v14703_v27  ;;  %v10744_v51 = vpop.eup %10743 }
0x19f2   :  { %v6257_v9 = vpop.permute.xlu0 %6256  ;;  %v6247_v14 = vpop.permute.xlu1 %6246  ;;  %v6044_v19 = vmul.f32 %v10744_v51, %v14696_v12 }
0x19f3   :  { %9925 = vmatprep.mubr.f32.mxu0 %v6038_v37 }
0x19f4   :  { %v10746_v20 = vpop.eup %10745  ;;  %9926 = vmatmul.mubr.f32.gmra.mxu0 %v6040_v16 }
0x19f5   :  { %v6042_v0 = vmul.f32 %v10746_v20, %v14708_v5 }
0x19f6   :  { %v6261_v48 = vpop.permute.xlu0 %6260  ;;  %v6251_v6 = vpop.permute.xlu1 %6250 }
0x19f7   :  { %9928 = vmatprep.mubr.f32.mxu0 %v6042_v0 }
0x19f8   :  { %9929 = vmatmul.mubr.f32.gmra.mxu0 %v6044_v19 }
0x19f9   :  { %9963 = vmatprep.mubr.msk.f32.mxu0 %vm605_vm1, %v6239_v53 }
0x19fa   :  { %v6265_v43 = vpop.permute.xlu0 %6264  ;;  %v6255_v27 = vpop.permute.xlu1 %6254 }
0x19fc   :  { %9964 = vmatmul.mubr.msk.f32.vlgmr.msra.gmra.mxu0 %vm605_vm1, %v6241_v35 }
0x19fd   :  { %9966 = vmatprep.mubr.msk.f32.mxu0 %vm605_vm1, %v6243_v33 }
0x19fe   :  { %v6269_v44 = vpop.permute.xlu0 %6268  ;;  %v6259_v21 = vpop.permute.xlu1 %6258 }
0x1a00   :  { %9967 = vmatmul.mubr.msk.f32.gmra.mxu0 %vm605_vm1, %v6245_v36 }
0x1a01   :  { %9969 = vmatprep.mubr.msk.f32.mxu0 %vm605_vm1, %v6247_v14 }
0x1a02   :  { %v6718_v5 = vpop.permute.xlu0 %6717  ;;  %v6263_v11 = vpop.permute.xlu1 %6262 }
0x1a03   :  { %9987 = vmatprep.subr.mxu1 %v6718_v5 }
0x1a04   :  { %9988 = vmatpush3.msra.mxu1 %v6718_v5  ;;  %9970 = vmatmul.mubr.msk.f32.gmra.mxu0 %vm605_vm1, %v6249_v56 }
0x1a05   :  { %9972 = vmatprep.mubr.msk.f32.mxu0 %vm605_vm1, %v6251_v6 }
0x1a06   :  { %v6714_v12 = vpop.permute.xlu0 %6713  ;;  %v6267_v61 = vpop.permute.xlu1 %6266 }
0x1a08   :  { %9973 = vmatmul.mubr.msk.f32.gmra.mxu0 %vm605_vm1, %v6253_v40 }
0x1a09   :  { %9975 = vmatprep.mubr.msk.f32.mxu0 %vm605_vm1, %v6255_v27  ;;  %v14936_v27 = vld [vmem:[%s15733_s1 + $0x80] sm:$0xff] }
0x1a0a   :  { %v6710_v50 = vpop.permute.xlu0 %6709  ;;  %v6716_v1 = vpop.permute.xlu1 %6715 }
0x1a0b   :  { %9989 = vmatprep.subr.mxu1 %v6716_v1 }
0x1a0c   :  { %9990 = vmatpush3.msra.mxu1 %v6716_v1  ;;  %9976 = vmatmul.mubr.msk.f32.gmra.mxu0 %vm605_vm1, %v6257_v9  ;;  %v14954_v1 = vld [vmem:[%s15733_s1 + $0x90] sm:$0xff] }
0x1a0d   :  { %9991 = vmatprep.subr.mxu1 %v6714_v12  ;;  %9978 = vmatprep.mubr.msk.f32.mxu0 %vm605_vm1, %v6259_v21  ;;  %15990 = vst [vmem:[#allocation7_spill] sm:$0xff] %v14954_v1 }
0x1a0e   :  { %9992 = vmatpush3.msra.mxu1 %v6714_v12  ;;  %v6712_v45 = vpop.permute.xlu1 %6711  ;;  %v6704_v63 = vpop.permute.xlu0 %6703 }
0x1a0f   :  { %9993 = vmatprep.subr.mxu1 %v6712_v45 }
0x1a10   :  { %9994 = vmatpush3.msra.mxu1 %v6712_v45  ;;  %9979 = vmatmul.mubr.msk.f32.gmra.mxu0 %vm605_vm1, %v6261_v48  ;;  %v14928_v48 = vld [vmem:[%s15733_s1 + $0x88] sm:$0xff] }
0x1a11   :  { %9995 = vmatprep.subr.mxu1 %v6710_v50  ;;  %9981 = vmatprep.mubr.msk.f32.mxu0 %vm605_vm1, %v6263_v11 }
0x1a12   :  { %9996 = vmatpush3.msra.mxu1 %v6710_v50  ;;  %v6708_v30 = vpop.permute.xlu1 %6707  ;;  %v6700_v47 = vpop.permute.xlu0 %6699 }
0x1a13   :  { %9997 = vmatprep.subr.mxu1 %v6708_v30 }
0x1a14   :  { %9998 = vmatpush3.msra.mxu1 %v6708_v30  ;;  %9982 = vmatmul.mubr.msk.f32.gmra.mxu0 %vm605_vm1, %v6265_v43 }
0x1a15   :  { %9984 = vmatprep.mubr.msk.f32.mxu0 %vm605_vm1, %v6267_v61  ;;  %v14946_v61 = vld [vmem:[%s15733_s1 + $0x98] sm:$0xff] }
0x1a16   :  { %v6706_v57 = vpop.permute.xlu1 %6705  ;;  %v6696_v42 = vpop.permute.xlu0 %6695 }
0x1a17   :  { %9999 = vmatprep.subr.mxu1 %v6706_v57 }
0x1a18   :  { %10000 = vmatpush3.msra.mxu1 %v6706_v57  ;;  %9985 = vmatmul.mubr.msk.f32.gmra.mxu0 %vm605_vm1, %v6269_v44 }
0x1a19   :  { %10001 = vmatprep.subr.mxu1 %v6704_v63 }
0x1a1a   :  { %10002 = vmatpush3.msra.mxu1 %v6704_v63  ;;  %v6702_v41 = vpop.permute.xlu1 %6701  ;;  %v6692_v54 = vpop.permute.xlu0 %6691 }
0x1a1b   :  { %10003 = vmatprep.subr.mxu1 %v6702_v41 }
0x1a1c   :  { %10004 = vmatpush3.msra.mxu1 %v6702_v41  ;;  %v14964_v41 = vld [vmem:[%s15733_s1 + $0xa8] sm:$0xff] }
0x1a1d   :  { %10005 = vmatprep.subr.mxu1 %v6700_v47  ;;  %15991 = vst [vmem:[#allocation6_spill] sm:$0xff] %v14964_v41 }
0x1a1e   :  { %10006 = vmatpush3.msra.mxu1 %v6700_v47  ;;  %v6698_v35 = vpop.permute.xlu1 %6697  ;;  %v6688_v29 = vpop.permute.xlu0 %6687 }
0x1a1f   :  { %10007 = vmatprep.subr.mxu1 %v6698_v35 }
0x1a20   :  { %10008 = vmatpush3.msra.mxu1 %v6698_v35  ;;  %v14972_v35 = vld [vmem:[%s15733_s1 + $0xa0] sm:$0xff] }
0x1a21   :  { %10009 = vmatprep.subr.mxu1 %v6696_v42  ;;  %15992 = vst [vmem:[#allocation9_spill] sm:$0xff] %v14972_v35 }
0x1a22   :  { %10010 = vmatpush3.msra.mxu1 %v6696_v42  ;;  %v6694_v36 = vpop.permute.xlu1 %6693 }
0x1a23   :  { %10011 = vmatprep.subr.mxu1 %v6694_v36 }
0x1a24   :  { %10012 = vmatpush3.msra.mxu1 %v6694_v36 }
0x1a25   :  { %10013 = vmatprep.subr.mxu1 %v6692_v54 }
0x1a26   :  { %10014 = vmatpush3.msra.mxu1 %v6692_v54  ;;  %v6690_v52 = vpop.permute.xlu1 %6689 }
0x1a27   :  { %10015 = vmatprep.subr.mxu1 %v6690_v52 }
0x1a28   :  { %10016 = vmatpush3.msra.mxu1 %v6690_v52 }
0x1a29   :  { %10017 = vmatprep.subr.mxu1 %v6688_v29 }
0x1a2a   :  { %10018 = vmatpush3.msra.mxu1 %v6688_v29  ;;  %v14889_v7 = vpop.permute.xlu1 %6942 }
0x1a2b   :  { %10043 = vmatprep.subr.msk.mxu1 %vm605_vm1, %v14889_v7 }
0x1a30   :  { %v14893_v23 = vpop.f32.mrf.mxu0 }
0x1a31   :  { %15974 = vst [vmem:[#allocation27_spill] sm:$0xff] %v14893_v23 }
0x1a32   :  { %v14895_v56 = vpop.f32.mrf.mxu0 }
0x1a33   :  { %15975 = vst [vmem:[#allocation26_spill] sm:$0xff] %v14895_v56 }
0x1a68   :  { %v14897_v53 = vpop.f32.mrf.mxu0 }
0x1a69   :  { %15976 = vst [vmem:[#allocation29_spill] sm:$0xff] %v14897_v53 }
0x1a6a   :  { %v14899_v59 = vpop.f32.mrf.mxu0 }
0x1a6b   :  { %15977 = vst [vmem:[#allocation28_spill] sm:$0xff] %v14899_v59 }
0x1a70   :  { %v14901_v38 = vpop.f32.mrf.mxu0 }
0x1a71   :  { %15978 = vst [vmem:[#allocation31_spill] sm:$0xff] %v14901_v38 }
0x1a72   :  { %v14903_v34 = vpop.f32.mrf.mxu0 }
0x1a73   :  { %15979 = vst [vmem:[#allocation30_spill] sm:$0xff] %v14903_v34 }
0x1a74   :  { %v14905_v13 = vpop.f32.mrf.mxu0 }
0x1a75   :  { %15980 = vst [vmem:[#allocation33_spill] sm:$0xff] %v14905_v13 }
0x1a76   :  { %v14907_v24 = vpop.f32.mrf.mxu0 }
0x1a77   :  { %15981 = vst [vmem:[#allocation32_spill] sm:$0xff] %v14907_v24 }
0x1aac   :  { %v14909_v40 = vpop.f32.mrf.mxu0 }
0x1aad   :  { %15982 = vst [vmem:[#allocation35_spill] sm:$0xff] %v14909_v40  ;;  %v15079_v40 = vpop.permute.xlu1 %6936 }
0x1aae   :  { %v14911_v33 = vpop.f32.mrf.mxu0 }
0x1aaf   :  { %15983 = vst [vmem:[#allocation34_spill] sm:$0xff] %v14911_v33 }
0x1ab0   :  { %v14913_v25 = vpop.f32.mrf.mxu0 }
0x1ab1   :  { %15984 = vst [vmem:[#allocation37_spill] sm:$0xff] %v14913_v25 }
0x1ab2   :  { %v14915_v60 = vpop.f32.mrf.mxu0 }
0x1ab3   :  { %15985 = vst [vmem:[#allocation36_spill] sm:$0xff] %v14915_v60 }
0x1ab4   :  { %v14917_v37 = vpop.f32.mrf.mxu0 }
0x1ab5   :  { %15986 = vst [vmem:[#allocation39_spill] sm:$0xff] %v14917_v37 }
0x1ab6   :  { %v14919_v9 = vpop.f32.mrf.mxu0 }
0x1ab7   :  { %15987 = vst [vmem:[#allocation38_spill] sm:$0xff] %v14919_v9 }
0x1ab8   :  { %v14921_v14 = vpop.f32.mrf.mxu0 }
0x1ab9   :  { %15988 = vst [vmem:[#allocation41_spill] sm:$0xff] %v14921_v14 }
0x1aba   :  { %v14923_v51 = vpop.f32.mrf.mxu0 }
0x1abb   :  { %15989 = vst [vmem:[#allocation40_spill] sm:$0xff] %v14923_v51 }
0x1abc   :  { %v9965_v16 = vpop.f32.mrf.mxu0 }
0x1abd   :  { %v6512_v20 = vmul.f32 0.35355338, %v9965_v16 }
0x1abe   :  { %v6432_v0 = vpop.f32.mrf.mxu0 }
0x1abf   :  { %v14931_v6 = vadd.f32 %v14928_v48, %v6512_v20  ;;  %v6511_v19 = vmul.f32 0.35355338, %v6432_v0  ;;  %v14982_v20 = vld [vmem:[%s15733_s1 + $0xb8] sm:$0xff] }
0x1ac0   :  { %v9968_v43 = vpop.f32.mrf.mxu0  ;;  %15993 = vst [vmem:[#allocation8_spill] sm:$0xff] %v14982_v20 }
0x1ac1   :  { %v14939_v44 = vadd.f32 %v14936_v27, %v6511_v19  ;;  %v6514_v21 = vmul.f32 0.35355338, %v9968_v43  ;;  %6545 = vmax.xlane.f32.xlu0 %v14931_v6  ;;  %v14990_v19 = vld [vmem:[%s15733_s1 + $0xb0] sm:$0xff] }
0x1ac2   :  { %v6442_v5 = vpop.f32.mrf.mxu0  ;;  %15994 = vst [vmem:[#allocation11_spill] sm:$0xff] %v14990_v19 }
0x1ac3   :  { %v6513_v11 = vmul.f32 0.35355338, %v6442_v5  ;;  %6543 = vmax.xlane.f32.xlu1 %v14939_v44  ;;  %v14949_v50 = vadd.f32 %v14946_v61, %v6514_v21 }
0x1ac4   :  { %v9971_v12 = vpop.f32.mrf.mxu0 }
0x1ac5   :  { %v14957_v45 = vadd.f32 %v14954_v1, %v6513_v11  ;;  %v6516_v63 = vmul.f32 0.35355338, %v9971_v12 }
0x1ac6   :  { %v6452_v30 = vpop.f32.mrf.mxu0 }
0x1ac7   :  { %v6515_v47 = vmul.f32 0.35355338, %v6452_v30  ;;  %6549 = vmax.xlane.f32.xlu1 %v14949_v50  ;;  %6547 = vmax.xlane.f32.xlu0 %v14957_v45  ;;  %v14967_v42 = vadd.f32 %v14964_v41, %v6516_v63  ;;  %v15000_v63 = vld [vmem:[%s15733_s1 + $0xc8] sm:$0xff] }
0x1ac8   :  { %v9974_v57 = vpop.f32.mrf.mxu0  ;;  %15995 = vst [vmem:[#allocation10_spill] sm:$0xff] %v15000_v63 }
0x1ac9   :  { %v14975_v54 = vadd.f32 %v14972_v35, %v6515_v47  ;;  %v6518_v36 = vmul.f32 0.35355338, %v9974_v57  ;;  %v15008_v47 = vld [vmem:[%s15733_s1 + $0xc0] sm:$0xff] }
0x1aca   :  { %v6462_v52 = vpop.f32.mrf.mxu0  ;;  %15996 = vst [vmem:[#allocation13_spill] sm:$0xff] %v15008_v47 }
0x1acb   :  { %v6517_v29 = vmul.f32 0.35355338, %v6462_v52  ;;  %6553 = vmax.xlane.f32.xlu1 %v14967_v42  ;;  %6551 = vmax.xlane.f32.xlu0 %v14975_v54  ;;  %v14985_v0 = vadd.f32 %v14982_v20, %v6518_v36 }
0x1acc   :  { %v9977_v16 = vpop.f32.mrf.mxu0 }
0x1acd   :  { %v14993_v43 = vadd.f32 %v14990_v19, %v6517_v29  ;;  %v6520_v21 = vmul.f32 0.35355338, %v9977_v16 }
0x1ace   :  { %v6472_v5 = vpop.f32.mrf.mxu0 }
0x1acf   :  { %v6519_v11 = vmul.f32 0.35355338, %v6472_v5  ;;  %6557 = vmax.xlane.f32.xlu1 %v14985_v0  ;;  %6555 = vmax.xlane.f32.xlu0 %v14993_v43  ;;  %v15003_v30 = vadd.f32 %v15000_v63, %v6520_v21  ;;  %v15018_v21 = vld [vmem:[%s15733_s1 + $0xd8] sm:$0xff] }
0x1ad0   :  { %v9980_v12 = vpop.f32.mrf.mxu0  ;;  %15997 = vst [vmem:[#allocation12_spill] sm:$0xff] %v15018_v21 }
0x1ad1   :  { %v15011_v57 = vadd.f32 %v15008_v47, %v6519_v11  ;;  %v6522_v36 = vmul.f32 0.35355338, %v9980_v12  ;;  %v15026_v11 = vld [vmem:[%s15733_s1 + $0xd0] sm:$0xff] }
0x1ad2   :  { %v6482_v52 = vpop.f32.mrf.mxu0  ;;  %15998 = vst [vmem:[#allocation15_spill] sm:$0xff] %v15026_v11 }
0x1ad3   :  { %v6521_v29 = vmul.f32 0.35355338, %v6482_v52  ;;  %6561 = vmax.xlane.f32.xlu1 %v15003_v30  ;;  %6559 = vmax.xlane.f32.xlu0 %v15011_v57  ;;  %v15021_v5 = vadd.f32 %v15018_v21, %v6522_v36  ;;  %v15036_v36 = vld [vmem:[%s15733_s1 + $0xe8] sm:$0xff] }
0x1ad4   :  { %v9983_v16 = vpop.f32.mrf.mxu0  ;;  %15999 = vst [vmem:[#allocation14_spill] sm:$0xff] %v15036_v36 }
0x1ad5   :  { %v15029_v12 = vadd.f32 %v15026_v11, %v6521_v29  ;;  %v6524_v52 = vmul.f32 0.35355338, %v9983_v16  ;;  %v15044_v29 = vld [vmem:[%s15733_s1 + $0xe0] sm:$0xff] }
0x1ad6   :  { %v6492_v55 = vpop.f32.mrf.mxu0  ;;  %16000 = vst [vmem:[#allocation17_spill] sm:$0xff] %v15044_v29 }
0x1ad7   :  { %v6523_v4 = vmul.f32 0.35355338, %v6492_v55  ;;  %6565 = vmax.xlane.f32.xlu1 %v15021_v5  ;;  %6563 = vmax.xlane.f32.xlu0 %v15029_v12  ;;  %v15039_v14 = vadd.f32 %v15036_v36, %v6524_v52  ;;  %v15054_v52 = vld [vmem:[%s15733_s1 + $0xf8] sm:$0xff] }
0x1ad8   :  { %v9986_v22 = vpop.f32.mrf.mxu0  ;;  %16001 = vst [vmem:[#allocation16_spill] sm:$0xff] %v15054_v52 }
0x1ad9   :  { %v15047_v55 = vadd.f32 %v15044_v29, %v6523_v4  ;;  %v6526_v16 = vmul.f32 0.35355338, %v9986_v22  ;;  %v15062_v4 = vld [vmem:[%s15733_s1 + $0xf0] sm:$0xff] }
0x1ada   :  { %v6502_v51 = vpop.f32.mrf.mxu0  ;;  %16002 = vst [vmem:[#allocation19_spill] sm:$0xff] %v15062_v4 }
0x1adb   :  { %v6525_v37 = vmul.f32 0.35355338, %v6502_v51  ;;  %6569 = vmax.xlane.f32.xlu1 %v15039_v14  ;;  %6567 = vmax.xlane.f32.xlu0 %v15047_v55  ;;  %v15057_v9 = vadd.f32 %v15054_v52, %v6526_v16  ;;  %v15071_v51 = vpop.permute.xlu0 %6940 }
0x1add   :  { %v15065_v22 = vadd.f32 %v15062_v4, %v6525_v37  ;;  %v15083_v37 = vpop.permute.xlu1 %6932 }
0x1adf   :  { %6573 = vmax.xlane.f32.xlu1 %v15057_v9  ;;  %6571 = vmax.xlane.f32.xlu0 %v15065_v22  ;;  %v15073_v25 = vpop.permute.xlu0 %6938 }
0x1ae1   :  { %v15087_v24 = vpop.permute.xlu1 %6928 }
0x1ae3   :  { %v15075_v16 = vpop.permute.xlu0 %6934 }
0x1ae5   :  { %v15091_v34 = vpop.permute.xlu1 %6924 }
0x1ae7   :  { %v15077_v60 = vpop.permute.xlu0 %6930 }
0x1aeb   :  { %v15081_v33 = vpop.permute.xlu0 %6926 }
0x1aef   :  { %v15085_v13 = vpop.permute.xlu0 %6922 }
0x1af3   :  { %v15089_v38 = vpop.permute.xlu0 %6920 }
0x1af5   :  { %6918 = vrot.lane.b32.xlu0 %v13967_v18, %s10942_s21 }
0x1b4a   :  { %v6546_v53 = vpop.xlane.xlu0 %6545 }
0x1b4b   :  { %v6576_v59 = vsub.f32 %v14931_v6, %v6546_v53 }
0x1b4c   :  { %v6544_v56 = vpop.xlane.xlu1 %6543 }
0x1b4d   :  { %v6593_v23 = vmul.f32 1.442695, %v6576_v59  ;;  %v6575_v4 = vsub.f32 %v14939_v44, %v6544_v56 }
0x1b4f   :  { %10747 = vpow2.f32 %v6593_v23  ;;  %v6591_v52 = vmul.f32 1.442695, %v6575_v4 }
0x1b50   :  { %v6548_v29 = vpop.xlane.xlu0 %6547  ;;  %v6550_v36 = vpop.xlane.xlu1 %6549 }
0x1b51   :  { %10749 = vpow2.f32 %v6591_v52  ;;  %v6577_v11 = vsub.f32 %v14957_v45, %v6548_v29  ;;  %v6578_v21 = vsub.f32 %v14949_v50, %v6550_v36 }
0x1b53   :  { %v6595_v47 = vmul.f32 1.442695, %v6577_v11  ;;  %v6597_v63 = vmul.f32 1.442695, %v6578_v21 }
0x1b54   :  { %v6552_v19 = vpop.xlane.xlu0 %6551  ;;  %v6554_v20 = vpop.xlane.xlu1 %6553 }
0x1b55   :  { %10751 = vpow2.f32 %v6595_v47  ;;  %v6580_v53 = vsub.f32 %v14967_v42, %v6554_v20  ;;  %v6579_v59 = vsub.f32 %v14975_v54, %v6552_v19 }
0x1b56   :  { %10753 = vpow2.f32 %v6597_v63 }
0x1b57   :  { %v6601_v56 = vmul.f32 1.442695, %v6580_v53  ;;  %v6599_v52 = vmul.f32 1.442695, %v6579_v59 }
0x1b58   :  { %v6556_v23 = vpop.xlane.xlu0 %6555  ;;  %v6558_v6 = vpop.xlane.xlu1 %6557 }
0x1b59   :  { %v6581_v44 = vsub.f32 %v14993_v43, %v6556_v23  ;;  %10755 = vpow2.f32 %v6601_v56  ;;  %v6582_v45 = vsub.f32 %v14985_v0, %v6558_v6 }
0x1b5b   :  { %v6603_v50 = vmul.f32 1.442695, %v6581_v44  ;;  %v6605_v42 = vmul.f32 1.442695, %v6582_v45 }
0x1b5c   :  { %v15101_v11 = vpop.eup %10747  ;;  %v6562_v21 = vpop.xlane.xlu1 %6561 }
0x1b5d   :  { %10757 = vpow2.f32 %v6603_v50  ;;  %6625 = vadd.xlane.f32.xlu0 %v15101_v11  ;;  %v6560_v36 = vpop.xlane.xlu0 %6559  ;;  %v6584_v6 = vsub.f32 %v15003_v30, %v6562_v21 }
0x1b5e   :  { %v15104_v47 = vpop.eup %10749  ;;  %10759 = vpow2.f32 %v6599_v52  ;;  %v6583_v50 = vsub.f32 %v15011_v57, %v6560_v36 }
0x1b5f   :  { %6623 = vadd.xlane.f32.xlu1 %v15104_v47  ;;  %10761 = vpow2.f32 %v6605_v42  ;;  %v6609_v42 = vmul.f32 1.442695, %v6584_v6 }
0x1b60   :  { %v6566_v29 = vpop.xlane.xlu1 %6565  ;;  %v6607_v41 = vmul.f32 1.442695, %v6583_v50 }
0x1b61   :  { %v6564_v4 = vpop.xlane.xlu0 %6563  ;;  %v6586_v1 = vsub.f32 %v15021_v5, %v6566_v29 }
0x1b62   :  { %v15107_v54 = vpop.eup %10751  ;;  %v6585_v59 = vsub.f32 %v15029_v12, %v6564_v4 }
0x1b63   :  { %v15109_v20 = vpop.eup %10753  ;;  %6627 = vadd.xlane.f32.xlu1 %v15107_v54 }
0x1b64   :  { %6629 = vadd.xlane.f32.xlu0 %v15109_v20  ;;  %v6570_v53 = vpop.xlane.xlu1 %6569  ;;  %v6611_v56 = vmul.f32 1.442695, %v6585_v59 }
0x1b65   :  { %v6588_v23 = vsub.f32 %v15039_v14, %v6570_v53  ;;  %v6568_v12 = vpop.xlane.xlu0 %6567  ;;  %v6613_v14 = vmul.f32 1.442695, %v6586_v1 }
0x1b66   :  { %v15113_v0 = vpop.eup %10755  ;;  %10763 = vpow2.f32 %v6611_v56  ;;  %v6587_v30 = vsub.f32 %v15047_v55, %v6568_v12 }
0x1b67   :  { %6633 = vadd.xlane.f32.xlu1 %v15113_v0  ;;  %v6617_v52 = vmul.f32 1.442695, %v6588_v23 }
0x1b68   :  { %v6574_v44 = vpop.xlane.xlu1 %6573  ;;  %v6615_v4 = vmul.f32 1.442695, %v6587_v30 }
0x1b69   :  { %v6590_v45 = vsub.f32 %v15057_v9, %v6574_v44  ;;  %10765 = vpow2.f32 %v6617_v52  ;;  %v6572_v55 = vpop.xlane.xlu0 %6571 }
0x1b6a   :  { %v15116_v19 = vpop.eup %10757  ;;  %10767 = vpow2.f32 %v6609_v42  ;;  %v6589_v36 = vsub.f32 %v15065_v22, %v6572_v55 }
0x1b6b   :  { %v15118_v43 = vpop.eup %10759  ;;  %6635 = vadd.xlane.f32.xlu0 %v15116_v19  ;;  %v6621_v35 = vmul.f32 1.442695, %v6590_v45 }
0x1b6c   :  { %6631 = vadd.xlane.f32.xlu1 %v15118_v43  ;;  %v15122_v63 = vpop.eup %10761  ;;  %v6619_v29 = vmul.f32 1.442695, %v6589_v36 }
0x1b6d   :  { %10769 = vpow2.f32 %v6621_v35  ;;  %v15178_v53 = vpop.permute.xlu0 %6918 }
0x1b6e   :  { %10771 = vpow2.f32 %v6607_v41 }
0x1b6f   :  { %10773 = vpow2.f32 %v6613_v14 }
0x1b70   :  { %6637 = vadd.xlane.f32.xlu1 %v15122_v63  ;;  %10775 = vpow2.f32 %v6615_v4 }
0x1b71   :  { %10777 = vpow2.f32 %v6619_v29 }
0x1b73   :  { %v15136_v21 = vpop.eup %10763 }
0x1b76   :  { %v15139_v9 = vpop.eup %10765 }
0x1b77   :  { %v15141_v57 = vpop.eup %10767 }
0x1b7a   :  { %v15145_v35 = vpop.eup %10769 }
0x1b7b   :  { %v15147_v1 = vpop.eup %10771 }
0x1b7c   :  { %v15151_v41 = vpop.eup %10773 }
0x1b7d   :  { %v15154_v5 = vpop.eup %10775 }
0x1b7e   :  { %v15182_v22 = vpop.eup %10777 }
0x1b81   :  { %6914 = vrot.lane.b32.xlu1 %v13973_v28, %s10942_s21  ;;  %6916 = vrot.lane.b32.xlu0 %v13963_v58, %s10942_s21 }
0x1ba0   :  { %6643 = vadd.xlane.f32.xlu0 %v15136_v21 }
0x1ba4   :  { %6649 = vadd.xlane.f32.xlu0 %v15139_v9 }
0x1ba5   :  { %6641 = vadd.xlane.f32.xlu1 %v15141_v57 }
0x1ba8   :  { %6653 = vadd.xlane.f32.xlu0 %v15145_v35 }
0x1ba9   :  { %6639 = vadd.xlane.f32.xlu1 %v15147_v1 }
0x1bad   :  { %6645 = vadd.xlane.f32.xlu1 %v15151_v41 }
0x1bb1   :  { %6647 = vadd.xlane.f32.xlu1 %v15154_v5 }
0x1bbe   :  { %6912 = vrot.lane.b32.xlu0 %v13913_v49, %s10942_s21 }
0x1bc2   :  { %6880 = vrot.lane.b32.xlu1 %v13913_v49, %s10943_s13  ;;  %6882 = vrot.lane.b32.xlu0 %v13973_v28, %s10943_s13 }
0x1bc6   :  { %6886 = vrot.lane.b32.xlu0 %v13967_v18, %s10943_s13 }
0x1bca   :  { %6890 = vrot.lane.b32.xlu0 %v13959_v46, %s10943_s13 }
0x1bce   :  { %6894 = vrot.lane.b32.xlu0 %v13951_v10, %s10943_s13 }
0x1bd2   :  { %6898 = vrot.lane.b32.xlu0 %v13943_v15, %s10943_s13 }
0x1bd6   :  { %6902 = vrot.lane.b32.xlu0 %v13935_v3, %s10943_s13 }
0x1bda   :  { %6906 = vrot.lane.b32.xlu0 %v13927_v32, %s10943_s13 }
0x1bde   :  { %6910 = vrot.lane.b32.xlu0 %v13917_v8, %s10943_s13 }
0x1be2   :  { %7359 = vrot.lane.b32.xlu0 %v13917_v8, %s10944_s14 }
0x1be6   :  { %6651 = vadd.xlane.f32.xlu1 %v15182_v22  ;;  %v6626_v59 = vpop.xlane.xlu0 %6625  ;;  %7355 = vrot.lane.b32.xlu0 %v13927_v32, %s10944_s14 }
0x1be7   :  { %10779 = vrcp.f32 %v6626_v59 }
0x1be8   :  { %v6624_v56 = vpop.xlane.xlu1 %6623 }
0x1be9   :  { %10781 = vrcp.f32 %v6624_v56 }
0x1bea   :  { %7351 = vrot.lane.b32.xlu0 %v13935_v3, %s10944_s14 }
0x1bec   :  { %v6628_v23 = vpop.xlane.xlu1 %6627 }
0x1bed   :  { %v6630_v6 = vpop.xlane.xlu0 %6629  ;;  %10783 = vrcp.f32 %v6628_v23 }
0x1bee   :  { %10785 = vrcp.f32 %v6630_v6  ;;  %7347 = vrot.lane.b32.xlu0 %v13943_v15, %s10944_s14 }
0x1bf0   :  { %v6634_v8 = vpop.xlane.xlu1 %6633 }
0x1bf1   :  { %10787 = vrcp.f32 %v6634_v8 }
0x1bf2   :  { %7343 = vrot.lane.b32.xlu0 %v13951_v10, %s10944_s14 }
0x1bf4   :  { %v6636_v44 = vpop.xlane.xlu0 %6635  ;;  %v10780_v32 = vpop.eup %10779 }
0x1bf5   :  { %10789 = vrcp.f32 %v6636_v44  ;;  %v6632_v52 = vpop.xlane.xlu1 %6631  ;;  %v6658_v50 = vmul.f32 %v10780_v32, %v15101_v11 }
0x1bf6   :  { %v10782_v45 = vpop.eup %10781  ;;  %10791 = vrcp.f32 %v6632_v52 }
0x1bf7   :  { %6884 = vrot.lane.b32.xlu1 %v13963_v58, %s10943_s13  ;;  %v6656_v3 = vmul.f32 %v10782_v45, %v15104_v47 }
0x1bf9   :  { %v6638_v42 = vpop.xlane.xlu1 %6637  ;;  %10019 = vmatprep.mubr.f32.mxu1 %v6656_v3 }
0x1bfa   :  { %v10784_v15 = vpop.eup %10783  ;;  %10793 = vrcp.f32 %v6638_v42  ;;  %10020 = vmatmul.mubr.f32.vlgmr.msra.gmra.mxu1 %v6658_v50 }
0x1bfb   :  { %v10786_v10 = vpop.eup %10785  ;;  %6888 = vrot.lane.b32.xlu1 %v13955_v31, %s10943_s13  ;;  %10044 = vmatpush3.xpose.msk.msra.mxu1 %vm605_vm1, %v14889_v7  ;;  %v6660_v12 = vmul.f32 %v10784_v15, %v15107_v54 }
0x1bfc   :  { %10045 = vmatprep.subr.msk.mxu1 %vm605_vm1, %v15071_v51  ;;  %v6662_v47 = vmul.f32 %v10786_v10, %v15109_v20 }
0x1bfd   :  { %10022 = vmatprep.mubr.f32.mxu1 %v6660_v12 }
0x1bfe   :  { %10023 = vmatmul.mubr.f32.gmra.mxu1 %v6662_v47  ;;  %v10788_v11 = vpop.eup %10787 }
0x1bff   :  { %6892 = vrot.lane.b32.xlu1 %v13947_v39, %s10943_s13  ;;  %10046 = vmatpush3.xpose.msk.msra.mxu1 %vm605_vm1, %v15071_v51  ;;  %v6666_v20 = vmul.f32 %v10788_v11, %v15113_v0 }
0x1c00   :  { %10047 = vmatprep.subr.msk.mxu1 %vm605_vm1, %v15073_v25 }
0x1c02   :  { %v10790_v7 = vpop.eup %10789 }
0x1c03   :  { %v10792_v14 = vpop.eup %10791  ;;  %6896 = vrot.lane.b32.xlu1 %v13939_v62, %s10943_s13  ;;  %10048 = vmatpush3.xpose.msk.msra.mxu1 %vm605_vm1, %v15073_v25  ;;  %v6668_v51 = vmul.f32 %v10790_v7, %v15116_v19 }
0x1c04   :  { %10049 = vmatprep.subr.msk.mxu1 %vm605_vm1, %v15079_v40  ;;  %v6664_v54 = vmul.f32 %v10792_v14, %v15118_v43 }
0x1c06   :  { %10025 = vmatprep.mubr.f32.mxu1 %v6664_v54 }
0x1c07   :  { %v10794_v30 = vpop.eup %10793  ;;  %6900 = vrot.lane.b32.xlu1 %v13931_v26, %s10943_s13  ;;  %10026 = vmatmul.mubr.f32.gmra.mxu1 %v6666_v20 }
0x1c08   :  { %10050 = vmatpush3.xpose.msk.msra.mxu1 %vm605_vm1, %v15079_v40  ;;  %10028 = vmatprep.mubr.f32.mxu1 %v6668_v51  ;;  %v6670_v25 = vmul.f32 %v10794_v30, %v15122_v63 }
0x1c09   :  { %10051 = vmatprep.subr.msk.mxu1 %vm605_vm1, %v15075_v16 }
0x1c0b   :  { %6904 = vrot.lane.b32.xlu1 %v13923_v17, %s10943_s13  ;;  %10029 = vmatmul.mubr.f32.gmra.mxu1 %v6670_v25 }
0x1c0c   :  { %10052 = vmatpush3.xpose.msk.msra.mxu1 %vm605_vm1, %v15075_v16 }
0x1c0d   :  { %10053 = vmatprep.subr.msk.mxu1 %vm605_vm1, %v15083_v37 }
0x1c0f   :  { %6908 = vrot.lane.b32.xlu1 %v13919_v2, %s10943_s13 }
0x1c10   :  { %10054 = vmatpush3.xpose.msk.msra.mxu1 %vm605_vm1, %v15083_v37 }
0x1c11   :  { %10055 = vmatprep.subr.msk.mxu1 %vm605_vm1, %v15077_v60 }
0x1c13   :  { %7357 = vrot.lane.b32.xlu1 %v13919_v2, %s10944_s14  ;;  %v6917_v2 = vpop.permute.xlu0 %6916 }
0x1c14   :  { %10056 = vmatpush3.xpose.msk.msra.mxu1 %vm605_vm1, %v15077_v60 }
0x1c15   :  { %10057 = vmatprep.subr.msk.mxu1 %vm605_vm1, %v15087_v24 }
0x1c17   :  { %7353 = vrot.lane.b32.xlu1 %v13923_v17, %s10944_s14 }
0x1c18   :  { %10058 = vmatpush3.xpose.msk.msra.mxu1 %vm605_vm1, %v15087_v24 }
0x1c19   :  { %10059 = vmatprep.subr.msk.mxu1 %vm605_vm1, %v15081_v33 }
0x1c1b   :  { %7349 = vrot.lane.b32.xlu1 %v13931_v26, %s10944_s14  ;;  %v6915_v26 = vpop.permute.xlu1 %6914 }
0x1c1c   :  { %10060 = vmatpush3.xpose.msk.msra.mxu1 %vm605_vm1, %v15081_v33 }
0x1c1d   :  { %10061 = vmatprep.subr.msk.mxu1 %vm605_vm1, %v15091_v34 }
0x1c1f   :  { %7345 = vrot.lane.b32.xlu1 %v13939_v62, %s10944_s14 }
0x1c20   :  { %10062 = vmatpush3.xpose.msk.msra.mxu1 %vm605_vm1, %v15091_v34 }
0x1c21   :  { %10063 = vmatprep.subr.msk.mxu1 %vm605_vm1, %v15085_v13 }
0x1c23   :  { %7341 = vrot.lane.b32.xlu1 %v13947_v39, %s10944_s14 }
0x1c24   :  { %10064 = vmatpush3.xpose.msk.msra.mxu1 %vm605_vm1, %v15085_v13 }
0x1c25   :  { %10065 = vmatprep.subr.msk.mxu1 %vm605_vm1, %v15089_v38 }
0x1c28   :  { %10066 = vmatpush3.xpose.msk.msra.mxu1 %vm605_vm1, %v15089_v38 }
0x1c29   :  { %10067 = vmatprep.subr.msk.mxu1 %vm605_vm1, %v15178_v53  ;;  %v6644_v17 = vpop.xlane.xlu0 %6643 }
0x1c2a   :  { %10795 = vrcp.f32 %v6644_v17 }
0x1c2c   :  { %10068 = vmatpush3.xpose.msk.msra.mxu1 %vm605_vm1, %v15178_v53 }
0x1c2d   :  { %10069 = vmatprep.subr.msk.mxu1 %vm605_vm1, %v6917_v2  ;;  %v6650_v62 = vpop.xlane.xlu0 %6649 }
0x1c2e   :  { %v6642_v39 = vpop.xlane.xlu1 %6641 }
0x1c2f   :  { %10797 = vrcp.f32 %v6642_v39 }
0x1c30   :  { %10070 = vmatpush3.xpose.msk.msra.mxu1 %vm605_vm1, %v6917_v2 }
0x1c31   :  { %10071 = vmatprep.subr.msk.mxu1 %vm605_vm1, %v6915_v26  ;;  %v6654_v34 = vpop.xlane.xlu0 %6653 }
0x1c32   :  { %v6640_v38 = vpop.xlane.xlu1 %6639 }
0x1c33   :  { %10799 = vrcp.f32 %v6640_v38 }
0x1c34   :  { %10072 = vmatpush3.xpose.msk.msra.mxu1 %vm605_vm1, %v6915_v26 }
0x1c35   :  { %v6913_v13 = vpop.permute.xlu0 %6912 }
0x1c36   :  { %v6646_v24 = vpop.xlane.xlu1 %6645  ;;  %10073 = vmatprep.subr.msk.mxu1 %vm605_vm1, %v6913_v13 }
0x1c37   :  { %10801 = vrcp.f32 %v6646_v24  ;;  %v10796_v16 = vpop.eup %10795 }
0x1c38   :  { %10074 = vmatpush3.xpose.msk.msra.mxu1 %vm605_vm1, %v6913_v13  ;;  %10803 = vrcp.f32 %v6650_v62  ;;  %v6676_v4 = vmul.f32 %v10796_v16, %v15136_v21 }
0x1c39   :  { %v6883_v40 = vpop.permute.xlu0 %6882 }
0x1c3a   :  { %v6648_v33 = vpop.xlane.xlu1 %6647 }
0x1c3b   :  { %10805 = vrcp.f32 %v6648_v33 }
0x1c3c   :  { %v10798_v37 = vpop.eup %10797  ;;  %10807 = vrcp.f32 %v6654_v34 }
0x1c3d   :  { %v6887_v60 = vpop.permute.xlu0 %6886  ;;  %v6674_v63 = vmul.f32 %v10798_v37, %v15141_v57 }
0x1c40   :  { %v10800_v0 = vpop.eup %10799 }
0x1c41   :  { %v6891_v19 = vpop.permute.xlu0 %6890  ;;  %v6672_v43 = vmul.f32 %v10800_v0, %v15147_v1 }
0x1c43   :  { %10031 = vmatprep.mubr.f32.mxu1 %v6672_v43 }
0x1c44   :  { %v10802_v55 = vpop.eup %10801  ;;  %10032 = vmatmul.mubr.f32.gmra.mxu1 %v6674_v63 }
0x1c45   :  { %10034 = vmatprep.mubr.f32.mxu1 %v6676_v4  ;;  %v6895_v36 = vpop.permute.xlu0 %6894  ;;  %v6678_v29 = vmul.f32 %v10802_v55, %v15151_v41  ;;  %v10804_v53 = vpop.eup %10803 }
0x1c46   :  { %v6682_v6 = vmul.f32 %v10804_v53, %v15139_v9  ;;  %v6881_v41 = vpop.permute.xlu1 %6880 }
0x1c48   :  { %v10806_v59 = vpop.eup %10805  ;;  %10035 = vmatmul.mubr.f32.gmra.mxu1 %v6678_v29 }
0x1c49   :  { %v6899_v56 = vpop.permute.xlu0 %6898  ;;  %v6680_v23 = vmul.f32 %v10806_v59, %v15154_v5  ;;  %v10808_v45 = vpop.eup %10807 }
0x1c4a   :  { %v6686_v42 = vmul.f32 %v10808_v45, %v15145_v35  ;;  %v16006_v45 = vld [vmem:[#allocation8_spill] sm:$0xff] }
0x1c4b   :  { %10037 = vmatprep.mubr.f32.mxu1 %v6680_v23 }
0x1c4c   :  { %10038 = vmatmul.mubr.f32.gmra.mxu1 %v6682_v6  ;;  %v16003_v6 = vld [vmem:[#allocation7_spill] sm:$0xff] }
0x1c4d   :  { %v6903_v57 = vpop.permute.xlu0 %6902 }
0x1c51   :  { %v15287_v1 = vpop.permute.xlu0 %6906 }
0x1c55   :  { %v15289_v21 = vpop.permute.xlu0 %6910 }
0x1c59   :  { %v7360_v8 = vpop.permute.xlu0 %7359 }
0x1c5a   :  { %10099 = vmatprep.subr.mxu0 %v7360_v8  ;;  %10187 = vmatprep.subr.mxu1 %v7360_v8 }
0x1c5b   :  { %10100 = vmatpush3.msra.mxu0 %v7360_v8 }
0x1c5d   :  { %v7356_v35 = vpop.permute.xlu0 %7355 }
0x1c61   :  { %v7352_v11 = vpop.permute.xlu0 %7351 }
0x1c65   :  { %v7348_v14 = vpop.permute.xlu0 %7347 }
0x1c69   :  { %v7344_v20 = vpop.permute.xlu0 %7343 }
0x1c6f   :  { %v6652_v44 = vpop.xlane.xlu1 %6651 }
0x1c70   :  { %10809 = vrcp.f32 %v6652_v44  ;;  %v16005_v44 = vld [vmem:[#allocation9_spill] sm:$0xff] }
0x1c73   :  { %v6885_v32 = vpop.permute.xlu1 %6884 }
0x1c77   :  { %v6889_v52 = vpop.permute.xlu1 %6888 }
0x1c7b   :  { %v6893_v5 = vpop.permute.xlu1 %6892 }
0x1c7d   :  { %v10810_v9 = vpop.eup %10809 }
0x1c7e   :  { %v6684_v3 = vmul.f32 %v10810_v9, %v15182_v22 }
0x1c7f   :  { %v6897_v50 = vpop.permute.xlu1 %6896 }
0x1c80   :  { %10040 = vmatprep.mubr.f32.mxu1 %v6684_v3  ;;  %v16007_v3 = vld [vmem:[#allocation11_spill] sm:$0xff] }
0x1c81   :  { %10041 = vmatmul.mubr.f32.gmra.mxu1 %v6686_v42 }
0x1c82   :  { %10075 = vmatprep.mubr.msk.f32.mxu1 %vm605_vm1, %v6881_v41 }
0x1c83   :  { %v6901_v15 = vpop.permute.xlu1 %6900 }
0x1c85   :  { %10076 = vmatmul.mubr.msk.f32.vlgmr.msra.gmra.mxu1 %vm605_vm1, %v6883_v40 }
0x1c86   :  { %10203 = vmatpush3.msra.mxu1 %v7360_v8  ;;  %10078 = vmatprep.mubr.msk.f32.mxu1 %vm605_vm1, %v6885_v32  ;;  %v16004_v8 = vld [vmem:[#allocation6_spill] sm:$0xff] }
0x1c87   :  { %v6905_v10 = vpop.permute.xlu1 %6904 }
0x1c89   :  { %10079 = vmatmul.mubr.msk.f32.gmra.mxu1 %vm605_vm1, %v6887_v60 }
0x1c8a   :  { %10081 = vmatprep.mubr.msk.f32.mxu1 %vm605_vm1, %v6889_v52 }
0x1c8b   :  { %v6909_v12 = vpop.permute.xlu1 %6908 }
0x1c8d   :  { %10082 = vmatmul.mubr.msk.f32.gmra.mxu1 %vm605_vm1, %v6891_v19 }
0x1c8e   :  { %10084 = vmatprep.mubr.msk.f32.mxu1 %vm605_vm1, %v6893_v5 }
0x1c8f   :  { %v7358_v22 = vpop.permute.xlu1 %7357 }
0x1c90   :  { %10101 = vmatprep.subr.mxu0 %v7358_v22  ;;  %10188 = vmatprep.subr.mxu1 %v7358_v22 }
0x1c91   :  { %10085 = vmatmul.mubr.msk.f32.gmra.mxu1 %vm605_vm1, %v6895_v36  ;;  %10102 = vmatpush3.msra.mxu0 %v7358_v22 }
0x1c92   :  { %10204 = vmatpush3.msra.mxu1 %v7358_v22  ;;  %10087 = vmatprep.mubr.msk.f32.mxu1 %vm605_vm1, %v6897_v50 }
0x1c93   :  { %10103 = vmatprep.subr.mxu0 %v7356_v35  ;;  %10189 = vmatprep.subr.mxu1 %v7356_v35  ;;  %v7354_v47 = vpop.permute.xlu1 %7353 }
0x1c94   :  { %10104 = vmatpush3.msra.mxu0 %v7356_v35  ;;  %10205 = vmatpush3.msra.mxu1 %v7356_v35  ;;  %v16008_v35 = vld [vmem:[#allocation10_spill] sm:$0xff] }
0x1c95   :  { %10105 = vmatprep.subr.mxu0 %v7354_v47  ;;  %10190 = vmatprep.subr.mxu1 %v7354_v47 }
0x1c96   :  { %10088 = vmatmul.mubr.msk.f32.gmra.mxu1 %vm605_vm1, %v6899_v56  ;;  %10106 = vmatpush3.msra.mxu0 %v7354_v47 }
0x1c97   :  { %10206 = vmatpush3.msra.mxu1 %v7354_v47  ;;  %10090 = vmatprep.mubr.msk.f32.mxu1 %vm605_vm1, %v6901_v15  ;;  %v7350_v7 = vpop.permute.xlu1 %7349  ;;  %v16009_v47 = vld [vmem:[#allocation13_spill] sm:$0xff] }
0x1c98   :  { %10107 = vmatprep.subr.mxu0 %v7352_v11  ;;  %10191 = vmatprep.subr.mxu1 %v7352_v11 }
0x1c99   :  { %10108 = vmatpush3.msra.mxu0 %v7352_v11  ;;  %10207 = vmatpush3.msra.mxu1 %v7352_v11 }
0x1c9a   :  { %10109 = vmatprep.subr.mxu0 %v7350_v7  ;;  %10192 = vmatprep.subr.mxu1 %v7350_v7 }
0x1c9b   :  { %10091 = vmatmul.mubr.msk.f32.gmra.mxu1 %vm605_vm1, %v6903_v57  ;;  %10110 = vmatpush3.msra.mxu0 %v7350_v7  ;;  %v7346_v54 = vpop.permute.xlu1 %7345 }
0x1c9c   :  { %10208 = vmatpush3.msra.mxu1 %v7350_v7  ;;  %10093 = vmatprep.mubr.msk.f32.mxu1 %vm605_vm1, %v6905_v10 }
0x1c9d   :  { %10111 = vmatprep.subr.mxu0 %v7348_v14  ;;  %10193 = vmatprep.subr.mxu1 %v7348_v14 }
0x1c9e   :  { %10112 = vmatpush3.msra.mxu0 %v7348_v14  ;;  %10209 = vmatpush3.msra.mxu1 %v7348_v14 }
0x1c9f   :  { %10113 = vmatprep.subr.mxu0 %v7346_v54  ;;  %10194 = vmatprep.subr.mxu1 %v7346_v54  ;;  %v7342_v51 = vpop.permute.xlu1 %7341 }
0x1ca0   :  { %10094 = vmatmul.mubr.msk.f32.gmra.mxu1 %vm605_vm1, %v15287_v1  ;;  %10114 = vmatpush3.msra.mxu0 %v7346_v54 }
0x1ca1   :  { %10210 = vmatpush3.msra.mxu1 %v7346_v54  ;;  %10096 = vmatprep.mubr.msk.f32.mxu1 %vm605_vm1, %v6909_v12 }
0x1ca2   :  { %10115 = vmatprep.subr.mxu0 %v7344_v20  ;;  %10195 = vmatprep.subr.mxu1 %v7344_v20 }
0x1ca3   :  { %10116 = vmatpush3.msra.mxu0 %v7344_v20  ;;  %10211 = vmatpush3.msra.mxu1 %v7344_v20  ;;  %v16010_v20 = vld [vmem:[#allocation12_spill] sm:$0xff] }
0x1ca4   :  { %10117 = vmatprep.subr.mxu0 %v7342_v51  ;;  %10196 = vmatprep.subr.mxu1 %v7342_v51 }
0x1ca5   :  { %10097 = vmatmul.mubr.msk.f32.gmra.mxu1 %vm605_vm1, %v15289_v21  ;;  %10118 = vmatpush3.msra.mxu0 %v7342_v51 }
0x1ca6   :  { %10212 = vmatpush3.msra.mxu1 %v7342_v51 }
0x1cba   :  { %v15311_v30 = vpop.f32.mrf.mxu1 }
0x1cbc   :  { %v15313_v25 = vpop.f32.mrf.mxu1 }
0x1cbe   :  { %v15315_v2 = vpop.f32.mrf.mxu1 }
0x1cc0   :  { %v15317_v17 = vpop.f32.mrf.mxu1 }
0x1cc7   :  { %v15319_v26 = vpop.f32.mrf.mxu1 }
0x1cc9   :  { %v15321_v62 = vpop.f32.mrf.mxu1 }
0x1ccb   :  { %v15323_v39 = vpop.f32.mrf.mxu1 }
0x1ccd   :  { %v15325_v34 = vpop.f32.mrf.mxu1 }
0x1d04   :  { %v15327_v38 = vpop.f32.mrf.mxu1 }
0x1d06   :  { %v15329_v13 = vpop.f32.mrf.mxu1 }
0x1d08   :  { %v15331_v24 = vpop.f32.mrf.mxu1 }
0x1d0a   :  { %v15333_v40 = vpop.f32.mrf.mxu1 }
0x1d0c   :  { %v15335_v33 = vpop.f32.mrf.mxu1 }
0x1d0e   :  { %v15337_v60 = vpop.f32.mrf.mxu1 }
0x1d41   :  { %v15339_v16 = vpop.f32.mrf.mxu1 }
0x1d43   :  { %v15341_v37 = vpop.f32.mrf.mxu1 }
0x1d45   :  { %v10077_v0 = vpop.f32.mrf.mxu1 }
0x1d46   :  { %v7154_v19 = vmul.f32 0.35355338, %v10077_v0 }
0x1d47   :  { %v7074_v43 = vpop.f32.mrf.mxu1 }
0x1d48   :  { %v15344_v63 = vadd.f32 %v14928_v48, %v7154_v19  ;;  %v7153_v4 = vmul.f32 0.35355338, %v7074_v43  ;;  %v16011_v19 = vld [vmem:[#allocation15_spill] sm:$0xff] }
0x1d49   :  { %v10080_v55 = vpop.f32.mrf.mxu1 }
0x1d4a   :  { %v15347_v36 = vadd.f32 %v14936_v27, %v7153_v4  ;;  %v7156_v29 = vmul.f32 0.35355338, %v10080_v55  ;;  %7187 = vmax.xlane.f32.xlu0 %v15344_v63 }
0x1d4b   :  { %v7084_v53 = vpop.f32.mrf.mxu1 }
0x1d4c   :  { %v7155_v59 = vmul.f32 0.35355338, %v7084_v53  ;;  %7185 = vmax.xlane.f32.xlu1 %v15347_v36  ;;  %v15352_v23 = vadd.f32 %v14946_v61, %v7156_v29  ;;  %v16012_v53 = vld [vmem:[#allocation14_spill] sm:$0xff] }
0x1d4d   :  { %v10083_v56 = vpop.f32.mrf.mxu1 }
0x1d4e   :  { %v15355_v57 = vadd.f32 %v16003_v6, %v7155_v59  ;;  %v7158_v48 = vmul.f32 0.35355338, %v10083_v56  ;;  %v16013_v6 = vld [vmem:[#allocation17_spill] sm:$0xff] }
0x1d4f   :  { %v7094_v1 = vpop.f32.mrf.mxu1 }
0x1d50   :  { %v7157_v21 = vmul.f32 0.35355338, %v7094_v1  ;;  %7191 = vmax.xlane.f32.xlu1 %v15352_v23  ;;  %7189 = vmax.xlane.f32.xlu0 %v15355_v57  ;;  %v15360_v41 = vadd.f32 %v16004_v8, %v7158_v48  ;;  %v16014_v8 = vld [vmem:[#allocation16_spill] sm:$0xff] }
0x1d51   :  { %v10086_v27 = vpop.f32.mrf.mxu1 }
0x1d52   :  { %v15363_v32 = vadd.f32 %v16005_v44, %v7157_v21  ;;  %v7160_v52 = vmul.f32 0.35355338, %v10086_v27 }
0x1d53   :  { %v7104_v61 = vpop.f32.mrf.mxu1 }
0x1d54   :  { %v7159_v5 = vmul.f32 0.35355338, %v7104_v61  ;;  %7195 = vmax.xlane.f32.xlu1 %v15360_v41  ;;  %7193 = vmax.xlane.f32.xlu0 %v15363_v32  ;;  %v15368_v9 = vadd.f32 %v16006_v45, %v7160_v52  ;;  %v16015_v61 = vld [vmem:[#allocation19_spill] sm:$0xff] }
0x1d56   :  { %v15371_v50 = vadd.f32 %v16007_v3, %v7159_v5  ;;  %v10089_v42 = vpop.f32.mrf.mxu1 }
0x1d57   :  { %v7162_v15 = vmul.f32 0.35355338, %v10089_v42 }
0x1d58   :  { %v7114_v10 = vpop.f32.mrf.mxu1  ;;  %7199 = vmax.xlane.f32.xlu1 %v15368_v9  ;;  %7197 = vmax.xlane.f32.xlu0 %v15371_v50 }
0x1d59   :  { %v7161_v12 = vmul.f32 0.35355338, %v7114_v10  ;;  %v15376_v22 = vadd.f32 %v16008_v35, %v7162_v15 }
0x1d5b   :  { %v15379_v11 = vadd.f32 %v16009_v47, %v7161_v12  ;;  %v10092_v7 = vpop.f32.mrf.mxu1 }
0x1d5c   :  { %v7164_v14 = vmul.f32 0.35355338, %v10092_v7  ;;  %7203 = vmax.xlane.f32.xlu1 %v15376_v22 }
0x1d5d   :  { %v7124_v54 = vpop.f32.mrf.mxu1  ;;  %7201 = vmax.xlane.f32.xlu0 %v15379_v11 }
0x1d5e   :  { %v15384_v51 = vadd.f32 %v16010_v20, %v7164_v14  ;;  %v7163_v0 = vmul.f32 0.35355338, %v7124_v54 }
0x1d60   :  { %v15387_v43 = vadd.f32 %v16011_v19, %v7163_v0  ;;  %v10095_v4 = vpop.f32.mrf.mxu1  ;;  %7207 = vmax.xlane.f32.xlu1 %v15384_v51 }
0x1d61   :  { %v7166_v55 = vmul.f32 0.35355338, %v10095_v4 }
0x1d62   :  { %v7134_v29 = vpop.f32.mrf.mxu1  ;;  %7205 = vmax.xlane.f32.xlu0 %v15387_v43 }
0x1d63   :  { %v15392_v59 = vadd.f32 %v16012_v53, %v7166_v55  ;;  %v7165_v56 = vmul.f32 0.35355338, %v7134_v29 }
0x1d65   :  { %v15395_v48 = vadd.f32 %v16013_v6, %v7165_v56  ;;  %v10098_v1 = vpop.f32.mrf.mxu1  ;;  %7211 = vmax.xlane.f32.xlu1 %v15392_v59 }
0x1d66   :  { %v7168_v21 = vmul.f32 0.35355338, %v10098_v1 }
0x1d67   :  { %v7144_v27 = vpop.f32.mrf.mxu1  ;;  %7209 = vmax.xlane.f32.xlu0 %v15395_v48 }
0x1d68   :  { %v15400_v44 = vadd.f32 %v16014_v8, %v7168_v21  ;;  %v7167_v52 = vmul.f32 0.35355338, %v7144_v27 }
0x1d6a   :  { %v15403_v5 = vadd.f32 %v16015_v61, %v7167_v52  ;;  %7215 = vmax.xlane.f32.xlu1 %v15400_v44 }
0x1d6c   :  { %7213 = vmax.xlane.f32.xlu0 %v15403_v5 }
0x1d7b   :  { %7337 = vrot.lane.b32.xlu1 %v13955_v31, %s10944_s14 }
0x1d7f   :  { %7333 = vrot.lane.b32.xlu1 %v13963_v58, %s10944_s14 }
0x1d82   :  { %7339 = vrot.lane.b32.xlu0 %v13959_v46, %s10944_s14 }
0x1d83   :  { %7329 = vrot.lane.b32.xlu1 %v13913_v49, %s10944_s14 }
0x1d86   :  { %7335 = vrot.lane.b32.xlu0 %v13967_v18, %s10944_s14 }
0x1d8a   :  { %7331 = vrot.lane.b32.xlu0 %v13973_v28, %s10944_s14 }
0x1dd3   :  { %v7188_v45 = vpop.xlane.xlu0 %7187 }
0x1dd4   :  { %v7218_v3 = vsub.f32 %v15344_v63, %v7188_v45 }
0x1dd5   :  { %v7186_v42 = vpop.xlane.xlu1 %7185 }
0x1dd6   :  { %v7235_v31 = vmul.f32 1.442695, %v7218_v3  ;;  %v7217_v15 = vsub.f32 %v15347_v36, %v7186_v42 }
0x1dd8   :  { %10811 = vpow2.f32 %v7235_v31  ;;  %v7233_v58 = vmul.f32 1.442695, %v7217_v15 }
0x1dd9   :  { %v7190_v10 = vpop.xlane.xlu0 %7189  ;;  %v7192_v46 = vpop.xlane.xlu1 %7191 }
0x1dda   :  { %10813 = vpow2.f32 %v7233_v58  ;;  %v7219_v49 = vsub.f32 %v15355_v57, %v7190_v10  ;;  %v7220_v12 = vsub.f32 %v15352_v23, %v7192_v46 }
0x1ddc   :  { %v7237_v18 = vmul.f32 1.442695, %v7219_v49  ;;  %v7239_v35 = vmul.f32 1.442695, %v7220_v12 }
0x1ddd   :  { %v7194_v47 = vpop.xlane.xlu0 %7193  ;;  %v7196_v28 = vpop.xlane.xlu1 %7195 }
0x1dde   :  { %10815 = vpow2.f32 %v7237_v18  ;;  %v7221_v63 = vsub.f32 %v15363_v32, %v7194_v47  ;;  %v7222_v7 = vsub.f32 %v15360_v41, %v7196_v28 }
0x1ddf   :  { %10817 = vpow2.f32 %v7239_v35 }
0x1de0   :  { %v7241_v36 = vmul.f32 1.442695, %v7221_v63  ;;  %v7243_v14 = vmul.f32 1.442695, %v7222_v7 }
0x1de1   :  { %v7198_v54 = vpop.xlane.xlu0 %7197  ;;  %v7200_v20 = vpop.xlane.xlu1 %7199 }
0x1de2   :  { %10819 = vpow2.f32 %v7241_v36  ;;  %v7223_v0 = vsub.f32 %v15371_v50, %v7198_v54  ;;  %v7224_v57 = vsub.f32 %v15368_v9, %v7200_v20 }
0x1de3   :  { %10821 = vpow2.f32 %v7243_v14 }
0x1de4   :  { %v7245_v23 = vmul.f32 1.442695, %v7223_v0  ;;  %v7247_v19 = vmul.f32 1.442695, %v7224_v57 }
0x1de5   :  { %v15427_v4 = vpop.eup %10811  ;;  %v7204_v55 = vpop.xlane.xlu1 %7203 }
0x1de6   :  { %10823 = vpow2.f32 %v7245_v23  ;;  %v7202_v32 = vpop.xlane.xlu0 %7201  ;;  %v7226_v41 = vsub.f32 %v15376_v22, %v7204_v55  ;;  %7267 = vadd.xlane.f32.xlu0 %v15427_v4  ;;  %v16016_v23 = vld [vmem:[#allocation27_spill] sm:$0xff]  ;;  %v16018_v55 = vld [vmem:[#allocation28_spill] sm:$0xff] }
0x1de7   :  { %v15431_v29 = vpop.eup %10813  ;;  %10825 = vpow2.f32 %v7247_v19  ;;  %v7225_v53 = vsub.f32 %v15379_v11, %v7202_v32  ;;  %v16017_v19 = vld [vmem:[#allocation26_spill] sm:$0xff]  ;;  %v16019_v32 = vld [vmem:[#allocation29_spill] sm:$0xff] }
0x1de8   :  { %v7251_v50 = vmul.f32 1.442695, %v7226_v41  ;;  %7265 = vadd.xlane.f32.xlu1 %v15431_v29  ;;  %v16020_v41 = vld [vmem:[#allocation30_spill] sm:$0xff] }
0x1de9   :  { %v7249_v9 = vmul.f32 1.442695, %v7225_v53  ;;  %v7208_v56 = vpop.xlane.xlu1 %7207 }
0x1dea   :  { %10827 = vpow2.f32 %v7251_v50  ;;  %v7228_v6 = vsub.f32 %v15384_v51, %v7208_v56 }
0x1deb   :  { %v15436_v1 = vpop.eup %10815  ;;  %10829 = vpow2.f32 %v7249_v9  ;;  %v7206_v21 = vpop.xlane.xlu0 %7205 }
0x1dec   :  { %v15438_v22 = vpop.eup %10817  ;;  %v7227_v27 = vsub.f32 %v15387_v43, %v7206_v21  ;;  %v7255_v8 = vmul.f32 1.442695, %v7228_v6  ;;  %7269 = vadd.xlane.f32.xlu1 %v15436_v1 }
0x1ded   :  { %7271 = vadd.xlane.f32.xlu0 %v15438_v22 }
0x1dee   :  { %v7253_v11 = vmul.f32 1.442695, %v7227_v27  ;;  %v7212_v52 = vpop.xlane.xlu1 %7211  ;;  %10831 = vpow2.f32 %v7255_v8 }
0x1def   :  { %v15443_v61 = vpop.eup %10819  ;;  %v7230_v51 = vsub.f32 %v15392_v59, %v7212_v52 }
0x1df0   :  { %v15446_v45 = vpop.eup %10821  ;;  %10833 = vpow2.f32 %v7253_v11  ;;  %v7210_v3 = vpop.xlane.xlu0 %7209  ;;  %7273 = vadd.xlane.f32.xlu1 %v15443_v61 }
0x1df1   :  { %v7229_v43 = vsub.f32 %v15395_v48, %v7210_v3  ;;  %v7259_v42 = vmul.f32 1.442695, %v7230_v51  ;;  %7275 = vadd.xlane.f32.xlu0 %v15446_v45 }
0x1df3   :  { %v15451_v31 = vpop.eup %10823  ;;  %v7257_v15 = vmul.f32 1.442695, %v7229_v43  ;;  %v7216_v58 = vpop.xlane.xlu1 %7215  ;;  %10835 = vpow2.f32 %v7259_v42 }
0x1df4   :  { %v15453_v10 = vpop.eup %10825  ;;  %v7232_v59 = vsub.f32 %v15400_v44, %v7216_v58  ;;  %7277 = vadd.xlane.f32.xlu1 %v15451_v31 }
0x1df5   :  { %10837 = vpow2.f32 %v7257_v15  ;;  %v7214_v46 = vpop.xlane.xlu0 %7213  ;;  %7279 = vadd.xlane.f32.xlu0 %v15453_v10 }
0x1df6   :  { %v7231_v48 = vsub.f32 %v15403_v5, %v7214_v46  ;;  %v7263_v49 = vmul.f32 1.442695, %v7232_v59 }
0x1df7   :  { %v15459_v12 = vpop.eup %10827  ;;  %v7338_v28 = vpop.permute.xlu1 %7337 }
0x1df8   :  { %v15461_v18 = vpop.eup %10829  ;;  %v7261_v35 = vmul.f32 1.442695, %v7231_v48  ;;  %10839 = vpow2.f32 %v7263_v49 }
0x1df9   :  { %v7340_v47 = vpop.permute.xlu0 %7339  ;;  %7281 = vadd.xlane.f32.xlu1 %v15461_v18  ;;  %7283 = vadd.xlane.f32.xlu0 %v15459_v12 }
0x1dfa   :  { %10841 = vpow2.f32 %v7261_v35  ;;  %10119 = vmatprep.subr.mxu0 %v7340_v47  ;;  %10197 = vmatprep.subr.mxu1 %v7340_v47 }
0x1dfb   :  { %10120 = vmatpush3.msra.mxu0 %v7340_v47  ;;  %10213 = vmatpush3.msra.mxu1 %v7340_v47  ;;  %v15465_v44 = vpop.eup %10831  ;;  %v7334_v7 = vpop.permute.xlu1 %7333 }
0x1dfc   :  { %10121 = vmatprep.subr.mxu0 %v7338_v28  ;;  %10198 = vmatprep.subr.mxu1 %v7338_v28 }
0x1dfd   :  { %v15467_v5 = vpop.eup %10833  ;;  %v7336_v63 = vpop.permute.xlu0 %7335  ;;  %10122 = vmatpush3.msra.mxu0 %v7338_v28  ;;  %10214 = vmatpush3.msra.mxu1 %v7338_v28 }
0x1dfe   :  { %10123 = vmatprep.subr.mxu0 %v7336_v63  ;;  %10199 = vmatprep.subr.mxu1 %v7336_v63 }
0x1dff   :  { %10124 = vmatpush3.msra.mxu0 %v7336_v63  ;;  %10215 = vmatpush3.msra.mxu1 %v7336_v63  ;;  %v7330_v20 = vpop.permute.xlu1 %7329 }
0x1e00   :  { %7285 = vadd.xlane.f32.xlu1 %v15467_v5  ;;  %7287 = vadd.xlane.f32.xlu0 %v15465_v44  ;;  %v15471_v36 = vpop.eup %10835 }
0x1e01   :  { %10125 = vmatprep.subr.mxu0 %v7334_v7  ;;  %10200 = vmatprep.subr.mxu1 %v7334_v7  ;;  %v7332_v14 = vpop.permute.xlu0 %7331 }
0x1e02   :  { %v15473_v54 = vpop.eup %10837  ;;  %10126 = vmatpush3.msra.mxu0 %v7334_v7  ;;  %10216 = vmatpush3.msra.mxu1 %v7334_v7 }
0x1e03   :  { %10127 = vmatprep.subr.mxu0 %v7332_v14  ;;  %10201 = vmatprep.subr.mxu1 %v7332_v14 }
0x1e04   :  { %10128 = vmatpush3.msra.mxu0 %v7332_v14  ;;  %10217 = vmatpush3.msra.mxu1 %v7332_v14 }
0x1e05   :  { %7289 = vadd.xlane.f32.xlu1 %v15473_v54  ;;  %7291 = vadd.xlane.f32.xlu0 %v15471_v36  ;;  %v15477_v0 = vpop.eup %10839 }
0x1e06   :  { %10129 = vmatprep.subr.mxu0 %v7330_v20  ;;  %10202 = vmatprep.subr.mxu1 %v7330_v20 }
0x1e07   :  { %v15479_v57 = vpop.eup %10841  ;;  %10130 = vmatpush3.msra.mxu0 %v7330_v20  ;;  %10218 = vmatpush3.msra.mxu1 %v7330_v20 }
0x1e09   :  { %7293 = vadd.xlane.f32.xlu1 %v15479_v57  ;;  %7295 = vadd.xlane.f32.xlu0 %v15477_v0 }
0x1e1a   :  { %7540 = vrot.lane.b32.xlu1 %v16016_v23, %s10945_s15 }
0x1e1e   :  { %7602 = vrot.lane.b32.xlu1 %v15313_v25, %s10946_s16  ;;  %v16021_v25 = vld [vmem:[#allocation31_spill] sm:$0xff] }
0x1e1f   :  { %7538 = vrot.lane.b32.xlu0 %v16017_v19, %s10945_s15 }
0x1e22   :  { %7542 = vrot.lane.b32.xlu1 %v16018_v55, %s10945_s15 }
0x1e23   :  { %7604 = vrot.lane.b32.xlu0 %v15311_v30, %s10946_s16  ;;  %v16022_v30 = vld [vmem:[#allocation32_spill] sm:$0xff] }
0x1e26   :  { %7606 = vrot.lane.b32.xlu1 %v15317_v17, %s10946_s16  ;;  %v16023_v17 = vld [vmem:[#allocation33_spill] sm:$0xff] }
0x1e27   :  { %7544 = vrot.lane.b32.xlu0 %v16019_v32, %s10945_s15 }
0x1e2a   :  { %7546 = vrot.lane.b32.xlu1 %v16020_v41, %s10945_s15 }
0x1e2b   :  { %7608 = vrot.lane.b32.xlu0 %v15315_v2, %s10946_s16  ;;  %v16024_v2 = vld [vmem:[#allocation34_spill] sm:$0xff] }
0x1e2e   :  { %7610 = vrot.lane.b32.xlu1 %v15321_v62, %s10946_s16  ;;  %v16025_v62 = vld [vmem:[#allocation35_spill] sm:$0xff] }
0x1e2f   :  { %7548 = vrot.lane.b32.xlu0 %v16021_v25, %s10945_s15 }
0x1e32   :  { %7550 = vrot.lane.b32.xlu1 %v16022_v30, %s10945_s15 }
0x1e33   :  { %7612 = vrot.lane.b32.xlu0 %v15319_v26, %s10946_s16  ;;  %v16026_v26 = vld [vmem:[#allocation36_spill] sm:$0xff] }
0x1e36   :  { %7614 = vrot.lane.b32.xlu1 %v15325_v34, %s10946_s16  ;;  %v16027_v34 = vld [vmem:[#allocation37_spill] sm:$0xff] }
0x1e37   :  { %7552 = vrot.lane.b32.xlu0 %v16023_v17, %s10945_s15 }
0x1e3a   :  { %7554 = vrot.lane.b32.xlu1 %v16024_v2, %s10945_s15 }
0x1e3b   :  { %7616 = vrot.lane.b32.xlu0 %v15323_v39, %s10946_s16  ;;  %v16028_v39 = vld [vmem:[#allocation38_spill] sm:$0xff] }
0x1e3e   :  { %7618 = vrot.lane.b32.xlu1 %v15329_v13, %s10946_s16  ;;  %v16029_v13 = vld [vmem:[#allocation39_spill] sm:$0xff] }
0x1e3f   :  { %7556 = vrot.lane.b32.xlu0 %v16025_v62, %s10945_s15 }
0x1e42   :  { %7558 = vrot.lane.b32.xlu1 %v16026_v26, %s10945_s15 }
0x1e43   :  { %7620 = vrot.lane.b32.xlu0 %v15327_v38, %s10946_s16  ;;  %v16030_v38 = vld [vmem:[#allocation40_spill] sm:$0xff] }
0x1e46   :  { %7622 = vrot.lane.b32.xlu1 %v15333_v40, %s10946_s16  ;;  %v16031_v40 = vld [vmem:[#allocation41_spill] sm:$0xff] }
0x1e47   :  { %7560 = vrot.lane.b32.xlu0 %v16027_v34, %s10945_s15 }
0x1e4a   :  { %7562 = vrot.lane.b32.xlu1 %v16028_v39, %s10945_s15 }
0x1e4b   :  { %7624 = vrot.lane.b32.xlu0 %v15331_v24, %s10946_s16 }
0x1e4e   :  { %7626 = vrot.lane.b32.xlu1 %v15337_v60, %s10946_s16 }
0x1e4f   :  { %7564 = vrot.lane.b32.xlu0 %v16029_v13, %s10945_s15 }
0x1e52   :  { %7566 = vrot.lane.b32.xlu1 %v16030_v38, %s10945_s15 }
0x1e53   :  { %7628 = vrot.lane.b32.xlu0 %v15335_v33, %s10946_s16 }
0x1e56   :  { %7630 = vrot.lane.b32.xlu1 %v15341_v37, %s10946_s16 }
0x1e57   :  { %7568 = vrot.lane.b32.xlu0 %v16031_v40, %s10945_s15 }
0x1e5b   :  { %7632 = vrot.lane.b32.xlu0 %v15339_v16, %s10946_s16 }
0x1e6f   :  { %v7268_v24 = vpop.xlane.xlu0 %7267 }
0x1e70   :  { %10843 = vrcp.f32 %v7268_v24 }
0x1e71   :  { %v7266_v60 = vpop.xlane.xlu1 %7265 }
0x1e72   :  { %10845 = vrcp.f32 %v7266_v60 }
0x1e75   :  { %v7270_v53 = vpop.xlane.xlu1 %7269 }
0x1e76   :  { %v7272_v50 = vpop.xlane.xlu0 %7271  ;;  %10847 = vrcp.f32 %v7270_v53 }
0x1e77   :  { %10849 = vrcp.f32 %v7272_v50 }
0x1e79   :  { %v7274_v9 = vpop.xlane.xlu1 %7273 }
0x1e7a   :  { %v7276_v56 = vpop.xlane.xlu0 %7275  ;;  %10851 = vrcp.f32 %v7274_v9 }
0x1e7b   :  { %10853 = vrcp.f32 %v7276_v56 }
0x1e7d   :  { %v7278_v33 = vpop.xlane.xlu1 %7277  ;;  %v10844_v37 = vpop.eup %10843 }
0x1e7e   :  { %v7280_v6 = vpop.xlane.xlu0 %7279  ;;  %10855 = vrcp.f32 %v7278_v33  ;;  %v7300_v27 = vmul.f32 %v10844_v37, %v15427_v4 }
0x1e7f   :  { %v10846_v21 = vpop.eup %10845  ;;  %10857 = vrcp.f32 %v7280_v6 }
0x1e80   :  { %v7298_v16 = vmul.f32 %v10846_v21, %v15431_v29 }
0x1e82   :  { %v7284_v8 = vpop.xlane.xlu0 %7283  ;;  %v7282_v11 = vpop.xlane.xlu1 %7281  ;;  %10131 = vmatprep.mubr.f32.mxu0 %v7298_v16 }
0x1e83   :  { %v10848_v52 = vpop.eup %10847  ;;  %10859 = vrcp.f32 %v7284_v8  ;;  %10132 = vmatmul.mubr.f32.vlgmr.msra.gmra.mxu0 %v7300_v27 }
0x1e84   :  { %v10850_v51 = vpop.eup %10849  ;;  %10861 = vrcp.f32 %v7282_v11  ;;  %v7302_v3 = vmul.f32 %v10848_v52, %v15436_v1 }
0x1e85   :  { %v7304_v43 = vmul.f32 %v10850_v51, %v15438_v22 }
0x1e86   :  { %10134 = vmatprep.mubr.f32.mxu0 %v7302_v3 }
0x1e87   :  { %v10852_v42 = vpop.eup %10851  ;;  %10135 = vmatmul.mubr.f32.gmra.mxu0 %v7304_v43 }
0x1e88   :  { %v10854_v15 = vpop.eup %10853  ;;  %v7306_v29 = vmul.f32 %v10852_v42, %v15443_v61 }
0x1e89   :  { %v7288_v58 = vpop.xlane.xlu0 %7287  ;;  %v7286_v4 = vpop.xlane.xlu1 %7285  ;;  %v7308_v59 = vmul.f32 %v10854_v15, %v15446_v45 }
0x1e8a   :  { %10863 = vrcp.f32 %v7288_v58  ;;  %10137 = vmatprep.mubr.f32.mxu0 %v7306_v29 }
0x1e8b   :  { %v10856_v46 = vpop.eup %10855  ;;  %10865 = vrcp.f32 %v7286_v4  ;;  %10138 = vmatmul.mubr.f32.gmra.mxu0 %v7308_v59 }
0x1e8c   :  { %v10858_v48 = vpop.eup %10857  ;;  %v7310_v1 = vmul.f32 %v10856_v46, %v15451_v31 }
0x1e8d   :  { %v7312_v22 = vmul.f32 %v10858_v48, %v15453_v10 }
0x1e8e   :  { %v7292_v49 = vpop.xlane.xlu0 %7291  ;;  %v7290_v35 = vpop.xlane.xlu1 %7289  ;;  %10140 = vmatprep.mubr.f32.mxu0 %v7310_v1 }
0x1e8f   :  { %10867 = vrcp.f32 %v7292_v49  ;;  %10141 = vmatmul.mubr.f32.gmra.mxu0 %v7312_v22 }
0x1e90   :  { %v10860_v61 = vpop.eup %10859  ;;  %10869 = vrcp.f32 %v7290_v35 }
0x1e91   :  { %v10862_v47 = vpop.eup %10861  ;;  %v7316_v45 = vmul.f32 %v10860_v61, %v15459_v12 }
0x1e92   :  { %v7296_v28 = vpop.xlane.xlu0 %7295  ;;  %v7294_v63 = vpop.xlane.xlu1 %7293  ;;  %v7314_v7 = vmul.f32 %v10862_v47, %v15461_v18 }
0x1e93   :  { %10871 = vrcp.f32 %v7296_v28 }
0x1e94   :  { %10873 = vrcp.f32 %v7294_v63  ;;  %10143 = vmatprep.mubr.f32.mxu0 %v7314_v7 }
0x1e95   :  { %10144 = vmatmul.mubr.f32.gmra.mxu0 %v7316_v45 }
0x1e96   :  { %v7539_v38 = vpop.permute.xlu0 %7538  ;;  %v7541_v40 = vpop.permute.xlu1 %7540 }
0x1e97   :  { %v10864_v31 = vpop.eup %10863 }
0x1e98   :  { %v10866_v10 = vpop.eup %10865  ;;  %v7320_v14 = vmul.f32 %v10864_v31, %v15465_v44  ;;  %v107_v44 = vld [vmem:[%s15734_s2 + $0xb8] sm:$0xff] }
0x1e99   :  { %v7318_v20 = vmul.f32 %v10866_v10, %v15467_v5  ;;  %v101_v5 = vld [vmem:[%s15734_s2 + $0x88] sm:$0xff]  ;;  %10155 = vmatprep.subr.mxu0 %v107_v44  ;;  %v16032_v10 = vld [vmem:[#allocation24_spill] sm:$0xff] }
0x1e9a   :  { %10156 = vmatpush3.msra.mxu0 %v107_v44  ;;  %v7605_v60 = vpop.permute.xlu0 %7604  ;;  %v7603_v50 = vpop.permute.xlu1 %7602 }
0x1e9b   :  { %10146 = vmatprep.mubr.f32.mxu0 %v7318_v20  ;;  %10157 = vmatprep.subr.mxu0 %v101_v5  ;;  %v16033_v20 = vld [vmem:[#allocation22_spill] sm:$0xff] }
0x1e9c   :  { %v10868_v23 = vpop.eup %10867  ;;  %10147 = vmatmul.mubr.f32.gmra.mxu0 %v7320_v14  ;;  %v7714_v14 = vsel %vm605_vm1, %v16032_v10, %v7539_v38 }
0x1e9d   :  { %v10870_v19 = vpop.eup %10869  ;;  %v7324_v12 = vmul.f32 %v10868_v23, %v15471_v36  ;;  %v95_v36 = vld [vmem:[%s15734_s2 + $0x58] sm:$0xff]  ;;  %10158 = vmatpush3.msra.mxu0 %v101_v5  ;;  %v7715_v23 = vsel %vm605_vm1, %v16033_v20, %v7541_v40  ;;  %v16035_v5 = vld [vmem:[#allocation25_spill] sm:$0xff] }
0x1e9e   :  { %v7322_v55 = vmul.f32 %v10870_v19, %v15473_v54  ;;  %v89_v54 = vld [vmem:[%s15734_s2 + $0x28] sm:$0xff]  ;;  %10159 = vmatprep.subr.mxu0 %v95_v36  ;;  %v7545_v33 = vpop.permute.xlu0 %7544  ;;  %v7543_v6 = vpop.permute.xlu1 %7542  ;;  %v7730_v19 = vsel %vm3318_vm2, %v7714_v14, %v7603_v50 }
0x1e9f   :  { %10160 = vmatpush3.msra.mxu0 %v95_v36  ;;  %v7717_v36 = vsel %vm605_vm1, %v16035_v5, %v7545_v33 }
0x1ea0   :  { %v10872_v32 = vpop.eup %10871  ;;  %10149 = vmatprep.mubr.f32.mxu0 %v7322_v55  ;;  %10161 = vmatprep.subr.mxu0 %v89_v54  ;;  %v7731_v55 = vsel %vm3318_vm2, %v7715_v23, %v7605_v60 }
0x1ea1   :  { %v10874_v18 = vpop.eup %10873  ;;  %v7328_v41 = vmul.f32 %v10872_v32, %v15477_v0  ;;  %10150 = vmatmul.mubr.f32.gmra.mxu0 %v7324_v12 }
0x1ea2   :  { %v7326_v25 = vmul.f32 %v10874_v18, %v15479_v57  ;;  %10162 = vmatpush3.msra.mxu0 %v89_v54  ;;  %v7609_v16 = vpop.permute.xlu0 %7608  ;;  %v7607_v27 = vpop.permute.xlu1 %7606 }
0x1ea4   :  { %10152 = vmatprep.mubr.f32.mxu1 %v7326_v25  ;;  %v16034_v25 = vld [vmem:[#allocation23_spill] sm:$0xff] }
0x1ea5   :  { %10153 = vmatmul.mubr.f32.vlgmr.msra.gmra.mxu1 %v7328_v41  ;;  %v7716_v44 = vsel %vm605_vm1, %v16034_v25, %v7543_v6 }
0x1ea6   :  { %v7549_v8 = vpop.permute.xlu0 %7548  ;;  %v7547_v11 = vpop.permute.xlu1 %7546  ;;  %v7732_v54 = vsel %vm3318_vm2, %v7716_v44, %v7607_v27 }
0x1eaa   :  { %v7613_v52 = vpop.permute.xlu0 %7612  ;;  %v7611_v51 = vpop.permute.xlu1 %7610 }
0x1eae   :  { %v7553_v3 = vpop.permute.xlu0 %7552  ;;  %v7551_v43 = vpop.permute.xlu1 %7550 }
0x1eb2   :  { %v7617_v42 = vpop.permute.xlu0 %7616  ;;  %v7615_v15 = vpop.permute.xlu1 %7614 }
0x1eb6   :  { %v7557_v29 = vpop.permute.xlu0 %7556  ;;  %v7555_v58 = vpop.permute.xlu1 %7554 }
0x1eba   :  { %v7621_v4 = vpop.permute.xlu0 %7620  ;;  %v7619_v59 = vpop.permute.xlu1 %7618 }
0x1ebe   :  { %v15591_v46 = vpop.permute.xlu0 %7560  ;;  %v15593_v48 = vpop.permute.xlu1 %7558 }
0x1ec2   :  { %v15595_v1 = vpop.permute.xlu0 %7624  ;;  %v15597_v22 = vpop.permute.xlu1 %7622 }
0x1ec6   :  { %v15599_v49 = vpop.permute.xlu0 %7564  ;;  %v15601_v35 = vpop.permute.xlu1 %7562 }
0x1eca   :  { %v15603_v61 = vpop.permute.xlu0 %7628  ;;  %v15605_v47 = vpop.permute.xlu1 %7626 }
0x1ece   :  { %v15607_v45 = vpop.permute.xlu0 %7568  ;;  %v15609_v28 = vpop.permute.xlu1 %7566 }
0x1ed2   :  { %v15611_v63 = vpop.permute.xlu0 %7632  ;;  %v15613_v7 = vpop.permute.xlu1 %7630 }
0x1f43   :  { %v10133_v0 = vpop.f32.mrf.mxu0 }
0x1f44   :  { %7668 = vrot.lane.b32.xlu0 %v10133_v0, %s10947_s30 }
0x1f45   :  { %v7443_v57 = vpop.f32.mrf.mxu0 }
0x1f46   :  { %7666 = vrot.lane.b32.xlu1 %v7443_v57, %s10947_s30  ;;  %v7733_v57 = vsel %vm3318_vm2, %v7717_v36, %v7609_v16  ;;  %v16046_v36 = vld [vmem:[#allocation52_spill] sm:$0xff] }
0x1f47   :  { %v10136_v30 = vpop.f32.mrf.mxu0 }
0x1f48   :  { %7672 = vrot.lane.b32.xlu0 %v10136_v30, %s10947_s30 }
0x1f49   :  { %v7453_v17 = vpop.f32.mrf.mxu0 }
0x1f4a   :  { %7670 = vrot.lane.b32.xlu1 %v7453_v17, %s10947_s30 }
0x1f4b   :  { %v10139_v2 = vpop.f32.mrf.mxu0 }
0x1f4c   :  { %7676 = vrot.lane.b32.xlu0 %v10139_v2, %s10947_s30 }
0x1f4d   :  { %v7463_v62 = vpop.f32.mrf.mxu0 }
0x1f4e   :  { %7674 = vrot.lane.b32.xlu1 %v7463_v62, %s10947_s30  ;;  %v16036_v62 = vld [vmem:[#allocation42_spill] sm:$0xff] }
0x1f4f   :  { %v10142_v26 = vpop.f32.mrf.mxu0 }
0x1f50   :  { %7680 = vrot.lane.b32.xlu0 %v10142_v26, %s10947_s30  ;;  %v7718_v26 = vsel %vm605_vm1, %v16036_v62, %v7547_v11 }
0x1f51   :  { %v7473_v34 = vpop.f32.mrf.mxu0 }
0x1f52   :  { %7678 = vrot.lane.b32.xlu1 %v7473_v34, %s10947_s30  ;;  %v16037_v34 = vld [vmem:[#allocation43_spill] sm:$0xff] }
0x1f55   :  { %v10145_v39 = vpop.f32.mrf.mxu0 }
0x1f56   :  { %7684 = vrot.lane.b32.xlu0 %v10145_v39, %s10947_s30  ;;  %v7719_v39 = vsel %vm605_vm1, %v16037_v34, %v7549_v8  ;;  %v16040_v8 = vld [vmem:[#allocation46_spill] sm:$0xff] }
0x1f57   :  { %v7483_v13 = vpop.f32.mrf.mxu0  ;;  %v7735_v40 = vsel %vm3318_vm2, %v7719_v39, %v7613_v52  ;;  %v7722_v11 = vsel %vm605_vm1, %v16040_v8, %v7555_v58  ;;  %v16042_v58 = vld [vmem:[#allocation48_spill] sm:$0xff] }
0x1f58   :  { %7682 = vrot.lane.b32.xlu1 %v7483_v13, %s10947_s30  ;;  %v7734_v13 = vsel %vm3318_vm2, %v7718_v26, %v7611_v51  ;;  %v16041_v51 = vld [vmem:[#allocation47_spill] sm:$0xff]  ;;  %v7724_v20 = vsel %vm605_vm1, %v16042_v58, %v15593_v48  ;;  %v16044_v48 = vld [vmem:[#allocation50_spill] sm:$0xff] }
0x1f5c   :  { %v10148_v24 = vpop.f32.mrf.mxu0 }
0x1f5d   :  { %7688 = vrot.lane.b32.xlu0 %v10148_v24, %s10947_s30 }
0x1f5e   :  { %v7493_v53 = vpop.f32.mrf.mxu0 }
0x1f5f   :  { %7686 = vrot.lane.b32.xlu1 %v7493_v53, %s10947_s30  ;;  %v16038_v53 = vld [vmem:[#allocation44_spill] sm:$0xff] }
0x1f60   :  { %v7720_v50 = vsel %vm605_vm1, %v16038_v53, %v7551_v43  ;;  %v7738_v43 = vsel %vm3318_vm2, %v7722_v11, %v7619_v59 }
0x1f61   :  { %v10151_v9 = vpop.f32.mrf.mxu0 }
0x1f62   :  { %7692 = vrot.lane.b32.xlu0 %v10151_v9, %s10947_s30 }
0x1f63   :  { %v7503_v56 = vpop.f32.mrf.mxu0 }
0x1f64   :  { %7690 = vrot.lane.b32.xlu1 %v7503_v56, %s10947_s30  ;;  %v16039_v56 = vld [vmem:[#allocation45_spill] sm:$0xff] }
0x1f65   :  { %v10154_v37 = vpop.f32.mrf.mxu1  ;;  %v7721_v33 = vsel %vm605_vm1, %v16039_v56, %v7553_v3  ;;  %v7723_v3 = vsel %vm605_vm1, %v16041_v51, %v7557_v29  ;;  %v16043_v29 = vld [vmem:[#allocation49_spill] sm:$0xff] }
0x1f66   :  { %7696 = vrot.lane.b32.xlu0 %v10154_v37, %s10947_s30  ;;  %v7736_v37 = vsel %vm3318_vm2, %v7720_v50, %v7615_v15  ;;  %v7725_v59 = vsel %vm605_vm1, %v16043_v29, %v15591_v46  ;;  %v7726_v46 = vsel %vm605_vm1, %v16044_v48, %v15601_v35  ;;  %v7728_v35 = vsel %vm605_vm1, %v16046_v36, %v15609_v28  ;;  %v10911_v28 = vld [vmem:[%s15735_s3 + $0x8] sm:$0xf]  ;;  %s10948_s3 = smov [#allocation2]  }
0x1f67   :  { %v7513_v21 = vpop.f32.mrf.mxu1  ;;  %s7980_s24 = sshll.u32 %s10948_s3, 4  ;;  %s7981_s24 = int_to_ptr.vmem [resolvable:$true] %s7980_s24 }
0x1f68   :  { %7694 = vrot.lane.b32.xlu1 %v7513_v21, %s10947_s30  ;;  %v7737_v21 = vsel %vm3318_vm2, %v7721_v33, %v7617_v42  ;;  %v7739_v42 = vsel %vm3318_vm2, %v7723_v3, %v7621_v4  ;;  %v7740_v4 = vsel %vm3318_vm2, %v7724_v20, %v15597_v22  ;;  %s10912_s25 = scalar_lea.vmem %s7981_s24, 2048  ;;  %p10917_p1 = scmp.lt.s32.totalorder %s7981_s24, %s7981_s24 }
0x1f69   :  { %p10913_p0 = scmp.ne.s32.totalorder %s7981_s24, %s10912_s25  ;;  %p10918_p2 = scmp.lt.s32.totalorder %s10912_s25, %s10912_s25 }
0x1f6b   :  { %p10919_p3 = por %p10918_p2, %p10917_p1 }
0x1f6d   :  { %p10920_p4 = pnand %p10919_p3, %p10913_p0 }
0x1fb6   :  { %v7669_v31 = vpop.permute.xlu0 %7668 }
0x1fb7   :  { %v7747_v18 = vsel %vm3335_vm3, %v7731_v55, %v7669_v31 }
0x1fb8   :  { %v7667_v12 = vpop.permute.xlu1 %7666 }
0x1fb9   :  { %v7746_v32 = vsel %vm3335_vm3, %v7730_v19, %v7667_v12  ;;  %v7741_v19 = vsel %vm3318_vm2, %v7725_v59, %v15595_v1  ;;  %v7742_v1 = vsel %vm3318_vm2, %v7726_v46, %v15605_v47 }
0x1fba   :  { %v7673_v41 = vpop.permute.xlu0 %7672  ;;  %10163 = vmatprep.mubr.msk.f32.mxu0 %vm110_vm0, %v7746_v32 }
0x1fbb   :  { %10164 = vmatmul.mubr.msk.f32.vlgmr.msra.gmra.mxu0 %vm110_vm0, %v7747_v18  ;;  %v7749_v17 = vsel %vm3335_vm3, %v7733_v57, %v7673_v41  ;;  %v16045_v18 = vld [vmem:[#allocation51_spill] sm:$0xff] }
0x1fbc   :  { %v7671_v0 = vpop.permute.xlu1 %7670  ;;  %v7727_v22 = vsel %vm605_vm1, %v16045_v18, %v15599_v49  ;;  %v16047_v49 = vld [vmem:[#allocation53_spill] sm:$0xff] }
0x1fbd   :  { %v7748_v30 = vsel %vm3335_vm3, %v7732_v54, %v7671_v0  ;;  %v7743_v25 = vsel %vm3318_vm2, %v7727_v22, %v15603_v61  ;;  %v7729_v47 = vsel %vm605_vm1, %v16047_v49, %v15607_v45  ;;  %v7744_v61 = vsel %vm3318_vm2, %v7728_v35, %v15613_v7  ;;  %v16048_v45 = vld [vmem:[#allocation5_spill] sm:$0xff] }
0x1fbe   :  { %v7677_v2 = vpop.permute.xlu0 %7676  ;;  %10166 = vmatprep.mubr.msk.f32.mxu0 %vm110_vm0, %v7748_v30  ;;  %v7745_v57 = vsel %vm3318_vm2, %v7729_v47, %v15611_v63 }
0x1fbf   :  { %10167 = vmatmul.mubr.msk.f32.gmra.mxu0 %vm110_vm0, %v7749_v17  ;;  %v7751_v60 = vsel %vm3335_vm3, %v7735_v40, %v7677_v2  ;;  %v16049_v2 = vsub.s32 0, %v16048_v45 }
0x1fc0   :  { %v7675_v38 = vpop.permute.xlu1 %7674 }
0x1fc1   :  { %v7750_v24 = vsel %vm3335_vm3, %v7734_v13, %v7675_v38  ;;  %v7765_v62 = vrot.slane %v10911_v28, %v16049_v2 }
0x1fc2   :  { %10169 = vmatprep.mubr.msk.f32.mxu0 %vm110_vm0, %v7750_v24  ;;  %v7681_v9 = vpop.permute.xlu0 %7680 }
0x1fc3   :  { %10170 = vmatmul.mubr.msk.f32.gmra.mxu0 %vm110_vm0, %v7751_v60  ;;  %v7753_v27 = vsel %vm3335_vm3, %v7737_v21, %v7681_v9 }
0x1fc4   :  { %v7679_v6 = vpop.permute.xlu1 %7678 }
0x1fc5   :  { %v7752_v16 = vsel %vm3335_vm3, %v7736_v37, %v7679_v6 }
0x1fc6   :  { %10172 = vmatprep.mubr.msk.f32.mxu0 %vm110_vm0, %v7752_v16 }
0x1fc7   :  { %10173 = vmatmul.mubr.msk.f32.gmra.mxu0 %vm110_vm0, %v7753_v27 }
0x1fc8   :  { %v7685_v52 = vpop.permute.xlu0 %7684 }
0x1fc9   :  { %v7755_v10 = vsel %vm3335_vm3, %v7739_v42, %v7685_v52 }
0x1fca   :  { %v7683_v15 = vpop.permute.xlu1 %7682 }
0x1fcb   :  { %v7754_v31 = vsel %vm3335_vm3, %v7738_v43, %v7683_v15 }
0x1fcc   :  { %10175 = vmatprep.mubr.msk.f32.mxu0 %vm110_vm0, %v7754_v31 }
0x1fcd   :  { %10176 = vmatmul.mubr.msk.f32.gmra.mxu0 %vm110_vm0, %v7755_v10 }
0x1fcf   :  { %v7689_v14 = vpop.permute.xlu0 %7688 }
0x1fd0   :  { %v7757_v55 = vsel %vm3335_vm3, %v7741_v19, %v7689_v14 }
0x1fd1   :  { %v7687_v23 = vpop.permute.xlu1 %7686 }
0x1fd2   :  { %v7756_v12 = vsel %vm3335_vm3, %v7740_v4, %v7687_v23 }
0x1fd3   :  { %10178 = vmatprep.mubr.msk.f32.mxu0 %vm110_vm0, %v7756_v12 }
0x1fd4   :  { %v7693_v32 = vpop.permute.xlu0 %7692  ;;  %10179 = vmatmul.mubr.msk.f32.gmra.mxu0 %vm110_vm0, %v7757_v55 }
0x1fd5   :  { %v7759_v5 = vsel %vm3335_vm3, %v7743_v25, %v7693_v32 }
0x1fd6   :  { %v7691_v41 = vpop.permute.xlu1 %7690 }
0x1fd7   :  { %v7758_v44 = vsel %vm3335_vm3, %v7742_v1, %v7691_v41 }
0x1fd8   :  { %10181 = vmatprep.mubr.msk.f32.mxu0 %vm110_vm0, %v7758_v44  ;;  %v7697_v54 = vpop.permute.xlu0 %7696 }
0x1fd9   :  { %10182 = vmatmul.mubr.msk.f32.gmra.mxu0 %vm110_vm0, %v7759_v5  ;;  %v7761_v17 = vsel %vm3335_vm3, %v7745_v57, %v7697_v54 }
0x1fda   :  { %v7695_v0 = vpop.permute.xlu1 %7694 }
0x1fdb   :  { %v7760_v30 = vsel %vm3335_vm3, %v7744_v61, %v7695_v0 }
0x1fdc   :  { %10184 = vmatprep.mubr.msk.f32.mxu0 %vm110_vm0, %v7760_v30 }
0x1fdd   :  { %10185 = vmatmul.mubr.msk.f32.gmra.mxu0 %vm110_vm0, %v7761_v17 }
0x207b   :  { %v10165_v7 = vpop.f32.mrf.mxu0 }
0x207c   :  { %v7886_v26 = vadd.f32 %v10165_v7, %v7765_v62 }
0x207d   :  { %v7880_v34 = vpop.f32.mrf.mxu0 }
0x207e   :  { %7960 = vst.msk [vmem:[#allocation2 + $0x8] sm:$0xff] %vm110_vm0, %v7886_v26  ;;  %v7881_v63 = vadd.f32 %v7880_v34, %v7765_v62 }
0x207f   :  { %v10168_v39 = vpop.f32.mrf.mxu0 }
0x2080   :  { %7959 = vst.msk [vmem:[#allocation2] sm:$0xff] %vm110_vm0, %v7881_v63  ;;  %v7896_v13 = vadd.f32 %v10168_v39, %v7765_v62 }
0x2081   :  { %v7890_v38 = vpop.f32.mrf.mxu0 }
0x2082   :  { %7962 = vst.msk [vmem:[#allocation2 + $0x18] sm:$0xff] %vm110_vm0, %v7896_v13  ;;  %v7891_v40 = vadd.f32 %v7890_v38, %v7765_v62 }
0x2083   :  { %v10171_v24 = vpop.f32.mrf.mxu0 }
0x2084   :  { %7961 = vst.msk [vmem:[#allocation2 + $0x10] sm:$0xff] %vm110_vm0, %v7891_v40  ;;  %v7906_v60 = vadd.f32 %v10171_v24, %v7765_v62 }
0x2085   :  { %v7900_v53 = vpop.f32.mrf.mxu0 }
0x2086   :  { %7964 = vst.msk [vmem:[#allocation2 + $0x28] sm:$0xff] %vm110_vm0, %v7906_v60  ;;  %v7901_v50 = vadd.f32 %v7900_v53, %v7765_v62 }
0x2087   :  { %v10174_v9 = vpop.f32.mrf.mxu0 }
0x2088   :  { %7963 = vst.msk [vmem:[#allocation2 + $0x20] sm:$0xff] %vm110_vm0, %v7901_v50  ;;  %v7916_v56 = vadd.f32 %v10174_v9, %v7765_v62 }
0x2089   :  { %v7910_v33 = vpop.f32.mrf.mxu0 }
0x208a   :  { %7966 = vst.msk [vmem:[#allocation2 + $0x38] sm:$0xff] %vm110_vm0, %v7916_v56  ;;  %v7911_v37 = vadd.f32 %v7910_v33, %v7765_v62 }
0x208c   :  { %7965 = vst.msk [vmem:[#allocation2 + $0x30] sm:$0xff] %vm110_vm0, %v7911_v37 }
0x208d   :  { %v10177_v6 = vpop.f32.mrf.mxu0 }
0x208e   :  { %v7926_v21 = vadd.f32 %v10177_v6, %v7765_v62 }
0x208f   :  { %v7920_v16 = vpop.f32.mrf.mxu0 }
0x2090   :  { %7968 = vst.msk [vmem:[#allocation2 + $0x48] sm:$0xff] %vm110_vm0, %v7926_v21  ;;  %v7921_v27 = vadd.f32 %v7920_v16, %v7765_v62 }
0x2092   :  { %7967 = vst.msk [vmem:[#allocation2 + $0x40] sm:$0xff] %vm110_vm0, %v7921_v27 }
0x2094   :  { %v10180_v8 = vpop.f32.mrf.mxu0 }
0x2095   :  { %v7936_v11 = vadd.f32 %v10180_v8, %v7765_v62 }
0x2096   :  { %v7930_v52 = vpop.f32.mrf.mxu0 }
0x2097   :  { %7970 = vst.msk [vmem:[#allocation2 + $0x58] sm:$0xff] %vm110_vm0, %v7936_v11  ;;  %v7931_v51 = vadd.f32 %v7930_v52, %v7765_v62 }
0x2099   :  { %7969 = vst.msk [vmem:[#allocation2 + $0x50] sm:$0xff] %vm110_vm0, %v7931_v51  ;;  %v10183_v3 = vpop.f32.mrf.mxu0 }
0x209a   :  { %v7946_v43 = vadd.f32 %v10183_v3, %v7765_v62 }
0x209b   :  { %v7940_v15 = vpop.f32.mrf.mxu0 }
0x209c   :  { %7972 = vst.msk [vmem:[#allocation2 + $0x68] sm:$0xff] %vm110_vm0, %v7946_v43  ;;  %v7941_v42 = vadd.f32 %v7940_v15, %v7765_v62 }
0x209d   :  { %v10186_v31 = vpop.f32.mrf.mxu0 }
0x209e   :  { %7971 = vst.msk [vmem:[#allocation2 + $0x60] sm:$0xff] %vm110_vm0, %v7941_v42  ;;  %v7956_v10 = vadd.f32 %v10186_v31, %v7765_v62 }
0x209f   :  { %v7950_v14 = vpop.f32.mrf.mxu0 }
0x20a0   :  { %7974 = vst.msk [vmem:[#allocation2 + $0x78] sm:$0xff] %vm110_vm0, %v7956_v10  ;;  %v7951_v58 = vadd.f32 %v7950_v14, %v7765_v62 }
0x20a2   :  { %7973 = vst.msk [vmem:[#allocation2 + $0x70] sm:$0xff] %vm110_vm0, %v7951_v58 }
0x20a3   :  { %10923 = shalt.err (!%p10920_p4)
}
0x20a4   :  { %s10949_s26 = smov 128  }
0x20a5   :  { %7986 = dma.vmem_to_hbm [thread:$0]  %s7981_s24, 2048, %s15736_s4, [#allocation3], %s10949_s26, %s10949_s26, %s10945_s15  }
0x20a6   :  { %10932 = dma.done.wait [#allocation3], 2048  }
0x20a7   :  { %10933 = vsyncadd [#allocation3], 4294965248 }
0x20a8   :  { %7990 = vsyncpa [#allocation3], 1 }

</bundles_post_ra>
